<compile_context>
chip_gen: v5e
topology: v5e:2x2
jax: 0.10.0
libtpu: 0.0.40
codegen_flags: <defaults>
</compile_context>

<pallas_src>
import functools
import math

import jax
import jax.numpy as jnp
import numpy as np
from jax.experimental import pallas as pl
from jax.experimental.pallas import tpu as pltpu


def _round_up(x, m):
    return ((x + m - 1) // m) * m


# ----------------------------- Pallas kernel -------------------------------


def _globalnet_kernel(
    x_ref,                   # (N, Dp)      N = B*S, Dp = pad(d_model, 128)
    wqkv_ref,                # (Dp, 3*H*HDp) fused QKV, per-head 128-aligned slots
    bqkv_ref,                # (1, 3*H*HDp)
    wo_ref,                  # (H, HDp, Dp)  per-head output-projection blocks
    bo_ref,                  # (1, Dp)
    ln1_g_ref, ln1_b_ref,    # (1, Dp)
    w1_ref, b1_ref,          # (Dp, FFp), (1, FFp)
    w2_ref, b2_ref,          # (FFp, Dp), (1, Dp)
    ln2_g_ref, ln2_b_ref,    # (1, Dp)
    wfc_ref, bfc_ref,        # (Dp, Dp), (1, Dp)
    bias_ref,                # (N, N)  0 within a batch element, -1e30 across
    pool_ref,                # (B, N)  mean-pool matrix (1/S on own rows)
    out_ref,                 # (B, Dp)
    *,
    nhead: int,
    num_layers: int,
    d_model: int,
    d_k: int,
):
    HDp = wo_ref.shape[1]            # per-head padded lane width (128)
    scale = 1.0 / math.sqrt(d_k)
    inv_d = 1.0 / d_model

    # Hoist parameter reads out of the unrolled, weight-shared layer loop
    # (JAX does not CSE broadcast_in_dim / repeated loads).
    wqkv = wqkv_ref[...]
    bqkv = bqkv_ref[...]
    bo = bo_ref[...]
    ln1_g, ln1_b = ln1_g_ref[...], ln1_b_ref[...]
    w1, b1 = w1_ref[...], b1_ref[...]
    w2, b2 = w2_ref[...], b2_ref[...]
    ln2_g, ln2_b = ln2_g_ref[...], ln2_b_ref[...]
    attn_bias = bias_ref[...]
    wo_heads = [wo_ref[h] for h in range(nhead)]

    def layer_norm(v, g, b):
        # Padded lanes of v are zero, so full-width sums equal sums over the
        # d_model valid lanes; gamma/beta are zero-padded so output stays zero
        # in the padded lanes.
        mu = jnp.sum(v, axis=-1, keepdims=True) * inv_d
        var = jnp.sum(v * v, axis=-1, keepdims=True) * inv_d - mu * mu
        return (v - mu) * jax.lax.rsqrt(var + 1e-5) * g + b

    src = x_ref[...]
    # num_layers is tiny (2) -> static unroll is fine; switch to lax.fori_loop
    # if it ever grows large.
    for _ in range(num_layers):
        qkv = jnp.dot(src, wqkv, preferred_element_type=jnp.float32) + bqkv

        attn = None
        for h in range(nhead):
            q_h = qkv[:, h * HDp:(h + 1) * HDp]
            k_h = qkv[:, (nhead + h) * HDp:(nhead + h + 1) * HDp]
            v_h = qkv[:, (2 * nhead + h) * HDp:(2 * nhead + h + 1) * HDp]
            s = jax.lax.dot_general(
                q_h, k_h, (((1,), (1,)), ((), ())),
                preferred_element_type=jnp.float32) * scale + attn_bias
            s = s - jnp.max(s, axis=-1, keepdims=True)
            p = jnp.exp(s)
            p = p * pl.reciprocal(jnp.sum(p, axis=-1, keepdims=True), approx=True)
            ctx = jnp.dot(p, v_h, preferred_element_type=jnp.float32)
            contrib = jnp.dot(ctx, wo_heads[h], preferred_element_type=jnp.float32)
            attn = contrib if attn is None else attn + contrib

        src = layer_norm(src + attn + bo, ln1_g, ln1_b)

        h1 = jnp.maximum(jnp.dot(src, w1, preferred_element_type=jnp.float32) + b1, 0.0)
        ff = jnp.dot(h1, w2, preferred_element_type=jnp.float32) + b2
        src = layer_norm(src + ff, ln2_g, ln2_b)

    pooled = jnp.dot(pool_ref[...], src, preferred_element_type=jnp.float32)   # (B, Dp)
    out_ref[...] = (
        jnp.dot(pooled, wfc_ref[...], preferred_element_type=jnp.float32) + bfc_ref[...]
    )


# ------------------------------- wrapper ------------------------------------


def _pad_params(params, *, nhead, d_pad, hd_pad, ff_pad):
    """Zero-pad weights to a lane-dense layout (done once, on host/XLA)."""
    p = params
    D = p["wq"].shape[0]
    dk = D // nhead
    f32 = jnp.float32

    wqkv = jnp.zeros((d_pad, 3 * nhead * hd_pad), f32)
    bqkv = jnp.zeros((1, 3 * nhead * hd_pad), f32)
    for i, (w_name, b_name) in enumerate((("wq", "bq"), ("wk", "bk"), ("wv", "bv"))):
        w, b = p[w_name], p[b_name]
        for h in range(nhead):
            off = (i * nhead + h) * hd_pad
            wqkv = wqkv.at[:D, off:off + dk].set(w[:, h * dk:(h + 1) * dk])
            bqkv = bqkv.at[:, off:off + dk].set(b[:, h * dk:(h + 1) * dk])

    wo = jnp.zeros((nhead, hd_pad, d_pad), f32)
    for h in range(nhead):
        wo = wo.at[h, :dk, :D].set(p["wo"][h * dk:(h + 1) * dk, :])

    def pad2(w, r, c):
        return jnp.zeros((r, c), f32).at[:w.shape[0], :w.shape[1]].set(w)

    return dict(
        wqkv=wqkv, bqkv=bqkv, wo=wo,
        bo=pad2(p["bo"], 1, d_pad),
        ln1_g=pad2(p["ln1_g"], 1, d_pad), ln1_b=pad2(p["ln1_b"], 1, d_pad),
        w1=pad2(p["w1"], d_pad, ff_pad), b1=pad2(p["b1"], 1, ff_pad),
        w2=pad2(p["w2"], ff_pad, d_pad), b2=pad2(p["b2"], 1, d_pad),
        ln2_g=pad2(p["ln2_g"], 1, d_pad), ln2_b=pad2(p["ln2_b"], 1, d_pad),
        wfc=pad2(p["wfc"], d_pad, d_pad), bfc=pad2(p["bfc"], 1, d_pad),
    )


def globalnet_forward(tokens, params, *, nhead, num_layers):
    """tokens: (B, S) int32 ; returns (B, D) float32."""
    emb = params["embedding"]                 # (V, D)
    B, S = tokens.shape
    D = emb.shape[1]
    dk = D // nhead
    FF = params["w1"].shape[1]
    Dp = _round_up(D, 128)
    HDp = _round_up(dk, 128)
    FFp = _round_up(FF, 128)
    N = B * S

    # glue: embedding lookup + sinusoidal positional encoding
    x = jnp.take(emb, tokens, axis=0)                         # (B, S, D)
    pos = jnp.arange(S, dtype=jnp.float32)[:, None]
    div = jnp.exp(jnp.arange(0, D, 2, dtype=jnp.float32) * (-math.log(10000.0) / D))
    pe = jnp.zeros((S, D), jnp.float32)
    pe = pe.at[:, 0::2].set(jnp.sin(pos * div))
    pe = pe.at[:, 1::2].set(jnp.cos(pos * div))
    x = x + pe[None]

    # fold batch -> one lane-dense (B*S, Dp) slab, zero-padded lanes
    x_pad = jnp.zeros((N, Dp), jnp.float32).at[:, :D].set(x.reshape(N, D))

    pp = _pad_params(params, nhead=nhead, d_pad=Dp, hd_pad=HDp, ff_pad=FFp)

    # block-diagonal attention bias (keeps attention scoped per batch element)
    row_b = jnp.arange(N, dtype=jnp.int32) // S
    attn_bias = jnp.where(
        row_b[:, None] == row_b[None, :], 0.0, -1e30).astype(jnp.float32)
    # mean-pool matrix: pooled[b] = mean over that batch element's S rows
    pool = (row_b[None, :] == jnp.arange(B, dtype=jnp.int32)[:, None]
            ).astype(jnp.float32) / S

    args = (
        x_pad, pp["wqkv"], pp["bqkv"], pp["wo"], pp["bo"],
        pp["ln1_g"], pp["ln1_b"], pp["w1"], pp["b1"], pp["w2"], pp["b2"],
        pp["ln2_g"], pp["ln2_b"], pp["wfc"], pp["bfc"], attn_bias, pool,
    )

    out = pl.pallas_call(
        functools.partial(_globalnet_kernel, nhead=nhead, num_layers=num_layers,
                          d_model=D, d_k=dk),
        out_shape=jax.ShapeDtypeStruct((B, Dp), jnp.float32),
        in_specs=[pl.BlockSpec(memory_space=pltpu.MemorySpace.VMEM)
                  for _ in range(len(args))],
        out_specs=pl.BlockSpec(memory_space=pltpu.MemorySpace.VMEM),
    )(*args)
    return out[:, :D]                                          # (B, D)


# --------------------------- pure-JAX reference ------------------------------


def globalnet_reference(tokens, params, *, nhead, num_layers):
    emb = params["embedding"]
    B, S = tokens.shape
    D = emb.shape[1]
    dk = D // nhead

    x = jnp.take(emb, tokens, axis=0)
    pos = jnp.arange(S, dtype=jnp.float32)[:, None]
    div = jnp.exp(jnp.arange(0, D, 2, dtype=jnp.float32) * (-math.log(10000.0) / D))
    pe = jnp.zeros((S, D), jnp.float32)
    pe = pe.at[:, 0::2].set(jnp.sin(pos * div))
    pe = pe.at[:, 1::2].set(jnp.cos(pos * div))
    x = x + pe[None]

    def ln(v, g, b):
        mu = jnp.mean(v, axis=-1, keepdims=True)
        var = jnp.mean((v - mu) ** 2, axis=-1, keepdims=True)
        return (v - mu) / jnp.sqrt(var + 1e-5) * g + b

    p = params
    src = x
    for _ in range(num_layers):
        q = (src @ p["wq"] + p["bq"]).reshape(B, S, nhead, dk).transpose(0, 2, 1, 3)
        k = (src @ p["wk"] + p["bk"]).reshape(B, S, nhead, dk).transpose(0, 2, 1, 3)
        v = (src @ p["wv"] + p["bv"]).reshape(B, S, nhead, dk).transpose(0, 2, 1, 3)
        scores = jnp.einsum("bhqd,bhkd->bhqk", q, k) / math.sqrt(dk)
        attn = jax.nn.softmax(scores, axis=-1)
        ctx = jnp.einsum("bhqk,bhkd->bhqd", attn, v).transpose(0, 2, 1, 3).reshape(B, S, D)
        src2 = ctx @ p["wo"] + p["bo"]
        src = ln(src + src2, p["ln1_g"], p["ln1_b"])
        h1 = jax.nn.relu(src @ p["w1"] + p["b1"])
        src2 = h1 @ p["w2"] + p["b2"]
        src = ln(src + src2, p["ln2_g"], p["ln2_b"])
    pooled = jnp.mean(src, axis=1)
    return pooled @ p["wfc"] + p["bfc"][0]


# --------------------------------- main --------------------------------------


def make_params(key, vocab_size, d_model, dim_feedforward):
    keys = jax.random.split(key, 10)
    s = 0.02
    D, FF = d_model, dim_feedforward
    params = {
        "embedding": jax.random.normal(keys[0], (vocab_size, D), jnp.float32) * s,
        "wq": jax.random.normal(keys[1], (D, D), jnp.float32) * s,
        "bq": jnp.zeros((1, D), jnp.float32),
        "wk": jax.random.normal(keys[2], (D, D), jnp.float32) * s,
        "bk": jnp.zeros((1, D), jnp.float32),
        "wv": jax.random.normal(keys[3], (D, D), jnp.float32) * s,
        "bv": jnp.zeros((1, D), jnp.float32),
        "wo": jax.random.normal(keys[4], (D, D), jnp.float32) * s,
        "bo": jnp.zeros((1, D), jnp.float32),
        "ln1_g": jnp.ones((1, D), jnp.float32),
        "ln1_b": jnp.zeros((1, D), jnp.float32),
        "w1": jax.random.normal(keys[5], (D, FF), jnp.float32) * s,
        "b1": jnp.zeros((1, FF), jnp.float32),
        "w2": jax.random.normal(keys[6], (FF, D), jnp.float32) * s,
        "b2": jnp.zeros((1, D), jnp.float32),
        "ln2_g": jnp.ones((1, D), jnp.float32),
        "ln2_b": jnp.zeros((1, D), jnp.float32),
        "wfc": jax.random.normal(keys[7], (D, D), jnp.float32) * s,
        "bfc": jnp.zeros((1, D), jnp.float32),
    }
    return params


if __name__ == "__main__":
    vocab_size = 100
    d_model = 32
    nhead = 4
    num_layers = 2
    dim_feedforward = 2048   # PyTorch default used by EncoderLayer(d_model, nhead)
    B, S = 2, 8

    key = jax.random.PRNGKey(0)
    pkey, tkey = jax.random.split(key)
    params = make_params(pkey, vocab_size, d_model, dim_feedforward)
    tokens = jax.random.randint(tkey, (B, S), 0, vocab_size, dtype=jnp.int32)

    out = globalnet_forward(tokens, params, nhead=nhead, num_layers=num_layers)
    out = jax.block_until_ready(out)

    ref = globalnet_reference(tokens, params, nhead=nhead, num_layers=num_layers)
    ref = jax.block_until_ready(ref)

    assert out.shape == (B, d_model)
    np.testing.assert_allclose(np.asarray(out), np.asarray(ref), atol=2e-3, rtol=2e-3)
    print("KERNEL_OK")
</pallas_src>

<mosaic_0001>
module attributes {stable_mosaic.version = 11 : i64} {
  func.func @_globalnet_kernel(%arg0: memref<16x128xf32, #tpu.memory_space<vmem>>, %arg1: memref<128x1536xf32, #tpu.memory_space<vmem>>, %arg2: memref<1x1536xf32, #tpu.memory_space<vmem>>, %arg3: memref<4x128x128xf32, #tpu.memory_space<vmem>>, %arg4: memref<1x128xf32, #tpu.memory_space<vmem>>, %arg5: memref<1x128xf32, #tpu.memory_space<vmem>>, %arg6: memref<1x128xf32, #tpu.memory_space<vmem>>, %arg7: memref<128x2048xf32, #tpu.memory_space<vmem>>, %arg8: memref<1x2048xf32, #tpu.memory_space<vmem>>, %arg9: memref<2048x128xf32, #tpu.memory_space<vmem>>, %arg10: memref<1x128xf32, #tpu.memory_space<vmem>>, %arg11: memref<1x128xf32, #tpu.memory_space<vmem>>, %arg12: memref<1x128xf32, #tpu.memory_space<vmem>>, %arg13: memref<128x128xf32, #tpu.memory_space<vmem>>, %arg14: memref<1x128xf32, #tpu.memory_space<vmem>>, %arg15: memref<16x16xf32, #tpu.memory_space<vmem>>, %arg16: memref<2x16xf32, #tpu.memory_space<vmem>>, %arg17: memref<2x128xf32, #tpu.memory_space<vmem>>) attributes {dimension_semantics = [], scalar_prefetch = 0 : i64, scratch_operands = 0 : i64, tpu.core_type = #tpu.core_type<tc>} {
    %c0 = arith.constant 0 : index
    %c0_0 = arith.constant 0 : index
    %0 = vector.load %arg1[%c0, %c0_0] : memref<128x1536xf32, #tpu.memory_space<vmem>>, vector<128x1536xf32>
    %c0_1 = arith.constant 0 : index
    %c0_2 = arith.constant 0 : index
    %1 = vector.load %arg2[%c0_1, %c0_2] : memref<1x1536xf32, #tpu.memory_space<vmem>>, vector<1x1536xf32>
    %c0_3 = arith.constant 0 : index
    %c0_4 = arith.constant 0 : index
    %2 = vector.load %arg4[%c0_3, %c0_4] : memref<1x128xf32, #tpu.memory_space<vmem>>, vector<1x128xf32>
    %c0_5 = arith.constant 0 : index
    %c0_6 = arith.constant 0 : index
    %3 = vector.load %arg5[%c0_5, %c0_6] : memref<1x128xf32, #tpu.memory_space<vmem>>, vector<1x128xf32>
    %c0_7 = arith.constant 0 : index
    %c0_8 = arith.constant 0 : index
    %4 = vector.load %arg6[%c0_7, %c0_8] : memref<1x128xf32, #tpu.memory_space<vmem>>, vector<1x128xf32>
    %c0_9 = arith.constant 0 : index
    %c0_10 = arith.constant 0 : index
    %5 = vector.load %arg7[%c0_9, %c0_10] : memref<128x2048xf32, #tpu.memory_space<vmem>>, vector<128x2048xf32>
    %c0_11 = arith.constant 0 : index
    %c0_12 = arith.constant 0 : index
    %6 = vector.load %arg8[%c0_11, %c0_12] : memref<1x2048xf32, #tpu.memory_space<vmem>>, vector<1x2048xf32>
    %c0_13 = arith.constant 0 : index
    %c0_14 = arith.constant 0 : index
    %7 = vector.load %arg9[%c0_13, %c0_14] : memref<2048x128xf32, #tpu.memory_space<vmem>>, vector<2048x128xf32>
    %c0_15 = arith.constant 0 : index
    %c0_16 = arith.constant 0 : index
    %8 = vector.load %arg10[%c0_15, %c0_16] : memref<1x128xf32, #tpu.memory_space<vmem>>, vector<1x128xf32>
    %c0_17 = arith.constant 0 : index
    %c0_18 = arith.constant 0 : index
    %9 = vector.load %arg11[%c0_17, %c0_18] : memref<1x128xf32, #tpu.memory_space<vmem>>, vector<1x128xf32>
    %c0_19 = arith.constant 0 : index
    %c0_20 = arith.constant 0 : index
    %10 = vector.load %arg12[%c0_19, %c0_20] : memref<1x128xf32, #tpu.memory_space<vmem>>, vector<1x128xf32>
    %c0_21 = arith.constant 0 : index
    %c0_22 = arith.constant 0 : index
    %11 = vector.load %arg15[%c0_21, %c0_22] : memref<16x16xf32, #tpu.memory_space<vmem>>, vector<16x16xf32>
    %c0_23 = arith.constant 0 : index
    %c0_24 = arith.constant 0 : index
    %c0_25 = arith.constant 0 : index
    %12 = vector.load %arg3[%c0_23, %c0_24, %c0_25] : memref<4x128x128xf32, #tpu.memory_space<vmem>>, vector<1x128x128xf32>
    %13 = vector.shape_cast %12 : vector<1x128x128xf32> to vector<128x128xf32>
    %c1 = arith.constant 1 : index
    %c0_26 = arith.constant 0 : index
    %c0_27 = arith.constant 0 : index
    %14 = vector.load %arg3[%c1, %c0_26, %c0_27] : memref<4x128x128xf32, #tpu.memory_space<vmem>>, vector<1x128x128xf32>
    %15 = vector.shape_cast %14 : vector<1x128x128xf32> to vector<128x128xf32>
    %c2 = arith.constant 2 : index
    %c0_28 = arith.constant 0 : index
    %c0_29 = arith.constant 0 : index
    %16 = vector.load %arg3[%c2, %c0_28, %c0_29] : memref<4x128x128xf32, #tpu.memory_space<vmem>>, vector<1x128x128xf32>
    %17 = vector.shape_cast %16 : vector<1x128x128xf32> to vector<128x128xf32>
    %c3 = arith.constant 3 : index
    %c0_30 = arith.constant 0 : index
    %c0_31 = arith.constant 0 : index
    %18 = vector.load %arg3[%c3, %c0_30, %c0_31] : memref<4x128x128xf32, #tpu.memory_space<vmem>>, vector<1x128x128xf32>
    %19 = vector.shape_cast %18 : vector<1x128x128xf32> to vector<128x128xf32>
    %c0_32 = arith.constant 0 : index
    %c0_33 = arith.constant 0 : index
    %20 = vector.load %arg0[%c0_32, %c0_33] : memref<16x128xf32, #tpu.memory_space<vmem>>, vector<16x128xf32>
    %cst = arith.constant dense<0.000000e+00> : vector<16x1536xf32>
    %21 = tpu.matmul %20, %0, %cst {dimension_numbers = #tpu.dot_dimension_numbers<[1], [0], [0], [1], [0, 0, 1, 1], [], []>} : vector<16x128xf32>, vector<128x1536xf32>, vector<16x1536xf32> -> vector<16x1536xf32>
    %22 = vector.broadcast %1 : vector<1x1536xf32> to vector<16x1536xf32>
    %23 = arith.addf %21, %22 : vector<16x1536xf32>
    %24 = vector.extract_strided_slice %23 {offsets = [0, 0], sizes = [16, 128], strides = [1, 1]} : vector<16x1536xf32> to vector<16x128xf32>
    %25 = vector.extract_strided_slice %23 {offsets = [0, 512], sizes = [16, 128], strides = [1, 1]} : vector<16x1536xf32> to vector<16x128xf32>
    %26 = vector.extract_strided_slice %23 {offsets = [0, 1024], sizes = [16, 128], strides = [1, 1]} : vector<16x1536xf32> to vector<16x128xf32>
    %cst_34 = arith.constant dense<0.000000e+00> : vector<16x16xf32>
    %27 = tpu.matmul %24, %25, %cst_34 {dimension_numbers = #tpu.dot_dimension_numbers<[1], [1], [0], [0], [0, 0, 1, 0], [], []>} : vector<16x128xf32>, vector<16x128xf32>, vector<16x16xf32> -> vector<16x16xf32>
    %cst_35 = arith.constant 0.353553385 : f32
    %28 = vector.broadcast %cst_35 : f32 to vector<16x16xf32>
    %29 = arith.mulf %27, %28 : vector<16x16xf32>
    %30 = arith.addf %29, %11 : vector<16x16xf32>
    %cst_36 = arith.constant dense<0xFF800000> : vector<16xf32>
    %31 = vector.multi_reduction <maximumf>, %30, %cst_36 [1] : vector<16x16xf32> to vector<16xf32>
    %32 = vector.shape_cast %31 : vector<16xf32> to vector<16x1xf32>
    %33 = vector.broadcast %32 : vector<16x1xf32> to vector<16x16xf32>
    %34 = arith.subf %30, %33 : vector<16x16xf32>
    %35 = math.exp %34 : vector<16x16xf32>
    %cst_37 = arith.constant dense<0.000000e+00> : vector<16xf32>
    %36 = vector.multi_reduction <add>, %35, %cst_37 [1] : vector<16x16xf32> to vector<16xf32>
    %37 = vector.shape_cast %36 : vector<16xf32> to vector<16x1xf32>
    %38 = tpu.reciprocal %37 {approx = true} : vector<16x1xf32> -> vector<16x1xf32>
    %39 = vector.broadcast %38 : vector<16x1xf32> to vector<16x16xf32>
    %40 = arith.mulf %35, %39 : vector<16x16xf32>
    %cst_38 = arith.constant dense<0.000000e+00> : vector<16x128xf32>
    %41 = tpu.matmul %40, %26, %cst_38 {dimension_numbers = #tpu.dot_dimension_numbers<[1], [0], [0], [1], [0, 0, 1, 1], [], []>} : vector<16x16xf32>, vector<16x128xf32>, vector<16x128xf32> -> vector<16x128xf32>
    %cst_39 = arith.constant dense<0.000000e+00> : vector<16x128xf32>
    %42 = tpu.matmul %41, %13, %cst_39 {dimension_numbers = #tpu.dot_dimension_numbers<[1], [0], [0], [1], [0, 0, 1, 1], [], []>} : vector<16x128xf32>, vector<128x128xf32>, vector<16x128xf32> -> vector<16x128xf32>
    %43 = vector.extract_strided_slice %23 {offsets = [0, 128], sizes = [16, 128], strides = [1, 1]} : vector<16x1536xf32> to vector<16x128xf32>
    %44 = vector.extract_strided_slice %23 {offsets = [0, 640], sizes = [16, 128], strides = [1, 1]} : vector<16x1536xf32> to vector<16x128xf32>
    %45 = vector.extract_strided_slice %23 {offsets = [0, 1152], sizes = [16, 128], strides = [1, 1]} : vector<16x1536xf32> to vector<16x128xf32>
    %cst_40 = arith.constant dense<0.000000e+00> : vector<16x16xf32>
    %46 = tpu.matmul %43, %44, %cst_40 {dimension_numbers = #tpu.dot_dimension_numbers<[1], [1], [0], [0], [0, 0, 1, 0], [], []>} : vector<16x128xf32>, vector<16x128xf32>, vector<16x16xf32> -> vector<16x16xf32>
    %cst_41 = arith.constant 0.353553385 : f32
    %47 = vector.broadcast %cst_41 : f32 to vector<16x16xf32>
    %48 = arith.mulf %46, %47 : vector<16x16xf32>
    %49 = arith.addf %48, %11 : vector<16x16xf32>
    %cst_42 = arith.constant dense<0xFF800000> : vector<16xf32>
    %50 = vector.multi_reduction <maximumf>, %49, %cst_42 [1] : vector<16x16xf32> to vector<16xf32>
    %51 = vector.shape_cast %50 : vector<16xf32> to vector<16x1xf32>
    %52 = vector.broadcast %51 : vector<16x1xf32> to vector<16x16xf32>
    %53 = arith.subf %49, %52 : vector<16x16xf32>
    %54 = math.exp %53 : vector<16x16xf32>
    %cst_43 = arith.constant dense<0.000000e+00> : vector<16xf32>
    %55 = vector.multi_reduction <add>, %54, %cst_43 [1] : vector<16x16xf32> to vector<16xf32>
    %56 = vector.shape_cast %55 : vector<16xf32> to vector<16x1xf32>
    %57 = tpu.reciprocal %56 {approx = true} : vector<16x1xf32> -> vector<16x1xf32>
    %58 = vector.broadcast %57 : vector<16x1xf32> to vector<16x16xf32>
    %59 = arith.mulf %54, %58 : vector<16x16xf32>
    %cst_44 = arith.constant dense<0.000000e+00> : vector<16x128xf32>
    %60 = tpu.matmul %59, %45, %cst_44 {dimension_numbers = #tpu.dot_dimension_numbers<[1], [0], [0], [1], [0, 0, 1, 1], [], []>} : vector<16x16xf32>, vector<16x128xf32>, vector<16x128xf32> -> vector<16x128xf32>
    %cst_45 = arith.constant dense<0.000000e+00> : vector<16x128xf32>
    %61 = tpu.matmul %60, %15, %cst_45 {dimension_numbers = #tpu.dot_dimension_numbers<[1], [0], [0], [1], [0, 0, 1, 1], [], []>} : vector<16x128xf32>, vector<128x128xf32>, vector<16x128xf32> -> vector<16x128xf32>
    %62 = arith.addf %42, %61 : vector<16x128xf32>
    %63 = vector.extract_strided_slice %23 {offsets = [0, 256], sizes = [16, 128], strides = [1, 1]} : vector<16x1536xf32> to vector<16x128xf32>
    %64 = vector.extract_strided_slice %23 {offsets = [0, 768], sizes = [16, 128], strides = [1, 1]} : vector<16x1536xf32> to vector<16x128xf32>
    %65 = vector.extract_strided_slice %23 {offsets = [0, 1280], sizes = [16, 128], strides = [1, 1]} : vector<16x1536xf32> to vector<16x128xf32>
    %cst_46 = arith.constant dense<0.000000e+00> : vector<16x16xf32>
    %66 = tpu.matmul %63, %64, %cst_46 {dimension_numbers = #tpu.dot_dimension_numbers<[1], [1], [0], [0], [0, 0, 1, 0], [], []>} : vector<16x128xf32>, vector<16x128xf32>, vector<16x16xf32> -> vector<16x16xf32>
    %cst_47 = arith.constant 0.353553385 : f32
    %67 = vector.broadcast %cst_47 : f32 to vector<16x16xf32>
    %68 = arith.mulf %66, %67 : vector<16x16xf32>
    %69 = arith.addf %68, %11 : vector<16x16xf32>
    %cst_48 = arith.constant dense<0xFF800000> : vector<16xf32>
    %70 = vector.multi_reduction <maximumf>, %69, %cst_48 [1] : vector<16x16xf32> to vector<16xf32>
    %71 = vector.shape_cast %70 : vector<16xf32> to vector<16x1xf32>
    %72 = vector.broadcast %71 : vector<16x1xf32> to vector<16x16xf32>
    %73 = arith.subf %69, %72 : vector<16x16xf32>
    %74 = math.exp %73 : vector<16x16xf32>
    %cst_49 = arith.constant dense<0.000000e+00> : vector<16xf32>
    %75 = vector.multi_reduction <add>, %74, %cst_49 [1] : vector<16x16xf32> to vector<16xf32>
    %76 = vector.shape_cast %75 : vector<16xf32> to vector<16x1xf32>
    %77 = tpu.reciprocal %76 {approx = true} : vector<16x1xf32> -> vector<16x1xf32>
    %78 = vector.broadcast %77 : vector<16x1xf32> to vector<16x16xf32>
    %79 = arith.mulf %74, %78 : vector<16x16xf32>
    %cst_50 = arith.constant dense<0.000000e+00> : vector<16x128xf32>
    %80 = tpu.matmul %79, %65, %cst_50 {dimension_numbers = #tpu.dot_dimension_numbers<[1], [0], [0], [1], [0, 0, 1, 1], [], []>} : vector<16x16xf32>, vector<16x128xf32>, vector<16x128xf32> -> vector<16x128xf32>
    %cst_51 = arith.constant dense<0.000000e+00> : vector<16x128xf32>
    %81 = tpu.matmul %80, %17, %cst_51 {dimension_numbers = #tpu.dot_dimension_numbers<[1], [0], [0], [1], [0, 0, 1, 1], [], []>} : vector<16x128xf32>, vector<128x128xf32>, vector<16x128xf32> -> vector<16x128xf32>
    %82 = arith.addf %62, %81 : vector<16x128xf32>
    %83 = vector.extract_strided_slice %23 {offsets = [0, 384], sizes = [16, 128], strides = [1, 1]} : vector<16x1536xf32> to vector<16x128xf32>
    %84 = vector.extract_strided_slice %23 {offsets = [0, 896], sizes = [16, 128], strides = [1, 1]} : vector<16x1536xf32> to vector<16x128xf32>
    %85 = vector.extract_strided_slice %23 {offsets = [0, 1408], sizes = [16, 128], strides = [1, 1]} : vector<16x1536xf32> to vector<16x128xf32>
    %cst_52 = arith.constant dense<0.000000e+00> : vector<16x16xf32>
    %86 = tpu.matmul %83, %84, %cst_52 {dimension_numbers = #tpu.dot_dimension_numbers<[1], [1], [0], [0], [0, 0, 1, 0], [], []>} : vector<16x128xf32>, vector<16x128xf32>, vector<16x16xf32> -> vector<16x16xf32>
    %cst_53 = arith.constant 0.353553385 : f32
    %87 = vector.broadcast %cst_53 : f32 to vector<16x16xf32>
    %88 = arith.mulf %86, %87 : vector<16x16xf32>
    %89 = arith.addf %88, %11 : vector<16x16xf32>
    %cst_54 = arith.constant dense<0xFF800000> : vector<16xf32>
    %90 = vector.multi_reduction <maximumf>, %89, %cst_54 [1] : vector<16x16xf32> to vector<16xf32>
    %91 = vector.shape_cast %90 : vector<16xf32> to vector<16x1xf32>
    %92 = vector.broadcast %91 : vector<16x1xf32> to vector<16x16xf32>
    %93 = arith.subf %89, %92 : vector<16x16xf32>
    %94 = math.exp %93 : vector<16x16xf32>
    %cst_55 = arith.constant dense<0.000000e+00> : vector<16xf32>
    %95 = vector.multi_reduction <add>, %94, %cst_55 [1] : vector<16x16xf32> to vector<16xf32>
    %96 = vector.shape_cast %95 : vector<16xf32> to vector<16x1xf32>
    %97 = tpu.reciprocal %96 {approx = true} : vector<16x1xf32> -> vector<16x1xf32>
    %98 = vector.broadcast %97 : vector<16x1xf32> to vector<16x16xf32>
    %99 = arith.mulf %94, %98 : vector<16x16xf32>
    %cst_56 = arith.constant dense<0.000000e+00> : vector<16x128xf32>
    %100 = tpu.matmul %99, %85, %cst_56 {dimension_numbers = #tpu.dot_dimension_numbers<[1], [0], [0], [1], [0, 0, 1, 1], [], []>} : vector<16x16xf32>, vector<16x128xf32>, vector<16x128xf32> -> vector<16x128xf32>
    %cst_57 = arith.constant dense<0.000000e+00> : vector<16x128xf32>
    %101 = tpu.matmul %100, %19, %cst_57 {dimension_numbers = #tpu.dot_dimension_numbers<[1], [0], [0], [1], [0, 0, 1, 1], [], []>} : vector<16x128xf32>, vector<128x128xf32>, vector<16x128xf32> -> vector<16x128xf32>
    %102 = arith.addf %82, %101 : vector<16x128xf32>
    %103 = arith.addf %20, %102 : vector<16x128xf32>
    %104 = vector.broadcast %2 : vector<1x128xf32> to vector<16x128xf32>
    %105 = arith.addf %103, %104 : vector<16x128xf32>
    %cst_58 = arith.constant dense<0.000000e+00> : vector<16xf32>
    %106 = vector.multi_reduction <add>, %105, %cst_58 [1] : vector<16x128xf32> to vector<16xf32>
    %107 = vector.shape_cast %106 : vector<16xf32> to vector<16x1xf32>
    %cst_59 = arith.constant 3.125000e-02 : f32
    %108 = vector.broadcast %cst_59 : f32 to vector<16x1xf32>
    %109 = arith.mulf %107, %108 : vector<16x1xf32>
    %110 = arith.mulf %105, %105 : vector<16x128xf32>
    %cst_60 = arith.constant dense<0.000000e+00> : vector<16xf32>
    %111 = vector.multi_reduction <add>, %110, %cst_60 [1] : vector<16x128xf32> to vector<16xf32>
    %112 = vector.shape_cast %111 : vector<16xf32> to vector<16x1xf32>
    %cst_61 = arith.constant 3.125000e-02 : f32
    %113 = vector.broadcast %cst_61 : f32 to vector<16x1xf32>
    %114 = arith.mulf %112, %113 : vector<16x1xf32>
    %115 = arith.mulf %109, %109 : vector<16x1xf32>
    %116 = arith.subf %114, %115 : vector<16x1xf32>
    %117 = vector.broadcast %109 : vector<16x1xf32> to vector<16x128xf32>
    %118 = arith.subf %105, %117 : vector<16x128xf32>
    %cst_62 = arith.constant 9.99999974E-6 : f32
    %119 = vector.broadcast %cst_62 : f32 to vector<16x1xf32>
    %120 = arith.addf %116, %119 : vector<16x1xf32>
    %121 = math.rsqrt %120 : vector<16x1xf32>
    %122 = vector.broadcast %121 : vector<16x1xf32> to vector<16x128xf32>
    %123 = arith.mulf %118, %122 : vector<16x128xf32>
    %124 = vector.broadcast %3 : vector<1x128xf32> to vector<16x128xf32>
    %125 = arith.mulf %123, %124 : vector<16x128xf32>
    %126 = vector.broadcast %4 : vector<1x128xf32> to vector<16x128xf32>
    %127 = arith.addf %125, %126 : vector<16x128xf32>
    %cst_63 = arith.constant dense<0.000000e+00> : vector<16x2048xf32>
    %128 = tpu.matmul %127, %5, %cst_63 {dimension_numbers = #tpu.dot_dimension_numbers<[1], [0], [0], [1], [0, 0, 1, 1], [], []>} : vector<16x128xf32>, vector<128x2048xf32>, vector<16x2048xf32> -> vector<16x2048xf32>
    %129 = vector.broadcast %6 : vector<1x2048xf32> to vector<16x2048xf32>
    %130 = arith.addf %128, %129 : vector<16x2048xf32>
    %cst_64 = arith.constant 0.000000e+00 : f32
    %131 = vector.broadcast %cst_64 : f32 to vector<16x2048xf32>
    %132 = arith.maximumf %130, %131 : vector<16x2048xf32>
    %cst_65 = arith.constant dense<0.000000e+00> : vector<16x128xf32>
    %133 = tpu.matmul %132, %7, %cst_65 {dimension_numbers = #tpu.dot_dimension_numbers<[1], [0], [0], [1], [0, 0, 1, 1], [], []>} : vector<16x2048xf32>, vector<2048x128xf32>, vector<16x128xf32> -> vector<16x128xf32>
    %134 = vector.broadcast %8 : vector<1x128xf32> to vector<16x128xf32>
    %135 = arith.addf %133, %134 : vector<16x128xf32>
    %136 = arith.addf %127, %135 : vector<16x128xf32>
    %cst_66 = arith.constant dense<0.000000e+00> : vector<16xf32>
    %137 = vector.multi_reduction <add>, %136, %cst_66 [1] : vector<16x128xf32> to vector<16xf32>
    %138 = vector.shape_cast %137 : vector<16xf32> to vector<16x1xf32>
    %cst_67 = arith.constant 3.125000e-02 : f32
    %139 = vector.broadcast %cst_67 : f32 to vector<16x1xf32>
    %140 = arith.mulf %138, %139 : vector<16x1xf32>
    %141 = arith.mulf %136, %136 : vector<16x128xf32>
    %cst_68 = arith.constant dense<0.000000e+00> : vector<16xf32>
    %142 = vector.multi_reduction <add>, %141, %cst_68 [1] : vector<16x128xf32> to vector<16xf32>
    %143 = vector.shape_cast %142 : vector<16xf32> to vector<16x1xf32>
    %cst_69 = arith.constant 3.125000e-02 : f32
    %144 = vector.broadcast %cst_69 : f32 to vector<16x1xf32>
    %145 = arith.mulf %143, %144 : vector<16x1xf32>
    %146 = arith.mulf %140, %140 : vector<16x1xf32>
    %147 = arith.subf %145, %146 : vector<16x1xf32>
    %148 = vector.broadcast %140 : vector<16x1xf32> to vector<16x128xf32>
    %149 = arith.subf %136, %148 : vector<16x128xf32>
    %cst_70 = arith.constant 9.99999974E-6 : f32
    %150 = vector.broadcast %cst_70 : f32 to vector<16x1xf32>
    %151 = arith.addf %147, %150 : vector<16x1xf32>
    %152 = math.rsqrt %151 : vector<16x1xf32>
    %153 = vector.broadcast %152 : vector<16x1xf32> to vector<16x128xf32>
    %154 = arith.mulf %149, %153 : vector<16x128xf32>
    %155 = vector.broadcast %9 : vector<1x128xf32> to vector<16x128xf32>
    %156 = arith.mulf %154, %155 : vector<16x128xf32>
    %157 = vector.broadcast %10 : vector<1x128xf32> to vector<16x128xf32>
    %158 = arith.addf %156, %157 : vector<16x128xf32>
    %cst_71 = arith.constant dense<0.000000e+00> : vector<16x1536xf32>
    %159 = tpu.matmul %158, %0, %cst_71 {dimension_numbers = #tpu.dot_dimension_numbers<[1], [0], [0], [1], [0, 0, 1, 1], [], []>} : vector<16x128xf32>, vector<128x1536xf32>, vector<16x1536xf32> -> vector<16x1536xf32>
    %160 = vector.broadcast %1 : vector<1x1536xf32> to vector<16x1536xf32>
    %161 = arith.addf %159, %160 : vector<16x1536xf32>
    %162 = vector.extract_strided_slice %161 {offsets = [0, 0], sizes = [16, 128], strides = [1, 1]} : vector<16x1536xf32> to vector<16x128xf32>
    %163 = vector.extract_strided_slice %161 {offsets = [0, 512], sizes = [16, 128], strides = [1, 1]} : vector<16x1536xf32> to vector<16x128xf32>
    %164 = vector.extract_strided_slice %161 {offsets = [0, 1024], sizes = [16, 128], strides = [1, 1]} : vector<16x1536xf32> to vector<16x128xf32>
    %cst_72 = arith.constant dense<0.000000e+00> : vector<16x16xf32>
    %165 = tpu.matmul %162, %163, %cst_72 {dimension_numbers = #tpu.dot_dimension_numbers<[1], [1], [0], [0], [0, 0, 1, 0], [], []>} : vector<16x128xf32>, vector<16x128xf32>, vector<16x16xf32> -> vector<16x16xf32>
    %cst_73 = arith.constant 0.353553385 : f32
    %166 = vector.broadcast %cst_73 : f32 to vector<16x16xf32>
    %167 = arith.mulf %165, %166 : vector<16x16xf32>
    %168 = arith.addf %167, %11 : vector<16x16xf32>
    %cst_74 = arith.constant dense<0xFF800000> : vector<16xf32>
    %169 = vector.multi_reduction <maximumf>, %168, %cst_74 [1] : vector<16x16xf32> to vector<16xf32>
    %170 = vector.shape_cast %169 : vector<16xf32> to vector<16x1xf32>
    %171 = vector.broadcast %170 : vector<16x1xf32> to vector<16x16xf32>
    %172 = arith.subf %168, %171 : vector<16x16xf32>
    %173 = math.exp %172 : vector<16x16xf32>
    %cst_75 = arith.constant dense<0.000000e+00> : vector<16xf32>
    %174 = vector.multi_reduction <add>, %173, %cst_75 [1] : vector<16x16xf32> to vector<16xf32>
    %175 = vector.shape_cast %174 : vector<16xf32> to vector<16x1xf32>
    %176 = tpu.reciprocal %175 {approx = true} : vector<16x1xf32> -> vector<16x1xf32>
    %177 = vector.broadcast %176 : vector<16x1xf32> to vector<16x16xf32>
    %178 = arith.mulf %173, %177 : vector<16x16xf32>
    %cst_76 = arith.constant dense<0.000000e+00> : vector<16x128xf32>
    %179 = tpu.matmul %178, %164, %cst_76 {dimension_numbers = #tpu.dot_dimension_numbers<[1], [0], [0], [1], [0, 0, 1, 1], [], []>} : vector<16x16xf32>, vector<16x128xf32>, vector<16x128xf32> -> vector<16x128xf32>
    %cst_77 = arith.constant dense<0.000000e+00> : vector<16x128xf32>
    %180 = tpu.matmul %179, %13, %cst_77 {dimension_numbers = #tpu.dot_dimension_numbers<[1], [0], [0], [1], [0, 0, 1, 1], [], []>} : vector<16x128xf32>, vector<128x128xf32>, vector<16x128xf32> -> vector<16x128xf32>
    %181 = vector.extract_strided_slice %161 {offsets = [0, 128], sizes = [16, 128], strides = [1, 1]} : vector<16x1536xf32> to vector<16x128xf32>
    %182 = vector.extract_strided_slice %161 {offsets = [0, 640], sizes = [16, 128], strides = [1, 1]} : vector<16x1536xf32> to vector<16x128xf32>
    %183 = vector.extract_strided_slice %161 {offsets = [0, 1152], sizes = [16, 128], strides = [1, 1]} : vector<16x1536xf32> to vector<16x128xf32>
    %cst_78 = arith.constant dense<0.000000e+00> : vector<16x16xf32>
    %184 = tpu.matmul %181, %182, %cst_78 {dimension_numbers = #tpu.dot_dimension_numbers<[1], [1], [0], [0], [0, 0, 1, 0], [], []>} : vector<16x128xf32>, vector<16x128xf32>, vector<16x16xf32> -> vector<16x16xf32>
    %cst_79 = arith.constant 0.353553385 : f32
    %185 = vector.broadcast %cst_79 : f32 to vector<16x16xf32>
    %186 = arith.mulf %184, %185 : vector<16x16xf32>
    %187 = arith.addf %186, %11 : vector<16x16xf32>
    %cst_80 = arith.constant dense<0xFF800000> : vector<16xf32>
    %188 = vector.multi_reduction <maximumf>, %187, %cst_80 [1] : vector<16x16xf32> to vector<16xf32>
    %189 = vector.shape_cast %188 : vector<16xf32> to vector<16x1xf32>
    %190 = vector.broadcast %189 : vector<16x1xf32> to vector<16x16xf32>
    %191 = arith.subf %187, %190 : vector<16x16xf32>
    %192 = math.exp %191 : vector<16x16xf32>
    %cst_81 = arith.constant dense<0.000000e+00> : vector<16xf32>
    %193 = vector.multi_reduction <add>, %192, %cst_81 [1] : vector<16x16xf32> to vector<16xf32>
    %194 = vector.shape_cast %193 : vector<16xf32> to vector<16x1xf32>
    %195 = tpu.reciprocal %194 {approx = true} : vector<16x1xf32> -> vector<16x1xf32>
    %196 = vector.broadcast %195 : vector<16x1xf32> to vector<16x16xf32>
    %197 = arith.mulf %192, %196 : vector<16x16xf32>
    %cst_82 = arith.constant dense<0.000000e+00> : vector<16x128xf32>
    %198 = tpu.matmul %197, %183, %cst_82 {dimension_numbers = #tpu.dot_dimension_numbers<[1], [0], [0], [1], [0, 0, 1, 1], [], []>} : vector<16x16xf32>, vector<16x128xf32>, vector<16x128xf32> -> vector<16x128xf32>
    %cst_83 = arith.constant dense<0.000000e+00> : vector<16x128xf32>
    %199 = tpu.matmul %198, %15, %cst_83 {dimension_numbers = #tpu.dot_dimension_numbers<[1], [0], [0], [1], [0, 0, 1, 1], [], []>} : vector<16x128xf32>, vector<128x128xf32>, vector<16x128xf32> -> vector<16x128xf32>
    %200 = arith.addf %180, %199 : vector<16x128xf32>
    %201 = vector.extract_strided_slice %161 {offsets = [0, 256], sizes = [16, 128], strides = [1, 1]} : vector<16x1536xf32> to vector<16x128xf32>
    %202 = vector.extract_strided_slice %161 {offsets = [0, 768], sizes = [16, 128], strides = [1, 1]} : vector<16x1536xf32> to vector<16x128xf32>
    %203 = vector.extract_strided_slice %161 {offsets = [0, 1280], sizes = [16, 128], strides = [1, 1]} : vector<16x1536xf32> to vector<16x128xf32>
    %cst_84 = arith.constant dense<0.000000e+00> : vector<16x16xf32>
    %204 = tpu.matmul %201, %202, %cst_84 {dimension_numbers = #tpu.dot_dimension_numbers<[1], [1], [0], [0], [0, 0, 1, 0], [], []>} : vector<16x128xf32>, vector<16x128xf32>, vector<16x16xf32> -> vector<16x16xf32>
    %cst_85 = arith.constant 0.353553385 : f32
    %205 = vector.broadcast %cst_85 : f32 to vector<16x16xf32>
    %206 = arith.mulf %204, %205 : vector<16x16xf32>
    %207 = arith.addf %206, %11 : vector<16x16xf32>
    %cst_86 = arith.constant dense<0xFF800000> : vector<16xf32>
    %208 = vector.multi_reduction <maximumf>, %207, %cst_86 [1] : vector<16x16xf32> to vector<16xf32>
    %209 = vector.shape_cast %208 : vector<16xf32> to vector<16x1xf32>
    %210 = vector.broadcast %209 : vector<16x1xf32> to vector<16x16xf32>
    %211 = arith.subf %207, %210 : vector<16x16xf32>
    %212 = math.exp %211 : vector<16x16xf32>
    %cst_87 = arith.constant dense<0.000000e+00> : vector<16xf32>
    %213 = vector.multi_reduction <add>, %212, %cst_87 [1] : vector<16x16xf32> to vector<16xf32>
    %214 = vector.shape_cast %213 : vector<16xf32> to vector<16x1xf32>
    %215 = tpu.reciprocal %214 {approx = true} : vector<16x1xf32> -> vector<16x1xf32>
    %216 = vector.broadcast %215 : vector<16x1xf32> to vector<16x16xf32>
    %217 = arith.mulf %212, %216 : vector<16x16xf32>
    %cst_88 = arith.constant dense<0.000000e+00> : vector<16x128xf32>
    %218 = tpu.matmul %217, %203, %cst_88 {dimension_numbers = #tpu.dot_dimension_numbers<[1], [0], [0], [1], [0, 0, 1, 1], [], []>} : vector<16x16xf32>, vector<16x128xf32>, vector<16x128xf32> -> vector<16x128xf32>
    %cst_89 = arith.constant dense<0.000000e+00> : vector<16x128xf32>
    %219 = tpu.matmul %218, %17, %cst_89 {dimension_numbers = #tpu.dot_dimension_numbers<[1], [0], [0], [1], [0, 0, 1, 1], [], []>} : vector<16x128xf32>, vector<128x128xf32>, vector<16x128xf32> -> vector<16x128xf32>
    %220 = arith.addf %200, %219 : vector<16x128xf32>
    %221 = vector.extract_strided_slice %161 {offsets = [0, 384], sizes = [16, 128], strides = [1, 1]} : vector<16x1536xf32> to vector<16x128xf32>
    %222 = vector.extract_strided_slice %161 {offsets = [0, 896], sizes = [16, 128], strides = [1, 1]} : vector<16x1536xf32> to vector<16x128xf32>
    %223 = vector.extract_strided_slice %161 {offsets = [0, 1408], sizes = [16, 128], strides = [1, 1]} : vector<16x1536xf32> to vector<16x128xf32>
    %cst_90 = arith.constant dense<0.000000e+00> : vector<16x16xf32>
    %224 = tpu.matmul %221, %222, %cst_90 {dimension_numbers = #tpu.dot_dimension_numbers<[1], [1], [0], [0], [0, 0, 1, 0], [], []>} : vector<16x128xf32>, vector<16x128xf32>, vector<16x16xf32> -> vector<16x16xf32>
    %cst_91 = arith.constant 0.353553385 : f32
    %225 = vector.broadcast %cst_91 : f32 to vector<16x16xf32>
    %226 = arith.mulf %224, %225 : vector<16x16xf32>
    %227 = arith.addf %226, %11 : vector<16x16xf32>
    %cst_92 = arith.constant dense<0xFF800000> : vector<16xf32>
    %228 = vector.multi_reduction <maximumf>, %227, %cst_92 [1] : vector<16x16xf32> to vector<16xf32>
    %229 = vector.shape_cast %228 : vector<16xf32> to vector<16x1xf32>
    %230 = vector.broadcast %229 : vector<16x1xf32> to vector<16x16xf32>
    %231 = arith.subf %227, %230 : vector<16x16xf32>
    %232 = math.exp %231 : vector<16x16xf32>
    %cst_93 = arith.constant dense<0.000000e+00> : vector<16xf32>
    %233 = vector.multi_reduction <add>, %232, %cst_93 [1] : vector<16x16xf32> to vector<16xf32>
    %234 = vector.shape_cast %233 : vector<16xf32> to vector<16x1xf32>
    %235 = tpu.reciprocal %234 {approx = true} : vector<16x1xf32> -> vector<16x1xf32>
    %236 = vector.broadcast %235 : vector<16x1xf32> to vector<16x16xf32>
    %237 = arith.mulf %232, %236 : vector<16x16xf32>
    %cst_94 = arith.constant dense<0.000000e+00> : vector<16x128xf32>
    %238 = tpu.matmul %237, %223, %cst_94 {dimension_numbers = #tpu.dot_dimension_numbers<[1], [0], [0], [1], [0, 0, 1, 1], [], []>} : vector<16x16xf32>, vector<16x128xf32>, vector<16x128xf32> -> vector<16x128xf32>
    %cst_95 = arith.constant dense<0.000000e+00> : vector<16x128xf32>
    %239 = tpu.matmul %238, %19, %cst_95 {dimension_numbers = #tpu.dot_dimension_numbers<[1], [0], [0], [1], [0, 0, 1, 1], [], []>} : vector<16x128xf32>, vector<128x128xf32>, vector<16x128xf32> -> vector<16x128xf32>
    %240 = arith.addf %220, %239 : vector<16x128xf32>
    %241 = arith.addf %158, %240 : vector<16x128xf32>
    %242 = vector.broadcast %2 : vector<1x128xf32> to vector<16x128xf32>
    %243 = arith.addf %241, %242 : vector<16x128xf32>
    %cst_96 = arith.constant dense<0.000000e+00> : vector<16xf32>
    %244 = vector.multi_reduction <add>, %243, %cst_96 [1] : vector<16x128xf32> to vector<16xf32>
    %245 = vector.shape_cast %244 : vector<16xf32> to vector<16x1xf32>
    %cst_97 = arith.constant 3.125000e-02 : f32
    %246 = vector.broadcast %cst_97 : f32 to vector<16x1xf32>
    %247 = arith.mulf %245, %246 : vector<16x1xf32>
    %248 = arith.mulf %243, %243 : vector<16x128xf32>
    %cst_98 = arith.constant dense<0.000000e+00> : vector<16xf32>
    %249 = vector.multi_reduction <add>, %248, %cst_98 [1] : vector<16x128xf32> to vector<16xf32>
    %250 = vector.shape_cast %249 : vector<16xf32> to vector<16x1xf32>
    %cst_99 = arith.constant 3.125000e-02 : f32
    %251 = vector.broadcast %cst_99 : f32 to vector<16x1xf32>
    %252 = arith.mulf %250, %251 : vector<16x1xf32>
    %253 = arith.mulf %247, %247 : vector<16x1xf32>
    %254 = arith.subf %252, %253 : vector<16x1xf32>
    %255 = vector.broadcast %247 : vector<16x1xf32> to vector<16x128xf32>
    %256 = arith.subf %243, %255 : vector<16x128xf32>
    %cst_100 = arith.constant 9.99999974E-6 : f32
    %257 = vector.broadcast %cst_100 : f32 to vector<16x1xf32>
    %258 = arith.addf %254, %257 : vector<16x1xf32>
    %259 = math.rsqrt %258 : vector<16x1xf32>
    %260 = vector.broadcast %259 : vector<16x1xf32> to vector<16x128xf32>
    %261 = arith.mulf %256, %260 : vector<16x128xf32>
    %262 = vector.broadcast %3 : vector<1x128xf32> to vector<16x128xf32>
    %263 = arith.mulf %261, %262 : vector<16x128xf32>
    %264 = vector.broadcast %4 : vector<1x128xf32> to vector<16x128xf32>
    %265 = arith.addf %263, %264 : vector<16x128xf32>
    %cst_101 = arith.constant dense<0.000000e+00> : vector<16x2048xf32>
    %266 = tpu.matmul %265, %5, %cst_101 {dimension_numbers = #tpu.dot_dimension_numbers<[1], [0], [0], [1], [0, 0, 1, 1], [], []>} : vector<16x128xf32>, vector<128x2048xf32>, vector<16x2048xf32> -> vector<16x2048xf32>
    %267 = vector.broadcast %6 : vector<1x2048xf32> to vector<16x2048xf32>
    %268 = arith.addf %266, %267 : vector<16x2048xf32>
    %cst_102 = arith.constant 0.000000e+00 : f32
    %269 = vector.broadcast %cst_102 : f32 to vector<16x2048xf32>
    %270 = arith.maximumf %268, %269 : vector<16x2048xf32>
    %cst_103 = arith.constant dense<0.000000e+00> : vector<16x128xf32>
    %271 = tpu.matmul %270, %7, %cst_103 {dimension_numbers = #tpu.dot_dimension_numbers<[1], [0], [0], [1], [0, 0, 1, 1], [], []>} : vector<16x2048xf32>, vector<2048x128xf32>, vector<16x128xf32> -> vector<16x128xf32>
    %272 = vector.broadcast %8 : vector<1x128xf32> to vector<16x128xf32>
    %273 = arith.addf %271, %272 : vector<16x128xf32>
    %274 = arith.addf %265, %273 : vector<16x128xf32>
    %cst_104 = arith.constant dense<0.000000e+00> : vector<16xf32>
    %275 = vector.multi_reduction <add>, %274, %cst_104 [1] : vector<16x128xf32> to vector<16xf32>
    %276 = vector.shape_cast %275 : vector<16xf32> to vector<16x1xf32>
    %cst_105 = arith.constant 3.125000e-02 : f32
    %277 = vector.broadcast %cst_105 : f32 to vector<16x1xf32>
    %278 = arith.mulf %276, %277 : vector<16x1xf32>
    %279 = arith.mulf %274, %274 : vector<16x128xf32>
    %cst_106 = arith.constant dense<0.000000e+00> : vector<16xf32>
    %280 = vector.multi_reduction <add>, %279, %cst_106 [1] : vector<16x128xf32> to vector<16xf32>
    %281 = vector.shape_cast %280 : vector<16xf32> to vector<16x1xf32>
    %cst_107 = arith.constant 3.125000e-02 : f32
    %282 = vector.broadcast %cst_107 : f32 to vector<16x1xf32>
    %283 = arith.mulf %281, %282 : vector<16x1xf32>
    %284 = arith.mulf %278, %278 : vector<16x1xf32>
    %285 = arith.subf %283, %284 : vector<16x1xf32>
    %286 = vector.broadcast %278 : vector<16x1xf32> to vector<16x128xf32>
    %287 = arith.subf %274, %286 : vector<16x128xf32>
    %cst_108 = arith.constant 9.99999974E-6 : f32
    %288 = vector.broadcast %cst_108 : f32 to vector<16x1xf32>
    %289 = arith.addf %285, %288 : vector<16x1xf32>
    %290 = math.rsqrt %289 : vector<16x1xf32>
    %291 = vector.broadcast %290 : vector<16x1xf32> to vector<16x128xf32>
    %292 = arith.mulf %287, %291 : vector<16x128xf32>
    %293 = vector.broadcast %9 : vector<1x128xf32> to vector<16x128xf32>
    %294 = arith.mulf %292, %293 : vector<16x128xf32>
    %295 = vector.broadcast %10 : vector<1x128xf32> to vector<16x128xf32>
    %296 = arith.addf %294, %295 : vector<16x128xf32>
    %c0_109 = arith.constant 0 : index
    %c0_110 = arith.constant 0 : index
    %297 = vector.load %arg16[%c0_109, %c0_110] : memref<2x16xf32, #tpu.memory_space<vmem>>, vector<2x16xf32>
    %cst_111 = arith.constant dense<0.000000e+00> : vector<2x128xf32>
    %298 = tpu.matmul %297, %296, %cst_111 {dimension_numbers = #tpu.dot_dimension_numbers<[1], [0], [0], [1], [0, 0, 1, 1], [], []>} : vector<2x16xf32>, vector<16x128xf32>, vector<2x128xf32> -> vector<2x128xf32>
    %c0_112 = arith.constant 0 : index
    %c0_113 = arith.constant 0 : index
    %299 = vector.load %arg13[%c0_112, %c0_113] : memref<128x128xf32, #tpu.memory_space<vmem>>, vector<128x128xf32>
    %cst_114 = arith.constant dense<0.000000e+00> : vector<2x128xf32>
    %300 = tpu.matmul %298, %299, %cst_114 {dimension_numbers = #tpu.dot_dimension_numbers<[1], [0], [0], [1], [0, 0, 1, 1], [], []>} : vector<2x128xf32>, vector<128x128xf32>, vector<2x128xf32> -> vector<2x128xf32>
    %c0_115 = arith.constant 0 : index
    %c0_116 = arith.constant 0 : index
    %301 = vector.load %arg14[%c0_115, %c0_116] : memref<1x128xf32, #tpu.memory_space<vmem>>, vector<1x128xf32>
    %302 = vector.broadcast %301 : vector<1x128xf32> to vector<2x128xf32>
    %303 = arith.addf %300, %302 : vector<2x128xf32>
    %c0_117 = arith.constant 0 : index
    %c0_118 = arith.constant 0 : index
    %304 = vector.load %arg17[%c0_117, %c0_118] : memref<2x128xf32, #tpu.memory_space<vmem>>, vector<2x128xf32>
    tpu.vector_store %arg17[%c0_117, %c0_118], %303 {strides = array<i32>} : memref<2x128xf32, #tpu.memory_space<vmem>>, vector<2x128xf32>,
    return
  }
}

</mosaic_0001>

<bundles_post_ra>
// kernel: tpu_custom_call.1
= control target key start
LH: loop header
LB: loop body
LE: loop exit
PB: predicated region body
PF: predicated region fallthrough
CT: control target
= control target key end

     0   :  { %s6087_s0 = inlined_call_operand.hbm [shape: f32[16,128], index: 0, kind: input, shape index: {}]   ;;  %s6088_s1 = inlined_call_operand.hbm [shape: f32[128,1536], index: 1, kind: input, shape index: {}]   ;;  %s6089_s2 = inlined_call_operand.hbm [shape: f32[1,1536], index: 2, kind: input, shape index: {}]   ;;  %s6090_s3 = inlined_call_operand.hbm [shape: f32[4,128,128], index: 3, kind: input, shape index: {}]   ;;  %s6091_s4 = inlined_call_operand.vmem [shape: f32[1,128], index: 4, kind: input, shape index: {}]   ;;  %s6092_s5 = inlined_call_operand.vmem [shape: f32[1,128], index: 5, kind: input, shape index: {}]   ;;  %s6093_s6 = inlined_call_operand.vmem [shape: f32[1,128], index: 6, kind: input, shape index: {}]   ;;  %s6094_s7 = inlined_call_operand.hbm [shape: f32[128,2048], index: 7, kind: input, shape index: {}]   ;;  %s6095_s8 = inlined_call_operand.hbm [shape: f32[1,2048], index: 8, kind: input, shape index: {}]   ;;  %s6096_s9 = inlined_call_operand.hbm [shape: f32[2048,128], index: 9, kind: input, shape index: {}]   ;;  %s6097_s10 = inlined_call_operand.vmem [shape: f32[1,128], index: 10, kind: input, shape index: {}]   ;;  %s6098_s11 = inlined_call_operand.vmem [shape: f32[1,128], index: 11, kind: input, shape index: {}]   ;;  %s6099_s12 = inlined_call_operand.vmem [shape: f32[1,128], index: 12, kind: input, shape index: {}]   ;;  %s6100_s13 = inlined_call_operand.hbm [shape: f32[128,128], index: 13, kind: input, shape index: {}]   ;;  %s6101_s14 = inlined_call_operand.vmem [shape: f32[1,128], index: 14, kind: input, shape index: {}]   ;;  %s6102_s15 = inlined_call_operand.hbm [shape: f32[16,16], index: 15, kind: input, shape index: {}]   ;;  %s6103_s16 = inlined_call_operand.vmem [shape: f32[2,16], index: 16, kind: input, shape index: {}]   ;;  %s6104_s17 = inlined_call_operand.hbm [shape: f32[2,128], index: 17, kind: output, shape index: {}]  }
   0x1   :  { %6105 = sst [smem:[#allocation24_spill]] %s6087_s0 }
   0x2   :  { %6106 = sst [smem:[#allocation25_spill]] %s6088_s1 }
   0x3   :  { %22 = vsyncpa [#allocation3], 0 }
   0x4   :  { %23 = vsyncpa [#allocation6], 0 }
   0x5   :  { %24 = vsyncpa [#allocation9], 0 }
   0x6   :  { %25 = vsyncpa [#allocation12], 0 }
   0x7   :  { %26 = vsyncpa [#allocation15], 0  ;;  %s6107_s26 = sld [smem:[#allocation25_spill]] }
   0xd   :  { %s45_s27 = sshll.u32 %s6107_s26, 4  ;;  %s46_s27 = int_to_ptr.hbm [resolvable:$true] %s45_s27 }
   0xe   :  { %27 = vsyncpa [#allocation4], 0  ;;  %s5400_s28 = smov [#allocation5]   ;;  %s5401_s0 = smov 1536  }
   0xf   :  { %s47_s29 = sshll.u32 %s5400_s28, 4  ;;  %s5402_s30 = smov 96   ;;  %s48_s29 = int_to_ptr.vmem [resolvable:$true] %s47_s29 }
  0x10   :  { %53 = dma.hbm_to_vmem [thread:$0]  %s46_s27, 24576, %s48_s29, [#allocation6], %s5401_s0, %s5401_s0, %s5402_s30  }
  0x11   :  { %s69_s1 = sshll.u32 %s6090_s3, 4  ;;  %s5403_s20 = smov [#allocation8]   ;;  %s70_s1 = int_to_ptr.hbm [resolvable:$true] %s69_s1 }
  0x12   :  { %s71_s21 = sshll.u32 %s5403_s20, 4  ;;  %s102_s24 = sshll.u32 %s6095_s8, 4  ;;  %s72_s21 = int_to_ptr.vmem [resolvable:$true] %s71_s21  ;;  %s103_s24 = int_to_ptr.hbm [resolvable:$true] %s102_s24 }
  0x13   :  { %s5404_s25 = smov 128   ;;  %s5405_s26 = smov 8  }
  0x14   :  { %77 = dma.hbm_to_vmem [thread:$0]  %s70_s1, 8192, %s72_s21, [#allocation9], %s5404_s25, %s5404_s25, %s5405_s26  }
  0x15   :  { %s131_s29 = sshll.u32 %s6100_s13, 4  ;;  %s5406_s3 = smov [#allocation11]   ;;  %s132_s29 = int_to_ptr.hbm [resolvable:$true] %s131_s29 }
  0x16   :  { %s104_s0 = sshll.u32 %s5406_s3, 4  ;;  %s5407_s30 = smov [#allocation14]   ;;  %s105_s0 = int_to_ptr.vmem [resolvable:$true] %s104_s0 }
  0x17   :  { %107 = dma.hbm_to_vmem [thread:$0]  %s103_s24, 256, %s105_s0, [#allocation12]  }
  0x18   :  { %s133_s18 = sshll.u32 %s5407_s30, 4  ;;  %s6108_s20 = sld [smem:[#allocation24_spill]]  ;;  %s134_s18 = int_to_ptr.vmem [resolvable:$true] %s133_s18 }
  0x19   :  { %139 = dma.hbm_to_vmem [thread:$0]  %s132_s29, 2048, %s134_s18, [#allocation15], %s5404_s25, %s5404_s25, %s5405_s26  }
  0x1a   :  { %s59_s13 = sshll.u32 %s6089_s2, 4  ;;  %s5408_s23 = smov [#allocation2]   ;;  %s60_s13 = int_to_ptr.hbm [resolvable:$true] %s59_s13 }
  0x1b   :  { %s34_s27 = sshll.u32 %s5408_s23, 4  ;;  %s5409_s24 = smov [#allocation7]   ;;  %s35_s27 = int_to_ptr.vmem [resolvable:$true] %s34_s27 }
  0x1c   :  { %s61_s28 = sshll.u32 %s5409_s24, 4  ;;  %s88_s30 = sshll.u32 %s6094_s7, 4  ;;  %s62_s28 = int_to_ptr.vmem [resolvable:$true] %s61_s28  ;;  %s89_s30 = int_to_ptr.hbm [resolvable:$true] %s88_s30 }
  0x1d   :  { %64 = dma.hbm_to_vmem [thread:$0]  %s60_s13, 192, %s62_s28, [#allocation6]  }
  0x1e   :  { %s32_s22 = sshll.u32 %s6108_s20, 4  ;;  %s5410_s29 = smov [#allocation10]   ;;  %s33_s22 = int_to_ptr.hbm [resolvable:$true] %s32_s22 }
  0x1f   :  { %40 = dma.hbm_to_vmem [thread:$0]  %s33_s22, 256, %s35_s27, [#allocation3], %s5404_s25, %s5404_s25, %s5405_s26  }
  0x20   :  { %s90_s18 = sshll.u32 %s5410_s29, 4  ;;  %s112_s19 = sshll.u32 %s6096_s9, 4  ;;  %s91_s18 = int_to_ptr.vmem [resolvable:$true] %s90_s18  ;;  %s113_s19 = int_to_ptr.hbm [resolvable:$true] %s112_s19 }
  0x21   :  { %s5411_s20 = smov 2048   ;;  %s146_s21 = sshll.u32 %s6102_s15, 4  ;;  %s147_s21 = int_to_ptr.hbm [resolvable:$true] %s146_s21 }
  0x22   :  { %96 = dma.hbm_to_vmem [thread:$0]  %s89_s30, 32768, %s91_s18, [#allocation9], %s5411_s20, %s5411_s20, %s5404_s25  }
  0x23   :  { %s5412_s23 = smov [#allocation13]   ;;  %s5413_s13 = smov [#allocation16]  }
  0x24   :  { %s114_s7 = sshll.u32 %s5412_s23, 4  ;;  %s148_s27 = sshll.u32 %s5413_s13, 4  ;;  %s115_s7 = int_to_ptr.vmem [resolvable:$true] %s114_s7  ;;  %s149_s27 = int_to_ptr.vmem [resolvable:$true] %s148_s27 }
  0x25   :  { %120 = dma.hbm_to_vmem [thread:$0]  %s113_s19, 32768, %s115_s7, [#allocation12], %s5404_s25, %s5404_s25, %s5405_s26  }
  0x26   :  { %154 = dma.hbm_to_vmem [thread:$0]  %s147_s21, 256, %s149_s27, [#allocation15], %s5404_s25, %s5404_s25, %s5405_s26  }
  0x27   :  { %5388 = dma.done.wait [#allocation3], 256  }
  0x28   :  { %5389 = vsyncadd [#allocation3], 4294967040 }
  0x29   :  { %5390 = dma.done.wait [#allocation6], 24768  }
  0x2a   :  { %5391 = vsyncadd [#allocation6], 4294942528 }
  0x2b   :  { %5392 = dma.done.wait [#allocation9], 40960  }
  0x2c   :  { %5393 = vsyncadd [#allocation9], 4294926336 }
  0x2d   :  { %5394 = dma.done.wait [#allocation12], 33024  }
  0x2e   :  { %5395 = vsyncadd [#allocation12], 4294934272 }
  0x2f   :  { %5396 = dma.done.wait [#allocation15], 2304  }
  0x30   :  { %5397 = vsyncadd [#allocation15], 4294964992  ;;  %v374_v0 = vld [vmem:[#allocation5 + $0x5a8] sm:$0xff]  ;;  %v375_v1 = vld [vmem:[#allocation5 + $0x5b0] sm:$0xff]  ;;  %vm1307_vm0 = vcmask 130048   ;;  %s5414_s9 = smov [#allocation17]  }
  0x31   :  { %v362_v2 = vld [vmem:[#allocation5 + $0x548] sm:$0xff]  ;;  %1027 = vmatpush.msra.mxu1 %v374_v0  ;;  %1050 = vmatpush.msra.mxu2 %v375_v1  ;;  %v363_v3 = vld [vmem:[#allocation5 + $0x550] sm:$0xff]  ;;  %v5552_v43 = vld [vmem:[#allocation2 + $0x8] sm:$0xff]  ;;  %s4235_s15 = sshll.u32 %s5414_s9, 4  ;;  %s4237_s24 = sshll.u32 %s6104_s17, 4  ;;  %s4236_s15 = int_to_ptr.vmem [resolvable:$true] %s4235_s15  ;;  %s4238_s24 = int_to_ptr.hbm [resolvable:$true] %s4237_s24 }
  0x32   :  { %v350_v4 = vld [vmem:[#allocation5 + $0x4e8] sm:$0xff]  ;;  %v351_v5 = vld [vmem:[#allocation5 + $0x4f0] sm:$0xff]  ;;  %v373_v46 = vld [vmem:[#allocation5 + $0x5a0] sm:$0xff] }
  0x33   :  { %1028 = vmatpush.msra.mxu1 %v362_v2  ;;  %1051 = vmatpush.msra.mxu2 %v363_v3  ;;  %v338_v6 = vld [vmem:[#allocation5 + $0x488] sm:$0xff]  ;;  %v339_v7 = vld [vmem:[#allocation5 + $0x490] sm:$0xff]  ;;  %v361_v49 = vld [vmem:[#allocation5 + $0x540] sm:$0xff] }
  0x34   :  { %v326_v8 = vld [vmem:[#allocation5 + $0x428] sm:$0xff]  ;;  %v327_v9 = vld [vmem:[#allocation5 + $0x430] sm:$0xff]  ;;  %1004 = vmatpush.msra.mxu0 %v373_v46  ;;  %v349_v52 = vld [vmem:[#allocation5 + $0x4e0] sm:$0xff] }
  0x35   :  { %1029 = vmatpush.msra.mxu1 %v350_v4  ;;  %1052 = vmatpush.msra.mxu2 %v351_v5  ;;  %v314_v10 = vld [vmem:[#allocation5 + $0x3c8] sm:$0xff]  ;;  %v315_v11 = vld [vmem:[#allocation5 + $0x3d0] sm:$0xff]  ;;  %v337_v55 = vld [vmem:[#allocation5 + $0x480] sm:$0xff] }
  0x36   :  { %v302_v12 = vld [vmem:[#allocation5 + $0x368] sm:$0xff]  ;;  %v303_v13 = vld [vmem:[#allocation5 + $0x370] sm:$0xff]  ;;  %1005 = vmatpush.msra.mxu0 %v361_v49  ;;  %v325_v58 = vld [vmem:[#allocation5 + $0x420] sm:$0xff] }
  0x37   :  { %1030 = vmatpush.msra.mxu1 %v338_v6  ;;  %1053 = vmatpush.msra.mxu2 %v339_v7  ;;  %v290_v14 = vld [vmem:[#allocation5 + $0x308] sm:$0xff]  ;;  %v291_v15 = vld [vmem:[#allocation5 + $0x310] sm:$0xff]  ;;  %v313_v61 = vld [vmem:[#allocation5 + $0x3c0] sm:$0xff] }
  0x38   :  { %v278_v16 = vld [vmem:[#allocation5 + $0x2a8] sm:$0xff]  ;;  %v279_v17 = vld [vmem:[#allocation5 + $0x2b0] sm:$0xff]  ;;  %1006 = vmatpush.msra.mxu0 %v349_v52  ;;  %v301_v0 = vld [vmem:[#allocation5 + $0x360] sm:$0xff] }
  0x39   :  { %1031 = vmatpush.msra.mxu1 %v326_v8  ;;  %1054 = vmatpush.msra.mxu2 %v327_v9  ;;  %v266_v18 = vld [vmem:[#allocation5 + $0x248] sm:$0xff]  ;;  %v267_v19 = vld [vmem:[#allocation5 + $0x250] sm:$0xff]  ;;  %v289_v3 = vld [vmem:[#allocation5 + $0x300] sm:$0xff] }
  0x3a   :  { %v254_v20 = vld [vmem:[#allocation5 + $0x1e8] sm:$0xff]  ;;  %v255_v21 = vld [vmem:[#allocation5 + $0x1f0] sm:$0xff]  ;;  %1007 = vmatpush.msra.mxu0 %v337_v55  ;;  %v277_v6 = vld [vmem:[#allocation5 + $0x2a0] sm:$0xff] }
  0x3b   :  { %1032 = vmatpush.msra.mxu1 %v314_v10  ;;  %1055 = vmatpush.msra.mxu2 %v315_v11  ;;  %v242_v22 = vld [vmem:[#allocation5 + $0x188] sm:$0xff]  ;;  %v243_v23 = vld [vmem:[#allocation5 + $0x190] sm:$0xff]  ;;  %v265_v9 = vld [vmem:[#allocation5 + $0x240] sm:$0xff] }
  0x3c   :  { %v230_v24 = vld [vmem:[#allocation5 + $0x128] sm:$0xff]  ;;  %v231_v25 = vld [vmem:[#allocation5 + $0x130] sm:$0xff]  ;;  %1008 = vmatpush.msra.mxu0 %v325_v58  ;;  %v293_v49 = vld [vmem:[#allocation5 + $0x320] sm:$0xff] }
  0x3d   :  { %1033 = vmatpush.msra.mxu1 %v302_v12  ;;  %1056 = vmatpush.msra.mxu2 %v303_v13  ;;  %v218_v26 = vld [vmem:[#allocation5 + $0xc8] sm:$0xff]  ;;  %v219_v27 = vld [vmem:[#allocation5 + $0xd0] sm:$0xff]  ;;  %v253_v12 = vld [vmem:[#allocation5 + $0x1e0] sm:$0xff] }
  0x3e   :  { %v206_v28 = vld [vmem:[#allocation5 + $0x68] sm:$0xff]  ;;  %v207_v29 = vld [vmem:[#allocation5 + $0x70] sm:$0xff]  ;;  %1009 = vmatpush.msra.mxu0 %v313_v61  ;;  %v257_v52 = vld [vmem:[#allocation5 + $0x200] sm:$0xff] }
  0x3f   :  { %1034 = vmatpush.msra.mxu1 %v290_v14  ;;  %1057 = vmatpush.msra.mxu2 %v291_v15  ;;  %v194_v30 = vld [vmem:[#allocation5 + $0x8] sm:$0xff]  ;;  %v195_v31 = vld [vmem:[#allocation5 + $0x10] sm:$0xff]  ;;  %v241_v15 = vld [vmem:[#allocation5 + $0x180] sm:$0xff] }
  0x40   :  { %v378_v32 = vld [vmem:[#allocation5 + $0x5c8] sm:$0xff]  ;;  %v379_v33 = vld [vmem:[#allocation5 + $0x5d0] sm:$0xff]  ;;  %1010 = vmatpush.msra.mxu0 %v301_v0 }
  0x41   :  { %1035 = vmatpush.msra.mxu1 %v278_v16  ;;  %1058 = vmatpush.msra.mxu2 %v279_v17  ;;  %v5548_v34 = vld [vmem:[#allocation2] sm:$0xff]  ;;  %v366_v35 = vld [vmem:[#allocation5 + $0x568] sm:$0xff] }
  0x42   :  { %v367_v36 = vld [vmem:[#allocation5 + $0x570] sm:$0xff]  ;;  %v354_v37 = vld [vmem:[#allocation5 + $0x508] sm:$0xff]  ;;  %1011 = vmatpush.msra.mxu0 %v289_v3 }
  0x43   :  { %1036 = vmatpush.msra.mxu1 %v266_v18  ;;  %1059 = vmatpush.msra.mxu2 %v267_v19  ;;  %v355_v38 = vld [vmem:[#allocation5 + $0x510] sm:$0xff]  ;;  %v342_v39 = vld [vmem:[#allocation5 + $0x4a8] sm:$0xff]  ;;  %v229_v18 = vld [vmem:[#allocation5 + $0x120] sm:$0xff] }
  0x44   :  { %v343_v40 = vld [vmem:[#allocation5 + $0x4b0] sm:$0xff]  ;;  %v330_v41 = vld [vmem:[#allocation5 + $0x448] sm:$0xff]  ;;  %1012 = vmatpush.msra.mxu0 %v277_v6  ;;  %v376_v6 = vld [vmem:[#allocation5 + $0x5b8] sm:$0xff] }
  0x45   :  { %1037 = vmatpush.msra.mxu1 %v254_v20  ;;  %1060 = vmatpush.msra.mxu2 %v255_v21  ;;  %v331_v42 = vld [vmem:[#allocation5 + $0x450] sm:$0xff]  ;;  %v318_v44 = vld [vmem:[#allocation5 + $0x3e8] sm:$0xff]  ;;  %v217_v21 = vld [vmem:[#allocation5 + $0xc0] sm:$0xff] }
  0x46   :  { %v319_v45 = vld [vmem:[#allocation5 + $0x3f0] sm:$0xff]  ;;  %v306_v47 = vld [vmem:[#allocation5 + $0x388] sm:$0xff]  ;;  %1013 = vmatpush.msra.mxu0 %v265_v9  ;;  %1073 = vmatpush.msra.mxu3 %v376_v6  ;;  %v352_v9 = vld [vmem:[#allocation5 + $0x4f8] sm:$0xff] }
  0x47   :  { %1038 = vmatpush.msra.mxu1 %v242_v22  ;;  %1061 = vmatpush.msra.mxu2 %v243_v23  ;;  %v307_v48 = vld [vmem:[#allocation5 + $0x390] sm:$0xff]  ;;  %v294_v50 = vld [vmem:[#allocation5 + $0x328] sm:$0xff]  ;;  %v205_v23 = vld [vmem:[#allocation5 + $0x60] sm:$0xff] }
  0x48   :  { %v295_v51 = vld [vmem:[#allocation5 + $0x330] sm:$0xff]  ;;  %v282_v53 = vld [vmem:[#allocation5 + $0x2c8] sm:$0xff]  ;;  %1014 = vmatpush.msra.mxu0 %v253_v12  ;;  %v328_v12 = vld [vmem:[#allocation5 + $0x438] sm:$0xff] }
  0x49   :  { %1039 = vmatpush.msra.mxu1 %v230_v24  ;;  %1062 = vmatpush.msra.mxu2 %v231_v25  ;;  %v283_v54 = vld [vmem:[#allocation5 + $0x2d0] sm:$0xff]  ;;  %v270_v56 = vld [vmem:[#allocation5 + $0x268] sm:$0xff]  ;;  %v276_v6 = vld [vmem:[#allocation5 + $0x298] sm:$0xff] }
  0x4a   :  { %v271_v57 = vld [vmem:[#allocation5 + $0x270] sm:$0xff]  ;;  %v258_v59 = vld [vmem:[#allocation5 + $0x208] sm:$0xff]  ;;  %1015 = vmatpush.msra.mxu0 %v241_v15  ;;  %v304_v15 = vld [vmem:[#allocation5 + $0x378] sm:$0xff] }
  0x4b   :  { %1040 = vmatpush.msra.mxu1 %v218_v26  ;;  %1063 = vmatpush.msra.mxu2 %v219_v27  ;;  %v259_v60 = vld [vmem:[#allocation5 + $0x210] sm:$0xff]  ;;  %v246_v62 = vld [vmem:[#allocation5 + $0x1a8] sm:$0xff]  ;;  %v193_v26 = vld [vmem:[#allocation5] sm:$0xff] }
  0x4c   :  { %v247_v63 = vld [vmem:[#allocation5 + $0x1b0] sm:$0xff]  ;;  %v234_v1 = vld [vmem:[#allocation5 + $0x148] sm:$0xff]  ;;  %1016 = vmatpush.msra.mxu0 %v229_v18 }
  0x4d   :  { %1041 = vmatpush.msra.mxu1 %v206_v28  ;;  %1064 = vmatpush.msra.mxu2 %v207_v29  ;;  %v235_v2 = vld [vmem:[#allocation5 + $0x150] sm:$0xff]  ;;  %v222_v4 = vld [vmem:[#allocation5 + $0xe8] sm:$0xff]  ;;  %v377_v28 = vld [vmem:[#allocation5 + $0x5c0] sm:$0xff] }
  0x4e   :  { %v223_v5 = vld [vmem:[#allocation5 + $0xf0] sm:$0xff]  ;;  %v210_v7 = vld [vmem:[#allocation5 + $0x88] sm:$0xff]  ;;  %1017 = vmatpush.msra.mxu0 %v217_v21 }
  0x4f   :  { %1042 = vmatpush.msra.mxu1 %v194_v30  ;;  %1065 = vmatpush.msra.mxu2 %v195_v31  ;;  %v211_v8 = vld [vmem:[#allocation5 + $0x90] sm:$0xff]  ;;  %v198_v10 = vld [vmem:[#allocation5 + $0x28] sm:$0xff]  ;;  %v365_v31 = vld [vmem:[#allocation5 + $0x560] sm:$0xff] }
  0x50   :  { %1043 = vmatmul.f32.vlgmr.msra.gmra.mxu1 %v5548_v34  ;;  %1066 = vmatmul.f32.vlgmr.msra.gmra.mxu2 %v5548_v34  ;;  %v199_v11 = vld [vmem:[#allocation5 + $0x30] sm:$0xff]  ;;  %v382_v14 = vld [vmem:[#allocation5 + $0x5e8] sm:$0xff] }
  0x51   :  { %1119 = vmatpush.msrb.mxu1 %v378_v32  ;;  %1142 = vmatpush.msrb.mxu2 %v379_v33  ;;  %v383_v13 = vld [vmem:[#allocation5 + $0x5f0] sm:$0xff]  ;;  %v370_v17 = vld [vmem:[#allocation5 + $0x588] sm:$0xff] }
  0x52   :  { %v371_v16 = vld [vmem:[#allocation5 + $0x590] sm:$0xff]  ;;  %v358_v20 = vld [vmem:[#allocation5 + $0x528] sm:$0xff]  ;;  %1018 = vmatpush.msra.mxu0 %v205_v23  ;;  %v268_v23 = vld [vmem:[#allocation5 + $0x258] sm:$0xff] }
  0x53   :  { %1120 = vmatpush.msrb.mxu1 %v366_v35  ;;  %1143 = vmatpush.msrb.mxu2 %v367_v36  ;;  %v359_v19 = vld [vmem:[#allocation5 + $0x530] sm:$0xff]  ;;  %v346_v25 = vld [vmem:[#allocation5 + $0x4c8] sm:$0xff]  ;;  %v353_v35 = vld [vmem:[#allocation5 + $0x500] sm:$0xff] }
  0x54   :  { %v347_v22 = vld [vmem:[#allocation5 + $0x4d0] sm:$0xff]  ;;  %v334_v29 = vld [vmem:[#allocation5 + $0x468] sm:$0xff]  ;;  %1019 = vmatpush.msra.mxu0 %v193_v26 }
  0x55   :  { %1121 = vmatpush.msrb.mxu1 %v354_v37  ;;  %1144 = vmatpush.msrb.mxu2 %v355_v38  ;;  %v335_v24 = vld [vmem:[#allocation5 + $0x470] sm:$0xff]  ;;  %v322_v32 = vld [vmem:[#allocation5 + $0x408] sm:$0xff]  ;;  %v341_v38 = vld [vmem:[#allocation5 + $0x4a0] sm:$0xff] }
  0x56   :  { %v323_v27 = vld [vmem:[#allocation5 + $0x410] sm:$0xff]  ;;  %1096 = vmatpush.msrb.mxu0 %v377_v28  ;;  %v310_v36 = vld [vmem:[#allocation5 + $0x3a8] sm:$0xff] }
  0x57   :  { %1122 = vmatpush.msrb.mxu1 %v342_v39  ;;  %1145 = vmatpush.msrb.mxu2 %v343_v40  ;;  %v311_v30 = vld [vmem:[#allocation5 + $0x3b0] sm:$0xff]  ;;  %v298_v39 = vld [vmem:[#allocation5 + $0x348] sm:$0xff] }
  0x58   :  { %1046 = vmatmul.f32.gmra.mxu1 %v5552_v43  ;;  %1069 = vmatmul.f32.gmra.mxu2 %v5552_v43  ;;  %v299_v33 = vld [vmem:[#allocation5 + $0x350] sm:$0xff]  ;;  %v274_v46 = vld [vmem:[#allocation5 + $0x288] sm:$0xff] }
  0x59   :  { %1123 = vmatpush.msrb.mxu1 %v330_v41  ;;  %1146 = vmatpush.msrb.mxu2 %v331_v42  ;;  %v287_v37 = vld [vmem:[#allocation5 + $0x2f0] sm:$0xff]  ;;  %v329_v41 = vld [vmem:[#allocation5 + $0x440] sm:$0xff]  ;;  %v286_v42 = vld [vmem:[#allocation5 + $0x2e8] sm:$0xff] }
  0x5a   :  { %1020 = vmatmul.f32.vlgmr.msra.gmra.mxu0 %v5548_v34  ;;  %v275_v40 = vld [vmem:[#allocation5 + $0x290] sm:$0xff]  ;;  %v262_v55 = vld [vmem:[#allocation5 + $0x228] sm:$0xff] }
  0x5b   :  { %1124 = vmatpush.msrb.mxu1 %v318_v44  ;;  %1147 = vmatpush.msrb.mxu2 %v319_v45  ;;  %v263_v44 = vld [vmem:[#allocation5 + $0x230] sm:$0xff]  ;;  %v317_v45 = vld [vmem:[#allocation5 + $0x3e0] sm:$0xff]  ;;  %v250_v58 = vld [vmem:[#allocation5 + $0x1c8] sm:$0xff] }
  0x5c   :  { %1097 = vmatpush.msrb.mxu0 %v365_v31  ;;  %v238_v61 = vld [vmem:[#allocation5 + $0x168] sm:$0xff] }
  0x5d   :  { %1125 = vmatpush.msrb.mxu1 %v306_v47  ;;  %1148 = vmatpush.msrb.mxu2 %v307_v48  ;;  %v251_v47 = vld [vmem:[#allocation5 + $0x1d0] sm:$0xff]  ;;  %v305_v48 = vld [vmem:[#allocation5 + $0x380] sm:$0xff]  ;;  %v226_v0 = vld [vmem:[#allocation5 + $0x108] sm:$0xff] }
  0x5e   :  { %1098 = vmatpush.msrb.mxu0 %v353_v35  ;;  %v202_v3 = vld [vmem:[#allocation5 + $0x48] sm:$0xff]  ;;  %v208_v35 = vld [vmem:[#allocation5 + $0x78] sm:$0xff] }
  0x5f   :  { %1126 = vmatpush.msrb.mxu1 %v294_v50  ;;  %1149 = vmatpush.msrb.mxu2 %v295_v51  ;;  %v281_v50 = vld [vmem:[#allocation5 + $0x2c0] sm:$0xff] }
  0x60   :  { %1099 = vmatpush.msrb.mxu0 %v341_v38  ;;  %v269_v51 = vld [vmem:[#allocation5 + $0x260] sm:$0xff]  ;;  %v380_v38 = vld [vmem:[#allocation5 + $0x5d8] sm:$0xff] }
  0x61   :  { %1127 = vmatpush.msrb.mxu1 %v282_v53  ;;  %1150 = vmatpush.msrb.mxu2 %v283_v54  ;;  %v245_v53 = vld [vmem:[#allocation5 + $0x1a0] sm:$0xff] }
  0x62   :  { %1100 = vmatpush.msrb.mxu0 %v329_v41  ;;  %v233_v54 = vld [vmem:[#allocation5 + $0x140] sm:$0xff]  ;;  %v356_v41 = vld [vmem:[#allocation5 + $0x518] sm:$0xff] }
  0x63   :  { %1128 = vmatpush.msrb.mxu1 %v270_v56  ;;  %1151 = vmatpush.msrb.mxu2 %v271_v57  ;;  %v221_v56 = vld [vmem:[#allocation5 + $0xe0] sm:$0xff]  ;;  %v239_v57 = vld [vmem:[#allocation5 + $0x170] sm:$0xff] }
  0x64   :  { %1023 = vmatmul.f32.gmra.mxu0 %v5552_v43 }
  0x65   :  { %1129 = vmatpush.msrb.mxu1 %v258_v59  ;;  %1152 = vmatpush.msrb.mxu2 %v259_v60  ;;  %v209_v59 = vld [vmem:[#allocation5 + $0x80] sm:$0xff]  ;;  %v227_v60 = vld [vmem:[#allocation5 + $0x110] sm:$0xff] }
  0x66   :  { %1101 = vmatpush.msrb.mxu0 %v317_v45  ;;  %v332_v45 = vld [vmem:[#allocation5 + $0x458] sm:$0xff] }
  0x67   :  { %1130 = vmatpush.msrb.mxu1 %v246_v62  ;;  %1153 = vmatpush.msrb.mxu2 %v247_v63  ;;  %v197_v62 = vld [vmem:[#allocation5 + $0x20] sm:$0xff]  ;;  %v215_v63 = vld [vmem:[#allocation5 + $0xb0] sm:$0xff] }
  0x68   :  { %1102 = vmatpush.msrb.mxu0 %v305_v48  ;;  %v308_v48 = vld [vmem:[#allocation5 + $0x398] sm:$0xff] }
  0x69   :  { %1131 = vmatpush.msrb.mxu1 %v234_v1  ;;  %1154 = vmatpush.msrb.mxu2 %v235_v2  ;;  %v203_v1 = vld [vmem:[#allocation5 + $0x50] sm:$0xff]  ;;  %v214_v2 = vld [vmem:[#allocation5 + $0xa8] sm:$0xff] }
  0x6a   :  { %1103 = vmatpush.msrb.mxu0 %v293_v49  ;;  %v296_v49 = vld [vmem:[#allocation5 + $0x338] sm:$0xff] }
  0x6b   :  { %1132 = vmatpush.msrb.mxu1 %v222_v4  ;;  %1155 = vmatpush.msrb.mxu2 %v223_v5 }
  0x6c   :  { %1104 = vmatpush.msrb.mxu0 %v281_v50  ;;  %v284_v50 = vld [vmem:[#allocation5 + $0x2d8] sm:$0xff] }
  0x6d   :  { %1133 = vmatpush.msrb.mxu1 %v210_v7  ;;  %1156 = vmatpush.msrb.mxu2 %v211_v8  ;;  %v364_v8 = vld [vmem:[#allocation5 + $0x558] sm:$0xff] }
  0x6e   :  { %1105 = vmatpush.msrb.mxu0 %v269_v51  ;;  %1074 = vmatpush.msra.mxu3 %v364_v8  ;;  %v272_v51 = vld [vmem:[#allocation5 + $0x278] sm:$0xff] }
  0x6f   :  { %1134 = vmatpush.msrb.mxu1 %v198_v10  ;;  %1157 = vmatpush.msrb.mxu2 %v199_v11  ;;  %v340_v11 = vld [vmem:[#allocation5 + $0x498] sm:$0xff] }
  0x70   :  { %1135 = vmatmul.f32.vlgmr.msrb.gmra.mxu1 %v5548_v34  ;;  %1158 = vmatmul.f32.vlgmr.msrb.gmra.mxu2 %v5548_v34  ;;  %v264_v8 = vld [vmem:[#allocation5 + $0x238] sm:$0xff] }
  0x71   :  { %1234 = vmatpush.msra.mxu2 %v383_v13  ;;  %1211 = vmatpush.msra.mxu1 %v382_v14  ;;  %v316_v14 = vld [vmem:[#allocation5 + $0x3d8] sm:$0xff] }
  0x72   :  { %1106 = vmatpush.msrb.mxu0 %v257_v52  ;;  %1075 = vmatpush.msra.mxu3 %v352_v9  ;;  %v252_v9 = vld [vmem:[#allocation5 + $0x1d8] sm:$0xff] }
  0x73   :  { %1235 = vmatpush.msra.mxu2 %v371_v16  ;;  %1212 = vmatpush.msra.mxu1 %v370_v17  ;;  %v292_v16 = vld [vmem:[#allocation5 + $0x318] sm:$0xff]  ;;  %v5572_v17 = vld [vmem:[#allocation7] sm:$0xff] }
  0x74   :  { %1107 = vmatpush.msrb.mxu0 %v245_v53  ;;  %1076 = vmatpush.msra.mxu3 %v340_v11  ;;  %v5582_v26 = vperm.slane %v5572_v17, 1  ;;  %v260_v53 = vld [vmem:[#allocation5 + $0x218] sm:$0xff] }
  0x75   :  { %1236 = vmatpush.msra.mxu2 %v359_v19  ;;  %1213 = vmatpush.msra.mxu1 %v358_v20  ;;  %v280_v19 = vld [vmem:[#allocation5 + $0x2b8] sm:$0xff]  ;;  %v5575_v20 = vperm.slane %v5572_v17, 5 }
  0x76   :  { %1108 = vmatpush.msrb.mxu0 %v233_v54  ;;  %1077 = vmatpush.msra.mxu3 %v328_v12  ;;  %v248_v54 = vld [vmem:[#allocation5 + $0x1b8] sm:$0xff] }
  0x77   :  { %1237 = vmatpush.msra.mxu2 %v347_v22  ;;  %1214 = vmatpush.msra.mxu1 %v346_v25  ;;  %v5579_v25 = vperm.slane %v5572_v17, 6  ;;  %v228_v12 = vld [vmem:[#allocation5 + $0x118] sm:$0xff] }
  0x78   :  { %1138 = vmatmul.f32.gmra.mxu1 %v5552_v43  ;;  %1161 = vmatmul.f32.gmra.mxu2 %v5552_v43 }
  0x79   :  { %1238 = vmatpush.msra.mxu2 %v335_v24  ;;  %1215 = vmatpush.msra.mxu1 %v334_v29  ;;  %v256_v24 = vld [vmem:[#allocation5 + $0x1f8] sm:$0xff] }
  0x7a   :  { %1109 = vmatpush.msrb.mxu0 %v221_v56  ;;  %1078 = vmatpush.msra.mxu3 %v316_v14  ;;  %v224_v56 = vld [vmem:[#allocation5 + $0xf8] sm:$0xff] }
  0x7b   :  { %1239 = vmatpush.msra.mxu2 %v323_v27  ;;  %1216 = vmatpush.msra.mxu1 %v322_v32  ;;  %v244_v27 = vld [vmem:[#allocation5 + $0x198] sm:$0xff] }
  0x7c   :  { %1110 = vmatpush.msrb.mxu0 %v209_v59  ;;  %1079 = vmatpush.msra.mxu3 %v304_v15  ;;  %v200_v59 = vld [vmem:[#allocation5 + $0x38] sm:$0xff] }
  0x7d   :  { %1240 = vmatpush.msra.mxu2 %v311_v30  ;;  %1217 = vmatpush.msra.mxu1 %v310_v36  ;;  %v232_v30 = vld [vmem:[#allocation5 + $0x138] sm:$0xff] }
  0x7e   :  { %1111 = vmatpush.msrb.mxu0 %v197_v62  ;;  %1080 = vmatpush.msra.mxu3 %v292_v16  ;;  %v360_v62 = vld [vmem:[#allocation5 + $0x538] sm:$0xff]  ;;  %v5603_v16 = vld [vmem:[#allocation7 + $0x8] sm:$0xf] }
  0x7f   :  { %1241 = vmatpush.msra.mxu2 %v299_v33  ;;  %1218 = vmatpush.msra.mxu1 %v298_v39  ;;  %v220_v33 = vld [vmem:[#allocation5 + $0xd8] sm:$0xff] }
  0x80   :  { %1112 = vmatmul.f32.vlgmr.msrb.gmra.mxu0 %v5548_v34  ;;  %1081 = vmatpush.msra.mxu3 %v280_v19  ;;  %v368_v39 = vld [vmem:[#allocation5 + $0x578] sm:$0xff] }
  0x81   :  { %1242 = vmatpush.msra.mxu2 %v287_v37  ;;  %1219 = vmatpush.msra.mxu1 %v286_v42  ;;  %v196_v37 = vld [vmem:[#allocation5 + $0x18] sm:$0xff] }
  0x82   :  { %1082 = vmatpush.msra.mxu3 %v268_v23  ;;  %v344_v42 = vld [vmem:[#allocation5 + $0x4b8] sm:$0xff] }
  0x83   :  { %1243 = vmatpush.msra.mxu2 %v275_v40  ;;  %1220 = vmatpush.msra.mxu1 %v274_v46  ;;  %v320_v46 = vld [vmem:[#allocation5 + $0x3f8] sm:$0xff] }
  0x84   :  { %1083 = vmatpush.msra.mxu3 %v256_v24  ;;  %v216_v14 = vld [vmem:[#allocation5 + $0xb8] sm:$0xff] }
  0x85   :  { %1244 = vmatpush.msra.mxu2 %v263_v44  ;;  %1221 = vmatpush.msra.mxu1 %v262_v55  ;;  %v5591_v44 = vperm.slane %v5572_v17, 2  ;;  %v236_v55 = vld [vmem:[#allocation5 + $0x158] sm:$0xff] }
  0x86   :  { %1084 = vmatpush.msra.mxu3 %v244_v27 }
  0x87   :  { %1245 = vmatpush.msra.mxu2 %v251_v47  ;;  %1222 = vmatpush.msra.mxu1 %v250_v58 }
  0x88   :  { %1115 = vmatmul.f32.gmra.mxu0 %v5552_v43  ;;  %1085 = vmatpush.msra.mxu3 %v232_v30  ;;  %v5618_v30 = vperm.slane %v5603_v16, 2 }
  0x89   :  { %1246 = vmatpush.msra.mxu2 %v239_v57  ;;  %1223 = vmatpush.msra.mxu1 %v238_v61  ;;  %v212_v57 = vld [vmem:[#allocation5 + $0x98] sm:$0xff] }
  0x8a   :  { %1086 = vmatpush.msra.mxu3 %v220_v33  ;;  %v372_v61 = vld [vmem:[#allocation5 + $0x598] sm:$0xff] }
  0x8b   :  { %1247 = vmatpush.msra.mxu2 %v227_v60  ;;  %1224 = vmatpush.msra.mxu1 %v226_v0  ;;  %v384_v60 = vld [vmem:[#allocation5 + $0x5f8] sm:$0xff] }
  0x8c   :  { %1087 = vmatpush.msra.mxu3 %v208_v35  ;;  %v336_v0 = vld [vmem:[#allocation5 + $0x478] sm:$0xff] }
  0x8d   :  { %1248 = vmatpush.msra.mxu2 %v215_v63  ;;  %1225 = vmatpush.msra.mxu1 %v214_v2  ;;  %v348_v63 = vld [vmem:[#allocation5 + $0x4d8] sm:$0xff] }
  0x8e   :  { %1088 = vmatpush.msra.mxu3 %v196_v37  ;;  %v324_v2 = vld [vmem:[#allocation5 + $0x418] sm:$0xff] }
  0x8f   :  { %1249 = vmatpush.msra.mxu2 %v203_v1  ;;  %1226 = vmatpush.msra.mxu1 %v202_v3  ;;  %v312_v3 = vld [vmem:[#allocation5 + $0x3b8] sm:$0xff] }
  0x90   :  { %1250 = vmatmul.f32.vlgmr.msra.gmra.mxu2 %v5548_v34  ;;  %1227 = vmatmul.f32.vlgmr.msra.gmra.mxu1 %v5548_v34 }
  0x91   :  { %1165 = vmatpush.msrb.mxu3 %v380_v38  ;;  %v5624_v38 = vld [vmem:[#allocation16] sm:$0xff] }
  0x92   :  { %1089 = vmatmul.f32.vlgmr.msra.gmra.mxu3 %v5548_v34 }
  0x93   :  { %1166 = vmatpush.msrb.mxu3 %v368_v39 }
  0x95   :  { %1167 = vmatpush.msrb.mxu3 %v356_v41 }
  0x97   :  { %1168 = vmatpush.msrb.mxu3 %v344_v42 }
  0x98   :  { %1253 = vmatmul.f32.gmra.mxu2 %v5552_v43  ;;  %1230 = vmatmul.f32.gmra.mxu1 %v5552_v43 }
  0x99   :  { %1169 = vmatpush.msrb.mxu3 %v332_v45  ;;  %v5628_v45 = vld [vmem:[#allocation16 + $0x8] sm:$0xff] }
  0x9a   :  { %1092 = vmatmul.f32.gmra.mxu3 %v5552_v43 }
  0x9b   :  { %1170 = vmatpush.msrb.mxu3 %v320_v46 }
  0x9d   :  { %1171 = vmatpush.msrb.mxu3 %v308_v48 }
  0x9f   :  { %1172 = vmatpush.msrb.mxu3 %v296_v49 }
  0xa1   :  { %1173 = vmatpush.msrb.mxu3 %v284_v50 }
  0xa3   :  { %1174 = vmatpush.msrb.mxu3 %v272_v51 }
  0xa5   :  { %1175 = vmatpush.msrb.mxu3 %v260_v53 }
  0xa7   :  { %1176 = vmatpush.msrb.mxu3 %v248_v54 }
  0xa9   :  { %1177 = vmatpush.msrb.mxu3 %v236_v55 }
  0xab   :  { %1178 = vmatpush.msrb.mxu3 %v224_v56 }
  0xad   :  { %1179 = vmatpush.msrb.mxu3 %v212_v57 }
  0xaf   :  { %1180 = vmatpush.msrb.mxu3 %v200_v59 }
  0xb0   :  { %1181 = vmatmul.f32.vlgmr.msrb.gmra.mxu3 %v5548_v34 }
  0xb1   :  { %1257 = vmatpush.msra.mxu3 %v384_v60 }
  0xb3   :  { %1258 = vmatpush.msra.mxu3 %v372_v61 }
  0xb5   :  { %1259 = vmatpush.msra.mxu3 %v360_v62 }
  0xb7   :  { %1260 = vmatpush.msra.mxu3 %v348_v63 }
  0xb8   :  { %1184 = vmatmul.f32.gmra.mxu3 %v5552_v43 }
  0xb9   :  { %1261 = vmatpush.msra.mxu3 %v336_v0 }
  0xbb   :  { %1262 = vmatpush.msra.mxu3 %v324_v2  ;;  %v381_v2 = vld [vmem:[#allocation5 + $0x5e0] sm:$0xff] }
  0xbc   :  { %1188 = vmatpush.msra.mxu0 %v381_v2 }
  0xbd   :  { %1263 = vmatpush.msra.mxu3 %v312_v3  ;;  %v369_v3 = vld [vmem:[#allocation5 + $0x580] sm:$0xff] }
  0xbe   :  { %1189 = vmatpush.msra.mxu0 %v369_v3 }
  0xcd   :  { %v1044_v4 = vpop.f32.mrf.mxu1 }
  0xce   :  { %v1045_v32 = vadd.f32 %v1044_v4, %v5582_v26  ;;  %v300_v4 = vld [vmem:[#allocation5 + $0x358] sm:$0xff] }
  0xcf   :  { %1264 = vmatpush.msra.mxu3 %v300_v4  ;;  %v357_v4 = vld [vmem:[#allocation5 + $0x520] sm:$0xff] }
  0xd0   :  { %1190 = vmatpush.msra.mxu0 %v357_v4 }
  0xd3   :  { %v5568_v5 = vpop.f32.mrf.mxu2 }
  0xd4   :  { %v1068_v47 = vadd.f32 %v5568_v5, %v5591_v44  ;;  %v288_v5 = vld [vmem:[#allocation5 + $0x2f8] sm:$0xff] }
  0xd5   :  { %v1047_v7 = vpop.f32.mrf.mxu1  ;;  %1265 = vmatpush.msra.mxu3 %v288_v5 }
  0xd6   :  { %v1048_v40 = vadd.f32 %v1047_v7, %v5582_v26 }
  0xd7   :  { %v1021_v58 = vpop.f32.mrf.mxu0  ;;  %1266 = vmatpush.msra.mxu3 %v276_v6 }
  0xd9   :  { %1267 = vmatpush.msra.mxu3 %v264_v8 }
  0xdb   :  { %v5570_v10 = vpop.f32.mrf.mxu2  ;;  %1268 = vmatpush.msra.mxu3 %v252_v9 }
  0xdc   :  { %v1071_v52 = vadd.f32 %v5570_v10, %v5591_v44  ;;  %v240_v10 = vld [vmem:[#allocation5 + $0x178] sm:$0xff] }
  0xdd   :  { %1269 = vmatpush.msra.mxu3 %v240_v10  ;;  %v333_v10 = vld [vmem:[#allocation5 + $0x460] sm:$0xff] }
  0xdf   :  { %1270 = vmatpush.msra.mxu3 %v228_v12  ;;  %v321_v12 = vld [vmem:[#allocation5 + $0x400] sm:$0xff] }
  0xe1   :  { %v1024_v1 = vpop.f32.mrf.mxu0  ;;  %1271 = vmatpush.msra.mxu3 %v216_v14 }
  0xed   :  { %v1136_v13 = vpop.f32.mrf.mxu1 }
  0xee   :  { %v1137_v28 = vadd.f32 %v1136_v13, %v5575_v20  ;;  %v5601_v13 = vperm.slane %v5572_v17, 4 }
  0xf3   :  { %v1159_v18 = vpop.f32.mrf.mxu2 }
  0xf4   :  { %v1160_v36 = vadd.f32 %v1159_v18, %v5579_v25  ;;  %v204_v18 = vld [vmem:[#allocation5 + $0x58] sm:$0xff] }
  0xf5   :  { %v1139_v21 = vpop.f32.mrf.mxu1  ;;  %1272 = vmatpush.msra.mxu3 %v204_v18 }
  0xf6   :  { %v1140_v22 = vadd.f32 %v1139_v21, %v5575_v20  ;;  %v5607_v21 = vperm.slane %v5603_v16, 1  ;;  %1273 = vmatmul.f32.vlgmr.msra.gmra.mxu3 %v5548_v34 }
  0xf8   :  { %1373 = vmatpush.xpose.msrb.mxu2 %v1140_v22 }
  0xfb   :  { %v1162_v29 = vpop.f32.mrf.mxu2 }
  0xfc   :  { %v1163_v31 = vadd.f32 %v1162_v29, %v5579_v25  ;;  %1374 = vmatpush.xpose.msrb.mxu2 %v1137_v28  ;;  %v5614_v29 = vperm.slane %v5572_v17, 0 }
  0xfd   :  { %v1113_v7 = vpop.f32.mrf.mxu0 }
  0xfe   :  { %v1114_v24 = vadd.f32 %v1113_v7, %v5601_v13  ;;  %1276 = vmatmul.f32.gmra.mxu3 %v5552_v43  ;;  %v345_v7 = vld [vmem:[#allocation5 + $0x4c0] sm:$0xff] }
  0xff   :  { %1375 = vmatmul.f32.vlgmr.msrb.gmra.mxu2 %v1045_v32  ;;  %v1022_v32 = vadd.f32 %v1021_v58, %v5614_v29  ;;  %1191 = vmatpush.msra.mxu0 %v345_v7 }
 0x100   :  { %1497 = vmatpush.xpose.msra.mxu2 %v1163_v31 }
 0x101   :  { %1192 = vmatpush.msra.mxu0 %v333_v10  ;;  %v940_v10 = vld [vmem:[#allocation8 + $0xf0] sm:$0xff] }
 0x103   :  { %1193 = vmatpush.msra.mxu0 %v321_v12  ;;  %v938_v12 = vld [vmem:[#allocation8 + $0xe0] sm:$0xff] }
 0x104   :  { %1498 = vmatpush.xpose.msra.mxu2 %v1160_v36  ;;  %v1025_v36 = vadd.f32 %v1024_v1, %v5614_v29 }
 0x105   :  { %v1116_v15 = vpop.f32.mrf.mxu0 }
 0x106   :  { %v1117_v19 = vadd.f32 %v1116_v15, %v5601_v13  ;;  %v309_v15 = vld [vmem:[#allocation5 + $0x3a0] sm:$0xff] }
 0x107   :  { %1378 = vmatmul.f32.gmra.mxu2 %v1048_v40  ;;  %1194 = vmatpush.msra.mxu0 %v309_v15  ;;  %v957_v15 = vld [vmem:[#allocation8 + $0x170] sm:$0xff] }
 0x108   :  { %1294 = vmatpush.xpose.msrb.mxu3 %v1117_v19 }
 0x10c   :  { %1295 = vmatpush.xpose.msrb.mxu3 %v1114_v24 }
 0x10d   :  { %v1228_v11 = vpop.f32.mrf.mxu1 }
 0x10e   :  { %v1229_v28 = vadd.f32 %v1228_v11, %v5607_v21 }
 0x10f   :  { %1499 = vmatmul.f32.vlgmr.msra.gmra.mxu2 %v1068_v47  ;;  %1296 = vmatmul.f32.vlgmr.msrb.gmra.mxu3 %v1022_v32 }
 0x113   :  { %v1251_v23 = vpop.f32.mrf.mxu2 }
 0x114   :  { %v1252_v35 = vadd.f32 %v1251_v23, %v5618_v30 }
 0x115   :  { %v1231_v22 = vpop.f32.mrf.mxu1  ;;  %v5636_v57 = vpop.f32.mrf.mxu3 }
 0x116   :  { %v1232_v27 = vadd.f32 %v1231_v22, %v5607_v21  ;;  %v297_v22 = vld [vmem:[#allocation5 + $0x340] sm:$0xff] }
 0x117   :  { %1502 = vmatmul.f32.gmra.mxu2 %v1071_v52  ;;  %1299 = vmatmul.f32.gmra.mxu3 %v1025_v36 }
 0x118   :  { %1428 = vmatpush.msra.mxu3 %v1232_v27  ;;  %1195 = vmatpush.msra.mxu0 %v297_v22  ;;  %v937_v22 = vld [vmem:[#allocation8 + $0xd8] sm:$0xff] }
 0x11a   :  { %1429 = vmatpush.msra.mxu3 %v1229_v28 }
 0x11b   :  { %v1254_v31 = vpop.f32.mrf.mxu2 }
 0x11c   :  { %v1255_v33 = vadd.f32 %v1254_v31, %v5618_v30 }
 0x11d   :  { %v5638_v58 = vpop.f32.mrf.mxu3 }
 0x11e   :  { %1552 = vmatpush.msrb.mxu3 %v1255_v33 }
 0x120   :  { %1553 = vmatpush.msrb.mxu3 %v1252_v35 }
 0x133   :  { %v5640_v59 = vpop.f32.mrf.mxu3 }
 0x13b   :  { %v5642_v60 = vpop.f32.mrf.mxu3 }
 0x179   :  { %v5644_v61 = vpop.f32.mrf.mxu3 }
 0x181   :  { %v5646_v1 = vpop.f32.mrf.mxu3 }
 0x182   :  { %v1376_v37 = vpop.f32.mrf.mxu2 }
 0x183   :  { %v1382_v39 = vmul.f32 0.35355338, %v1376_v37 }
 0x185   :  { %v1384_v40 = vadd.f32 %v1382_v39, %v5624_v38 }
 0x187   :  { %v1386_v41 = vsel %vm1307_vm0, %v1384_v40, -inf }
 0x188   :  { %1387 = vmax.xlane.f32.xlu0 %v1386_v41 }
 0x18a   :  { %v1379_v42 = vpop.f32.mrf.mxu2 }
 0x18b   :  { %v1383_v46 = vmul.f32 0.35355338, %v1379_v42 }
 0x18d   :  { %v1385_v47 = vadd.f32 %v1383_v46, %v5628_v45 }
 0x18f   :  { %v1389_v48 = vsel %vm1307_vm0, %v1385_v47, -inf }
 0x190   :  { %1390 = vmax.xlane.f32.xlu0 %v1389_v48 }
 0x192   :  { %v1500_v49 = vpop.f32.mrf.mxu2  ;;  %v1297_v14 = vpop.f32.mrf.mxu3 }
 0x193   :  { %v1506_v50 = vmul.f32 0.35355338, %v1500_v49  ;;  %v1303_v23 = vmul.f32 0.35355338, %v1297_v14  ;;  %v285_v49 = vld [vmem:[#allocation5 + $0x2e0] sm:$0xff] }
 0x194   :  { %1196 = vmatpush.msra.mxu0 %v285_v49  ;;  %v931_v49 = vld [vmem:[#allocation8 + $0xa8] sm:$0xff] }
 0x195   :  { %v1508_v51 = vadd.f32 %v1506_v50, %v5624_v38  ;;  %v1305_v31 = vadd.f32 %v1303_v23, %v5624_v38  ;;  %v273_v50 = vld [vmem:[#allocation5 + $0x280] sm:$0xff]  ;;  %v956_v23 = vld [vmem:[#allocation8 + $0x168] sm:$0xff] }
 0x196   :  { %1197 = vmatpush.msra.mxu0 %v273_v50  ;;  %v930_v50 = vld [vmem:[#allocation8 + $0xa0] sm:$0xff] }
 0x197   :  { %v1510_v52 = vsel %vm1307_vm0, %v1508_v51, -inf  ;;  %v1308_v36 = vsel %vm1307_vm0, %v1305_v31, -inf }
 0x198   :  { %1511 = vmax.xlane.f32.xlu1 %v1510_v52  ;;  %v249_v52 = vld [vmem:[#allocation5 + $0x1c0] sm:$0xff] }
 0x19a   :  { %v1503_v53 = vpop.f32.mrf.mxu2  ;;  %v1300_v32 = vpop.f32.mrf.mxu3 }
 0x19b   :  { %v1507_v54 = vmul.f32 0.35355338, %v1503_v53  ;;  %v1304_v37 = vmul.f32 0.35355338, %v1300_v32  ;;  %v237_v53 = vld [vmem:[#allocation5 + $0x160] sm:$0xff]  ;;  %v935_v32 = vld [vmem:[#allocation8 + $0xc8] sm:$0xff] }
 0x19d   :  { %v1509_v55 = vadd.f32 %v1507_v54, %v5628_v45  ;;  %v5657_v42 = vadd.f32 %v1304_v37, %v5628_v45  ;;  %v225_v54 = vld [vmem:[#allocation5 + $0x100] sm:$0xff] }
 0x19e   :  { %v953_v37 = vld [vmem:[#allocation8 + $0x150] sm:$0xff] }
 0x19f   :  { %v1513_v56 = vsel %vm1307_vm0, %v1509_v55, -inf  ;;  %v1311_v46 = vsel %vm1307_vm0, %v5657_v42, -inf }
 0x1a0   :  { %1514 = vmax.xlane.f32.xlu1 %v1513_v56  ;;  %v201_v56 = vld [vmem:[#allocation5 + $0x40] sm:$0xff] }
 0x1fb   :  { %v1388_v62 = vpop.xlane.xlu0 %1387 }
 0x1fc   :  { %v1392_v63 = vsub.f32 %v1384_v40, %v1388_v62 }
 0x1fe   :  { %v1394_v0 = vmul.f32 1.442695, %v1392_v63  ;;  %v5668_v63 = vperm.slane %v5572_v17, 7 }
 0x200   :  { %4290 = vpow2.f32 %v1394_v0  ;;  %v1186_v2 = vadd.f32 %v5642_v60, %v5668_v63  ;;  %v941_v60 = vld [vmem:[#allocation8 + $0xf8] sm:$0xff] }
 0x203   :  { %v1391_v5 = vpop.xlane.xlu0 %1390 }
 0x204   :  { %v1393_v6 = vsub.f32 %v1385_v47, %v1391_v5 }
 0x206   :  { %v5648_v8 = vpop.eup %4290  ;;  %v1396_v9 = vmul.f32 1.442695, %v1393_v6 }
 0x207   :  { %v1398_v11 = vsel %vm1307_vm0, %v5648_v8, 0.0 }
 0x208   :  { %4292 = vpow2.f32 %v1396_v9  ;;  %1399 = vadd.xlane.f32.xlu2 %v1398_v11  ;;  %v939_v11 = vld [vmem:[#allocation8 + $0xe8] sm:$0xff] }
 0x20b   :  { %v1512_v18 = vpop.xlane.xlu1 %1511 }
 0x20c   :  { %v1516_v19 = vsub.f32 %v1508_v51, %v1512_v18  ;;  %v261_v51 = vld [vmem:[#allocation5 + $0x220] sm:$0xff] }
 0x20d   :  { %1198 = vmatpush.msra.mxu0 %v261_v51  ;;  %v929_v51 = vld [vmem:[#allocation8 + $0x98] sm:$0xff] }
 0x20e   :  { %v4293_v24 = vpop.eup %4292  ;;  %v1518_v27 = vmul.f32 1.442695, %v1516_v19 }
 0x20f   :  { %v1401_v28 = vsel %vm1307_vm0, %v4293_v24, 0.0  ;;  %1199 = vmatpush.msra.mxu0 %v249_v52  ;;  %v5690_v52 = vperm.slane %v5603_v16, 3 }
 0x210   :  { %4294 = vpow2.f32 %v1518_v27  ;;  %1402 = vadd.xlane.f32.xlu2 %v1401_v28  ;;  %v955_v28 = vld [vmem:[#allocation8 + $0x160] sm:$0xff] }
 0x211   :  { %1200 = vmatpush.msra.mxu0 %v237_v53  ;;  %v928_v53 = vld [vmem:[#allocation8 + $0x90] sm:$0xff] }
 0x213   :  { %v1515_v33 = vpop.xlane.xlu1 %1514  ;;  %1201 = vmatpush.msra.mxu0 %v225_v54  ;;  %v927_v54 = vld [vmem:[#allocation8 + $0x88] sm:$0xff] }
 0x214   :  { %v1517_v35 = vsub.f32 %v1509_v55, %v1515_v33  ;;  %v213_v55 = vld [vmem:[#allocation5 + $0xa0] sm:$0xff] }
 0x215   :  { %1202 = vmatpush.msra.mxu0 %v213_v55  ;;  %v954_v33 = vld [vmem:[#allocation8 + $0x158] sm:$0xff]  ;;  %v926_v55 = vld [vmem:[#allocation8 + $0x80] sm:$0xff] }
 0x216   :  { %v4295_v39 = vpop.eup %4294  ;;  %v1520_v40 = vmul.f32 1.442695, %v1517_v35  ;;  %v934_v35 = vld [vmem:[#allocation8 + $0xc0] sm:$0xff] }
 0x217   :  { %v1522_v41 = vsel %vm1307_vm0, %v4295_v39, 0.0  ;;  %1203 = vmatpush.msra.mxu0 %v201_v56  ;;  %v1275_v56 = vadd.f32 %v5644_v61, %v5690_v52 }
 0x218   :  { %4296 = vpow2.f32 %v1520_v40  ;;  %1523 = vadd.xlane.f32.xlu0 %v1522_v41  ;;  %1309 = vmax.xlane.f32.xlu2 %v1308_v36  ;;  %v933_v40 = vld [vmem:[#allocation8 + $0xb8] sm:$0xff]  ;;  %v952_v41 = vld [vmem:[#allocation8 + $0x148] sm:$0xff] }
 0x219   :  { %1204 = vmatmul.f32.vlgmr.msra.gmra.mxu0 %v5548_v34  ;;  %v1183_v34 = vadd.f32 %v5640_v59, %v5668_v63  ;;  %v958_v59 = vld [vmem:[#allocation8 + $0x178] sm:$0xff] }
 0x21a   :  { %1437 = vmatpush.msrb.mxu0 %v941_v60  ;;  %1561 = vmatpush.msrb.mxu2 %v958_v59 }
 0x21c   :  { %1438 = vmatpush.msrb.mxu0 %v940_v10  ;;  %1562 = vmatpush.msrb.mxu2 %v957_v15 }
 0x21e   :  { %v5661_v47 = vpop.eup %4296  ;;  %1439 = vmatpush.msrb.mxu0 %v939_v11  ;;  %1563 = vmatpush.msrb.mxu2 %v956_v23 }
 0x21f   :  { %v1525_v48 = vsel %vm1307_vm0, %v5661_v47, 0.0 }
 0x220   :  { %1526 = vadd.xlane.f32.xlu1 %v1525_v48  ;;  %1312 = vmax.xlane.f32.xlu0 %v1311_v46  ;;  %v932_v46 = vld [vmem:[#allocation8 + $0xb0] sm:$0xff]  ;;  %v5685_v48 = vperm.slane %v5572_v17, 3  ;;  %v1278_v17 = vadd.f32 %v5646_v1, %v5690_v52  ;;  %v5699_v1 = vperm.slane %v5603_v16, 0  ;;  %v943_v16 = vld [vmem:[#allocation8 + $0x100] sm:$0xff] }
 0x221   :  { %1207 = vmatmul.f32.gmra.mxu0 %v5552_v43  ;;  %1564 = vmatpush.msrb.mxu2 %v955_v28 }
 0x222   :  { %1440 = vmatpush.msrb.mxu0 %v938_v12 }
 0x223   :  { %1565 = vmatpush.msrb.mxu2 %v954_v33 }
 0x224   :  { %1441 = vmatpush.msrb.mxu0 %v937_v22 }
 0x225   :  { %1566 = vmatpush.msrb.mxu2 %v953_v37  ;;  %v922_v37 = vld [vmem:[#allocation8 + $0x68] sm:$0xff] }
 0x227   :  { %1567 = vmatpush.msrb.mxu2 %v952_v41  ;;  %v918_v41 = vld [vmem:[#allocation8 + $0x48] sm:$0xff] }
 0x27b   :  { %v1400_v62 = vpop.xlane.xlu2 %1399 }
 0x27c   :  { %4298 = vrcp.f32 %v1400_v62 }
 0x282   :  { %v4299_v0 = vpop.eup %4298 }
 0x283   :  { %v1406_v3 = vmul.f32 %v4299_v0, %v5648_v8  ;;  %v1403_v4 = vpop.xlane.xlu2 %1402  ;;  %v951_v0 = vld [vmem:[#allocation8 + $0x140] sm:$0xff] }
 0x284   :  { %4300 = vrcp.f32 %v1403_v4  ;;  %1568 = vmatpush.msrb.mxu2 %v951_v0  ;;  %v948_v4 = vld [vmem:[#allocation8 + $0x128] sm:$0xff] }
 0x285   :  { %4253 = vmatmul.msk.f32.vlgmr.msra.gmra.mxu3 %vm1307_vm0, %v1406_v3  ;;  %v949_v3 = vld [vmem:[#allocation8 + $0x130] sm:$0xff] }
 0x286   :  { %1600 = vmatpush.xpose.msra.mxu3 %v1186_v2  ;;  %v950_v2 = vld [vmem:[#allocation8 + $0x138] sm:$0xff] }
 0x287   :  { %1569 = vmatpush.msrb.mxu2 %v950_v2 }
 0x289   :  { %1570 = vmatpush.msrb.mxu2 %v949_v3 }
 0x28a   :  { %v4301_v43 = vpop.eup %4300  ;;  %1601 = vmatpush.xpose.msra.mxu3 %v1183_v34  ;;  %v947_v34 = vld [vmem:[#allocation8 + $0x120] sm:$0xff] }
 0x28b   :  { %v1524_v5 = vpop.xlane.xlu0 %1523  ;;  %v1310_v6 = vpop.xlane.xlu2 %1309  ;;  %v1407_v7 = vmul.f32 %v4301_v43, %v4293_v24  ;;  %v936_v24 = vld [vmem:[#allocation8 + $0xd0] sm:$0xff]  ;;  %1571 = vmatpush.msrb.mxu2 %v948_v4 }
 0x28c   :  { %4302 = vrcp.f32 %v1524_v5  ;;  %v1314_v9 = vsub.f32 %v1305_v31, %v1310_v6  ;;  %1442 = vmatpush.msrb.mxu0 %v936_v24  ;;  %v946_v5 = vld [vmem:[#allocation8 + $0x118] sm:$0xff]  ;;  %v945_v6 = vld [vmem:[#allocation8 + $0x110] sm:$0xff] }
 0x28d   :  { %4254 = vmatmul.msk.f32.gmra.mxu3 %vm1307_vm0, %v1407_v7  ;;  %1572 = vmatpush.msrb.mxu2 %v947_v34  ;;  %v944_v7 = vld [vmem:[#allocation8 + $0x108] sm:$0xff] }
 0x28e   :  { %v1316_v8 = vmul.f32 1.442695, %v1314_v9  ;;  %1443 = vmatpush.msrb.mxu0 %v935_v32 }
 0x28f   :  { %1573 = vmatpush.msrb.mxu2 %v946_v5 }
 0x290   :  { %4304 = vpow2.f32 %v1316_v8  ;;  %1444 = vmatpush.msrb.mxu0 %v934_v35 }
 0x291   :  { %1574 = vmatpush.msrb.mxu2 %v945_v6 }
 0x292   :  { %v4303_v14 = vpop.eup %4302  ;;  %1445 = vmatpush.msrb.mxu0 %v933_v40  ;;  %v919_v40 = vld [vmem:[#allocation8 + $0x50] sm:$0xff] }
 0x293   :  { %v1530_v18 = vmul.f32 %v4303_v14, %v4295_v39  ;;  %v1527_v19 = vpop.xlane.xlu1 %1526  ;;  %1575 = vmatpush.msrb.mxu2 %v944_v7  ;;  %v1313_v9 = vpop.xlane.xlu0 %1312  ;;  %v975_v7 = vld [vmem:[#allocation8 + $0x1f8] sm:$0xff] }
 0x294   :  { %4306 = vrcp.f32 %v1527_v19  ;;  %1446 = vmatpush.msrb.mxu0 %v932_v46  ;;  %v1315_v15 = vsub.f32 %v5657_v42, %v1313_v9  ;;  %v924_v42 = vld [vmem:[#allocation8 + $0x78] sm:$0xff]  ;;  %v973_v9 = vld [vmem:[#allocation8 + $0x1e8] sm:$0xff] }
 0x295   :  { %4255 = vmatmul.msk.f32.vlgmr.msrb.gmra.mxu3 %vm1307_vm0, %v1530_v18  ;;  %1576 = vmatpush.msrb.mxu2 %v943_v16  ;;  %v916_v46 = vld [vmem:[#allocation8 + $0x38] sm:$0xff]  ;;  %v974_v16 = vld [vmem:[#allocation8 + $0x1f0] sm:$0xff] }
 0x296   :  { %v5678_v27 = vpop.eup %4304  ;;  %1447 = vmatpush.msrb.mxu0 %v931_v49  ;;  %v1205_v62 = vpop.f32.mrf.mxu0  ;;  %v1318_v18 = vmul.f32 1.442695, %v1315_v15  ;;  %v915_v49 = vld [vmem:[#allocation8 + $0x30] sm:$0xff] }
 0x297   :  { %v1320_v31 = vsel %vm1307_vm0, %v5678_v27, 0.0 }
 0x298   :  { %1321 = vadd.xlane.f32.xlu0 %v1320_v31  ;;  %1448 = vmatpush.msrb.mxu0 %v930_v50  ;;  %v914_v50 = vld [vmem:[#allocation8 + $0x28] sm:$0xff] }
 0x29a   :  { %v4307_v36 = vpop.eup %4306  ;;  %1449 = vmatpush.msrb.mxu0 %v929_v51  ;;  %v912_v51 = vld [vmem:[#allocation8 + $0x18] sm:$0xff] }
 0x29b   :  { %v1531_v39 = vmul.f32 %v4307_v36, %v5661_v47  ;;  %v1091_v47 = vadd.f32 %v5636_v57, %v5685_v48  ;;  %v1094_v57 = vadd.f32 %v5638_v58, %v5685_v48  ;;  %v1206_v58 = vadd.f32 %v1205_v62, %v5699_v1  ;;  %v923_v36 = vld [vmem:[#allocation8 + $0x70] sm:$0xff] }
 0x29c   :  { %1450 = vmatpush.msrb.mxu0 %v928_v53  ;;  %v911_v53 = vld [vmem:[#allocation8 + $0x10] sm:$0xff] }
 0x29d   :  { %4256 = vmatmul.msk.f32.gmra.mxu3 %vm1307_vm0, %v1531_v39  ;;  %v920_v39 = vld [vmem:[#allocation8 + $0x58] sm:$0xff] }
 0x29e   :  { %1451 = vmatpush.msrb.mxu0 %v927_v54  ;;  %v1208_v61 = vpop.f32.mrf.mxu0  ;;  %v910_v54 = vld [vmem:[#allocation8 + $0x8] sm:$0xff] }
 0x29f   :  { %v1209_v43 = vadd.f32 %v1208_v61, %v5699_v1 }
 0x2a0   :  { %1452 = vmatpush.msrb.mxu0 %v926_v55 }
 0x2a1   :  { %1350 = vmatpush.msrb.mxu1 %v1209_v43 }
 0x2a2   :  { %1655 = vmatpush.msra.mxu0 %v1278_v17  ;;  %v909_v17 = vld [vmem:[#allocation8] sm:$0xff] }
 0x2a3   :  { %1351 = vmatpush.msrb.mxu1 %v1206_v58 }
 0x2a4   :  { %1656 = vmatpush.msra.mxu0 %v1275_v56 }
 0x2a5   :  { %1602 = vmatmul.f32.vlgmr.msra.gmra.mxu3 %v1091_v47  ;;  %1460 = vmatpush.msra.mxu1 %v924_v42  ;;  %v913_v47 = vld [vmem:[#allocation8 + $0x20] sm:$0xff] }
 0x2a6   :  { %v960_v42 = vld [vmem:[#allocation8 + $0x180] sm:$0xff] }
 0x2a7   :  { %1461 = vmatpush.msra.mxu1 %v923_v36 }
 0x2a9   :  { %1462 = vmatpush.msra.mxu1 %v922_v37 }
 0x2ad   :  { %1605 = vmatmul.f32.gmra.mxu3 %v1094_v57 }
 0x308   :  { %v1431_v60 = vpop.f32.mrf.mxu3 }
 0x309   :  { %1453 = vmatmul.f32.vlgmr.msrb.gmra.mxu0 %v1431_v60  ;;  %v972_v60 = vld [vmem:[#allocation8 + $0x1e0] sm:$0xff] }
 0x30b   :  { %v1322_v10 = vpop.xlane.xlu0 %1321 }
 0x30c   :  { %4308 = vrcp.f32 %v1322_v10  ;;  %v971_v10 = vld [vmem:[#allocation8 + $0x1d8] sm:$0xff] }
 0x30d   :  { %4310 = vpow2.f32 %v1318_v18 }
 0x310   :  { %v1434_v8 = vpop.f32.mrf.mxu3 }
 0x311   :  { %1456 = vmatmul.f32.gmra.mxu0 %v1434_v8 }
 0x312   :  { %v4309_v11 = vpop.eup %4308 }
 0x313   :  { %v1328_v12 = vmul.f32 %v4309_v11, %v5678_v27  ;;  %v4311_v27 = vpop.eup %4310  ;;  %v970_v11 = vld [vmem:[#allocation8 + $0x1d0] sm:$0xff] }
 0x314   :  { %v1323_v35 = vsel %vm1307_vm0, %v4311_v27, 0.0 }
 0x315   :  { %4251 = vmatmul.msk.f32.vlgmr.msrb.gmra.mxu1 %vm1307_vm0, %v1328_v12  ;;  %v969_v12 = vld [vmem:[#allocation8 + $0x1c8] sm:$0xff] }
 0x318   :  { %v1555_v14 = vpop.f32.mrf.mxu3 }
 0x319   :  { %1577 = vmatmul.f32.vlgmr.msrb.gmra.mxu2 %v1555_v14  ;;  %v968_v14 = vld [vmem:[#allocation8 + $0x1c0] sm:$0xff] }
 0x320   :  { %v1558_v59 = vpop.f32.mrf.mxu3 }
 0x321   :  { %1580 = vmatmul.f32.gmra.mxu2 %v1558_v59  ;;  %v967_v59 = vld [vmem:[#allocation8 + $0x1b8] sm:$0xff] }
 0x328   :  { %v1603_v19 = vpop.f32.mrf.mxu3 }
 0x329   :  { %v1609_v22 = vmul.f32 0.35355338, %v1603_v19 }
 0x32b   :  { %v1611_v23 = vadd.f32 %v1609_v22, %v5624_v38  ;;  %v921_v38 = vld [vmem:[#allocation8 + $0x60] sm:$0xff]  ;;  %v966_v22 = vld [vmem:[#allocation8 + $0x1b0] sm:$0xff] }
 0x32c   :  { %1463 = vmatpush.msra.mxu1 %v921_v38 }
 0x32d   :  { %v1613_v24 = vsel %vm1307_vm0, %v1611_v23, -inf }
 0x32e   :  { %1614 = vmax.xlane.f32.xlu1 %v1613_v24  ;;  %1464 = vmatpush.msra.mxu1 %v920_v39  ;;  %v964_v24 = vld [vmem:[#allocation8 + $0x1a0] sm:$0xff] }
 0x330   :  { %v1606_v28 = vpop.f32.mrf.mxu3  ;;  %1465 = vmatpush.msra.mxu1 %v919_v40 }
 0x331   :  { %v1610_v31 = vmul.f32 0.35355338, %v1606_v28  ;;  %v963_v28 = vld [vmem:[#allocation8 + $0x198] sm:$0xff] }
 0x332   :  { %1466 = vmatpush.msra.mxu1 %v918_v41  ;;  %v630_v41 = vld [vmem:[#allocation10 + $0x780] sm:$0xff] }
 0x333   :  { %v1612_v32 = vadd.f32 %v1610_v31, %v5628_v45  ;;  %v917_v45 = vld [vmem:[#allocation8 + $0x40] sm:$0xff]  ;;  %1784 = vmatpush.msrb.mxu3 %v630_v41  ;;  %v471_v41 = vld [vmem:[#allocation10 + $0x288] sm:$0xff] }
 0x334   :  { %1467 = vmatpush.msra.mxu1 %v917_v45  ;;  %v631_v45 = vld [vmem:[#allocation10 + $0x788] sm:$0xff] }
 0x335   :  { %v1616_v33 = vsel %vm1307_vm0, %v1612_v32, -inf  ;;  %1807 = vmatpush.msrb.mxu0 %v631_v45  ;;  %v472_v45 = vld [vmem:[#allocation10 + $0x290] sm:$0xff] }
 0x336   :  { %1617 = vmax.xlane.f32.xlu2 %v1616_v33  ;;  %1324 = vadd.xlane.f32.xlu1 %v1323_v35  ;;  %v962_v33 = vld [vmem:[#allocation8 + $0x190] sm:$0xff]  ;;  %v961_v35 = vld [vmem:[#allocation8 + $0x188] sm:$0xff] }
 0x337   :  { %1468 = vmatpush.msra.mxu1 %v916_v46  ;;  %v632_v46 = vld [vmem:[#allocation10 + $0x790] sm:$0xff] }
 0x338   :  { %1830 = vmatpush.msra.mxu2 %v632_v46 }
 0x339   :  { %1469 = vmatpush.msra.mxu1 %v915_v49  ;;  %v633_v49 = vld [vmem:[#allocation10 + $0x798] sm:$0xff] }
 0x33b   :  { %1470 = vmatpush.msra.mxu1 %v914_v50  ;;  %v614_v50 = vld [vmem:[#allocation10 + $0x700] sm:$0xff] }
 0x33c   :  { %1785 = vmatpush.msrb.mxu3 %v614_v50  ;;  %v454_v50 = vld [vmem:[#allocation10 + $0x200] sm:$0xff] }
 0x33d   :  { %1471 = vmatpush.msra.mxu1 %v913_v47  ;;  %v615_v47 = vld [vmem:[#allocation10 + $0x708] sm:$0xff] }
 0x33e   :  { %1808 = vmatpush.msrb.mxu0 %v615_v47 }
 0x33f   :  { %1472 = vmatpush.msra.mxu1 %v912_v51  ;;  %v616_v51 = vld [vmem:[#allocation10 + $0x710] sm:$0xff] }
 0x340   :  { %1831 = vmatpush.msra.mxu2 %v616_v51  ;;  %v455_v51 = vld [vmem:[#allocation10 + $0x208] sm:$0xff] }
 0x341   :  { %1473 = vmatpush.msra.mxu1 %v911_v53  ;;  %v617_v53 = vld [vmem:[#allocation10 + $0x718] sm:$0xff] }
 0x343   :  { %1474 = vmatpush.msra.mxu1 %v910_v54  ;;  %v598_v54 = vld [vmem:[#allocation10 + $0x680] sm:$0xff] }
 0x344   :  { %1786 = vmatpush.msrb.mxu3 %v598_v54  ;;  %v456_v54 = vld [vmem:[#allocation10 + $0x210] sm:$0xff] }
 0x345   :  { %1475 = vmatpush.msra.mxu1 %v909_v17  ;;  %v599_v17 = vld [vmem:[#allocation10 + $0x688] sm:$0xff] }
 0x346   :  { %1809 = vmatpush.msrb.mxu0 %v599_v17  ;;  %v457_v17 = vld [vmem:[#allocation10 + $0x218] sm:$0xff] }
 0x347   :  { %1664 = vmatpush.msrb.mxu1 %v975_v7  ;;  %v553_v7 = vld [vmem:[#allocation10 + $0x518] sm:$0xff] }
 0x349   :  { %1665 = vmatpush.msrb.mxu1 %v974_v16 }
 0x34b   :  { %1666 = vmatpush.msrb.mxu1 %v973_v9  ;;  %v534_v9 = vld [vmem:[#allocation10 + $0x480] sm:$0xff] }
 0x34d   :  { %1667 = vmatpush.msrb.mxu1 %v972_v60  ;;  %v535_v60 = vld [vmem:[#allocation10 + $0x488] sm:$0xff] }
 0x34f   :  { %1668 = vmatpush.msrb.mxu1 %v971_v10 }
 0x351   :  { %1669 = vmatpush.msrb.mxu1 %v970_v11  ;;  %v537_v11 = vld [vmem:[#allocation10 + $0x498] sm:$0xff] }
 0x353   :  { %1670 = vmatpush.msrb.mxu1 %v969_v12  ;;  %v518_v12 = vld [vmem:[#allocation10 + $0x400] sm:$0xff] }
 0x355   :  { %1671 = vmatpush.msrb.mxu1 %v968_v14  ;;  %v519_v14 = vld [vmem:[#allocation10 + $0x408] sm:$0xff] }
 0x357   :  { %1672 = vmatpush.msrb.mxu1 %v967_v59  ;;  %v520_v59 = vld [vmem:[#allocation10 + $0x410] sm:$0xff] }
 0x359   :  { %1673 = vmatpush.msrb.mxu1 %v966_v22  ;;  %v503_v22 = vld [vmem:[#allocation10 + $0x388] sm:$0xff] }
 0x386   :  { %v1454_v36 = vpop.f32.mrf.mxu0 }
 0x38e   :  { %v5716_v37 = vpop.f32.mrf.mxu0 }
 0x392   :  { %v1353_v6 = vpop.f32.mrf.mxu1 }
 0x39c   :  { %v1578_v10 = vpop.f32.mrf.mxu2 }
 0x3a1   :  { %v1615_v55 = vpop.xlane.xlu1 %1614 }
 0x3a2   :  { %v1619_v56 = vsub.f32 %v1611_v23, %v1615_v55  ;;  %v965_v23 = vld [vmem:[#allocation8 + $0x1a8] sm:$0xff]  ;;  %v600_v55 = vld [vmem:[#allocation10 + $0x690] sm:$0xff] }
 0x3a3   :  { %1674 = vmatpush.msrb.mxu1 %v965_v23  ;;  %1832 = vmatpush.msra.mxu2 %v600_v55 }
 0x3a4   :  { %v1621_v57 = vmul.f32 1.442695, %v1619_v56  ;;  %v601_v56 = vld [vmem:[#allocation10 + $0x698] sm:$0xff]  ;;  %v1581_v47 = vpop.f32.mrf.mxu2 }
 0x3a5   :  { %1675 = vmatpush.msrb.mxu1 %v964_v24  ;;  %v504_v24 = vld [vmem:[#allocation10 + $0x390] sm:$0xff] }
 0x3a6   :  { %4312 = vpow2.f32 %v1621_v57  ;;  %v582_v57 = vld [vmem:[#allocation10 + $0x600] sm:$0xff] }
 0x3a7   :  { %1676 = vmatpush.msrb.mxu1 %v963_v28  ;;  %1787 = vmatpush.msrb.mxu3 %v582_v57  ;;  %v505_v28 = vld [vmem:[#allocation10 + $0x398] sm:$0xff]  ;;  %v439_v57 = vld [vmem:[#allocation10 + $0x188] sm:$0xff] }
 0x3a9   :  { %v1618_v62 = vpop.xlane.xlu2 %1617  ;;  %v1325_v0 = vpop.xlane.xlu1 %1324  ;;  %1677 = vmatpush.msrb.mxu1 %v962_v33  ;;  %v487_v33 = vld [vmem:[#allocation10 + $0x308] sm:$0xff] }
 0x3aa   :  { %v1620_v2 = vsub.f32 %v1612_v32, %v1618_v62  ;;  %4314 = vrcp.f32 %v1325_v0  ;;  %v583_v62 = vld [vmem:[#allocation10 + $0x608] sm:$0xff]  ;;  %v584_v0 = vld [vmem:[#allocation10 + $0x610] sm:$0xff] }
 0x3ab   :  { %1678 = vmatpush.msrb.mxu1 %v961_v35  ;;  %1810 = vmatpush.msrb.mxu0 %v583_v62  ;;  %v488_v35 = vld [vmem:[#allocation10 + $0x310] sm:$0xff] }
 0x3ac   :  { %v4313_v3 = vpop.eup %4312  ;;  %v1623_v4 = vmul.f32 1.442695, %v1620_v2  ;;  %v585_v2 = vld [vmem:[#allocation10 + $0x618] sm:$0xff]  ;;  %1833 = vmatpush.msra.mxu2 %v584_v0  ;;  %v440_v0 = vld [vmem:[#allocation10 + $0x190] sm:$0xff] }
 0x3ad   :  { %v1625_v61 = vsel %vm1307_vm0, %v4313_v3, 0.0  ;;  %1679 = vmatpush.msrb.mxu1 %v960_v42  ;;  %v489_v42 = vld [vmem:[#allocation10 + $0x318] sm:$0xff] }
 0x3ae   :  { %4316 = vpow2.f32 %v1623_v4  ;;  %1626 = vadd.xlane.f32.xlu2 %v1625_v61  ;;  %v567_v4 = vld [vmem:[#allocation10 + $0x588] sm:$0xff] }
 0x3af   :  { %1811 = vmatpush.msrb.mxu0 %v567_v4  ;;  %v423_v4 = vld [vmem:[#allocation10 + $0x108] sm:$0xff] }
 0x3b0   :  { %v4315_v34 = vpop.eup %4314 }
 0x3b1   :  { %v1329_v58 = vmul.f32 %v4315_v34, %v4311_v27  ;;  %v568_v34 = vld [vmem:[#allocation10 + $0x590] sm:$0xff] }
 0x3b2   :  { %1834 = vmatpush.msra.mxu2 %v568_v34 }
 0x3b3   :  { %4252 = vmatmul.msk.f32.gmra.mxu1 %vm1307_vm0, %v1329_v58  ;;  %v569_v58 = vld [vmem:[#allocation10 + $0x598] sm:$0xff] }
 0x3b4   :  { %v4317_v43 = vpop.eup %4316 }
 0x3b5   :  { %v1628_v5 = vsel %vm1307_vm0, %v4317_v43, 0.0 }
 0x3b6   :  { %1629 = vadd.xlane.f32.xlu0 %v1628_v5  ;;  %v551_v5 = vld [vmem:[#allocation10 + $0x508] sm:$0xff] }
 0x3b7   :  { %1812 = vmatpush.msrb.mxu0 %v551_v5  ;;  %v406_v5 = vld [vmem:[#allocation10 + $0x80] sm:$0xff] }
 0x3b9   :  { %1813 = vmatpush.msrb.mxu0 %v535_v60 }
 0x3bb   :  { %1476 = vmatmul.f32.vlgmr.msra.gmra.mxu1 %v1353_v6  ;;  %v552_v6 = vld [vmem:[#allocation10 + $0x510] sm:$0xff]  ;;  %1814 = vmatpush.msrb.mxu0 %v519_v14  ;;  %v634_v14 = vld [vmem:[#allocation10 + $0x7a0] sm:$0xff] }
 0x3bc   :  { %1853 = vmatpush.msra.mxu1 %v633_v49  ;;  %1835 = vmatpush.msra.mxu2 %v552_v6  ;;  %v473_v49 = vld [vmem:[#allocation10 + $0x298] sm:$0xff] }
 0x3bd   :  { %1815 = vmatpush.msrb.mxu0 %v503_v22  ;;  %v619_v22 = vld [vmem:[#allocation10 + $0x728] sm:$0xff] }
 0x3be   :  { %1854 = vmatpush.msra.mxu1 %v617_v53 }
 0x3bf   :  { %1816 = vmatpush.msrb.mxu0 %v487_v33  ;;  %v586_v33 = vld [vmem:[#allocation10 + $0x620] sm:$0xff] }
 0x3c0   :  { %1855 = vmatpush.msra.mxu1 %v601_v56  ;;  %v438_v56 = vld [vmem:[#allocation10 + $0x180] sm:$0xff] }
 0x3c1   :  { %1817 = vmatpush.msrb.mxu0 %v471_v41  ;;  %v573_v41 = vld [vmem:[#allocation10 + $0x5b8] sm:$0xff] }
 0x3c2   :  { %1856 = vmatpush.msra.mxu1 %v585_v2  ;;  %v441_v2 = vld [vmem:[#allocation10 + $0x198] sm:$0xff] }
 0x3c3   :  { %1818 = vmatpush.msrb.mxu0 %v455_v51  ;;  %v538_v51 = vld [vmem:[#allocation10 + $0x4a0] sm:$0xff] }
 0x3c4   :  { %1857 = vmatpush.msra.mxu1 %v569_v58  ;;  %v424_v58 = vld [vmem:[#allocation10 + $0x110] sm:$0xff] }
 0x3c5   :  { %1819 = vmatpush.msrb.mxu0 %v439_v57  ;;  %v525_v57 = vld [vmem:[#allocation10 + $0x438] sm:$0xff] }
 0x3c6   :  { %1858 = vmatpush.msra.mxu1 %v553_v7  ;;  %v407_v7 = vld [vmem:[#allocation10 + $0x88] sm:$0xff] }
 0x3c7   :  { %1820 = vmatpush.msrb.mxu0 %v423_v4  ;;  %v490_v4 = vld [vmem:[#allocation10 + $0x320] sm:$0xff] }
 0x3c8   :  { %1859 = vmatpush.msra.mxu1 %v537_v11  ;;  %v392_v11 = vld [vmem:[#allocation10 + $0x10] sm:$0xff] }
 0x3c9   :  { %1821 = vmatpush.msrb.mxu0 %v407_v7  ;;  %v476_v7 = vld [vmem:[#allocation10 + $0x2b0] sm:$0xff] }
 0x421   :  { %v1627_v8 = vpop.xlane.xlu2 %1626 }
 0x422   :  { %4318 = vrcp.f32 %v1627_v8  ;;  %v536_v8 = vld [vmem:[#allocation10 + $0x490] sm:$0xff] }
 0x423   :  { %1836 = vmatpush.msra.mxu2 %v536_v8  ;;  %v391_v8 = vld [vmem:[#allocation10 + $0x8] sm:$0xff] }
 0x424   :  { %1822 = vmatpush.msrb.mxu0 %v391_v8  ;;  %v461_v8 = vld [vmem:[#allocation10 + $0x238] sm:$0xff] }
 0x425   :  { %1837 = vmatpush.msra.mxu2 %v520_v59  ;;  %v635_v59 = vld [vmem:[#allocation10 + $0x7a8] sm:$0xff] }
 0x427   :  { %1838 = vmatpush.msra.mxu2 %v504_v24  ;;  %v621_v24 = vld [vmem:[#allocation10 + $0x738] sm:$0xff] }
 0x428   :  { %v4319_v15 = vpop.eup %4318 }
 0x429   :  { %v1633_v18 = vmul.f32 %v4319_v15, %v4313_v3  ;;  %v1630_v19 = vpop.xlane.xlu0 %1629  ;;  %v566_v3 = vld [vmem:[#allocation10 + $0x580] sm:$0xff]  ;;  %v521_v15 = vld [vmem:[#allocation10 + $0x418] sm:$0xff]  ;;  %1839 = vmatpush.msra.mxu2 %v488_v35  ;;  %v587_v35 = vld [vmem:[#allocation10 + $0x628] sm:$0xff] }
 0x42a   :  { %4320 = vrcp.f32 %v1630_v19  ;;  %1788 = vmatpush.msrb.mxu3 %v566_v3  ;;  %v502_v19 = vld [vmem:[#allocation10 + $0x380] sm:$0xff]  ;;  %1860 = vmatpush.msra.mxu1 %v521_v15  ;;  %v636_v15 = vld [vmem:[#allocation10 + $0x7b0] sm:$0xff] }
 0x42b   :  { %4257 = vmatmul.msk.f32.vlgmr.msra.gmra.mxu0 %vm1307_vm0, %v1633_v18  ;;  %1840 = vmatpush.msra.mxu2 %v472_v45  ;;  %v422_v3 = vld [vmem:[#allocation10 + $0x100] sm:$0xff] }
 0x42c   :  { %1861 = vmatpush.msra.mxu1 %v505_v28  ;;  %1899 = vmatpush.msra.mxu0 %v635_v59  ;;  %v602_v28 = vld [vmem:[#allocation10 + $0x6a0] sm:$0xff]  ;;  %v445_v59 = vld [vmem:[#allocation10 + $0x1b8] sm:$0xff] }
 0x42d   :  { %1841 = vmatpush.msra.mxu2 %v456_v54  ;;  %v554_v45 = vld [vmem:[#allocation10 + $0x520] sm:$0xff]  ;;  %v541_v54 = vld [vmem:[#allocation10 + $0x4b8] sm:$0xff] }
 0x42e   :  { %1862 = vmatpush.msra.mxu1 %v489_v42  ;;  %1900 = vmatpush.msra.mxu0 %v619_v22  ;;  %v588_v42 = vld [vmem:[#allocation10 + $0x630] sm:$0xff]  ;;  %v429_v22 = vld [vmem:[#allocation10 + $0x138] sm:$0xff] }
 0x42f   :  { %1842 = vmatpush.msra.mxu2 %v440_v0  ;;  %v507_v0 = vld [vmem:[#allocation10 + $0x3a8] sm:$0xff] }
 0x430   :  { %v4321_v31 = vpop.eup %4320  ;;  %v1356_v27 = vpop.f32.mrf.mxu1  ;;  %1863 = vmatpush.msra.mxu1 %v473_v49  ;;  %v555_v49 = vld [vmem:[#allocation10 + $0x528] sm:$0xff] }
 0x431   :  { %1479 = vmatmul.f32.gmra.mxu1 %v1356_v27  ;;  %v1634_v32 = vmul.f32 %v4321_v31, %v4317_v43  ;;  %v550_v43 = vld [vmem:[#allocation10 + $0x500] sm:$0xff]  ;;  %1843 = vmatpush.msra.mxu2 %v424_v58  ;;  %v493_v58 = vld [vmem:[#allocation10 + $0x338] sm:$0xff] }
 0x432   :  { %1789 = vmatpush.msrb.mxu3 %v550_v43  ;;  %v4283_v27 = vld [vmem:[%s6091_s4] ss:$0 sm:$0xff]  ;;  %1864 = vmatpush.msra.mxu1 %v457_v17  ;;  %v425_v43 = vld [vmem:[#allocation10 + $0x118] sm:$0xff] }
 0x433   :  { %4258 = vmatmul.msk.f32.gmra.mxu0 %vm1307_vm0, %v1634_v32  ;;  %v486_v32 = vld [vmem:[#allocation10 + $0x300] sm:$0xff] }
 0x434   :  { %1790 = vmatpush.msrb.mxu3 %v534_v9  ;;  %1865 = vmatpush.msra.mxu1 %v441_v2  ;;  %v409_v9 = vld [vmem:[#allocation10 + $0x98] sm:$0xff]  ;;  %v522_v17 = vld [vmem:[#allocation10 + $0x420] sm:$0xff]  ;;  %v508_v2 = vld [vmem:[#allocation10 + $0x3b0] sm:$0xff] }
 0x436   :  { %1791 = vmatpush.msrb.mxu3 %v518_v12  ;;  %1866 = vmatpush.msra.mxu1 %v425_v43  ;;  %v393_v12 = vld [vmem:[#allocation10 + $0x18] sm:$0xff]  ;;  %v474_v43 = vld [vmem:[#allocation10 + $0x2a0] sm:$0xff] }
 0x438   :  { %v1477_v40 = vpop.f32.mrf.mxu1  ;;  %1792 = vmatpush.msrb.mxu3 %v502_v19  ;;  %1867 = vmatpush.msra.mxu1 %v409_v9  ;;  %v618_v19 = vld [vmem:[#allocation10 + $0x720] sm:$0xff] }
 0x439   :  { %v1478_v16 = vadd.f32 %v1477_v40, %v1454_v36  ;;  %v470_v40 = vld [vmem:[#allocation10 + $0x280] sm:$0xff] }
 0x43a   :  { %1793 = vmatpush.msrb.mxu3 %v486_v32  ;;  %1868 = vmatpush.msra.mxu1 %v393_v12  ;;  %v605_v32 = vld [vmem:[#allocation10 + $0x6b8] sm:$0xff]  ;;  %v458_v9 = vld [vmem:[#allocation10 + $0x220] sm:$0xff]  ;;  %v443_v12 = vld [vmem:[#allocation10 + $0x1a8] sm:$0xff] }
 0x43b   :  { %v1584_v18 = vadd.f32 %v1578_v10, %v1478_v16  ;;  %v408_v16 = vld [vmem:[#allocation10 + $0x90] sm:$0xff]  ;;  %v390_v10 = vld [vmem:[#allocation10] sm:$0xff] }
 0x43c   :  { %1794 = vmatpush.msrb.mxu3 %v470_v40  ;;  %1844 = vmatpush.msra.mxu2 %v408_v16  ;;  %v572_v40 = vld [vmem:[#allocation10 + $0x5b0] sm:$0xff]  ;;  %v477_v16 = vld [vmem:[#allocation10 + $0x2b8] sm:$0xff] }
 0x43e   :  { %1795 = vmatpush.msrb.mxu3 %v454_v50  ;;  %1845 = vmatpush.msra.mxu2 %v392_v11  ;;  %v556_v50 = vld [vmem:[#allocation10 + $0x530] sm:$0xff]  ;;  %v442_v11 = vld [vmem:[#allocation10 + $0x1a0] sm:$0xff] }
 0x440   :  { %1796 = vmatpush.msrb.mxu3 %v438_v56  ;;  %1922 = vmatpush.msrb.mxu2 %v636_v15  ;;  %v524_v56 = vld [vmem:[#allocation10 + $0x430] sm:$0xff]  ;;  %v426_v15 = vld [vmem:[#allocation10 + $0x120] sm:$0xff] }
 0x442   :  { %1797 = vmatpush.msrb.mxu3 %v422_v3  ;;  %v509_v3 = vld [vmem:[#allocation10 + $0x3b8] sm:$0xff] }
 0x444   :  { %1798 = vmatpush.msrb.mxu3 %v406_v5  ;;  %v475_v5 = vld [vmem:[#allocation10 + $0x2a8] sm:$0xff] }
 0x446   :  { %1799 = vmatpush.msrb.mxu3 %v390_v10  ;;  %v460_v10 = vld [vmem:[#allocation10 + $0x230] sm:$0xff] }
 0x448   :  { %1876 = vmatpush.msra.mxu3 %v634_v14  ;;  %v444_v14 = vld [vmem:[#allocation10 + $0x1b0] sm:$0xff] }
 0x44a   :  { %1877 = vmatpush.msra.mxu3 %v618_v19  ;;  %v428_v19 = vld [vmem:[#allocation10 + $0x130] sm:$0xff] }
 0x44c   :  { %1878 = vmatpush.msra.mxu3 %v602_v28  ;;  %v412_v28 = vld [vmem:[#allocation10 + $0xb0] sm:$0xff] }
 0x44e   :  { %1879 = vmatpush.msra.mxu3 %v586_v33  ;;  %v396_v33 = vld [vmem:[#allocation10 + $0x30] sm:$0xff] }
 0x4a8   :  { %v1658_v38 = vpop.f32.mrf.mxu0 }
 0x4a9   :  { %1680 = vmatmul.f32.vlgmr.msrb.gmra.mxu1 %v1658_v38  ;;  %v4370_v38 = vld [vmem:[#allocation2] sm:$0xff] }
 0x4ae   :  { %v1480_v61 = vpop.f32.mrf.mxu1 }
 0x4af   :  { %v1481_v36 = vadd.f32 %v1480_v61, %v5716_v37  ;;  %v4371_v61 = vld [vmem:[#allocation2 + $0x8] sm:$0xff] }
 0x4b0   :  { %v1661_v39 = vpop.f32.mrf.mxu0 }
 0x4b1   :  { %1683 = vmatmul.f32.gmra.mxu1 %v1661_v39  ;;  %v1585_v37 = vadd.f32 %v1581_v47, %v1481_v36  ;;  %v589_v36 = vld [vmem:[#allocation10 + $0x638] sm:$0xff] }
 0x4b2   :  { %v557_v47 = vld [vmem:[#allocation10 + $0x538] sm:$0xff] }
 0x526   :  { %v1681_v23 = vpop.f32.mrf.mxu1 }
 0x527   :  { %v1687_v31 = vadd.f32 %v1681_v23, %v1584_v18  ;;  %v637_v18 = vld [vmem:[#allocation10 + $0x7b8] sm:$0xff]  ;;  %v620_v23 = vld [vmem:[#allocation10 + $0x730] sm:$0xff] }
 0x528   :  { %1945 = vmatpush.msrb.mxu1 %v637_v18  ;;  %1923 = vmatpush.msrb.mxu2 %v620_v23  ;;  %v427_v18 = vld [vmem:[#allocation10 + $0x128] sm:$0xff]  ;;  %v410_v23 = vld [vmem:[#allocation10 + $0xa0] sm:$0xff] }
 0x529   :  { %v1689_v39 = vadd.f32 %v4370_v38, %v1687_v31  ;;  %v603_v31 = vld [vmem:[#allocation10 + $0x6a8] sm:$0xff]  ;;  %v570_v38 = vld [vmem:[#allocation10 + $0x5a0] sm:$0xff] }
 0x52a   :  { %1946 = vmatpush.msrb.mxu1 %v621_v24  ;;  %1901 = vmatpush.msra.mxu0 %v603_v31  ;;  %v411_v24 = vld [vmem:[#allocation10 + $0xa8] sm:$0xff]  ;;  %v413_v31 = vld [vmem:[#allocation10 + $0xb8] sm:$0xff] }
 0x52b   :  { %v5722_v46 = vadd.f32 %v4283_v27, %v1689_v39  ;;  %v571_v39 = vld [vmem:[#allocation10 + $0x5a8] sm:$0xff]  ;;  %1880 = vmatpush.msra.mxu3 %v570_v38 }
 0x52c   :  { %1947 = vmatpush.msrb.mxu1 %v605_v32  ;;  %1902 = vmatpush.msra.mxu0 %v587_v35  ;;  %v395_v32 = vld [vmem:[#allocation10 + $0x28] sm:$0xff] }
 0x52d   :  { %1696 = vadd.xlane.f32.xlu1 %v5722_v46  ;;  %v1702_v53 = vmul.f32 %v5722_v46, %v5722_v46  ;;  %1881 = vmatpush.msra.mxu3 %v554_v45 }
 0x52e   :  { %v1684_v55 = vpop.f32.mrf.mxu1  ;;  %1948 = vmatpush.msrb.mxu1 %v589_v36  ;;  %1903 = vmatpush.msra.mxu0 %v571_v39 }
 0x52f   :  { %v1688_v62 = vadd.f32 %v1684_v55, %v1585_v37  ;;  %1704 = vadd.xlane.f32.xlu2 %v1702_v53  ;;  %v539_v37 = vld [vmem:[#allocation10 + $0x4a8] sm:$0xff]  ;;  %v540_v53 = vld [vmem:[#allocation10 + $0x4b0] sm:$0xff]  ;;  %1882 = vmatpush.msra.mxu3 %v538_v51 }
 0x530   :  { %1949 = vmatpush.msrb.mxu1 %v573_v41  ;;  %1904 = vmatpush.msra.mxu0 %v555_v49  ;;  %v523_v55 = vld [vmem:[#allocation10 + $0x428] sm:$0xff] }
 0x531   :  { %v1690_v34 = vadd.f32 %v4371_v61, %v1688_v62  ;;  %1883 = vmatpush.msra.mxu3 %v522_v17  ;;  %v506_v62 = vld [vmem:[#allocation10 + $0x3a0] sm:$0xff]  ;;  %v491_v61 = vld [vmem:[#allocation10 + $0x328] sm:$0xff] }
 0x532   :  { %1950 = vmatpush.msrb.mxu1 %v557_v47  ;;  %1905 = vmatpush.msra.mxu0 %v539_v37 }
 0x533   :  { %v5727_v6 = vadd.f32 %v4283_v27, %v1690_v34  ;;  %v604_v27 = vld [vmem:[#allocation10 + $0x6b0] sm:$0xff]  ;;  %1884 = vmatpush.msra.mxu3 %v506_v62 }
 0x534   :  { %1924 = vmatpush.msrb.mxu2 %v604_v27  ;;  %1951 = vmatpush.msrb.mxu1 %v541_v54  ;;  %v492_v34 = vld [vmem:[#allocation10 + $0x330] sm:$0xff]  ;;  %v394_v27 = vld [vmem:[#allocation10 + $0x20] sm:$0xff] }
 0x535   :  { %1698 = vadd.xlane.f32.xlu0 %v5727_v6  ;;  %v1703_v60 = vmul.f32 %v5727_v6, %v5727_v6  ;;  %1906 = vmatpush.msra.mxu0 %v523_v55 }
 0x536   :  { %1925 = vmatpush.msrb.mxu2 %v588_v42  ;;  %1952 = vmatpush.msrb.mxu1 %v525_v57  ;;  %v397_v42 = vld [vmem:[#allocation10 + $0x38] sm:$0xff] }
 0x537   :  { %1706 = vadd.xlane.f32.xlu1 %v1703_v60  ;;  %1907 = vmatpush.msra.mxu0 %v507_v0  ;;  %v459_v60 = vld [vmem:[#allocation10 + $0x228] sm:$0xff] }
 0x538   :  { %1926 = vmatpush.msrb.mxu2 %v572_v40  ;;  %1953 = vmatpush.msrb.mxu1 %v509_v3 }
 0x539   :  { %1885 = vmatpush.msra.mxu3 %v490_v4  ;;  %1908 = vmatpush.msra.mxu0 %v491_v61  ;;  %v4284_v61 = vld [vmem:[%s6092_s5] ss:$0 sm:$0xff] }
 0x53a   :  { %1927 = vmatpush.msrb.mxu2 %v556_v50  ;;  %1954 = vmatpush.msrb.mxu1 %v493_v58 }
 0x53b   :  { %1886 = vmatpush.msra.mxu3 %v474_v43  ;;  %1909 = vmatpush.msra.mxu0 %v475_v5  ;;  %v4285_v43 = vld [vmem:[%s6093_s6] ss:$0 sm:$0xff] }
 0x53c   :  { %1928 = vmatpush.msrb.mxu2 %v540_v53  ;;  %1955 = vmatpush.msrb.mxu1 %v477_v16 }
 0x53d   :  { %1887 = vmatpush.msra.mxu3 %v458_v9  ;;  %1910 = vmatpush.msra.mxu0 %v459_v60 }
 0x53e   :  { %1929 = vmatpush.msrb.mxu2 %v524_v56  ;;  %1956 = vmatpush.msrb.mxu1 %v461_v8  ;;  %v639_v8 = vld [vmem:[#allocation10 + $0x7c8] sm:$0xff] }
 0x53f   :  { %1888 = vmatpush.msra.mxu3 %v442_v11  ;;  %1911 = vmatpush.msra.mxu0 %v443_v12  ;;  %v640_v12 = vld [vmem:[#allocation10 + $0x7d0] sm:$0xff] }
 0x540   :  { %1930 = vmatpush.msrb.mxu2 %v508_v2  ;;  %1957 = vmatpush.msrb.mxu1 %v445_v59 }
 0x541   :  { %1889 = vmatpush.msra.mxu3 %v426_v15  ;;  %1912 = vmatpush.msra.mxu0 %v427_v18  ;;  %v622_v15 = vld [vmem:[#allocation10 + $0x740] sm:$0xff]  ;;  %v623_v18 = vld [vmem:[#allocation10 + $0x748] sm:$0xff] }
 0x542   :  { %1931 = vmatpush.msrb.mxu2 %v492_v34  ;;  %1958 = vmatpush.msrb.mxu1 %v429_v22  ;;  %v624_v22 = vld [vmem:[#allocation10 + $0x750] sm:$0xff] }
 0x543   :  { %1890 = vmatpush.msra.mxu3 %v410_v23  ;;  %1913 = vmatpush.msra.mxu0 %v411_v24  ;;  %v625_v23 = vld [vmem:[#allocation10 + $0x758] sm:$0xff]  ;;  %v607_v24 = vld [vmem:[#allocation10 + $0x6c8] sm:$0xff] }
 0x544   :  { %1932 = vmatpush.msrb.mxu2 %v476_v7  ;;  %1959 = vmatpush.msrb.mxu1 %v413_v31  ;;  %v608_v31 = vld [vmem:[#allocation10 + $0x6d0] sm:$0xff] }
 0x545   :  { %1891 = vmatpush.msra.mxu3 %v394_v27  ;;  %1914 = vmatpush.msra.mxu0 %v395_v32  ;;  %v609_v27 = vld [vmem:[#allocation10 + $0x6d8] sm:$0xff]  ;;  %v590_v32 = vld [vmem:[#allocation10 + $0x640] sm:$0xff] }
 0x546   :  { %1933 = vmatpush.msrb.mxu2 %v460_v10  ;;  %1960 = vmatpush.msrb.mxu1 %v397_v42  ;;  %v592_v42 = vld [vmem:[#allocation10 + $0x650] sm:$0xff] }
 0x548   :  { %1934 = vmatpush.msrb.mxu2 %v444_v14  ;;  %v641_v14 = vld [vmem:[#allocation10 + $0x7d8] sm:$0xff] }
 0x54a   :  { %1935 = vmatpush.msrb.mxu2 %v428_v19 }
 0x54c   :  { %1936 = vmatpush.msrb.mxu2 %v412_v28 }
 0x54e   :  { %1937 = vmatpush.msrb.mxu2 %v396_v33  ;;  %v591_v33 = vld [vmem:[#allocation10 + $0x648] sm:$0xff] }
 0x5a0   :  { %v1697_v35 = vpop.xlane.xlu1 %1696 }
 0x5a1   :  { %v1700_v36 = vmul.f32 0.03125, %v1697_v35 }
 0x5a2   :  { %v1705_v38 = vpop.xlane.xlu2 %1704 }
 0x5a3   :  { %v1710_v39 = vmul.f32 %v1700_v36, %v1700_v36  ;;  %v1708_v40 = vmul.f32 0.03125, %v1705_v38  ;;  %v1714_v4 = vsub.f32 %v5722_v46, %v1700_v36  ;;  %v638_v46 = vld [vmem:[#allocation10 + $0x7c0] sm:$0xff]  ;;  %v593_v36 = vld [vmem:[#allocation10 + $0x658] sm:$0xff] }
 0x5a4   :  { %v574_v38 = vld [vmem:[#allocation10 + $0x5c0] sm:$0xff] }
 0x5a5   :  { %v1712_v41 = vsub.f32 %v1708_v40, %v1710_v39  ;;  %v575_v39 = vld [vmem:[#allocation10 + $0x5c8] sm:$0xff]  ;;  %v576_v40 = vld [vmem:[#allocation10 + $0x5d0] sm:$0xff] }
 0x5a7   :  { %v1716_v45 = vadd.f32 1e-05, %v1712_v41  ;;  %v577_v41 = vld [vmem:[#allocation10 + $0x5d8] sm:$0xff] }
 0x5a8   :  { %v1699_v49 = vpop.xlane.xlu0 %1698 }
 0x5a9   :  { %4322 = vrsqrt.f32 %v1716_v45  ;;  %v1701_v50 = vmul.f32 0.03125, %v1699_v49  ;;  %vm1724_vm2 = vweird.f32 %v1716_v45  ;;  %v559_v49 = vld [vmem:[#allocation10 + $0x548] sm:$0xff] }
 0x5aa   :  { %v1707_v47 = vpop.xlane.xlu1 %1706 }
 0x5ab   :  { %v1711_v51 = vmul.f32 %v1701_v50, %v1701_v50  ;;  %v1709_v37 = vmul.f32 0.03125, %v1707_v47  ;;  %v1715_v11 = vsub.f32 %v5727_v6, %v1701_v50  ;;  %v606_v6 = vld [vmem:[#allocation10 + $0x6c0] sm:$0xff]  ;;  %v560_v50 = vld [vmem:[#allocation10 + $0x550] sm:$0xff]  ;;  %v561_v47 = vld [vmem:[#allocation10 + $0x558] sm:$0xff] }
 0x5ad   :  { %v1713_v53 = vsub.f32 %v1709_v37, %v1711_v51  ;;  %v542_v51 = vld [vmem:[#allocation10 + $0x4c0] sm:$0xff]  ;;  %v543_v37 = vld [vmem:[#allocation10 + $0x4c8] sm:$0xff] }
 0x5af   :  { %v4323_v54 = vpop.eup %4322  ;;  %v1717_v17 = vadd.f32 1e-05, %v1713_v53  ;;  %v544_v53 = vld [vmem:[#allocation10 + $0x4d0] sm:$0xff] }
 0x5b0   :  { %v1719_v55 = vmul.f32 %v4323_v54, %v1716_v45  ;;  %vm1725_vm1 = vweird.f32 %v4323_v54  ;;  %v558_v45 = vld [vmem:[#allocation10 + $0x540] sm:$0xff] }
 0x5b1   :  { %4324 = vrsqrt.f32 %v1717_v17  ;;  %vm1726_vm3 = vmor %vm1724_vm2, %vm1725_vm1  ;;  %vm1734_vm5 = vweird.f32 %v1717_v17 }
 0x5b2   :  { %v1720_v56 = vmul.f32 %v4323_v54, %v1719_v55  ;;  %v527_v55 = vld [vmem:[#allocation10 + $0x448] sm:$0xff] }
 0x5b4   :  { %v1721_v57 = vmul.f32 0.5, %v1720_v56  ;;  %v528_v56 = vld [vmem:[#allocation10 + $0x450] sm:$0xff] }
 0x5b6   :  { %v1722_v62 = vsub.f32 1.5, %v1721_v57  ;;  %v529_v57 = vld [vmem:[#allocation10 + $0x458] sm:$0xff] }
 0x5b7   :  { %v4325_v0 = vpop.eup %4324 }
 0x5b8   :  { %v1723_v2 = vmul.f32 %v4323_v54, %v1722_v62  ;;  %v1729_v3 = vmul.f32 %v4325_v0, %v1717_v17  ;;  %vm1735_vm4 = vweird.f32 %v4325_v0  ;;  %v526_v17 = vld [vmem:[#allocation10 + $0x440] sm:$0xff] }
 0x5b9   :  { %vm1736_vm6 = vmor %vm1734_vm5, %vm1735_vm4  ;;  %v510_v62 = vld [vmem:[#allocation10 + $0x3c0] sm:$0xff] }
 0x5ba   :  { %v1727_v34 = vsel %vm1726_vm3, %v4323_v54, %v1723_v2  ;;  %v1730_v58 = vmul.f32 %v4325_v0, %v1729_v3  ;;  %v545_v54 = vld [vmem:[#allocation10 + $0x4d8] sm:$0xff]  ;;  %v512_v2 = vld [vmem:[#allocation10 + $0x3d0] sm:$0xff] }
 0x5bb   :  { %v1738_v5 = vmul.f32 %v1727_v34, %v1714_v4  ;;  %v513_v3 = vld [vmem:[#allocation10 + $0x3d8] sm:$0xff]  ;;  %v494_v4 = vld [vmem:[#allocation10 + $0x340] sm:$0xff]  ;;  %v496_v34 = vld [vmem:[#allocation10 + $0x350] sm:$0xff] }
 0x5bc   :  { %v1731_v7 = vmul.f32 0.5, %v1730_v58  ;;  %v497_v58 = vld [vmem:[#allocation10 + $0x358] sm:$0xff] }
 0x5bd   :  { %v1743_v16 = vmul.f32 %v4284_v61, %v1738_v5  ;;  %v479_v5 = vld [vmem:[#allocation10 + $0x2c8] sm:$0xff] }
 0x5be   :  { %v1732_v9 = vsub.f32 1.5, %v1731_v7  ;;  %v480_v7 = vld [vmem:[#allocation10 + $0x2d0] sm:$0xff] }
 0x5bf   :  { %v5739_v60 = vadd.f32 %v4285_v43, %v1743_v16  ;;  %v481_v16 = vld [vmem:[#allocation10 + $0x2d8] sm:$0xff] }
 0x5c0   :  { %v1733_v10 = vmul.f32 %v4325_v0, %v1732_v9  ;;  %v462_v9 = vld [vmem:[#allocation10 + $0x240] sm:$0xff] }
 0x5c1   :  { %1800 = vmatmul.f32.vlgmr.msrb.gmra.mxu3 %v5739_v60  ;;  %1823 = vmatmul.f32.vlgmr.msrb.gmra.mxu0 %v5739_v60 }
 0x5c2   :  { %v1737_v59 = vsel %vm1736_vm6, %v4325_v0, %v1733_v10  ;;  %1846 = vmatmul.f32.vlgmr.msra.gmra.mxu2 %v5739_v60  ;;  %1869 = vmatmul.f32.vlgmr.msra.gmra.mxu1 %v5739_v60  ;;  %v511_v0 = vld [vmem:[#allocation10 + $0x3c8] sm:$0xff] }
 0x5c3   :  { %v1739_v19 = vmul.f32 %v1737_v59, %v1715_v11  ;;  %1968 = vmatpush.msrb.mxu3 %v638_v46  ;;  %1991 = vmatpush.msrb.mxu0 %v639_v8  ;;  %v463_v10 = vld [vmem:[#allocation10 + $0x248] sm:$0xff]  ;;  %v464_v46 = vld [vmem:[#allocation10 + $0x250] sm:$0xff]  ;;  %v465_v8 = vld [vmem:[#allocation10 + $0x258] sm:$0xff] }
 0x5c4   :  { %2014 = vmatpush.msra.mxu2 %v640_v12  ;;  %2037 = vmatpush.msra.mxu1 %v641_v14  ;;  %v446_v11 = vld [vmem:[#allocation10 + $0x1c0] sm:$0xff]  ;;  %v447_v12 = vld [vmem:[#allocation10 + $0x1c8] sm:$0xff]  ;;  %v448_v14 = vld [vmem:[#allocation10 + $0x1d0] sm:$0xff] }
 0x5c5   :  { %v1744_v28 = vmul.f32 %v4284_v61, %v1739_v19  ;;  %1969 = vmatpush.msrb.mxu3 %v622_v15  ;;  %1992 = vmatpush.msrb.mxu0 %v623_v18  ;;  %v495_v61 = vld [vmem:[#allocation10 + $0x348] sm:$0xff]  ;;  %v449_v59 = vld [vmem:[#allocation10 + $0x1d8] sm:$0xff]  ;;  %v430_v15 = vld [vmem:[#allocation10 + $0x140] sm:$0xff] }
 0x5c6   :  { %2015 = vmatpush.msra.mxu2 %v624_v22  ;;  %2038 = vmatpush.msra.mxu1 %v625_v23  ;;  %v431_v18 = vld [vmem:[#allocation10 + $0x148] sm:$0xff]  ;;  %v432_v19 = vld [vmem:[#allocation10 + $0x150] sm:$0xff]  ;;  %v433_v22 = vld [vmem:[#allocation10 + $0x158] sm:$0xff] }
 0x5c7   :  { %v5746_v35 = vadd.f32 %v4285_v43, %v1744_v28  ;;  %1970 = vmatpush.msrb.mxu3 %v606_v6  ;;  %1993 = vmatpush.msrb.mxu0 %v607_v24  ;;  %v478_v43 = vld [vmem:[#allocation10 + $0x2c0] sm:$0xff]  ;;  %v415_v6 = vld [vmem:[#allocation10 + $0xc8] sm:$0xff]  ;;  %v416_v24 = vld [vmem:[#allocation10 + $0xd0] sm:$0xff] }
 0x5c8   :  { %2016 = vmatpush.msra.mxu2 %v608_v31  ;;  %2039 = vmatpush.msra.mxu1 %v609_v27  ;;  %v414_v23 = vld [vmem:[#allocation10 + $0xc0] sm:$0xff]  ;;  %v417_v28 = vld [vmem:[#allocation10 + $0xd8] sm:$0xff]  ;;  %v399_v27 = vld [vmem:[#allocation10 + $0x48] sm:$0xff] }
 0x5c9   :  { %1971 = vmatpush.msrb.mxu3 %v590_v32  ;;  %1994 = vmatpush.msrb.mxu0 %v591_v33  ;;  %v398_v31 = vld [vmem:[#allocation10 + $0x40] sm:$0xff]  ;;  %v400_v32 = vld [vmem:[#allocation10 + $0x50] sm:$0xff]  ;;  %v401_v33 = vld [vmem:[#allocation10 + $0x58] sm:$0xff] }
 0x5ca   :  { %2017 = vmatpush.msra.mxu2 %v592_v42  ;;  %2040 = vmatpush.msra.mxu1 %v593_v36  ;;  %v642_v42 = vld [vmem:[#allocation10 + $0x7e0] sm:$0xff]  ;;  %v643_v36 = vld [vmem:[#allocation10 + $0x7e8] sm:$0xff] }
 0x5cb   :  { %1803 = vmatmul.f32.gmra.mxu3 %v5746_v35  ;;  %1826 = vmatmul.f32.gmra.mxu0 %v5746_v35 }
 0x5cc   :  { %1849 = vmatmul.f32.gmra.mxu2 %v5746_v35  ;;  %1872 = vmatmul.f32.gmra.mxu1 %v5746_v35 }
 0x5cd   :  { %1972 = vmatpush.msrb.mxu3 %v574_v38  ;;  %1995 = vmatpush.msrb.mxu0 %v575_v39  ;;  %v644_v38 = vld [vmem:[#allocation10 + $0x7f0] sm:$0xff]  ;;  %v645_v39 = vld [vmem:[#allocation10 + $0x7f8] sm:$0xff] }
 0x5ce   :  { %2018 = vmatpush.msra.mxu2 %v576_v40  ;;  %2041 = vmatpush.msra.mxu1 %v577_v41  ;;  %v626_v40 = vld [vmem:[#allocation10 + $0x760] sm:$0xff]  ;;  %v627_v41 = vld [vmem:[#allocation10 + $0x768] sm:$0xff] }
 0x5cf   :  { %1973 = vmatpush.msrb.mxu3 %v558_v45  ;;  %1996 = vmatpush.msrb.mxu0 %v559_v49  ;;  %v628_v45 = vld [vmem:[#allocation10 + $0x770] sm:$0xff]  ;;  %v629_v49 = vld [vmem:[#allocation10 + $0x778] sm:$0xff] }
 0x5d0   :  { %2019 = vmatpush.msra.mxu2 %v560_v50  ;;  %2042 = vmatpush.msra.mxu1 %v561_v47  ;;  %v610_v50 = vld [vmem:[#allocation10 + $0x6e0] sm:$0xff]  ;;  %v611_v47 = vld [vmem:[#allocation10 + $0x6e8] sm:$0xff] }
 0x5d1   :  { %1974 = vmatpush.msrb.mxu3 %v542_v51  ;;  %1997 = vmatpush.msrb.mxu0 %v543_v37  ;;  %v612_v51 = vld [vmem:[#allocation10 + $0x6f0] sm:$0xff]  ;;  %v613_v37 = vld [vmem:[#allocation10 + $0x6f8] sm:$0xff] }
 0x5d2   :  { %2020 = vmatpush.msra.mxu2 %v544_v53  ;;  %2043 = vmatpush.msra.mxu1 %v545_v54  ;;  %v594_v53 = vld [vmem:[#allocation10 + $0x660] sm:$0xff]  ;;  %v595_v54 = vld [vmem:[#allocation10 + $0x668] sm:$0xff] }
 0x5d3   :  { %1975 = vmatpush.msrb.mxu3 %v526_v17  ;;  %1998 = vmatpush.msrb.mxu0 %v527_v55  ;;  %v596_v17 = vld [vmem:[#allocation10 + $0x670] sm:$0xff]  ;;  %v597_v55 = vld [vmem:[#allocation10 + $0x678] sm:$0xff] }
 0x5d4   :  { %2021 = vmatpush.msra.mxu2 %v528_v56  ;;  %2044 = vmatpush.msra.mxu1 %v529_v57  ;;  %v578_v56 = vld [vmem:[#allocation10 + $0x5e0] sm:$0xff]  ;;  %v579_v57 = vld [vmem:[#allocation10 + $0x5e8] sm:$0xff] }
 0x5d5   :  { %1892 = vmatmul.f32.vlgmr.msra.gmra.mxu3 %v5739_v60  ;;  %1915 = vmatmul.f32.vlgmr.msra.gmra.mxu0 %v5739_v60 }
 0x5d6   :  { %1938 = vmatmul.f32.vlgmr.msrb.gmra.mxu2 %v5739_v60  ;;  %1961 = vmatmul.f32.vlgmr.msrb.gmra.mxu1 %v5739_v60 }
 0x5d7   :  { %1976 = vmatpush.msrb.mxu3 %v510_v62  ;;  %1999 = vmatpush.msrb.mxu0 %v511_v0  ;;  %v580_v62 = vld [vmem:[#allocation10 + $0x5f0] sm:$0xff]  ;;  %v581_v0 = vld [vmem:[#allocation10 + $0x5f8] sm:$0xff] }
 0x5d8   :  { %2022 = vmatpush.msra.mxu2 %v512_v2  ;;  %2045 = vmatpush.msra.mxu1 %v513_v3  ;;  %v562_v2 = vld [vmem:[#allocation10 + $0x560] sm:$0xff]  ;;  %v563_v3 = vld [vmem:[#allocation10 + $0x568] sm:$0xff] }
 0x5d9   :  { %1977 = vmatpush.msrb.mxu3 %v494_v4  ;;  %2000 = vmatpush.msrb.mxu0 %v495_v61  ;;  %v564_v4 = vld [vmem:[#allocation10 + $0x570] sm:$0xff]  ;;  %v565_v61 = vld [vmem:[#allocation10 + $0x578] sm:$0xff] }
 0x5da   :  { %2023 = vmatpush.msra.mxu2 %v496_v34  ;;  %2046 = vmatpush.msra.mxu1 %v497_v58  ;;  %v546_v34 = vld [vmem:[#allocation10 + $0x4e0] sm:$0xff]  ;;  %v547_v58 = vld [vmem:[#allocation10 + $0x4e8] sm:$0xff] }
 0x5db   :  { %1978 = vmatpush.msrb.mxu3 %v478_v43  ;;  %2001 = vmatpush.msrb.mxu0 %v479_v5  ;;  %v548_v43 = vld [vmem:[#allocation10 + $0x4f0] sm:$0xff]  ;;  %v549_v5 = vld [vmem:[#allocation10 + $0x4f8] sm:$0xff] }
 0x5dc   :  { %2024 = vmatpush.msra.mxu2 %v480_v7  ;;  %2047 = vmatpush.msra.mxu1 %v481_v16  ;;  %v530_v7 = vld [vmem:[#allocation10 + $0x460] sm:$0xff]  ;;  %v531_v16 = vld [vmem:[#allocation10 + $0x468] sm:$0xff] }
 0x5dd   :  { %1979 = vmatpush.msrb.mxu3 %v462_v9  ;;  %2002 = vmatpush.msrb.mxu0 %v463_v10  ;;  %v532_v9 = vld [vmem:[#allocation10 + $0x470] sm:$0xff]  ;;  %v533_v10 = vld [vmem:[#allocation10 + $0x478] sm:$0xff] }
 0x5de   :  { %2025 = vmatpush.msra.mxu2 %v464_v46  ;;  %2048 = vmatpush.msra.mxu1 %v465_v8  ;;  %v514_v46 = vld [vmem:[#allocation10 + $0x3e0] sm:$0xff]  ;;  %v515_v8 = vld [vmem:[#allocation10 + $0x3e8] sm:$0xff] }
 0x5df   :  { %1895 = vmatmul.f32.gmra.mxu3 %v5746_v35  ;;  %1918 = vmatmul.f32.gmra.mxu0 %v5746_v35 }
 0x5e0   :  { %1941 = vmatmul.f32.gmra.mxu2 %v5746_v35  ;;  %1964 = vmatmul.f32.gmra.mxu1 %v5746_v35 }
 0x5e1   :  { %1980 = vmatpush.msrb.mxu3 %v446_v11  ;;  %2003 = vmatpush.msrb.mxu0 %v447_v12  ;;  %v516_v11 = vld [vmem:[#allocation10 + $0x3f0] sm:$0xff]  ;;  %v517_v12 = vld [vmem:[#allocation10 + $0x3f8] sm:$0xff] }
 0x5e2   :  { %2026 = vmatpush.msra.mxu2 %v448_v14  ;;  %2049 = vmatpush.msra.mxu1 %v449_v59  ;;  %v498_v14 = vld [vmem:[#allocation10 + $0x360] sm:$0xff]  ;;  %v499_v59 = vld [vmem:[#allocation10 + $0x368] sm:$0xff] }
 0x5e3   :  { %1981 = vmatpush.msrb.mxu3 %v430_v15  ;;  %2004 = vmatpush.msrb.mxu0 %v431_v18  ;;  %v500_v15 = vld [vmem:[#allocation10 + $0x370] sm:$0xff]  ;;  %v501_v18 = vld [vmem:[#allocation10 + $0x378] sm:$0xff] }
 0x5e4   :  { %2027 = vmatpush.msra.mxu2 %v432_v19  ;;  %2050 = vmatpush.msra.mxu1 %v433_v22  ;;  %v482_v19 = vld [vmem:[#allocation10 + $0x2e0] sm:$0xff]  ;;  %v483_v22 = vld [vmem:[#allocation10 + $0x2e8] sm:$0xff] }
 0x5e5   :  { %1982 = vmatpush.msrb.mxu3 %v414_v23  ;;  %2005 = vmatpush.msrb.mxu0 %v415_v6  ;;  %v484_v23 = vld [vmem:[#allocation10 + $0x2f0] sm:$0xff]  ;;  %v485_v6 = vld [vmem:[#allocation10 + $0x2f8] sm:$0xff] }
 0x5e6   :  { %2028 = vmatpush.msra.mxu2 %v416_v24  ;;  %2051 = vmatpush.msra.mxu1 %v417_v28  ;;  %v466_v24 = vld [vmem:[#allocation10 + $0x260] sm:$0xff]  ;;  %v467_v28 = vld [vmem:[#allocation10 + $0x268] sm:$0xff] }
 0x5e7   :  { %1983 = vmatpush.msrb.mxu3 %v398_v31  ;;  %2006 = vmatpush.msrb.mxu0 %v399_v27  ;;  %v468_v31 = vld [vmem:[#allocation10 + $0x270] sm:$0xff]  ;;  %v469_v27 = vld [vmem:[#allocation10 + $0x278] sm:$0xff] }
 0x5e8   :  { %2029 = vmatpush.msra.mxu2 %v400_v32  ;;  %2052 = vmatpush.msra.mxu1 %v401_v33  ;;  %v450_v32 = vld [vmem:[#allocation10 + $0x1e0] sm:$0xff]  ;;  %v451_v33 = vld [vmem:[#allocation10 + $0x1e8] sm:$0xff] }
 0x5e9   :  { %2060 = vmatpush.msra.mxu3 %v642_v42  ;;  %2083 = vmatpush.msra.mxu0 %v643_v36  ;;  %v452_v42 = vld [vmem:[#allocation10 + $0x1f0] sm:$0xff]  ;;  %v453_v36 = vld [vmem:[#allocation10 + $0x1f8] sm:$0xff] }
 0x5ea   :  { %2106 = vmatpush.msrb.mxu2 %v644_v38  ;;  %2129 = vmatpush.msrb.mxu1 %v645_v39  ;;  %v434_v38 = vld [vmem:[#allocation10 + $0x160] sm:$0xff]  ;;  %v435_v39 = vld [vmem:[#allocation10 + $0x168] sm:$0xff] }
 0x5eb   :  { %1984 = vmatmul.f32.vlgmr.msrb.gmra.mxu3 %v5739_v60  ;;  %2007 = vmatmul.f32.vlgmr.msrb.gmra.mxu0 %v5739_v60 }
 0x5ec   :  { %2030 = vmatmul.f32.vlgmr.msra.gmra.mxu2 %v5739_v60  ;;  %2053 = vmatmul.f32.vlgmr.msra.gmra.mxu1 %v5739_v60 }
 0x5ed   :  { %2061 = vmatpush.msra.mxu3 %v626_v40  ;;  %2084 = vmatpush.msra.mxu0 %v627_v41  ;;  %v436_v40 = vld [vmem:[#allocation10 + $0x170] sm:$0xff]  ;;  %v437_v41 = vld [vmem:[#allocation10 + $0x178] sm:$0xff] }
 0x5ee   :  { %2107 = vmatpush.msrb.mxu2 %v628_v45  ;;  %2130 = vmatpush.msrb.mxu1 %v629_v49  ;;  %v418_v45 = vld [vmem:[#allocation10 + $0xe0] sm:$0xff]  ;;  %v419_v49 = vld [vmem:[#allocation10 + $0xe8] sm:$0xff] }
 0x5ef   :  { %2062 = vmatpush.msra.mxu3 %v610_v50  ;;  %2085 = vmatpush.msra.mxu0 %v611_v47  ;;  %v420_v50 = vld [vmem:[#allocation10 + $0xf0] sm:$0xff]  ;;  %v421_v47 = vld [vmem:[#allocation10 + $0xf8] sm:$0xff] }
 0x5f0   :  { %2108 = vmatpush.msrb.mxu2 %v612_v51  ;;  %2131 = vmatpush.msrb.mxu1 %v613_v37  ;;  %v402_v51 = vld [vmem:[#allocation10 + $0x60] sm:$0xff]  ;;  %v403_v37 = vld [vmem:[#allocation10 + $0x68] sm:$0xff] }
 0x5f1   :  { %2063 = vmatpush.msra.mxu3 %v594_v53  ;;  %2086 = vmatpush.msra.mxu0 %v595_v54  ;;  %v404_v53 = vld [vmem:[#allocation10 + $0x70] sm:$0xff]  ;;  %v405_v54 = vld [vmem:[#allocation10 + $0x78] sm:$0xff] }
 0x5f2   :  { %2109 = vmatpush.msrb.mxu2 %v596_v17  ;;  %2132 = vmatpush.msrb.mxu1 %v597_v55  ;;  %v679_v17 = vld [vmem:[#allocation13 + $0xf8] sm:$0xff] }
 0x5f3   :  { %2064 = vmatpush.msra.mxu3 %v578_v56  ;;  %2087 = vmatpush.msra.mxu0 %v579_v57  ;;  %v711_v55 = vld [vmem:[#allocation13 + $0x1f8] sm:$0xff] }
 0x5f4   :  { %2110 = vmatpush.msrb.mxu2 %v580_v62  ;;  %2133 = vmatpush.msrb.mxu1 %v581_v0  ;;  %v663_v56 = vld [vmem:[#allocation13 + $0x78] sm:$0xff]  ;;  %v678_v62 = vld [vmem:[#allocation13 + $0xf0] sm:$0xff] }
 0x5f5   :  { %1987 = vmatmul.f32.gmra.mxu3 %v5746_v35  ;;  %2010 = vmatmul.f32.gmra.mxu0 %v5746_v35  ;;  %v695_v57 = vld [vmem:[#allocation13 + $0x178] sm:$0xff]  ;;  %v710_v0 = vld [vmem:[#allocation13 + $0x1f0] sm:$0xff] }
 0x5f6   :  { %2033 = vmatmul.f32.gmra.mxu2 %v5746_v35  ;;  %2056 = vmatmul.f32.gmra.mxu1 %v5746_v35 }
 0x5f7   :  { %2065 = vmatpush.msra.mxu3 %v562_v2  ;;  %2088 = vmatpush.msra.mxu0 %v563_v3  ;;  %v662_v2 = vld [vmem:[#allocation13 + $0x70] sm:$0xff] }
 0x5f8   :  { %2111 = vmatpush.msrb.mxu2 %v564_v4  ;;  %2134 = vmatpush.msrb.mxu1 %v565_v61  ;;  %v694_v3 = vld [vmem:[#allocation13 + $0x170] sm:$0xff]  ;;  %v677_v4 = vld [vmem:[#allocation13 + $0xe8] sm:$0xff] }
 0x5f9   :  { %2066 = vmatpush.msra.mxu3 %v546_v34  ;;  %2089 = vmatpush.msra.mxu0 %v547_v58  ;;  %v709_v61 = vld [vmem:[#allocation13 + $0x1e8] sm:$0xff] }
 0x5fa   :  { %2112 = vmatpush.msrb.mxu2 %v548_v43  ;;  %2135 = vmatpush.msrb.mxu1 %v549_v5  ;;  %v661_v34 = vld [vmem:[#allocation13 + $0x68] sm:$0xff]  ;;  %v676_v43 = vld [vmem:[#allocation13 + $0xe0] sm:$0xff] }
 0x5fb   :  { %2067 = vmatpush.msra.mxu3 %v530_v7  ;;  %2090 = vmatpush.msra.mxu0 %v531_v16  ;;  %v693_v58 = vld [vmem:[#allocation13 + $0x168] sm:$0xff]  ;;  %v708_v5 = vld [vmem:[#allocation13 + $0x1e0] sm:$0xff] }
 0x5fc   :  { %2113 = vmatpush.msrb.mxu2 %v532_v9  ;;  %2136 = vmatpush.msrb.mxu1 %v533_v10  ;;  %v660_v7 = vld [vmem:[#allocation13 + $0x60] sm:$0xff]  ;;  %v675_v9 = vld [vmem:[#allocation13 + $0xd8] sm:$0xff] }
 0x5fd   :  { %2068 = vmatpush.msra.mxu3 %v514_v46  ;;  %2091 = vmatpush.msra.mxu0 %v515_v8  ;;  %v692_v16 = vld [vmem:[#allocation13 + $0x160] sm:$0xff]  ;;  %v707_v10 = vld [vmem:[#allocation13 + $0x1d8] sm:$0xff] }
 0x5fe   :  { %2114 = vmatpush.msrb.mxu2 %v516_v11  ;;  %2137 = vmatpush.msrb.mxu1 %v517_v12  ;;  %v659_v46 = vld [vmem:[#allocation13 + $0x58] sm:$0xff]  ;;  %v674_v11 = vld [vmem:[#allocation13 + $0xd0] sm:$0xff] }
 0x5ff   :  { %2069 = vmatpush.msra.mxu3 %v498_v14  ;;  %2092 = vmatpush.msra.mxu0 %v499_v59  ;;  %v691_v8 = vld [vmem:[#allocation13 + $0x158] sm:$0xff]  ;;  %v706_v12 = vld [vmem:[#allocation13 + $0x1d0] sm:$0xff] }
 0x600   :  { %2115 = vmatpush.msrb.mxu2 %v500_v15  ;;  %2138 = vmatpush.msrb.mxu1 %v501_v18  ;;  %v658_v14 = vld [vmem:[#allocation13 + $0x50] sm:$0xff]  ;;  %v673_v15 = vld [vmem:[#allocation13 + $0xc8] sm:$0xff] }
 0x601   :  { %2070 = vmatpush.msra.mxu3 %v482_v19  ;;  %2093 = vmatpush.msra.mxu0 %v483_v22  ;;  %v690_v59 = vld [vmem:[#allocation13 + $0x150] sm:$0xff]  ;;  %v705_v18 = vld [vmem:[#allocation13 + $0x1c8] sm:$0xff] }
 0x602   :  { %2116 = vmatpush.msrb.mxu2 %v484_v23  ;;  %2139 = vmatpush.msrb.mxu1 %v485_v6  ;;  %v657_v19 = vld [vmem:[#allocation13 + $0x48] sm:$0xff]  ;;  %v672_v23 = vld [vmem:[#allocation13 + $0xc0] sm:$0xff] }
 0x603   :  { %2071 = vmatpush.msra.mxu3 %v466_v24  ;;  %2094 = vmatpush.msra.mxu0 %v467_v28  ;;  %v689_v22 = vld [vmem:[#allocation13 + $0x148] sm:$0xff]  ;;  %v704_v6 = vld [vmem:[#allocation13 + $0x1c0] sm:$0xff] }
 0x604   :  { %2117 = vmatpush.msrb.mxu2 %v468_v31  ;;  %2140 = vmatpush.msrb.mxu1 %v469_v27  ;;  %v656_v24 = vld [vmem:[#allocation13 + $0x40] sm:$0xff]  ;;  %v671_v31 = vld [vmem:[#allocation13 + $0xb8] sm:$0xff] }
 0x605   :  { %2072 = vmatpush.msra.mxu3 %v450_v32  ;;  %2095 = vmatpush.msra.mxu0 %v451_v33  ;;  %v688_v28 = vld [vmem:[#allocation13 + $0x140] sm:$0xff]  ;;  %v703_v27 = vld [vmem:[#allocation13 + $0x1b8] sm:$0xff] }
 0x606   :  { %2118 = vmatpush.msrb.mxu2 %v452_v42  ;;  %2141 = vmatpush.msrb.mxu1 %v453_v36  ;;  %v655_v32 = vld [vmem:[#allocation13 + $0x38] sm:$0xff]  ;;  %v670_v42 = vld [vmem:[#allocation13 + $0xb0] sm:$0xff] }
 0x607   :  { %2073 = vmatpush.msra.mxu3 %v434_v38  ;;  %2096 = vmatpush.msra.mxu0 %v435_v39  ;;  %v687_v33 = vld [vmem:[#allocation13 + $0x138] sm:$0xff]  ;;  %v702_v36 = vld [vmem:[#allocation13 + $0x1b0] sm:$0xff] }
 0x608   :  { %2119 = vmatpush.msrb.mxu2 %v436_v40  ;;  %2142 = vmatpush.msrb.mxu1 %v437_v41  ;;  %v654_v38 = vld [vmem:[#allocation13 + $0x30] sm:$0xff]  ;;  %v669_v40 = vld [vmem:[#allocation13 + $0xa8] sm:$0xff] }
 0x609   :  { %2074 = vmatpush.msra.mxu3 %v418_v45  ;;  %2097 = vmatpush.msra.mxu0 %v419_v49  ;;  %v686_v39 = vld [vmem:[#allocation13 + $0x130] sm:$0xff]  ;;  %v701_v41 = vld [vmem:[#allocation13 + $0x1a8] sm:$0xff] }
 0x60a   :  { %2120 = vmatpush.msrb.mxu2 %v420_v50  ;;  %2143 = vmatpush.msrb.mxu1 %v421_v47  ;;  %v653_v45 = vld [vmem:[#allocation13 + $0x28] sm:$0xff]  ;;  %v668_v50 = vld [vmem:[#allocation13 + $0xa0] sm:$0xff] }
 0x60b   :  { %2075 = vmatpush.msra.mxu3 %v402_v51  ;;  %2098 = vmatpush.msra.mxu0 %v403_v37  ;;  %v685_v49 = vld [vmem:[#allocation13 + $0x128] sm:$0xff]  ;;  %v700_v47 = vld [vmem:[#allocation13 + $0x1a0] sm:$0xff] }
 0x60c   :  { %2121 = vmatpush.msrb.mxu2 %v404_v53  ;;  %2144 = vmatpush.msrb.mxu1 %v405_v54  ;;  %v652_v51 = vld [vmem:[#allocation13 + $0x20] sm:$0xff]  ;;  %v667_v53 = vld [vmem:[#allocation13 + $0x98] sm:$0xff] }
 0x60d   :  { %2076 = vmatmul.f32.vlgmr.msra.gmra.mxu3 %v5739_v60  ;;  %2099 = vmatmul.f32.vlgmr.msra.gmra.mxu0 %v5739_v60  ;;  %v684_v37 = vld [vmem:[#allocation13 + $0x120] sm:$0xff]  ;;  %v699_v54 = vld [vmem:[#allocation13 + $0x198] sm:$0xff] }
 0x60e   :  { %2122 = vmatmul.f32.vlgmr.msrb.gmra.mxu2 %v5739_v60  ;;  %2145 = vmatmul.f32.vlgmr.msrb.gmra.mxu1 %v5739_v60 }
 0x60f   :  { %2210 = vmatpush.msrb.mxu0 %v679_v17  ;;  %2256 = vmatpush.msra.mxu1 %v711_v55  ;;  %v651_v17 = vld [vmem:[#allocation13 + $0x18] sm:$0xff] }
 0x610   :  { %2187 = vmatpush.msrb.mxu3 %v663_v56  ;;  %2233 = vmatpush.msra.mxu2 %v695_v57  ;;  %v683_v55 = vld [vmem:[#allocation13 + $0x118] sm:$0xff]  ;;  %v666_v56 = vld [vmem:[#allocation13 + $0x90] sm:$0xff] }
 0x611   :  { %2211 = vmatpush.msrb.mxu0 %v678_v62  ;;  %2257 = vmatpush.msra.mxu1 %v710_v0  ;;  %v698_v57 = vld [vmem:[#allocation13 + $0x190] sm:$0xff] }
 0x612   :  { %2188 = vmatpush.msrb.mxu3 %v662_v2  ;;  %2234 = vmatpush.msra.mxu2 %v694_v3  ;;  %v650_v62 = vld [vmem:[#allocation13 + $0x10] sm:$0xff]  ;;  %v665_v2 = vld [vmem:[#allocation13 + $0x88] sm:$0xff] }
 0x613   :  { %2212 = vmatpush.msrb.mxu0 %v677_v4  ;;  %2258 = vmatpush.msra.mxu1 %v709_v61  ;;  %v682_v0 = vld [vmem:[#allocation13 + $0x110] sm:$0xff]  ;;  %v697_v3 = vld [vmem:[#allocation13 + $0x188] sm:$0xff] }
 0x614   :  { %2189 = vmatpush.msrb.mxu3 %v661_v34  ;;  %2235 = vmatpush.msra.mxu2 %v693_v58  ;;  %v649_v4 = vld [vmem:[#allocation13 + $0x8] sm:$0xff]  ;;  %v664_v34 = vld [vmem:[#allocation13 + $0x80] sm:$0xff] }
 0x615   :  { %2079 = vmatmul.f32.gmra.mxu3 %v5746_v35  ;;  %2102 = vmatmul.f32.gmra.mxu0 %v5746_v35  ;;  %v681_v61 = vld [vmem:[#allocation13 + $0x108] sm:$0xff]  ;;  %v696_v58 = vld [vmem:[#allocation13 + $0x180] sm:$0xff] }
 0x616   :  { %2125 = vmatmul.f32.gmra.mxu2 %v5746_v35  ;;  %2148 = vmatmul.f32.gmra.mxu1 %v5746_v35 }
 0x617   :  { %2213 = vmatpush.msrb.mxu0 %v676_v43  ;;  %2259 = vmatpush.msra.mxu1 %v708_v5  ;;  %v743_v43 = vld [vmem:[#allocation13 + $0x2f8] sm:$0xff] }
 0x618   :  { %2190 = vmatpush.msrb.mxu3 %v660_v7  ;;  %2236 = vmatpush.msra.mxu2 %v692_v16  ;;  %v775_v5 = vld [vmem:[#allocation13 + $0x3f8] sm:$0xff]  ;;  %v648_v7 = vld [vmem:[#allocation13] sm:$0xff] }
 0x619   :  { %2214 = vmatpush.msrb.mxu0 %v675_v9  ;;  %2260 = vmatpush.msra.mxu1 %v707_v10  ;;  %v680_v16 = vld [vmem:[#allocation13 + $0x100] sm:$0xff]  ;;  %v742_v9 = vld [vmem:[#allocation13 + $0x2f0] sm:$0xff] }
 0x61a   :  { %2191 = vmatpush.msrb.mxu3 %v659_v46  ;;  %2237 = vmatpush.msra.mxu2 %v691_v8  ;;  %v774_v10 = vld [vmem:[#allocation13 + $0x3f0] sm:$0xff]  ;;  %v727_v46 = vld [vmem:[#allocation13 + $0x278] sm:$0xff] }
 0x61b   :  { %2215 = vmatpush.msrb.mxu0 %v674_v11  ;;  %2261 = vmatpush.msra.mxu1 %v706_v12  ;;  %v759_v8 = vld [vmem:[#allocation13 + $0x378] sm:$0xff]  ;;  %v741_v11 = vld [vmem:[#allocation13 + $0x2e8] sm:$0xff] }
 0x61c   :  { %2192 = vmatpush.msrb.mxu3 %v658_v14  ;;  %2238 = vmatpush.msra.mxu2 %v690_v59  ;;  %v773_v12 = vld [vmem:[#allocation13 + $0x3e8] sm:$0xff]  ;;  %v726_v14 = vld [vmem:[#allocation13 + $0x270] sm:$0xff] }
 0x61d   :  { %2216 = vmatpush.msrb.mxu0 %v673_v15  ;;  %2262 = vmatpush.msra.mxu1 %v705_v18  ;;  %v758_v59 = vld [vmem:[#allocation13 + $0x370] sm:$0xff]  ;;  %v740_v15 = vld [vmem:[#allocation13 + $0x2e0] sm:$0xff] }
 0x61e   :  { %2193 = vmatpush.msrb.mxu3 %v657_v19  ;;  %2239 = vmatpush.msra.mxu2 %v689_v22  ;;  %v772_v18 = vld [vmem:[#allocation13 + $0x3e0] sm:$0xff]  ;;  %v725_v19 = vld [vmem:[#allocation13 + $0x268] sm:$0xff] }
 0x61f   :  { %2217 = vmatpush.msrb.mxu0 %v672_v23  ;;  %2263 = vmatpush.msra.mxu1 %v704_v6  ;;  %v757_v22 = vld [vmem:[#allocation13 + $0x368] sm:$0xff]  ;;  %v739_v23 = vld [vmem:[#allocation13 + $0x2d8] sm:$0xff] }
 0x620   :  { %2194 = vmatpush.msrb.mxu3 %v656_v24  ;;  %2240 = vmatpush.msra.mxu2 %v688_v28  ;;  %v771_v6 = vld [vmem:[#allocation13 + $0x3d8] sm:$0xff]  ;;  %v724_v24 = vld [vmem:[#allocation13 + $0x260] sm:$0xff] }
 0x621   :  { %2218 = vmatpush.msrb.mxu0 %v671_v31  ;;  %2264 = vmatpush.msra.mxu1 %v703_v27  ;;  %v756_v28 = vld [vmem:[#allocation13 + $0x360] sm:$0xff]  ;;  %v738_v31 = vld [vmem:[#allocation13 + $0x2d0] sm:$0xff] }
 0x622   :  { %2195 = vmatpush.msrb.mxu3 %v655_v32  ;;  %2241 = vmatpush.msra.mxu2 %v687_v33  ;;  %v770_v27 = vld [vmem:[#allocation13 + $0x3d0] sm:$0xff]  ;;  %v723_v32 = vld [vmem:[#allocation13 + $0x258] sm:$0xff] }
 0x623   :  { %2219 = vmatpush.msrb.mxu0 %v670_v42  ;;  %2265 = vmatpush.msra.mxu1 %v702_v36  ;;  %v755_v33 = vld [vmem:[#allocation13 + $0x358] sm:$0xff]  ;;  %v737_v42 = vld [vmem:[#allocation13 + $0x2c8] sm:$0xff] }
 0x624   :  { %2196 = vmatpush.msrb.mxu3 %v654_v38  ;;  %2242 = vmatpush.msra.mxu2 %v686_v39  ;;  %v769_v36 = vld [vmem:[#allocation13 + $0x3c8] sm:$0xff]  ;;  %v722_v38 = vld [vmem:[#allocation13 + $0x250] sm:$0xff] }
 0x625   :  { %2220 = vmatpush.msrb.mxu0 %v669_v40  ;;  %2266 = vmatpush.msra.mxu1 %v701_v41  ;;  %v754_v39 = vld [vmem:[#allocation13 + $0x350] sm:$0xff]  ;;  %v736_v40 = vld [vmem:[#allocation13 + $0x2c0] sm:$0xff] }
 0x626   :  { %2197 = vmatpush.msrb.mxu3 %v653_v45  ;;  %2243 = vmatpush.msra.mxu2 %v685_v49  ;;  %v768_v41 = vld [vmem:[#allocation13 + $0x3c0] sm:$0xff]  ;;  %v721_v45 = vld [vmem:[#allocation13 + $0x248] sm:$0xff] }
 0x627   :  { %2221 = vmatpush.msrb.mxu0 %v668_v50  ;;  %2267 = vmatpush.msra.mxu1 %v700_v47  ;;  %v753_v49 = vld [vmem:[#allocation13 + $0x348] sm:$0xff]  ;;  %v735_v50 = vld [vmem:[#allocation13 + $0x2b8] sm:$0xff] }
 0x628   :  { %2198 = vmatpush.msrb.mxu3 %v652_v51  ;;  %2244 = vmatpush.msra.mxu2 %v684_v37  ;;  %v767_v47 = vld [vmem:[#allocation13 + $0x3b8] sm:$0xff]  ;;  %v720_v51 = vld [vmem:[#allocation13 + $0x240] sm:$0xff] }
 0x629   :  { %2222 = vmatpush.msrb.mxu0 %v667_v53  ;;  %2268 = vmatpush.msra.mxu1 %v699_v54  ;;  %v752_v37 = vld [vmem:[#allocation13 + $0x340] sm:$0xff]  ;;  %v5776_v53 = vld [vmem:[#allocation11] sm:$0xff] }
 0x62a   :  { %2199 = vmatpush.msrb.mxu3 %v651_v17  ;;  %2245 = vmatpush.msra.mxu2 %v683_v55  ;;  %v734_v54 = vld [vmem:[#allocation13 + $0x2b0] sm:$0xff]  ;;  %v719_v55 = vld [vmem:[#allocation13 + $0x238] sm:$0xff] }
 0x62b   :  { %2223 = vmatpush.msrb.mxu0 %v666_v56  ;;  %2269 = vmatpush.msra.mxu1 %v698_v57  ;;  %v766_v17 = vld [vmem:[#allocation13 + $0x3b0] sm:$0xff]  ;;  %v751_v56 = vld [vmem:[#allocation13 + $0x338] sm:$0xff]  ;;  %v733_v57 = vld [vmem:[#allocation13 + $0x2a8] sm:$0xff] }
 0x62c   :  { %2200 = vmatpush.msrb.mxu3 %v650_v62  ;;  %2246 = vmatpush.msra.mxu2 %v682_v0  ;;  %v765_v62 = vld [vmem:[#allocation13 + $0x3a8] sm:$0xff]  ;;  %v5779_v0 = vperm.slane %v5776_v53, 1 }
 0x62d   :  { %2224 = vmatpush.msrb.mxu0 %v665_v2  ;;  %2270 = vmatpush.msra.mxu1 %v697_v3  ;;  %v5782_v2 = vperm.slane %v5776_v53, 3  ;;  %v718_v3 = vld [vmem:[#allocation13 + $0x230] sm:$0xff] }
 0x62e   :  { %2201 = vmatpush.msrb.mxu3 %v649_v4  ;;  %2247 = vmatpush.msra.mxu2 %v681_v61  ;;  %v750_v4 = vld [vmem:[#allocation13 + $0x330] sm:$0xff] }
 0x62f   :  { %2225 = vmatpush.msrb.mxu0 %v664_v34  ;;  %2271 = vmatpush.msra.mxu1 %v696_v58  ;;  %v732_v58 = vld [vmem:[#allocation13 + $0x2a0] sm:$0xff] }
 0x630   :  { %2202 = vmatpush.msrb.mxu3 %v648_v7  ;;  %2248 = vmatpush.msra.mxu2 %v680_v16  ;;  %v749_v7 = vld [vmem:[#allocation13 + $0x328] sm:$0xff]  ;;  %v731_v16 = vld [vmem:[#allocation13 + $0x298] sm:$0xff] }
 0x631   :  { %2302 = vmatpush.msra.mxu0 %v743_v43  ;;  %2348 = vmatpush.msrb.mxu1 %v775_v5  ;;  %v764_v43 = vld [vmem:[#allocation13 + $0x3a0] sm:$0xff]  ;;  %v717_v5 = vld [vmem:[#allocation13 + $0x228] sm:$0xff] }
 0x632   :  { %2279 = vmatpush.msra.mxu3 %v727_v46  ;;  %2325 = vmatpush.msrb.mxu2 %v759_v8  ;;  %v716_v8 = vld [vmem:[#allocation13 + $0x220] sm:$0xff] }
 0x633   :  { %2303 = vmatpush.msra.mxu0 %v742_v9  ;;  %2349 = vmatpush.msrb.mxu1 %v774_v10  ;;  %v763_v9 = vld [vmem:[#allocation13 + $0x398] sm:$0xff] }
 0x634   :  { %2280 = vmatpush.msra.mxu3 %v726_v14  ;;  %2326 = vmatpush.msrb.mxu2 %v758_v59  ;;  %v762_v14 = vld [vmem:[#allocation13 + $0x390] sm:$0xff]  ;;  %v715_v59 = vld [vmem:[#allocation13 + $0x218] sm:$0xff] }
 0x635   :  { %2304 = vmatpush.msra.mxu0 %v741_v11  ;;  %2350 = vmatpush.msrb.mxu1 %v773_v12  ;;  %v748_v11 = vld [vmem:[#allocation13 + $0x320] sm:$0xff]  ;;  %v730_v12 = vld [vmem:[#allocation13 + $0x290] sm:$0xff] }
 0x636   :  { %2281 = vmatpush.msra.mxu3 %v725_v19  ;;  %2327 = vmatpush.msrb.mxu2 %v757_v22  ;;  %v729_v22 = vld [vmem:[#allocation13 + $0x288] sm:$0xff] }
 0x637   :  { %2305 = vmatpush.msra.mxu0 %v740_v15  ;;  %2351 = vmatpush.msrb.mxu1 %v772_v18  ;;  %v747_v15 = vld [vmem:[#allocation13 + $0x318] sm:$0xff] }
 0x638   :  { %2282 = vmatpush.msra.mxu3 %v724_v24  ;;  %2328 = vmatpush.msrb.mxu2 %v756_v28  ;;  %v5790_v24 = vperm.slane %v5776_v53, 2 }
 0x639   :  { %2306 = vmatpush.msra.mxu0 %v739_v23  ;;  %2352 = vmatpush.msrb.mxu1 %v771_v6  ;;  %v761_v23 = vld [vmem:[#allocation13 + $0x388] sm:$0xff]  ;;  %v5787_v6 = vperm.slane %v5776_v53, 0 }
 0x63a   :  { %2283 = vmatpush.msra.mxu3 %v723_v32  ;;  %2329 = vmatpush.msrb.mxu2 %v755_v33  ;;  %v760_v32 = vld [vmem:[#allocation13 + $0x380] sm:$0xff]  ;;  %v807_v33 = vld [vmem:[#allocation13 + $0x4f8] sm:$0xff] }
 0x63b   :  { %2307 = vmatpush.msra.mxu0 %v738_v31  ;;  %2353 = vmatpush.msrb.mxu1 %v770_v27  ;;  %v728_v27 = vld [vmem:[#allocation13 + $0x280] sm:$0xff] }
 0x63c   :  { %2284 = vmatpush.msra.mxu3 %v722_v38  ;;  %2330 = vmatpush.msrb.mxu2 %v754_v39  ;;  %v714_v39 = vld [vmem:[#allocation13 + $0x210] sm:$0xff] }
 0x63d   :  { %2308 = vmatpush.msra.mxu0 %v737_v42  ;;  %2354 = vmatpush.msrb.mxu1 %v769_v36  ;;  %v839_v42 = vld [vmem:[#allocation13 + $0x5f8] sm:$0xff] }
 0x63e   :  { %2285 = vmatpush.msra.mxu3 %v721_v45  ;;  %2331 = vmatpush.msrb.mxu2 %v753_v49  ;;  %v1824_v61 = vpop.f32.mrf.mxu0  ;;  %v806_v49 = vld [vmem:[#allocation13 + $0x4f0] sm:$0xff] }
 0x63f   :  { %2309 = vmatpush.msra.mxu0 %v736_v40  ;;  %2355 = vmatpush.msrb.mxu1 %v768_v41  ;;  %v1870_v34 = vpop.f32.mrf.mxu1  ;;  %v1825_v10 = vadd.f32 %v1824_v61, %v5779_v0  ;;  %v746_v40 = vld [vmem:[#allocation13 + $0x310] sm:$0xff]  ;;  %v804_v61 = vld [vmem:[#allocation13 + $0x4e0] sm:$0xff] }
 0x640   :  { %2286 = vmatpush.msra.mxu3 %v720_v51  ;;  %2332 = vmatpush.msrb.mxu2 %v752_v37  ;;  %v1871_v46 = vadd.f32 %v1870_v34, %v5782_v2  ;;  %v745_v51 = vld [vmem:[#allocation13 + $0x308] sm:$0xff]  ;;  %v823_v34 = vld [vmem:[#allocation13 + $0x578] sm:$0xff] }
 0x641   :  { %2310 = vmatpush.msra.mxu0 %v735_v50  ;;  %2356 = vmatpush.msrb.mxu1 %v767_v47  ;;  %v2153_v18 = vmax.f32 %v1825_v10, 0.0  ;;  %v838_v50 = vld [vmem:[#allocation13 + $0x5f0] sm:$0xff]  ;;  %v713_v47 = vld [vmem:[#allocation13 + $0x208] sm:$0xff]  ;;  %v803_v10 = vld [vmem:[#allocation13 + $0x4d8] sm:$0xff] }
 0x642   :  { %2287 = vmatpush.msra.mxu3 %v719_v55  ;;  %2333 = vmatpush.msrb.mxu2 %v751_v56  ;;  %v2155_v19 = vmax.f32 %v1871_v46, 0.0  ;;  %v837_v55 = vld [vmem:[#allocation13 + $0x5e8] sm:$0xff]  ;;  %v5797_v46 = vperm.slane %v5776_v53, 5 }
 0x643   :  { %2311 = vmatpush.msra.mxu0 %v734_v54  ;;  %2357 = vmatpush.msrb.mxu1 %v766_v17  ;;  %v805_v17 = vld [vmem:[#allocation13 + $0x4e8] sm:$0xff] }
 0x644   :  { %2288 = vmatpush.msra.mxu3 %v718_v3  ;;  %2334 = vmatpush.msrb.mxu2 %v750_v4  ;;  %v1801_v28 = vpop.f32.mrf.mxu3  ;;  %v744_v3 = vld [vmem:[#allocation13 + $0x300] sm:$0xff]  ;;  %v791_v4 = vld [vmem:[#allocation13 + $0x478] sm:$0xff] }
 0x645   :  { %2312 = vmatpush.msra.mxu0 %v733_v57  ;;  %2358 = vmatpush.msrb.mxu1 %v765_v62  ;;  %v1847_v31 = vpop.f32.mrf.mxu2  ;;  %v1802_v36 = vadd.f32 %v1801_v28, %v5787_v6  ;;  %v712_v62 = vld [vmem:[#allocation13 + $0x200] sm:$0xff]  ;;  %v834_v28 = vld [vmem:[#allocation13 + $0x5d0] sm:$0xff] }
 0x646   :  { %2289 = vmatpush.msra.mxu3 %v717_v5  ;;  %2335 = vmatpush.msrb.mxu2 %v749_v7  ;;  %v1848_v38 = vadd.f32 %v1847_v31, %v5790_v24 }
 0x647   :  { %2313 = vmatpush.msra.mxu0 %v732_v58  ;;  %2359 = vmatpush.msrb.mxu1 %v764_v43  ;;  %v2152_v56 = vmax.f32 %v1802_v36, 0.0  ;;  %v836_v58 = vld [vmem:[#allocation13 + $0x5e0] sm:$0xff]  ;;  %v833_v36 = vld [vmem:[#allocation13 + $0x5c8] sm:$0xff] }
 0x648   :  { %2290 = vmatpush.msra.mxu3 %v716_v8  ;;  %2336 = vmatpush.msrb.mxu2 %v748_v11  ;;  %v1827_v41 = vpop.f32.mrf.mxu0  ;;  %v2154_v57 = vmax.f32 %v1848_v38, 0.0  ;;  %v5800_v8 = vperm.slane %v5776_v53, 7  ;;  %v822_v11 = vld [vmem:[#allocation13 + $0x570] sm:$0xff] }
 0x649   :  { %2314 = vmatpush.msra.mxu0 %v731_v16  ;;  %2360 = vmatpush.msrb.mxu1 %v763_v9  ;;  %v1873_v45 = vpop.f32.mrf.mxu1  ;;  %v1828_v37 = vadd.f32 %v1827_v41, %v5779_v0  ;;  %v790_v9 = vld [vmem:[#allocation13 + $0x470] sm:$0xff]  ;;  %v800_v41 = vld [vmem:[#allocation13 + $0x4c0] sm:$0xff] }
 0x64a   :  { %2291 = vmatpush.msra.mxu3 %v715_v59  ;;  %2337 = vmatpush.msrb.mxu2 %v747_v15  ;;  %v1874_v54 = vadd.f32 %v1873_v45, %v5782_v2  ;;  %v5807_v45 = vperm.slane %v5776_v53, 4 }
 0x64b   :  { %2315 = vmatpush.msra.mxu0 %v730_v12  ;;  %2361 = vmatpush.msrb.mxu1 %v762_v14  ;;  %v2169_v43 = vmax.f32 %v1828_v37, 0.0  ;;  %v835_v12 = vld [vmem:[#allocation13 + $0x5d8] sm:$0xff]  ;;  %v832_v37 = vld [vmem:[#allocation13 + $0x5c0] sm:$0xff] }
 0x64c   :  { %2226 = vmatmul.f32.vlgmr.msrb.gmra.mxu0 %v2153_v18  ;;  %2272 = vmatmul.f32.vlgmr.msra.gmra.mxu1 %v2155_v19  ;;  %v2171_v5 = vmax.f32 %v1874_v54, 0.0  ;;  %v789_v19 = vld [vmem:[#allocation13 + $0x468] sm:$0xff] }
 0x64d   :  { %2316 = vmatpush.msra.mxu0 %v729_v22  ;;  %2362 = vmatpush.msrb.mxu1 %v761_v23  ;;  %v802_v22 = vld [vmem:[#allocation13 + $0x4d0] sm:$0xff]  ;;  %v821_v23 = vld [vmem:[#allocation13 + $0x568] sm:$0xff] }
 0x64e   :  { %2292 = vmatpush.msra.mxu3 %v714_v39  ;;  %2338 = vmatpush.msrb.mxu2 %v746_v40  ;;  %v1804_v7 = vpop.f32.mrf.mxu3  ;;  %v787_v40 = vld [vmem:[#allocation13 + $0x458] sm:$0xff] }
 0x64f   :  { %2317 = vmatpush.msra.mxu0 %v728_v27  ;;  %2363 = vmatpush.msrb.mxu1 %v760_v32  ;;  %v1850_v16 = vpop.f32.mrf.mxu2  ;;  %v1805_v14 = vadd.f32 %v1804_v7, %v5787_v6  ;;  %v788_v32 = vld [vmem:[#allocation13 + $0x460] sm:$0xff] }
 0x650   :  { %2293 = vmatpush.msra.mxu3 %v713_v47  ;;  %2339 = vmatpush.msrb.mxu2 %v745_v51  ;;  %v1851_v59 = vadd.f32 %v1850_v16, %v5790_v24  ;;  %v819_v51 = vld [vmem:[#allocation13 + $0x558] sm:$0xff] }
 0x651   :  { %2394 = vmatpush.msrb.mxu0 %v807_v33  ;;  %2440 = vmatpush.msra.mxu1 %v839_v42  ;;  %v801_v33 = vld [vmem:[#allocation13 + $0x4c8] sm:$0xff]  ;;  %v820_v42 = vld [vmem:[#allocation13 + $0x560] sm:$0xff]  ;;  %v2168_v38 = vmax.f32 %v1805_v14, 0.0 }
 0x652   :  { %2294 = vmatpush.msra.mxu3 %v712_v62  ;;  %2340 = vmatpush.msrb.mxu2 %v744_v3  ;;  %v1916_v15 = vpop.f32.mrf.mxu0  ;;  %v2170_v39 = vmax.f32 %v1851_v59, 0.0  ;;  %v831_v62 = vld [vmem:[#allocation13 + $0x5b8] sm:$0xff]  ;;  %v816_v14 = vld [vmem:[#allocation13 + $0x540] sm:$0xff]  ;;  %v829_v59 = vld [vmem:[#allocation13 + $0x5a8] sm:$0xff] }
 0x653   :  { %2395 = vmatpush.msrb.mxu0 %v806_v49  ;;  %2441 = vmatpush.msra.mxu1 %v838_v50  ;;  %v1962_v18 = vpop.f32.mrf.mxu1  ;;  %v1917_v31 = vadd.f32 %v1916_v15, %v5797_v46  ;;  %v5810_v49 = vperm.slane %v5776_v53, 6  ;;  %v783_v15 = vld [vmem:[#allocation13 + $0x438] sm:$0xff] }
 0x654   :  { %2203 = vmatmul.f32.vlgmr.msrb.gmra.mxu3 %v2152_v56  ;;  %2249 = vmatmul.f32.vlgmr.msra.gmra.mxu2 %v2154_v57  ;;  %v1963_v27 = vadd.f32 %v1962_v18, %v5800_v8  ;;  %v799_v56 = vld [vmem:[#allocation13 + $0x4b8] sm:$0xff]  ;;  %v818_v57 = vld [vmem:[#allocation13 + $0x550] sm:$0xff]  ;;  %v796_v18 = vld [vmem:[#allocation13 + $0x4a0] sm:$0xff] }
 0x655   :  { %2396 = vmatpush.msrb.mxu0 %v805_v17  ;;  %2442 = vmatpush.msra.mxu1 %v837_v55  ;;  %v2157_v50 = vmax.f32 %v1917_v31, 0.0  ;;  %v786_v55 = vld [vmem:[#allocation13 + $0x450] sm:$0xff] }
 0x656   :  { %2371 = vmatpush.msrb.mxu3 %v791_v4  ;;  %2417 = vmatpush.msra.mxu2 %v823_v34  ;;  %v2159_v47 = vmax.f32 %v1963_v27, 0.0  ;;  %v785_v34 = vld [vmem:[#allocation13 + $0x448] sm:$0xff] }
 0x657   :  { %2397 = vmatpush.msrb.mxu0 %v804_v61  ;;  %2443 = vmatpush.msra.mxu1 %v836_v58  ;;  %v798_v58 = vld [vmem:[#allocation13 + $0x4b0] sm:$0xff] }
 0x658   :  { %2229 = vmatmul.f32.gmra.mxu0 %v2169_v43  ;;  %2275 = vmatmul.f32.gmra.mxu1 %v2171_v5  ;;  %v1893_v54 = vpop.f32.mrf.mxu3  ;;  %v817_v43 = vld [vmem:[#allocation13 + $0x548] sm:$0xff]  ;;  %v830_v5 = vld [vmem:[#allocation13 + $0x5b0] sm:$0xff] }
 0x659   :  { %2372 = vmatpush.msrb.mxu3 %v790_v9  ;;  %2398 = vmatpush.msrb.mxu0 %v803_v10  ;;  %v1939_v17 = vpop.f32.mrf.mxu2  ;;  %v1894_v53 = vadd.f32 %v1893_v54, %v5807_v45  ;;  %v784_v9 = vld [vmem:[#allocation13 + $0x440] sm:$0xff]  ;;  %v797_v10 = vld [vmem:[#allocation13 + $0x4a8] sm:$0xff] }
 0x65a   :  { %2418 = vmatpush.msra.mxu2 %v822_v11  ;;  %2444 = vmatpush.msra.mxu1 %v835_v12  ;;  %v1940_v3 = vadd.f32 %v1939_v17, %v5810_v49  ;;  %v813_v54 = vld [vmem:[#allocation13 + $0x528] sm:$0xff]  ;;  %v826_v17 = vld [vmem:[#allocation13 + $0x590] sm:$0xff] }
 0x65b   :  { %2373 = vmatpush.msrb.mxu3 %v789_v19  ;;  %2399 = vmatpush.msrb.mxu0 %v802_v22  ;;  %v2156_v11 = vmax.f32 %v1894_v53, 0.0  ;;  %v815_v19 = vld [vmem:[#allocation13 + $0x538] sm:$0xff]  ;;  %v828_v22 = vld [vmem:[#allocation13 + $0x5a0] sm:$0xff] }
 0x65c   :  { %2419 = vmatpush.msra.mxu2 %v821_v23  ;;  %2445 = vmatpush.msra.mxu1 %v834_v28  ;;  %v1919_v4 = vpop.f32.mrf.mxu0  ;;  %v2158_v12 = vmax.f32 %v1940_v3, 0.0  ;;  %v812_v3 = vld [vmem:[#allocation13 + $0x520] sm:$0xff] }
 0x65d   :  { %2374 = vmatpush.msrb.mxu3 %v788_v32  ;;  %2400 = vmatpush.msrb.mxu0 %v801_v33  ;;  %v1965_v61 = vpop.f32.mrf.mxu1  ;;  %v1920_v7 = vadd.f32 %v1919_v4, %v5797_v46  ;;  %v5816_v32 = vld [vmem:[#allocation11 + $0x8] sm:$0xff]  ;;  %v782_v33 = vld [vmem:[#allocation13 + $0x430] sm:$0xff]  ;;  %v825_v4 = vld [vmem:[#allocation13 + $0x588] sm:$0xff] }
 0x65e   :  { %2420 = vmatpush.msra.mxu2 %v820_v42  ;;  %2446 = vmatpush.msra.mxu1 %v833_v36  ;;  %v1966_v16 = vadd.f32 %v1965_v61, %v5800_v8  ;;  %v795_v42 = vld [vmem:[#allocation13 + $0x498] sm:$0xff]  ;;  %v814_v36 = vld [vmem:[#allocation13 + $0x530] sm:$0xff] }
 0x65f   :  { %2206 = vmatmul.f32.gmra.mxu3 %v2168_v38  ;;  %2252 = vmatmul.f32.gmra.mxu2 %v2170_v39  ;;  %v2173_v23 = vmax.f32 %v1920_v7, 0.0  ;;  %v827_v38 = vld [vmem:[#allocation13 + $0x598] sm:$0xff]  ;;  %v824_v7 = vld [vmem:[#allocation13 + $0x580] sm:$0xff] }
 0x660   :  { %2375 = vmatpush.msrb.mxu3 %v787_v40  ;;  %2401 = vmatpush.msrb.mxu0 %v800_v41  ;;  %v2175_v28 = vmax.f32 %v1966_v16, 0.0  ;;  %v5821_v41 = vperm.slane %v5816_v32, 1 }
 0x661   :  { %2421 = vmatpush.msra.mxu2 %v819_v51  ;;  %2447 = vmatpush.msra.mxu1 %v832_v37  ;;  %v5824_v37 = vperm.slane %v5816_v32, 3 }
 0x662   :  { %2318 = vmatmul.f32.vlgmr.msra.gmra.mxu0 %v2157_v50  ;;  %2364 = vmatmul.f32.vlgmr.msrb.gmra.mxu1 %v2159_v47  ;;  %v1896_v31 = vpop.f32.mrf.mxu3  ;;  %v781_v50 = vld [vmem:[#allocation13 + $0x428] sm:$0xff]  ;;  %v794_v47 = vld [vmem:[#allocation13 + $0x490] sm:$0xff] }
 0x663   :  { %2376 = vmatpush.msrb.mxu3 %v786_v55  ;;  %2402 = vmatpush.msrb.mxu0 %v799_v56  ;;  %v1942_v27 = vpop.f32.mrf.mxu2  ;;  %v1897_v39 = vadd.f32 %v1896_v31, %v5807_v45  ;;  %v780_v56 = vld [vmem:[#allocation13 + $0x420] sm:$0xff] }
 0x664   :  { %2422 = vmatpush.msra.mxu2 %v818_v57  ;;  %2448 = vmatpush.msra.mxu1 %v831_v62  ;;  %v1943_v40 = vadd.f32 %v1942_v27, %v5810_v49  ;;  %v793_v57 = vld [vmem:[#allocation13 + $0x488] sm:$0xff] }
 0x665   :  { %2377 = vmatpush.msrb.mxu3 %v785_v34  ;;  %2403 = vmatpush.msrb.mxu0 %v798_v58  ;;  %v2172_v62 = vmax.f32 %v1897_v39, 0.0  ;;  %v779_v58 = vld [vmem:[#allocation13 + $0x418] sm:$0xff]  ;;  %v777_v27 = vld [vmem:[#allocation13 + $0x408] sm:$0xff] }
 0x666   :  { %2423 = vmatpush.msra.mxu2 %v817_v43  ;;  %2449 = vmatpush.msra.mxu1 %v830_v5  ;;  %v2174_v61 = vmax.f32 %v1943_v40, 0.0  ;;  %v792_v43 = vld [vmem:[#allocation13 + $0x480] sm:$0xff]  ;;  %v811_v5 = vld [vmem:[#allocation13 + $0x518] sm:$0xff]  ;;  %v901_v39 = vld [vmem:[#allocation13 + $0x7e8] sm:$0xff] }
 0x667   :  { %2378 = vmatpush.msrb.mxu3 %v784_v9  ;;  %2404 = vmatpush.msrb.mxu0 %v797_v10  ;;  %v871_v9 = vld [vmem:[#allocation13 + $0x6f8] sm:$0xff]  ;;  %v776_v40 = vld [vmem:[#allocation13 + $0x400] sm:$0xff] }
 0x668   :  { %2424 = vmatpush.msra.mxu2 %v816_v14  ;;  %2450 = vmatpush.msra.mxu1 %v829_v59  ;;  %v2008_v51 = vpop.f32.mrf.mxu0  ;;  %v903_v10 = vld [vmem:[#allocation13 + $0x7f8] sm:$0xff]  ;;  %v778_v59 = vld [vmem:[#allocation13 + $0x410] sm:$0xff] }
 0x669   :  { %2295 = vmatmul.f32.vlgmr.msra.gmra.mxu3 %v2156_v11  ;;  %2341 = vmatmul.f32.vlgmr.msrb.gmra.mxu2 %v2158_v12  ;;  %v2054_v55 = vpop.f32.mrf.mxu1  ;;  %v2009_v53 = vadd.f32 %v2008_v51, %v5821_v41  ;;  %v5829_v11 = vperm.slane %v5816_v32, 0  ;;  %v5832_v12 = vperm.slane %v5816_v32, 2 }
 0x66a   :  { %2379 = vmatpush.msrb.mxu3 %v783_v15  ;;  %2405 = vmatpush.msrb.mxu0 %v796_v18  ;;  %v2055_v34 = vadd.f32 %v2054_v55, %v5824_v37 }
 0x66b   :  { %2425 = vmatpush.msra.mxu2 %v815_v19  ;;  %2451 = vmatpush.msra.mxu1 %v828_v22  ;;  %v2161_v16 = vmax.f32 %v2009_v53, 0.0  ;;  %v810_v19 = vld [vmem:[#allocation13 + $0x510] sm:$0xff] }
 0x66c   :  { %2321 = vmatmul.f32.gmra.mxu0 %v2173_v23  ;;  %2367 = vmatmul.f32.gmra.mxu1 %v2175_v28  ;;  %v2163_v14 = vmax.f32 %v2055_v34, 0.0  ;;  %v870_v22 = vld [vmem:[#allocation13 + $0x6f0] sm:$0xff]  ;;  %v899_v34 = vld [vmem:[#allocation13 + $0x7d8] sm:$0xff] }
 0x66d   :  { %2380 = vmatpush.msrb.mxu3 %v782_v33  ;;  %2406 = vmatpush.msrb.mxu0 %v795_v42  ;;  %v902_v23 = vld [vmem:[#allocation13 + $0x7f0] sm:$0xff]  ;;  %v809_v33 = vld [vmem:[#allocation13 + $0x508] sm:$0xff] }
 0x66e   :  { %2426 = vmatpush.msra.mxu2 %v814_v36  ;;  %2452 = vmatpush.msra.mxu1 %v827_v38  ;;  %v1985_v15 = vpop.f32.mrf.mxu3  ;;  %v869_v38 = vld [vmem:[#allocation13 + $0x6e8] sm:$0xff]  ;;  %v854_v53 = vld [vmem:[#allocation13 + $0x670] sm:$0xff] }
 0x66f   :  { %2381 = vmatpush.msrb.mxu3 %v781_v50  ;;  %2407 = vmatpush.msrb.mxu0 %v794_v47  ;;  %v2031_v18 = vpop.f32.mrf.mxu2  ;;  %v1986_v28 = vadd.f32 %v1985_v15, %v5829_v11  ;;  %v808_v50 = vld [vmem:[#allocation13 + $0x500] sm:$0xff] }
 0x670   :  { %2427 = vmatpush.msra.mxu2 %v813_v54  ;;  %2453 = vmatpush.msra.mxu1 %v826_v17  ;;  %v2032_v31 = vadd.f32 %v2031_v18, %v5832_v12  ;;  %v855_v54 = vld [vmem:[#allocation13 + $0x678] sm:$0xff]  ;;  %v868_v17 = vld [vmem:[#allocation13 + $0x6e0] sm:$0xff]  ;;  %v865_v18 = vld [vmem:[#allocation13 + $0x6c8] sm:$0xff] }
 0x671   :  { %2382 = vmatpush.msrb.mxu3 %v780_v56  ;;  %2408 = vmatpush.msrb.mxu0 %v793_v57  ;;  %v2160_v55 = vmax.f32 %v1986_v28, 0.0  ;;  %v887_v57 = vld [vmem:[#allocation13 + $0x778] sm:$0xff]  ;;  %v852_v15 = vld [vmem:[#allocation13 + $0x660] sm:$0xff] }
 0x672   :  { %2428 = vmatpush.msra.mxu2 %v812_v3  ;;  %2454 = vmatpush.msra.mxu1 %v825_v4  ;;  %v2011_v42 = vpop.f32.mrf.mxu0  ;;  %v2162_v56 = vmax.f32 %v2032_v31, 0.0  ;;  %v867_v3 = vld [vmem:[#allocation13 + $0x6d8] sm:$0xff]  ;;  %v864_v28 = vld [vmem:[#allocation13 + $0x6c0] sm:$0xff] }
 0x673   :  { %2298 = vmatmul.f32.gmra.mxu3 %v2172_v62  ;;  %2344 = vmatmul.f32.gmra.mxu2 %v2174_v61  ;;  %v2057_v36 = vpop.f32.mrf.mxu1  ;;  %v2012_v47 = vadd.f32 %v2011_v42, %v5821_v41  ;;  %v900_v62 = vld [vmem:[#allocation13 + $0x7e0] sm:$0xff]  ;;  %v886_v61 = vld [vmem:[#allocation13 + $0x770] sm:$0xff] }
 0x674   :  { %2383 = vmatpush.msrb.mxu3 %v779_v58  ;;  %2409 = vmatpush.msrb.mxu0 %v792_v43  ;;  %v2058_v51 = vadd.f32 %v2057_v36, %v5824_v37  ;;  %v896_v42 = vld [vmem:[#allocation13 + $0x7c0] sm:$0xff]  ;;  %v850_v36 = vld [vmem:[#allocation13 + $0x650] sm:$0xff] }
 0x675   :  { %2429 = vmatpush.msra.mxu2 %v811_v5  ;;  %2455 = vmatpush.msra.mxu1 %v824_v7  ;;  %v2177_v58 = vmax.f32 %v2012_v47, 0.0  ;;  %v853_v7 = vld [vmem:[#allocation13 + $0x668] sm:$0xff]  ;;  %v862_v47 = vld [vmem:[#allocation13 + $0x6b0] sm:$0xff] }
 0x676   :  { %2486 = vmatpush.msra.mxu0 %v871_v9  ;;  %2384 = vmatpush.msrb.mxu3 %v778_v59  ;;  %v2179_v4 = vmax.f32 %v2058_v51, 0.0  ;;  %v898_v59 = vld [vmem:[#allocation13 + $0x7d0] sm:$0xff]  ;;  %v881_v51 = vld [vmem:[#allocation13 + $0x748] sm:$0xff] }
 0x677   :  { %2532 = vmatpush.msrb.mxu1 %v903_v10  ;;  %2410 = vmatmul.f32.vlgmr.msrb.gmra.mxu0 %v2161_v16  ;;  %v866_v16 = vld [vmem:[#allocation13 + $0x6d0] sm:$0xff] }
 0x678   :  { %2430 = vmatpush.msra.mxu2 %v810_v19  ;;  %2456 = vmatmul.f32.vlgmr.msra.gmra.mxu1 %v2163_v14  ;;  %v1988_v43 = vpop.f32.mrf.mxu3  ;;  %v885_v14 = vld [vmem:[#allocation13 + $0x768] sm:$0xff]  ;;  %v884_v19 = vld [vmem:[#allocation13 + $0x760] sm:$0xff] }
 0x679   :  { %2487 = vmatpush.msra.mxu0 %v870_v22  ;;  %2533 = vmatpush.msrb.mxu1 %v902_v23  ;;  %v2034_v5 = vpop.f32.mrf.mxu2  ;;  %v1989_v9 = vadd.f32 %v1988_v43, %v5829_v11  ;;  %v897_v22 = vld [vmem:[#allocation13 + $0x7c8] sm:$0xff]  ;;  %v851_v23 = vld [vmem:[#allocation13 + $0x658] sm:$0xff]  ;;  %v5844_v43 = vperm.slane %v5816_v32, 7 }
 0x67a   :  { %2385 = vmatpush.msrb.mxu3 %v777_v27  ;;  %2431 = vmatpush.msra.mxu2 %v809_v33  ;;  %v2035_v10 = vadd.f32 %v2034_v5, %v5832_v12  ;;  %v883_v33 = vld [vmem:[#allocation13 + $0x758] sm:$0xff]  ;;  %v846_v5 = vld [vmem:[#allocation13 + $0x630] sm:$0xff] }
 0x67b   :  { %2488 = vmatpush.msra.mxu0 %v869_v38  ;;  %2534 = vmatpush.msrb.mxu1 %v901_v39  ;;  %v2176_v31 = vmax.f32 %v1989_v9, 0.0  ;;  %v863_v38 = vld [vmem:[#allocation13 + $0x6b8] sm:$0xff]  ;;  %v882_v39 = vld [vmem:[#allocation13 + $0x750] sm:$0xff] }
 0x67c   :  { %2386 = vmatpush.msrb.mxu3 %v776_v40  ;;  %2432 = vmatpush.msra.mxu2 %v808_v50  ;;  %v2178_v27 = vmax.f32 %v2035_v10, 0.0  ;;  %v895_v40 = vld [vmem:[#allocation13 + $0x7b8] sm:$0xff]  ;;  %v849_v50 = vld [vmem:[#allocation13 + $0x648] sm:$0xff] }
 0x67d   :  { %2489 = vmatpush.msra.mxu0 %v868_v17  ;;  %2535 = vmatpush.msrb.mxu1 %v900_v62  ;;  %v848_v17 = vld [vmem:[#allocation13 + $0x640] sm:$0xff]  ;;  %v847_v62 = vld [vmem:[#allocation13 + $0x638] sm:$0xff]  ;;  %v845_v10 = vld [vmem:[#allocation13 + $0x628] sm:$0xff] }
 0x67e   :  { %2463 = vmatpush.msra.mxu3 %v855_v54  ;;  %2509 = vmatpush.msrb.mxu2 %v887_v57  ;;  %v894_v54 = vld [vmem:[#allocation13 + $0x7b0] sm:$0xff]  ;;  %v893_v57 = vld [vmem:[#allocation13 + $0x7a8] sm:$0xff]  ;;  %v891_v9 = vld [vmem:[#allocation13 + $0x798] sm:$0xff] }
 0x67f   :  { %2387 = vmatmul.f32.vlgmr.msrb.gmra.mxu3 %v2160_v55  ;;  %2433 = vmatmul.f32.vlgmr.msra.gmra.mxu2 %v2162_v56  ;;  %v861_v55 = vld [vmem:[#allocation13 + $0x6a8] sm:$0xff]  ;;  %v880_v56 = vld [vmem:[#allocation13 + $0x740] sm:$0xff] }
 0x680   :  { %2464 = vmatpush.msra.mxu3 %v854_v53  ;;  %2490 = vmatpush.msra.mxu0 %v867_v3  ;;  %v860_v53 = vld [vmem:[#allocation13 + $0x6a0] sm:$0xff] }
 0x681   :  { %2510 = vmatpush.msrb.mxu2 %v886_v61  ;;  %2536 = vmatpush.msrb.mxu1 %v899_v34  ;;  %v879_v61 = vld [vmem:[#allocation13 + $0x738] sm:$0xff]  ;;  %v892_v34 = vld [vmem:[#allocation13 + $0x7a0] sm:$0xff] }
 0x682   :  { %2413 = vmatmul.f32.gmra.mxu0 %v2177_v58  ;;  %2459 = vmatmul.f32.gmra.mxu1 %v2179_v4  ;;  %v5841_v58 = vperm.slane %v5816_v32, 5 }
 0x683   :  { %2465 = vmatpush.msra.mxu3 %v853_v7  ;;  %2491 = vmatpush.msra.mxu0 %v866_v16  ;;  %v859_v7 = vld [vmem:[#allocation13 + $0x698] sm:$0xff]  ;;  %v878_v16 = vld [vmem:[#allocation13 + $0x730] sm:$0xff] }
 0x684   :  { %2511 = vmatpush.msrb.mxu2 %v885_v14  ;;  %2537 = vmatpush.msrb.mxu1 %v898_v59  ;;  %v858_v14 = vld [vmem:[#allocation13 + $0x690] sm:$0xff] }
 0x685   :  { %2466 = vmatpush.msra.mxu3 %v852_v15  ;;  %2492 = vmatpush.msra.mxu0 %v865_v18  ;;  %v877_v18 = vld [vmem:[#allocation13 + $0x728] sm:$0xff] }
 0x686   :  { %2512 = vmatpush.msrb.mxu2 %v884_v19  ;;  %2538 = vmatpush.msrb.mxu1 %v897_v22  ;;  %v890_v19 = vld [vmem:[#allocation13 + $0x790] sm:$0xff]  ;;  %v844_v22 = vld [vmem:[#allocation13 + $0x620] sm:$0xff] }
 0x687   :  { %2467 = vmatpush.msra.mxu3 %v851_v23  ;;  %2493 = vmatpush.msra.mxu0 %v864_v28  ;;  %v857_v23 = vld [vmem:[#allocation13 + $0x688] sm:$0xff] }
 0x688   :  { %2513 = vmatpush.msrb.mxu2 %v883_v33  ;;  %2539 = vmatpush.msrb.mxu1 %v896_v42  ;;  %v889_v33 = vld [vmem:[#allocation13 + $0x788] sm:$0xff]  ;;  %v5849_v42 = vperm.slane %v5816_v32, 4 }
 0x689   :  { %2390 = vmatmul.f32.gmra.mxu3 %v2176_v31  ;;  %2436 = vmatmul.f32.gmra.mxu2 %v2178_v27  ;;  %v876_v27 = vld [vmem:[#allocation13 + $0x720] sm:$0xff] }
 0x68a   :  { %2468 = vmatpush.msra.mxu3 %v850_v36  ;;  %2494 = vmatpush.msra.mxu0 %v863_v38  ;;  %v2100_v3 = vpop.f32.mrf.mxu0  ;;  %v5852_v36 = vperm.slane %v5816_v32, 6  ;;  %v843_v38 = vld [vmem:[#allocation13 + $0x618] sm:$0xff] }
 0x68b   :  { %2514 = vmatpush.msrb.mxu2 %v882_v39  ;;  %2540 = vmatpush.msrb.mxu1 %v895_v40  ;;  %v2146_v4 = vpop.f32.mrf.mxu1  ;;  %v2101_v59 = vadd.f32 %v2100_v3, %v5841_v58  ;;  %v856_v39 = vld [vmem:[#allocation13 + $0x680] sm:$0xff]  ;;  %v841_v3 = vld [vmem:[#allocation13 + $0x608] sm:$0xff] }
 0x68c   :  { %2469 = vmatpush.msra.mxu3 %v849_v50  ;;  %2495 = vmatpush.msra.mxu0 %v862_v47  ;;  %v2147_v15 = vadd.f32 %v2146_v4, %v5844_v43  ;;  %v875_v47 = vld [vmem:[#allocation13 + $0x718] sm:$0xff]  ;;  %v873_v4 = vld [vmem:[#allocation13 + $0x708] sm:$0xff] }
 0x68d   :  { %2515 = vmatpush.msrb.mxu2 %v881_v51  ;;  %2541 = vmatpush.msrb.mxu1 %v894_v54  ;;  %v2165_v40 = vmax.f32 %v2101_v59, 0.0  ;;  %v888_v51 = vld [vmem:[#allocation13 + $0x780] sm:$0xff] }
 0x68e   :  { %2470 = vmatpush.msra.mxu3 %v848_v17  ;;  %2496 = vmatpush.msra.mxu0 %v861_v55  ;;  %v2167_v50 = vmax.f32 %v2147_v15, 0.0 }
 0x68f   :  { %2516 = vmatpush.msrb.mxu2 %v880_v56  ;;  %2542 = vmatpush.msrb.mxu1 %v893_v57  ;;  %v842_v56 = vld [vmem:[#allocation13 + $0x610] sm:$0xff] }
 0x690   :  { %2471 = vmatpush.msra.mxu3 %v847_v62  ;;  %2497 = vmatpush.msra.mxu0 %v860_v53  ;;  %v2077_v28 = vpop.f32.mrf.mxu3  ;;  %v874_v57 = vld [vmem:[#allocation13 + $0x710] sm:$0xff] }
 0x691   :  { %2517 = vmatpush.msrb.mxu2 %v879_v61  ;;  %2543 = vmatpush.msrb.mxu1 %v892_v34  ;;  %v2123_v31 = vpop.f32.mrf.mxu2  ;;  %v2078_v55 = vadd.f32 %v2077_v28, %v5849_v42  ;;  %v4376_v28 = vld [vmem:[#allocation5 + $0x5a0] sm:$0xff] }
 0x692   :  { %2472 = vmatpush.msra.mxu3 %v846_v5  ;;  %2498 = vmatpush.msra.mxu0 %v859_v7  ;;  %v2103_v54 = vpop.f32.mrf.mxu0  ;;  %v2124_v32 = vadd.f32 %v2123_v31, %v5852_v36  ;;  %v840_v5 = vld [vmem:[#allocation13 + $0x600] sm:$0xff]  ;;  %v4377_v31 = vld [vmem:[#allocation5 + $0x5b0] sm:$0xff] }
 0x693   :  { %2518 = vmatpush.msrb.mxu2 %v878_v16  ;;  %2544 = vmatpush.msrb.mxu1 %v891_v9  ;;  %v2149_v17 = vpop.f32.mrf.mxu1  ;;  %v2104_v62 = vadd.f32 %v2103_v54, %v5841_v58  ;;  %v2164_v61 = vmax.f32 %v2078_v55, 0.0  ;;  %v872_v7 = vld [vmem:[#allocation13 + $0x700] sm:$0xff]  ;;  %v4372_v16 = vld [vmem:[#allocation5 + $0x5a8] sm:$0xff] }
 0x694   :  { %2473 = vmatpush.msra.mxu3 %v845_v10  ;;  %2499 = vmatpush.msra.mxu0 %v858_v14  ;;  %v2150_v53 = vadd.f32 %v2149_v17, %v5844_v43  ;;  %v2166_v34 = vmax.f32 %v2124_v32, 0.0  ;;  %v4373_v9 = vld [vmem:[#allocation5 + $0x5b8] sm:$0xff]  ;;  %v4384_v54 = vld [vmem:[#allocation5 + $0x488] sm:$0xff]  ;;  %v4386_v55 = vld [vmem:[#allocation5 + $0x480] sm:$0xff] }
 0x695   :  { %2519 = vmatpush.msrb.mxu2 %v877_v18  ;;  %2545 = vmatpush.msrb.mxu1 %v890_v19  ;;  %v2181_v59 = vmax.f32 %v2104_v62, 0.0  ;;  %v4374_v18 = vld [vmem:[#allocation5 + $0x548] sm:$0xff]  ;;  %v4375_v19 = vld [vmem:[#allocation5 + $0x558] sm:$0xff]  ;;  %v4387_v32 = vld [vmem:[#allocation5 + $0x490] sm:$0xff] }
 0x696   :  { %2474 = vmatpush.msra.mxu3 %v844_v22  ;;  %2500 = vmatpush.msra.mxu0 %v857_v23  ;;  %v2183_v15 = vmax.f32 %v2150_v53, 0.0  ;;  %v4385_v17 = vld [vmem:[#allocation5 + $0x498] sm:$0xff]  ;;  %v4390_v62 = vld [vmem:[#allocation5 + $0x430] sm:$0xff] }
 0x697   :  { %2520 = vmatpush.msrb.mxu2 %v876_v27  ;;  %2546 = vmatpush.msrb.mxu1 %v889_v33  ;;  %v4378_v27 = vld [vmem:[#allocation5 + $0x540] sm:$0xff]  ;;  %v4379_v33 = vld [vmem:[#allocation5 + $0x550] sm:$0xff]  ;;  %v4391_v53 = vld [vmem:[#allocation5 + $0x438] sm:$0xff] }
 0x698   :  { %2475 = vmatpush.msra.mxu3 %v843_v38  ;;  %2501 = vmatpush.msra.mxu0 %v856_v39  ;;  %v2080_v10 = vpop.f32.mrf.mxu3 }
 0x699   :  { %2521 = vmatpush.msrb.mxu2 %v875_v47  ;;  %2547 = vmatpush.msrb.mxu1 %v888_v51  ;;  %v2126_v14 = vpop.f32.mrf.mxu2  ;;  %v2081_v22 = vadd.f32 %v2080_v10, %v5849_v42  ;;  %v4382_v47 = vld [vmem:[#allocation5 + $0x4e0] sm:$0xff]  ;;  %v4383_v51 = vld [vmem:[#allocation5 + $0x4f0] sm:$0xff] }
 0x69a   :  { %2502 = vmatmul.f32.vlgmr.msra.gmra.mxu0 %v2165_v40  ;;  %2548 = vmatmul.f32.vlgmr.msrb.gmra.mxu1 %v2167_v50  ;;  %v2127_v23 = vadd.f32 %v2126_v14, %v5852_v36  ;;  %v4380_v40 = vld [vmem:[#allocation5 + $0x4e8] sm:$0xff]  ;;  %v4381_v50 = vld [vmem:[#allocation5 + $0x4f8] sm:$0xff]  ;;  %v4400_v10 = vld [vmem:[#allocation5 + $0x300] sm:$0xff] }
 0x69b   :  { %2476 = vmatpush.msra.mxu3 %v842_v56  ;;  %2522 = vmatpush.msrb.mxu2 %v874_v57  ;;  %v2180_v38 = vmax.f32 %v2081_v22, 0.0  ;;  %v4388_v56 = vld [vmem:[#allocation5 + $0x420] sm:$0xff]  ;;  %v4389_v57 = vld [vmem:[#allocation5 + $0x428] sm:$0xff]  ;;  %v4406_v22 = vld [vmem:[#allocation5 + $0x2b0] sm:$0xff] }
 0x69c   :  { %2634 = vmatpush.msrb.mxu0 %v4372_v16  ;;  %2680 = vmatpush.msra.mxu1 %v4373_v9  ;;  %v2182_v39 = vmax.f32 %v2127_v23, 0.0  ;;  %v4398_v16 = vld [vmem:[#allocation5 + $0x370] sm:$0xff]  ;;  %v4399_v9 = vld [vmem:[#allocation5 + $0x378] sm:$0xff]  ;;  %v4401_v14 = vld [vmem:[#allocation5 + $0x308] sm:$0xff] }
 0x69d   :  { %2477 = vmatpush.msra.mxu3 %v841_v3  ;;  %2523 = vmatpush.msrb.mxu2 %v873_v4  ;;  %v4392_v3 = vld [vmem:[#allocation5 + $0x3c0] sm:$0xff]  ;;  %v4393_v4 = vld [vmem:[#allocation5 + $0x3c8] sm:$0xff]  ;;  %v4407_v23 = vld [vmem:[#allocation5 + $0x2b8] sm:$0xff] }
 0x69e   :  { %2635 = vmatpush.msrb.mxu0 %v4374_v18  ;;  %2681 = vmatpush.msra.mxu1 %v4375_v19  ;;  %v4404_v18 = vld [vmem:[#allocation5 + $0x2a0] sm:$0xff]  ;;  %v4405_v19 = vld [vmem:[#allocation5 + $0x2a8] sm:$0xff] }
 0x69f   :  { %2478 = vmatpush.msra.mxu3 %v840_v5  ;;  %2524 = vmatpush.msrb.mxu2 %v872_v7  ;;  %v4396_v5 = vld [vmem:[#allocation5 + $0x360] sm:$0xff]  ;;  %v4397_v7 = vld [vmem:[#allocation5 + $0x368] sm:$0xff] }
 0x6a0   :  { %2479 = vmatmul.f32.vlgmr.msra.gmra.mxu3 %v2164_v61  ;;  %2525 = vmatmul.f32.vlgmr.msrb.gmra.mxu2 %v2166_v34  ;;  %v4394_v61 = vld [vmem:[#allocation5 + $0x3d0] sm:$0xff]  ;;  %v4395_v34 = vld [vmem:[#allocation5 + $0x3d8] sm:$0xff] }
 0x6a1   :  { %2611 = vmatpush.msrb.mxu3 %v4376_v28  ;;  %2657 = vmatpush.msra.mxu2 %v4377_v31  ;;  %v4408_v28 = vld [vmem:[#allocation5 + $0x240] sm:$0xff]  ;;  %v4409_v31 = vld [vmem:[#allocation5 + $0x248] sm:$0xff] }
 0x6a2   :  { %2505 = vmatmul.f32.gmra.mxu0 %v2181_v59  ;;  %2551 = vmatmul.f32.gmra.mxu1 %v2183_v15  ;;  %v4402_v59 = vld [vmem:[#allocation5 + $0x310] sm:$0xff]  ;;  %v4403_v15 = vld [vmem:[#allocation5 + $0x318] sm:$0xff] }
 0x6a3   :  { %2612 = vmatpush.msrb.mxu3 %v4378_v27  ;;  %2658 = vmatpush.msra.mxu2 %v4379_v33  ;;  %v4410_v27 = vld [vmem:[#allocation5 + $0x250] sm:$0xff]  ;;  %v4411_v33 = vld [vmem:[#allocation5 + $0x258] sm:$0xff] }
 0x6a4   :  { %2636 = vmatpush.msrb.mxu0 %v4380_v40  ;;  %2682 = vmatpush.msra.mxu1 %v4381_v50  ;;  %v4414_v40 = vld [vmem:[#allocation5 + $0x1f0] sm:$0xff]  ;;  %v4415_v50 = vld [vmem:[#allocation5 + $0x1f8] sm:$0xff] }
 0x6a5   :  { %2613 = vmatpush.msrb.mxu3 %v4382_v47  ;;  %2659 = vmatpush.msra.mxu2 %v4383_v51  ;;  %v4416_v47 = vld [vmem:[#allocation5 + $0x180] sm:$0xff]  ;;  %v4417_v51 = vld [vmem:[#allocation5 + $0x188] sm:$0xff] }
 0x6a6   :  { %2637 = vmatpush.msrb.mxu0 %v4384_v54  ;;  %2683 = vmatpush.msra.mxu1 %v4385_v17  ;;  %v4418_v54 = vld [vmem:[#allocation5 + $0x190] sm:$0xff]  ;;  %v4419_v17 = vld [vmem:[#allocation5 + $0x198] sm:$0xff] }
 0x6a7   :  { %2614 = vmatpush.msrb.mxu3 %v4386_v55  ;;  %2660 = vmatpush.msra.mxu2 %v4387_v32  ;;  %v4420_v55 = vld [vmem:[#allocation5 + $0x120] sm:$0xff]  ;;  %v4421_v32 = vld [vmem:[#allocation5 + $0x128] sm:$0xff] }
 0x6a8   :  { %2482 = vmatmul.f32.gmra.mxu3 %v2180_v38  ;;  %2528 = vmatmul.f32.gmra.mxu2 %v2182_v39  ;;  %v4412_v38 = vld [vmem:[#allocation5 + $0x1e0] sm:$0xff]  ;;  %v4413_v39 = vld [vmem:[#allocation5 + $0x1e8] sm:$0xff] }
 0x6a9   :  { %2615 = vmatpush.msrb.mxu3 %v4388_v56  ;;  %2638 = vmatpush.msrb.mxu0 %v4389_v57  ;;  %v4422_v56 = vld [vmem:[#allocation5 + $0x130] sm:$0xff]  ;;  %v4423_v57 = vld [vmem:[#allocation5 + $0x138] sm:$0xff] }
 0x6aa   :  { %2661 = vmatpush.msra.mxu2 %v4390_v62  ;;  %2684 = vmatpush.msra.mxu1 %v4391_v53  ;;  %v4424_v62 = vld [vmem:[#allocation5 + $0xc0] sm:$0xff]  ;;  %v4425_v53 = vld [vmem:[#allocation5 + $0xc8] sm:$0xff] }
 0x6ab   :  { %2616 = vmatpush.msrb.mxu3 %v4392_v3  ;;  %2639 = vmatpush.msrb.mxu0 %v4393_v4  ;;  %v4426_v3 = vld [vmem:[#allocation5 + $0xd0] sm:$0xff]  ;;  %v4427_v4 = vld [vmem:[#allocation5 + $0xd8] sm:$0xff] }
 0x6ac   :  { %2662 = vmatpush.msra.mxu2 %v4394_v61  ;;  %2685 = vmatpush.msra.mxu1 %v4395_v34  ;;  %v4428_v61 = vld [vmem:[#allocation5 + $0x60] sm:$0xff]  ;;  %v4429_v34 = vld [vmem:[#allocation5 + $0x68] sm:$0xff] }
 0x6ad   :  { %2617 = vmatpush.msrb.mxu3 %v4396_v5  ;;  %2640 = vmatpush.msrb.mxu0 %v4397_v7  ;;  %v4430_v5 = vld [vmem:[#allocation5 + $0x70] sm:$0xff]  ;;  %v4431_v7 = vld [vmem:[#allocation5 + $0x78] sm:$0xff] }
 0x6ae   :  { %2663 = vmatpush.msra.mxu2 %v4398_v16  ;;  %2686 = vmatpush.msra.mxu1 %v4399_v9  ;;  %v4432_v16 = vld [vmem:[#allocation5] sm:$0xff]  ;;  %v4433_v9 = vld [vmem:[#allocation5 + $0x8] sm:$0xff] }
 0x6af   :  { %2618 = vmatpush.msrb.mxu3 %v4400_v10  ;;  %2641 = vmatpush.msrb.mxu0 %v4401_v14  ;;  %v4434_v10 = vld [vmem:[#allocation5 + $0x10] sm:$0xff]  ;;  %v4435_v14 = vld [vmem:[#allocation5 + $0x18] sm:$0xff] }
 0x6b0   :  { %2664 = vmatpush.msra.mxu2 %v4402_v59  ;;  %2687 = vmatpush.msra.mxu1 %v4403_v15  ;;  %v4436_v59 = vld [vmem:[#allocation5 + $0x5c0] sm:$0xff]  ;;  %v4437_v15 = vld [vmem:[#allocation5 + $0x5c8] sm:$0xff] }
 0x6b1   :  { %2619 = vmatpush.msrb.mxu3 %v4404_v18  ;;  %2642 = vmatpush.msrb.mxu0 %v4405_v19  ;;  %v4438_v18 = vld [vmem:[#allocation5 + $0x5d0] sm:$0xff]  ;;  %v4439_v19 = vld [vmem:[#allocation5 + $0x5d8] sm:$0xff] }
 0x6b2   :  { %2665 = vmatpush.msra.mxu2 %v4406_v22  ;;  %2688 = vmatpush.msra.mxu1 %v4407_v23  ;;  %v4440_v22 = vld [vmem:[#allocation5 + $0x560] sm:$0xff]  ;;  %v4441_v23 = vld [vmem:[#allocation5 + $0x568] sm:$0xff] }
 0x6b3   :  { %2620 = vmatpush.msrb.mxu3 %v4408_v28  ;;  %2643 = vmatpush.msrb.mxu0 %v4409_v31  ;;  %v4442_v28 = vld [vmem:[#allocation5 + $0x570] sm:$0xff]  ;;  %v4443_v31 = vld [vmem:[#allocation5 + $0x578] sm:$0xff] }
 0x6b4   :  { %2666 = vmatpush.msra.mxu2 %v4410_v27  ;;  %2689 = vmatpush.msra.mxu1 %v4411_v33  ;;  %v4444_v27 = vld [vmem:[#allocation5 + $0x500] sm:$0xff]  ;;  %v4445_v33 = vld [vmem:[#allocation5 + $0x508] sm:$0xff] }
 0x6b5   :  { %2621 = vmatpush.msrb.mxu3 %v4412_v38  ;;  %2644 = vmatpush.msrb.mxu0 %v4413_v39  ;;  %v4446_v38 = vld [vmem:[#allocation5 + $0x510] sm:$0xff]  ;;  %v4447_v39 = vld [vmem:[#allocation5 + $0x518] sm:$0xff] }
 0x6b6   :  { %2667 = vmatpush.msra.mxu2 %v4414_v40  ;;  %2690 = vmatpush.msra.mxu1 %v4415_v50  ;;  %v4448_v40 = vld [vmem:[#allocation5 + $0x4a0] sm:$0xff]  ;;  %v4449_v50 = vld [vmem:[#allocation5 + $0x4a8] sm:$0xff] }
 0x6b7   :  { %2622 = vmatpush.msrb.mxu3 %v4416_v47  ;;  %2645 = vmatpush.msrb.mxu0 %v4417_v51  ;;  %v4450_v47 = vld [vmem:[#allocation5 + $0x4b0] sm:$0xff]  ;;  %v4451_v51 = vld [vmem:[#allocation5 + $0x4b8] sm:$0xff] }
 0x6b8   :  { %2668 = vmatpush.msra.mxu2 %v4418_v54  ;;  %2691 = vmatpush.msra.mxu1 %v4419_v17  ;;  %v4452_v54 = vld [vmem:[#allocation5 + $0x440] sm:$0xff]  ;;  %v4453_v17 = vld [vmem:[#allocation5 + $0x448] sm:$0xff] }
 0x6b9   :  { %2623 = vmatpush.msrb.mxu3 %v4420_v55  ;;  %2646 = vmatpush.msrb.mxu0 %v4421_v32  ;;  %v4454_v55 = vld [vmem:[#allocation5 + $0x450] sm:$0xff]  ;;  %v4455_v32 = vld [vmem:[#allocation5 + $0x458] sm:$0xff] }
 0x6ba   :  { %2669 = vmatpush.msra.mxu2 %v4422_v56  ;;  %2692 = vmatpush.msra.mxu1 %v4423_v57  ;;  %v4456_v56 = vld [vmem:[#allocation5 + $0x3e0] sm:$0xff]  ;;  %v4457_v57 = vld [vmem:[#allocation5 + $0x3e8] sm:$0xff] }
 0x6bb   :  { %2624 = vmatpush.msrb.mxu3 %v4424_v62  ;;  %2647 = vmatpush.msrb.mxu0 %v4425_v53  ;;  %v4458_v62 = vld [vmem:[#allocation5 + $0x3f0] sm:$0xff]  ;;  %v4459_v53 = vld [vmem:[#allocation5 + $0x3f8] sm:$0xff] }
 0x6bc   :  { %2670 = vmatpush.msra.mxu2 %v4426_v3  ;;  %2693 = vmatpush.msra.mxu1 %v4427_v4  ;;  %v4460_v3 = vld [vmem:[#allocation5 + $0x380] sm:$0xff]  ;;  %v4461_v4 = vld [vmem:[#allocation5 + $0x388] sm:$0xff] }
 0x6bd   :  { %2625 = vmatpush.msrb.mxu3 %v4428_v61  ;;  %2648 = vmatpush.msrb.mxu0 %v4429_v34  ;;  %v4462_v61 = vld [vmem:[#allocation5 + $0x390] sm:$0xff]  ;;  %v4463_v34 = vld [vmem:[#allocation5 + $0x398] sm:$0xff] }
 0x6be   :  { %2671 = vmatpush.msra.mxu2 %v4430_v5  ;;  %2694 = vmatpush.msra.mxu1 %v4431_v7  ;;  %v4464_v5 = vld [vmem:[#allocation5 + $0x320] sm:$0xff]  ;;  %v4465_v7 = vld [vmem:[#allocation5 + $0x328] sm:$0xff] }
 0x6bf   :  { %2626 = vmatpush.msrb.mxu3 %v4432_v16  ;;  %2649 = vmatpush.msrb.mxu0 %v4433_v9  ;;  %v4466_v16 = vld [vmem:[#allocation5 + $0x330] sm:$0xff]  ;;  %v4467_v9 = vld [vmem:[#allocation5 + $0x338] sm:$0xff] }
 0x6c0   :  { %2672 = vmatpush.msra.mxu2 %v4434_v10  ;;  %2695 = vmatpush.msra.mxu1 %v4435_v14  ;;  %v4468_v10 = vld [vmem:[#allocation5 + $0x2c0] sm:$0xff]  ;;  %v4469_v14 = vld [vmem:[#allocation5 + $0x2c8] sm:$0xff] }
 0x6c1   :  { %2703 = vmatpush.msra.mxu3 %v4436_v59  ;;  %2726 = vmatpush.msra.mxu0 %v4437_v15  ;;  %v4470_v59 = vld [vmem:[#allocation5 + $0x2d0] sm:$0xff]  ;;  %v4471_v15 = vld [vmem:[#allocation5 + $0x2d8] sm:$0xff] }
 0x6c2   :  { %2749 = vmatpush.msrb.mxu2 %v4438_v18  ;;  %2772 = vmatpush.msrb.mxu1 %v4439_v19  ;;  %v4472_v18 = vld [vmem:[#allocation5 + $0x260] sm:$0xff]  ;;  %v4473_v19 = vld [vmem:[#allocation5 + $0x268] sm:$0xff] }
 0x6c3   :  { %2704 = vmatpush.msra.mxu3 %v4440_v22  ;;  %2727 = vmatpush.msra.mxu0 %v4441_v23  ;;  %v4474_v22 = vld [vmem:[#allocation5 + $0x270] sm:$0xff]  ;;  %v4475_v23 = vld [vmem:[#allocation5 + $0x278] sm:$0xff] }
 0x6c4   :  { %2750 = vmatpush.msrb.mxu2 %v4442_v28  ;;  %2773 = vmatpush.msrb.mxu1 %v4443_v31  ;;  %v4476_v28 = vld [vmem:[#allocation5 + $0x200] sm:$0xff]  ;;  %v4477_v31 = vld [vmem:[#allocation5 + $0x208] sm:$0xff] }
 0x6c5   :  { %2705 = vmatpush.msra.mxu3 %v4444_v27  ;;  %2728 = vmatpush.msra.mxu0 %v4445_v33  ;;  %v4478_v27 = vld [vmem:[#allocation5 + $0x210] sm:$0xff]  ;;  %v4479_v33 = vld [vmem:[#allocation5 + $0x218] sm:$0xff] }
 0x6c6   :  { %2751 = vmatpush.msrb.mxu2 %v4446_v38  ;;  %2774 = vmatpush.msrb.mxu1 %v4447_v39  ;;  %v4480_v38 = vld [vmem:[#allocation5 + $0x1a0] sm:$0xff]  ;;  %v4481_v39 = vld [vmem:[#allocation5 + $0x1a8] sm:$0xff] }
 0x6c7   :  { %2706 = vmatpush.msra.mxu3 %v4448_v40  ;;  %2729 = vmatpush.msra.mxu0 %v4449_v50  ;;  %v4482_v40 = vld [vmem:[#allocation5 + $0x1b0] sm:$0xff]  ;;  %v4483_v50 = vld [vmem:[#allocation5 + $0x1b8] sm:$0xff] }
 0x6c8   :  { %2752 = vmatpush.msrb.mxu2 %v4450_v47  ;;  %2775 = vmatpush.msrb.mxu1 %v4451_v51  ;;  %v4484_v47 = vld [vmem:[#allocation5 + $0x140] sm:$0xff]  ;;  %v4485_v51 = vld [vmem:[#allocation5 + $0x148] sm:$0xff] }
 0x6c9   :  { %2707 = vmatpush.msra.mxu3 %v4452_v54  ;;  %2730 = vmatpush.msra.mxu0 %v4453_v17  ;;  %v4486_v54 = vld [vmem:[#allocation5 + $0x150] sm:$0xff]  ;;  %v4487_v17 = vld [vmem:[#allocation5 + $0x158] sm:$0xff] }
 0x6ca   :  { %2753 = vmatpush.msrb.mxu2 %v4454_v55  ;;  %2776 = vmatpush.msrb.mxu1 %v4455_v32  ;;  %v4488_v55 = vld [vmem:[#allocation5 + $0xe0] sm:$0xff]  ;;  %v4489_v32 = vld [vmem:[#allocation5 + $0xe8] sm:$0xff] }
 0x6cb   :  { %2708 = vmatpush.msra.mxu3 %v4456_v56  ;;  %2731 = vmatpush.msra.mxu0 %v4457_v57  ;;  %v4490_v56 = vld [vmem:[#allocation5 + $0xf0] sm:$0xff]  ;;  %v4491_v57 = vld [vmem:[#allocation5 + $0xf8] sm:$0xff] }
 0x6cc   :  { %2754 = vmatpush.msrb.mxu2 %v4458_v62  ;;  %2777 = vmatpush.msrb.mxu1 %v4459_v53  ;;  %v4492_v62 = vld [vmem:[#allocation5 + $0x80] sm:$0xff]  ;;  %v4493_v53 = vld [vmem:[#allocation5 + $0x88] sm:$0xff] }
 0x6cd   :  { %2709 = vmatpush.msra.mxu3 %v4460_v3  ;;  %2732 = vmatpush.msra.mxu0 %v4461_v4  ;;  %v4494_v3 = vld [vmem:[#allocation5 + $0x90] sm:$0xff]  ;;  %v4495_v4 = vld [vmem:[#allocation5 + $0x98] sm:$0xff] }
 0x6ce   :  { %2755 = vmatpush.msrb.mxu2 %v4462_v61  ;;  %2778 = vmatpush.msrb.mxu1 %v4463_v34  ;;  %v4496_v61 = vld [vmem:[#allocation5 + $0x20] sm:$0xff]  ;;  %v4497_v34 = vld [vmem:[#allocation5 + $0x28] sm:$0xff] }
 0x6cf   :  { %2710 = vmatpush.msra.mxu3 %v4464_v5  ;;  %2733 = vmatpush.msra.mxu0 %v4465_v7  ;;  %v4498_v5 = vld [vmem:[#allocation5 + $0x30] sm:$0xff]  ;;  %v4499_v7 = vld [vmem:[#allocation5 + $0x38] sm:$0xff] }
 0x6d0   :  { %2756 = vmatpush.msrb.mxu2 %v4466_v16  ;;  %2779 = vmatpush.msrb.mxu1 %v4467_v9  ;;  %v2227_v16 = vpop.f32.mrf.mxu0 }
 0x6d1   :  { %2711 = vmatpush.msra.mxu3 %v4468_v10  ;;  %2734 = vmatpush.msra.mxu0 %v4469_v14  ;;  %v2273_v14 = vpop.f32.mrf.mxu1 }
 0x6d2   :  { %2757 = vmatpush.msrb.mxu2 %v4470_v59  ;;  %2780 = vmatpush.msrb.mxu1 %v4471_v15 }
 0x6d3   :  { %2712 = vmatpush.msra.mxu3 %v4472_v18  ;;  %2735 = vmatpush.msra.mxu0 %v4473_v19  ;;  %v4286_v19 = vld [vmem:[%s6097_s10] ss:$0 sm:$0xff] }
 0x6d4   :  { %2758 = vmatpush.msrb.mxu2 %v4474_v22  ;;  %2781 = vmatpush.msrb.mxu1 %v4475_v23 }
 0x6d5   :  { %2713 = vmatpush.msra.mxu3 %v4476_v28  ;;  %2736 = vmatpush.msra.mxu0 %v4477_v31 }
 0x6d6   :  { %2759 = vmatpush.msrb.mxu2 %v4478_v27  ;;  %2782 = vmatpush.msrb.mxu1 %v4479_v33 }
 0x6d7   :  { %2714 = vmatpush.msra.mxu3 %v4480_v38  ;;  %2737 = vmatpush.msra.mxu0 %v4481_v39  ;;  %v2204_v9 = vpop.f32.mrf.mxu3  ;;  %v2250_v10 = vpop.f32.mrf.mxu2 }
 0x6d8   :  { %2760 = vmatpush.msrb.mxu2 %v4482_v40  ;;  %2783 = vmatpush.msrb.mxu1 %v4483_v50  ;;  %v2230_v59 = vpop.f32.mrf.mxu0  ;;  %v2205_v23 = vadd.f32 %v4286_v19, %v2204_v9 }
 0x6d9   :  { %2715 = vmatpush.msra.mxu3 %v4484_v47  ;;  %2738 = vmatpush.msra.mxu0 %v4485_v51  ;;  %v2276_v22 = vpop.f32.mrf.mxu1 }
 0x6da   :  { %2761 = vmatpush.msrb.mxu2 %v4486_v54  ;;  %2784 = vmatpush.msrb.mxu1 %v4487_v17  ;;  %v2228_v27 = vadd.f32 %v2227_v16, %v2205_v23 }
 0x6db   :  { %2716 = vmatpush.msra.mxu3 %v4488_v55  ;;  %2739 = vmatpush.msra.mxu0 %v4489_v32 }
 0x6dc   :  { %2762 = vmatpush.msrb.mxu2 %v4490_v56  ;;  %2785 = vmatpush.msrb.mxu1 %v4491_v57  ;;  %v2251_v39 = vadd.f32 %v2250_v10, %v2228_v27 }
 0x6dd   :  { %2717 = vmatpush.msra.mxu3 %v4492_v62  ;;  %2740 = vmatpush.msra.mxu0 %v4493_v53 }
 0x6de   :  { %2763 = vmatpush.msrb.mxu2 %v4494_v3  ;;  %2786 = vmatpush.msrb.mxu1 %v4495_v4  ;;  %v2274_v47 = vadd.f32 %v2273_v14, %v2251_v39 }
 0x6df   :  { %2718 = vmatpush.msra.mxu3 %v4496_v61  ;;  %2741 = vmatpush.msra.mxu0 %v4497_v34 }
 0x6e0   :  { %2764 = vmatpush.msrb.mxu2 %v4498_v5  ;;  %2787 = vmatpush.msrb.mxu1 %v4499_v7  ;;  %v2319_v28 = vpop.f32.mrf.mxu0 }
 0x6e1   :  { %v2365_v38 = vpop.f32.mrf.mxu1 }
 0x6e2   :  { %v2207_v15 = vpop.f32.mrf.mxu3  ;;  %v2253_v18 = vpop.f32.mrf.mxu2 }
 0x6e3   :  { %v2208_v40 = vadd.f32 %v4286_v19, %v2207_v15 }
 0x6e5   :  { %v2231_v50 = vadd.f32 %v2230_v59, %v2208_v40 }
 0x6e7   :  { %v2254_v32 = vadd.f32 %v2253_v18, %v2231_v50 }
 0x6e9   :  { %v2322_v51 = vpop.f32.mrf.mxu0  ;;  %v2368_v56 = vpop.f32.mrf.mxu1  ;;  %v2277_v62 = vadd.f32 %v2276_v22, %v2254_v32 }
 0x6ec   :  { %v2296_v31 = vpop.f32.mrf.mxu3  ;;  %v2342_v33 = vpop.f32.mrf.mxu2 }
 0x6ed   :  { %v2297_v17 = vadd.f32 %v2296_v31, %v2274_v47 }
 0x6ef   :  { %v2320_v57 = vadd.f32 %v2319_v28, %v2297_v17 }
 0x6f1   :  { %v2343_v53 = vadd.f32 %v2342_v33, %v2320_v57 }
 0x6f3   :  { %v2366_v7 = vadd.f32 %v2365_v38, %v2343_v53 }
 0x6f4   :  { %v2411_v4 = vpop.f32.mrf.mxu0 }
 0x6f5   :  { %v2457_v16 = vpop.f32.mrf.mxu1 }
 0x6f6   :  { %v2299_v54 = vpop.f32.mrf.mxu3  ;;  %v2345_v55 = vpop.f32.mrf.mxu2 }
 0x6f7   :  { %v2300_v3 = vadd.f32 %v2299_v54, %v2277_v62 }
 0x6f9   :  { %v2323_v5 = vadd.f32 %v2322_v51, %v2300_v3 }
 0x6fb   :  { %v2346_v10 = vadd.f32 %v2345_v55, %v2323_v5 }
 0x6fd   :  { %v2369_v19 = vadd.f32 %v2368_v56, %v2346_v10 }
 0x6ff   :  { %v2414_v14 = vpop.f32.mrf.mxu0  ;;  %v2460_v27 = vpop.f32.mrf.mxu1 }
 0x702   :  { %v2388_v61 = vpop.f32.mrf.mxu3  ;;  %v2434_v34 = vpop.f32.mrf.mxu2 }
 0x703   :  { %v2389_v9 = vadd.f32 %v2388_v61, %v2366_v7 }
 0x705   :  { %v2412_v59 = vadd.f32 %v2411_v4, %v2389_v9 }
 0x707   :  { %v2435_v31 = vadd.f32 %v2434_v34, %v2412_v59 }
 0x709   :  { %v2458_v22 = vadd.f32 %v2457_v16, %v2435_v31 }
 0x70c   :  { %v2391_v15 = vpop.f32.mrf.mxu3  ;;  %v2437_v23 = vpop.f32.mrf.mxu2 }
 0x70d   :  { %v2392_v18 = vadd.f32 %v2391_v15, %v2369_v19 }
 0x70f   :  { %v2415_v28 = vadd.f32 %v2414_v14, %v2392_v18 }
 0x711   :  { %v2438_v47 = vadd.f32 %v2437_v23, %v2415_v28 }
 0x713   :  { %v2461_v55 = vadd.f32 %v2460_v27, %v2438_v47 }
 0x717   :  { %v2503_v33 = vpop.f32.mrf.mxu0  ;;  %v2549_v38 = vpop.f32.mrf.mxu1 }
 0x71f   :  { %v2506_v62 = vpop.f32.mrf.mxu0  ;;  %v2552_v34 = vpop.f32.mrf.mxu1 }
 0x723   :  { %v2480_v39 = vpop.f32.mrf.mxu3  ;;  %v2526_v50 = vpop.f32.mrf.mxu2 }
 0x724   :  { %v2481_v40 = vadd.f32 %v2480_v39, %v2458_v22 }
 0x726   :  { %v2504_v51 = vadd.f32 %v2503_v33, %v2481_v40 }
 0x728   :  { %v2527_v54 = vadd.f32 %v2526_v50, %v2504_v51 }
 0x72a   :  { %v2550_v17 = vadd.f32 %v2549_v38, %v2527_v54 }
 0x72b   :  { %v2483_v32 = vpop.f32.mrf.mxu3  ;;  %v2529_v4 = vpop.f32.mrf.mxu2 }
 0x72c   :  { %v2484_v57 = vadd.f32 %v2483_v32, %v2461_v55  ;;  %v2555_v56 = vadd.f32 %v2550_v17, %v5739_v60  ;;  %v4287_v55 = vld [vmem:[%s6098_s11] ss:$0 sm:$0xff] }
 0x72e   :  { %v2507_v53 = vadd.f32 %v2506_v62, %v2484_v57  ;;  %2557 = vadd.xlane.f32.xlu2 %v2555_v56  ;;  %v2563_v3 = vmul.f32 %v2555_v56, %v2555_v56  ;;  %v4288_v62 = vld [vmem:[%s6099_s12] ss:$0 sm:$0xff] }
 0x730   :  { %v2530_v61 = vadd.f32 %v2529_v4, %v2507_v53  ;;  %2565 = vadd.xlane.f32.xlu0 %v2563_v3 }
 0x732   :  { %v2553_v5 = vadd.f32 %v2552_v34, %v2530_v61 }
 0x734   :  { %v2556_v7 = vadd.f32 %v2553_v5, %v5746_v35 }
 0x736   :  { %2559 = vadd.xlane.f32.xlu1 %v2556_v7  ;;  %v2564_v16 = vmul.f32 %v2556_v7, %v2556_v7 }
 0x738   :  { %2567 = vadd.xlane.f32.xlu2 %v2564_v16 }
 0x7a1   :  { %v2558_v9 = vpop.xlane.xlu2 %2557 }
 0x7a2   :  { %v2561_v10 = vmul.f32 0.03125, %v2558_v9 }
 0x7a3   :  { %v2566_v59 = vpop.xlane.xlu0 %2565 }
 0x7a4   :  { %v2571_v14 = vmul.f32 %v2561_v10, %v2561_v10  ;;  %v2569_v15 = vmul.f32 0.03125, %v2566_v59  ;;  %v2575_v17 = vsub.f32 %v2555_v56, %v2561_v10  ;;  %v4500_v10 = vld [vmem:[#allocation5 + $0x5e0] sm:$0xff]  ;;  %v4501_v59 = vld [vmem:[#allocation5 + $0x5e8] sm:$0xff] }
 0x7a6   :  { %v2573_v60 = vsub.f32 %v2569_v15, %v2571_v14  ;;  %v4502_v14 = vld [vmem:[#allocation5 + $0x5f0] sm:$0xff]  ;;  %v4503_v15 = vld [vmem:[#allocation5 + $0x5f8] sm:$0xff] }
 0x7a8   :  { %v2577_v19 = vadd.f32 1e-05, %v2573_v60  ;;  %v4504_v60 = vld [vmem:[#allocation5 + $0x580] sm:$0xff] }
 0x7a9   :  { %v2560_v23 = vpop.xlane.xlu1 %2559 }
 0x7aa   :  { %4326 = vrsqrt.f32 %v2577_v19  ;;  %v2562_v31 = vmul.f32 0.03125, %v2560_v23  ;;  %vm2585_vm8 = vweird.f32 %v2577_v19  ;;  %v4506_v23 = vld [vmem:[#allocation5 + $0x590] sm:$0xff] }
 0x7ab   :  { %v2568_v18 = vpop.xlane.xlu2 %2567 }
 0x7ac   :  { %v2572_v27 = vmul.f32 %v2562_v31, %v2562_v31  ;;  %v2570_v28 = vmul.f32 0.03125, %v2568_v18  ;;  %v2576_v56 = vsub.f32 %v2556_v7, %v2562_v31  ;;  %v4507_v31 = vld [vmem:[#allocation5 + $0x598] sm:$0xff] }
 0x7ae   :  { %v2574_v22 = vsub.f32 %v2570_v28, %v2572_v27  ;;  %v4508_v27 = vld [vmem:[#allocation5 + $0x520] sm:$0xff]  ;;  %v4509_v28 = vld [vmem:[#allocation5 + $0x528] sm:$0xff] }
 0x7b0   :  { %v4327_v33 = vpop.eup %4326  ;;  %v2578_v39 = vadd.f32 1e-05, %v2574_v22  ;;  %v4510_v22 = vld [vmem:[#allocation5 + $0x530] sm:$0xff] }
 0x7b1   :  { %v2580_v35 = vmul.f32 %v4327_v33, %v2577_v19  ;;  %vm2586_vm7 = vweird.f32 %v4327_v33  ;;  %v4505_v19 = vld [vmem:[#allocation5 + $0x588] sm:$0xff] }
 0x7b2   :  { %4328 = vrsqrt.f32 %v2578_v39  ;;  %vm2587_vm9 = vmor %vm2585_vm8, %vm2586_vm7  ;;  %vm2595_vm11 = vweird.f32 %v2578_v39 }
 0x7b3   :  { %v2581_v40 = vmul.f32 %v4327_v33, %v2580_v35  ;;  %v4513_v35 = vld [vmem:[#allocation5 + $0x4c8] sm:$0xff] }
 0x7b5   :  { %v2582_v50 = vmul.f32 0.5, %v2581_v40  ;;  %v4514_v40 = vld [vmem:[#allocation5 + $0x4d0] sm:$0xff] }
 0x7b7   :  { %v2583_v47 = vsub.f32 1.5, %v2582_v50  ;;  %v4515_v50 = vld [vmem:[#allocation5 + $0x4d8] sm:$0xff] }
 0x7b8   :  { %v4329_v51 = vpop.eup %4328 }
 0x7b9   :  { %v2584_v38 = vmul.f32 %v4327_v33, %v2583_v47  ;;  %v2590_v54 = vmul.f32 %v4329_v51, %v2578_v39  ;;  %vm2596_vm10 = vweird.f32 %v4329_v51  ;;  %v4512_v39 = vld [vmem:[#allocation5 + $0x4c0] sm:$0xff] }
 0x7ba   :  { %vm2597_vm12 = vmor %vm2595_vm11, %vm2596_vm10  ;;  %v4516_v47 = vld [vmem:[#allocation5 + $0x460] sm:$0xff] }
 0x7bb   :  { %v2588_v32 = vsel %vm2587_vm9, %v4327_v33, %v2584_v38  ;;  %v2591_v57 = vmul.f32 %v4329_v51, %v2590_v54  ;;  %v4511_v33 = vld [vmem:[#allocation5 + $0x538] sm:$0xff]  ;;  %v4518_v38 = vld [vmem:[#allocation5 + $0x470] sm:$0xff] }
 0x7bc   :  { %v2599_v53 = vmul.f32 %v2588_v32, %v2575_v17  ;;  %v4519_v54 = vld [vmem:[#allocation5 + $0x478] sm:$0xff]  ;;  %v4520_v17 = vld [vmem:[#allocation5 + $0x400] sm:$0xff]  ;;  %v4522_v32 = vld [vmem:[#allocation5 + $0x410] sm:$0xff] }
 0x7bd   :  { %v2592_v3 = vmul.f32 0.5, %v2591_v57  ;;  %v4523_v57 = vld [vmem:[#allocation5 + $0x418] sm:$0xff] }
 0x7be   :  { %v2604_v4 = vmul.f32 %v4287_v55, %v2599_v53  ;;  %v4525_v53 = vld [vmem:[#allocation5 + $0x3a8] sm:$0xff] }
 0x7bf   :  { %v2593_v61 = vsub.f32 1.5, %v2592_v3  ;;  %v4526_v3 = vld [vmem:[#allocation5 + $0x3b0] sm:$0xff] }
 0x7c0   :  { %v5871_v34 = vadd.f32 %v4288_v62, %v2604_v4  ;;  %v4527_v4 = vld [vmem:[#allocation5 + $0x3b8] sm:$0xff] }
 0x7c1   :  { %v2594_v5 = vmul.f32 %v4329_v51, %v2593_v61  ;;  %v4528_v61 = vld [vmem:[#allocation5 + $0x340] sm:$0xff] }
 0x7c2   :  { %2627 = vmatmul.f32.vlgmr.msrb.gmra.mxu3 %v5871_v34  ;;  %2650 = vmatmul.f32.vlgmr.msrb.gmra.mxu0 %v5871_v34 }
 0x7c3   :  { %v2598_v16 = vsel %vm2597_vm12, %v4329_v51, %v2594_v5  ;;  %2673 = vmatmul.f32.vlgmr.msra.gmra.mxu2 %v5871_v34  ;;  %2696 = vmatmul.f32.vlgmr.msra.gmra.mxu1 %v5871_v34  ;;  %v4517_v51 = vld [vmem:[#allocation5 + $0x468] sm:$0xff] }
 0x7c4   :  { %v2600_v9 = vmul.f32 %v2598_v16, %v2576_v56  ;;  %2795 = vmatpush.msrb.mxu3 %v4500_v10  ;;  %2818 = vmatpush.msrb.mxu0 %v4501_v59  ;;  %v4529_v5 = vld [vmem:[#allocation5 + $0x348] sm:$0xff]  ;;  %v4530_v56 = vld [vmem:[#allocation5 + $0x350] sm:$0xff]  ;;  %v4531_v16 = vld [vmem:[#allocation5 + $0x358] sm:$0xff] }
 0x7c5   :  { %2841 = vmatpush.msra.mxu2 %v4502_v14  ;;  %2864 = vmatpush.msra.mxu1 %v4503_v15  ;;  %v4533_v10 = vld [vmem:[#allocation5 + $0x2e8] sm:$0xff]  ;;  %v4534_v59 = vld [vmem:[#allocation5 + $0x2f0] sm:$0xff]  ;;  %v4535_v14 = vld [vmem:[#allocation5 + $0x2f8] sm:$0xff] }
 0x7c6   :  { %v2605_v7 = vmul.f32 %v4287_v55, %v2600_v9  ;;  %2796 = vmatpush.msrb.mxu3 %v4504_v60  ;;  %2819 = vmatpush.msrb.mxu0 %v4505_v19  ;;  %v4521_v55 = vld [vmem:[#allocation5 + $0x408] sm:$0xff]  ;;  %v4532_v9 = vld [vmem:[#allocation5 + $0x2e0] sm:$0xff]  ;;  %v4538_v60 = vld [vmem:[#allocation5 + $0x290] sm:$0xff] }
 0x7c7   :  { %2842 = vmatpush.msra.mxu2 %v4506_v23  ;;  %2865 = vmatpush.msra.mxu1 %v4507_v31  ;;  %v4536_v15 = vld [vmem:[#allocation5 + $0x280] sm:$0xff]  ;;  %v4539_v19 = vld [vmem:[#allocation5 + $0x298] sm:$0xff]  ;;  %v4541_v31 = vld [vmem:[#allocation5 + $0x228] sm:$0xff] }
 0x7c8   :  { %v5877_v18 = vadd.f32 %v4288_v62, %v2605_v7  ;;  %2797 = vmatpush.msrb.mxu3 %v4508_v27  ;;  %2820 = vmatpush.msrb.mxu0 %v4509_v28  ;;  %v4524_v62 = vld [vmem:[#allocation5 + $0x3a0] sm:$0xff]  ;;  %v4537_v7 = vld [vmem:[#allocation5 + $0x288] sm:$0xff]  ;;  %v4542_v27 = vld [vmem:[#allocation5 + $0x230] sm:$0xff] }
 0x7c9   :  { %2843 = vmatpush.msra.mxu2 %v4510_v22  ;;  %2866 = vmatpush.msra.mxu1 %v4511_v33  ;;  %v4540_v23 = vld [vmem:[#allocation5 + $0x220] sm:$0xff]  ;;  %v4543_v28 = vld [vmem:[#allocation5 + $0x238] sm:$0xff]  ;;  %v4545_v33 = vld [vmem:[#allocation5 + $0x1c8] sm:$0xff] }
 0x7ca   :  { %2798 = vmatpush.msrb.mxu3 %v4512_v39  ;;  %2821 = vmatpush.msrb.mxu0 %v4513_v35  ;;  %v4544_v22 = vld [vmem:[#allocation5 + $0x1c0] sm:$0xff]  ;;  %v4546_v39 = vld [vmem:[#allocation5 + $0x1d0] sm:$0xff]  ;;  %v4547_v35 = vld [vmem:[#allocation5 + $0x1d8] sm:$0xff] }
 0x7cb   :  { %2844 = vmatpush.msra.mxu2 %v4514_v40  ;;  %2867 = vmatpush.msra.mxu1 %v4515_v50  ;;  %v4548_v40 = vld [vmem:[#allocation5 + $0x160] sm:$0xff]  ;;  %v4549_v50 = vld [vmem:[#allocation5 + $0x168] sm:$0xff] }
 0x7cc   :  { %2630 = vmatmul.f32.gmra.mxu3 %v5877_v18  ;;  %2653 = vmatmul.f32.gmra.mxu0 %v5877_v18 }
 0x7cd   :  { %2676 = vmatmul.f32.gmra.mxu2 %v5877_v18  ;;  %2699 = vmatmul.f32.gmra.mxu1 %v5877_v18 }
 0x7ce   :  { %2799 = vmatpush.msrb.mxu3 %v4516_v47  ;;  %2822 = vmatpush.msrb.mxu0 %v4517_v51  ;;  %v4550_v47 = vld [vmem:[#allocation5 + $0x170] sm:$0xff]  ;;  %v4551_v51 = vld [vmem:[#allocation5 + $0x178] sm:$0xff] }
 0x7cf   :  { %2845 = vmatpush.msra.mxu2 %v4518_v38  ;;  %2868 = vmatpush.msra.mxu1 %v4519_v54  ;;  %v4552_v38 = vld [vmem:[#allocation5 + $0x100] sm:$0xff]  ;;  %v4553_v54 = vld [vmem:[#allocation5 + $0x108] sm:$0xff] }
 0x7d0   :  { %2800 = vmatpush.msrb.mxu3 %v4520_v17  ;;  %2823 = vmatpush.msrb.mxu0 %v4521_v55  ;;  %v4554_v17 = vld [vmem:[#allocation5 + $0x110] sm:$0xff]  ;;  %v4555_v55 = vld [vmem:[#allocation5 + $0x118] sm:$0xff] }
 0x7d1   :  { %2846 = vmatpush.msra.mxu2 %v4522_v32  ;;  %2869 = vmatpush.msra.mxu1 %v4523_v57  ;;  %v4556_v32 = vld [vmem:[#allocation5 + $0xa0] sm:$0xff]  ;;  %v4557_v57 = vld [vmem:[#allocation5 + $0xa8] sm:$0xff] }
 0x7d2   :  { %2801 = vmatpush.msrb.mxu3 %v4524_v62  ;;  %2824 = vmatpush.msrb.mxu0 %v4525_v53  ;;  %v4558_v62 = vld [vmem:[#allocation5 + $0xb0] sm:$0xff]  ;;  %v4559_v53 = vld [vmem:[#allocation5 + $0xb8] sm:$0xff] }
 0x7d3   :  { %2847 = vmatpush.msra.mxu2 %v4526_v3  ;;  %2870 = vmatpush.msra.mxu1 %v4527_v4  ;;  %v4560_v3 = vld [vmem:[#allocation5 + $0x40] sm:$0xff]  ;;  %v4561_v4 = vld [vmem:[#allocation5 + $0x48] sm:$0xff] }
 0x7d4   :  { %2802 = vmatpush.msrb.mxu3 %v4528_v61  ;;  %2825 = vmatpush.msrb.mxu0 %v4529_v5  ;;  %v4562_v61 = vld [vmem:[#allocation5 + $0x50] sm:$0xff]  ;;  %v4563_v5 = vld [vmem:[#allocation5 + $0x58] sm:$0xff] }
 0x7d5   :  { %2848 = vmatpush.msra.mxu2 %v4530_v56  ;;  %2871 = vmatpush.msra.mxu1 %v4531_v16  ;;  %v4564_v56 = vld [vmem:[#allocation8 + $0x78] sm:$0xff]  ;;  %v4565_v16 = vld [vmem:[#allocation8 + $0x70] sm:$0xff] }
 0x7d6   :  { %2719 = vmatmul.f32.vlgmr.msra.gmra.mxu3 %v5871_v34  ;;  %2742 = vmatmul.f32.vlgmr.msra.gmra.mxu0 %v5871_v34 }
 0x7d7   :  { %2765 = vmatmul.f32.vlgmr.msrb.gmra.mxu2 %v5871_v34  ;;  %2788 = vmatmul.f32.vlgmr.msrb.gmra.mxu1 %v5871_v34 }
 0x7d8   :  { %2803 = vmatpush.msrb.mxu3 %v4532_v9  ;;  %2826 = vmatpush.msrb.mxu0 %v4533_v10  ;;  %v4566_v9 = vld [vmem:[#allocation8 + $0x68] sm:$0xff]  ;;  %v4567_v10 = vld [vmem:[#allocation8 + $0x60] sm:$0xff] }
 0x7d9   :  { %2849 = vmatpush.msra.mxu2 %v4534_v59  ;;  %2872 = vmatpush.msra.mxu1 %v4535_v14  ;;  %v4568_v59 = vld [vmem:[#allocation8 + $0x58] sm:$0xff]  ;;  %v4569_v14 = vld [vmem:[#allocation8 + $0x50] sm:$0xff] }
 0x7da   :  { %2804 = vmatpush.msrb.mxu3 %v4536_v15  ;;  %2827 = vmatpush.msrb.mxu0 %v4537_v7  ;;  %v4570_v15 = vld [vmem:[#allocation8 + $0x48] sm:$0xff]  ;;  %v4571_v7 = vld [vmem:[#allocation8 + $0x40] sm:$0xff] }
 0x7db   :  { %2850 = vmatpush.msra.mxu2 %v4538_v60  ;;  %2873 = vmatpush.msra.mxu1 %v4539_v19  ;;  %v4572_v60 = vld [vmem:[#allocation8 + $0x38] sm:$0xff]  ;;  %v4573_v19 = vld [vmem:[#allocation8 + $0x30] sm:$0xff] }
 0x7dc   :  { %2805 = vmatpush.msrb.mxu3 %v4540_v23  ;;  %2828 = vmatpush.msrb.mxu0 %v4541_v31  ;;  %v4574_v23 = vld [vmem:[#allocation8 + $0x28] sm:$0xff]  ;;  %v4575_v31 = vld [vmem:[#allocation8 + $0x20] sm:$0xff] }
 0x7dd   :  { %2851 = vmatpush.msra.mxu2 %v4542_v27  ;;  %2874 = vmatpush.msra.mxu1 %v4543_v28  ;;  %v4576_v27 = vld [vmem:[#allocation8 + $0x18] sm:$0xff]  ;;  %v4577_v28 = vld [vmem:[#allocation8 + $0x10] sm:$0xff] }
 0x7de   :  { %2806 = vmatpush.msrb.mxu3 %v4544_v22  ;;  %2829 = vmatpush.msrb.mxu0 %v4545_v33  ;;  %v4578_v22 = vld [vmem:[#allocation8 + $0x8] sm:$0xff]  ;;  %v4579_v33 = vld [vmem:[#allocation8] sm:$0xff] }
 0x7df   :  { %2852 = vmatpush.msra.mxu2 %v4546_v39  ;;  %2875 = vmatpush.msra.mxu1 %v4547_v35  ;;  %v4580_v39 = vld [vmem:[#allocation8 + $0x1f8] sm:$0xff]  ;;  %v4581_v35 = vld [vmem:[#allocation8 + $0x1f0] sm:$0xff] }
 0x7e0   :  { %2722 = vmatmul.f32.gmra.mxu3 %v5877_v18  ;;  %2745 = vmatmul.f32.gmra.mxu0 %v5877_v18 }
 0x7e1   :  { %2768 = vmatmul.f32.gmra.mxu2 %v5877_v18  ;;  %2791 = vmatmul.f32.gmra.mxu1 %v5877_v18 }
 0x7e2   :  { %2807 = vmatpush.msrb.mxu3 %v4548_v40  ;;  %2830 = vmatpush.msrb.mxu0 %v4549_v50  ;;  %v4582_v40 = vld [vmem:[#allocation8 + $0x1e8] sm:$0xff]  ;;  %v4583_v50 = vld [vmem:[#allocation8 + $0x1e0] sm:$0xff] }
 0x7e3   :  { %2853 = vmatpush.msra.mxu2 %v4550_v47  ;;  %2876 = vmatpush.msra.mxu1 %v4551_v51  ;;  %v4584_v47 = vld [vmem:[#allocation8 + $0x1d8] sm:$0xff]  ;;  %v4585_v51 = vld [vmem:[#allocation8 + $0x1d0] sm:$0xff] }
 0x7e4   :  { %2808 = vmatpush.msrb.mxu3 %v4552_v38  ;;  %2831 = vmatpush.msrb.mxu0 %v4553_v54  ;;  %v4586_v38 = vld [vmem:[#allocation8 + $0x1c8] sm:$0xff]  ;;  %v4587_v54 = vld [vmem:[#allocation8 + $0x1c0] sm:$0xff] }
 0x7e5   :  { %2854 = vmatpush.msra.mxu2 %v4554_v17  ;;  %2877 = vmatpush.msra.mxu1 %v4555_v55  ;;  %v4588_v17 = vld [vmem:[#allocation8 + $0x1b8] sm:$0xff]  ;;  %v4589_v55 = vld [vmem:[#allocation8 + $0x1b0] sm:$0xff] }
 0x7e6   :  { %2809 = vmatpush.msrb.mxu3 %v4556_v32  ;;  %2832 = vmatpush.msrb.mxu0 %v4557_v57  ;;  %v4590_v32 = vld [vmem:[#allocation8 + $0x1a8] sm:$0xff]  ;;  %v4591_v57 = vld [vmem:[#allocation8 + $0x1a0] sm:$0xff] }
 0x7e7   :  { %2855 = vmatpush.msra.mxu2 %v4558_v62  ;;  %2878 = vmatpush.msra.mxu1 %v4559_v53  ;;  %v4592_v62 = vld [vmem:[#allocation8 + $0x198] sm:$0xff]  ;;  %v4593_v53 = vld [vmem:[#allocation8 + $0x190] sm:$0xff] }
 0x7e8   :  { %2810 = vmatpush.msrb.mxu3 %v4560_v3  ;;  %2833 = vmatpush.msrb.mxu0 %v4561_v4  ;;  %v4594_v3 = vld [vmem:[#allocation8 + $0x188] sm:$0xff]  ;;  %v4595_v4 = vld [vmem:[#allocation8 + $0x180] sm:$0xff] }
 0x7e9   :  { %2856 = vmatpush.msra.mxu2 %v4562_v61  ;;  %2879 = vmatpush.msra.mxu1 %v4563_v5 }
 0x7ea   :  { %2811 = vmatmul.f32.vlgmr.msrb.gmra.mxu3 %v5871_v34  ;;  %2834 = vmatmul.f32.vlgmr.msrb.gmra.mxu0 %v5871_v34 }
 0x7eb   :  { %2857 = vmatmul.f32.vlgmr.msra.gmra.mxu2 %v5871_v34  ;;  %2880 = vmatmul.f32.vlgmr.msra.gmra.mxu1 %v5871_v34 }
 0x7ec   :  { %3066 = vmatpush.msrb.mxu1 %v4564_v56 }
 0x7ee   :  { %3067 = vmatpush.msrb.mxu1 %v4565_v16 }
 0x7f0   :  { %3068 = vmatpush.msrb.mxu1 %v4566_v9 }
 0x7f2   :  { %2814 = vmatmul.f32.gmra.mxu3 %v5877_v18  ;;  %2837 = vmatmul.f32.gmra.mxu0 %v5877_v18 }
 0x7f3   :  { %2860 = vmatmul.f32.gmra.mxu2 %v5877_v18  ;;  %2883 = vmatmul.f32.gmra.mxu1 %v5877_v18 }
 0x7f4   :  { %3069 = vmatpush.msrb.mxu1 %v4567_v10 }
 0x7f6   :  { %3070 = vmatpush.msrb.mxu1 %v4568_v59 }
 0x7f8   :  { %3071 = vmatpush.msrb.mxu1 %v4569_v14 }
 0x7fa   :  { %3072 = vmatpush.msrb.mxu1 %v4570_v15 }
 0x7fc   :  { %3073 = vmatpush.msrb.mxu1 %v4571_v7 }
 0x7fe   :  { %3074 = vmatpush.msrb.mxu1 %v4572_v60 }
 0x800   :  { %3075 = vmatpush.msrb.mxu1 %v4573_v19 }
 0x802   :  { %3076 = vmatpush.msrb.mxu1 %v4574_v23 }
 0x804   :  { %3077 = vmatpush.msrb.mxu1 %v4575_v31 }
 0x806   :  { %3078 = vmatpush.msrb.mxu1 %v4576_v27 }
 0x808   :  { %3079 = vmatpush.msrb.mxu1 %v4577_v28 }
 0x80a   :  { %3080 = vmatpush.msrb.mxu1 %v4578_v22 }
 0x80c   :  { %3081 = vmatpush.msrb.mxu1 %v4579_v33 }
 0x80e   :  { %3270 = vmatpush.msra.mxu1 %v4580_v39 }
 0x810   :  { %3271 = vmatpush.msra.mxu1 %v4581_v35 }
 0x812   :  { %3272 = vmatpush.msra.mxu1 %v4582_v40  ;;  %v4596_v40 = vld [vmem:[#allocation8 + $0x178] sm:$0xff] }
 0x814   :  { %3273 = vmatpush.msra.mxu1 %v4583_v50 }
 0x816   :  { %3274 = vmatpush.msra.mxu1 %v4584_v47 }
 0x818   :  { %3275 = vmatpush.msra.mxu1 %v4585_v51 }
 0x81a   :  { %3276 = vmatpush.msra.mxu1 %v4586_v38  ;;  %v4597_v38 = vld [vmem:[#allocation8 + $0x170] sm:$0xff] }
 0x81c   :  { %3277 = vmatpush.msra.mxu1 %v4587_v54 }
 0x81e   :  { %3278 = vmatpush.msra.mxu1 %v4588_v17 }
 0x820   :  { %3279 = vmatpush.msra.mxu1 %v4589_v55 }
 0x822   :  { %3280 = vmatpush.msra.mxu1 %v4590_v32  ;;  %v4599_v32 = vld [vmem:[#allocation8 + $0x160] sm:$0xff] }
 0x824   :  { %3281 = vmatpush.msra.mxu1 %v4591_v57 }
 0x826   :  { %3282 = vmatpush.msra.mxu1 %v4592_v62 }
 0x828   :  { %3283 = vmatpush.msra.mxu1 %v4593_v53 }
 0x82a   :  { %3284 = vmatpush.msra.mxu1 %v4594_v3 }
 0x82c   :  { %3285 = vmatpush.msra.mxu1 %v4595_v4 }
 0x83f   :  { %v2651_v61 = vpop.f32.mrf.mxu0 }
 0x840   :  { %v2652_v22 = vadd.f32 %v2651_v61, %v5582_v26  ;;  %v4601_v61 = vld [vmem:[#allocation8 + $0x150] sm:$0xff] }
 0x845   :  { %v2628_v5 = vpop.f32.mrf.mxu3 }
 0x846   :  { %v2674_v56 = vpop.f32.mrf.mxu2 }
 0x847   :  { %v2675_v62 = vadd.f32 %v2674_v56, %v5591_v44  ;;  %v4604_v56 = vld [vmem:[#allocation8 + $0x140] sm:$0xff] }
 0x849   :  { %v2654_v16 = vpop.f32.mrf.mxu0 }
 0x84a   :  { %v2655_v47 = vadd.f32 %v2654_v16, %v5582_v26  ;;  %v4600_v26 = vld [vmem:[#allocation8 + $0x158] sm:$0xff] }
 0x84b   :  { %v4603_v16 = vld [vmem:[#allocation8 + $0xf8] sm:$0xff] }
 0x84f   :  { %v2631_v9 = vpop.f32.mrf.mxu3 }
 0x850   :  { %v5899_v10 = vpop.f32.mrf.mxu2  ;;  %v2632_v55 = vadd.f32 %v2631_v9, %v5614_v29  ;;  %v4605_v9 = vld [vmem:[#allocation8 + $0xf0] sm:$0xff] }
 0x853   :  { %v2743_v59 = vpop.f32.mrf.mxu0 }
 0x854   :  { %v2744_v19 = vadd.f32 %v2743_v59, %v5575_v20  ;;  %v2678_v59 = vadd.f32 %v5899_v10, %v5591_v44  ;;  %v4615_v44 = vld [vmem:[#allocation8 + $0x118] sm:$0xff]  ;;  %v4616_v10 = vld [vmem:[#allocation8 + $0xc0] sm:$0xff] }
 0x859   :  { %v2720_v14 = vpop.f32.mrf.mxu3 }
 0x85a   :  { %v2766_v15 = vpop.f32.mrf.mxu2  ;;  %v2721_v39 = vadd.f32 %v2720_v14, %v5601_v13  ;;  %v4606_v14 = vld [vmem:[#allocation8 + $0x138] sm:$0xff] }
 0x85b   :  { %v2767_v35 = vadd.f32 %v2766_v15, %v5579_v25  ;;  %v4609_v15 = vld [vmem:[#allocation8 + $0x130] sm:$0xff] }
 0x85d   :  { %v2746_v7 = vpop.f32.mrf.mxu0 }
 0x85e   :  { %v2747_v60 = vadd.f32 %v2746_v7, %v5575_v20  ;;  %v2629_v20 = vadd.f32 %v2628_v5, %v5614_v29  ;;  %v4602_v5 = vld [vmem:[#allocation8 + $0x148] sm:$0xff]  ;;  %v4610_v7 = vld [vmem:[#allocation8 + $0xd8] sm:$0xff] }
 0x860   :  { %2979 = vmatpush.xpose.msrb.mxu2 %v2747_v60  ;;  %v4611_v60 = vld [vmem:[#allocation8 + $0x128] sm:$0xff] }
 0x863   :  { %v2723_v23 = vpop.f32.mrf.mxu3 }
 0x864   :  { %v2724_v31 = vadd.f32 %v2723_v23, %v5601_v13  ;;  %v2769_v27 = vpop.f32.mrf.mxu2  ;;  %2980 = vmatpush.xpose.msrb.mxu2 %v2744_v19  ;;  %v4598_v13 = vld [vmem:[#allocation8 + $0x168] sm:$0xff]  ;;  %v4612_v19 = vld [vmem:[#allocation8 + $0xd0] sm:$0xff]  ;;  %v4613_v23 = vld [vmem:[#allocation8 + $0x120] sm:$0xff] }
 0x865   :  { %v2770_v28 = vadd.f32 %v2769_v27, %v5579_v25  ;;  %v4617_v27 = vld [vmem:[#allocation8 + $0x110] sm:$0xff] }
 0x866   :  { %2901 = vmatpush.xpose.msra.mxu3 %v2724_v31  ;;  %v4614_v31 = vld [vmem:[#allocation8 + $0xc8] sm:$0xff] }
 0x867   :  { %v2835_v33 = vpop.f32.mrf.mxu0  ;;  %2981 = vmatmul.f32.vlgmr.msrb.gmra.mxu2 %v2652_v22  ;;  %v4619_v22 = vld [vmem:[#allocation8 + $0x108] sm:$0xff] }
 0x868   :  { %3103 = vmatpush.xpose.msra.mxu2 %v2770_v28  ;;  %v2836_v25 = vadd.f32 %v2835_v33, %v5607_v21  ;;  %v4618_v28 = vld [vmem:[#allocation8 + $0xb8] sm:$0xff]  ;;  %v4620_v33 = vld [vmem:[#allocation8 + $0xb0] sm:$0xff] }
 0x86a   :  { %2902 = vmatpush.xpose.msra.mxu3 %v2721_v39  ;;  %v4621_v39 = vld [vmem:[#allocation8 + $0x100] sm:$0xff] }
 0x86c   :  { %3104 = vmatpush.xpose.msra.mxu2 %v2767_v35  ;;  %v4622_v35 = vld [vmem:[#allocation10 + $0x790] sm:$0xff] }
 0x86d   :  { %v2812_v50 = vpop.f32.mrf.mxu3  ;;  %2903 = vmatmul.f32.vlgmr.msra.gmra.mxu3 %v2629_v20  ;;  %v4623_v20 = vld [vmem:[#allocation8 + $0xa8] sm:$0xff] }
 0x86e   :  { %v2858_v51 = vpop.f32.mrf.mxu2 }
 0x86f   :  { %v2838_v54 = vpop.f32.mrf.mxu0  ;;  %2984 = vmatmul.f32.gmra.mxu2 %v2655_v47  ;;  %v2859_v29 = vadd.f32 %v2858_v51, %v5618_v30  ;;  %v4626_v47 = vld [vmem:[#allocation10 + $0x690] sm:$0xff]  ;;  %v4627_v51 = vld [vmem:[#allocation8 + $0x98] sm:$0xff] }
 0x870   :  { %3167 = vmatpush.msrb.mxu2 %v4596_v40  ;;  %v2839_v17 = vadd.f32 %v2838_v54, %v5607_v21  ;;  %v2813_v21 = vadd.f32 %v2812_v50, %v5699_v1  ;;  %v4624_v40 = vld [vmem:[#allocation10 + $0x710] sm:$0xff]  ;;  %v4625_v50 = vld [vmem:[#allocation8 + $0xa0] sm:$0xff] }
 0x871   :  { %v4629_v54 = vld [vmem:[#allocation8 + $0x90] sm:$0xff] }
 0x872   :  { %3168 = vmatpush.msrb.mxu2 %v4597_v38  ;;  %3034 = vmatpush.msrb.mxu3 %v2839_v17  ;;  %v4628_v38 = vld [vmem:[#allocation10 + $0x610] sm:$0xff] }
 0x873   :  { %v4630_v17 = vld [vmem:[#allocation10 + $0x590] sm:$0xff] }
 0x874   :  { %3169 = vmatpush.msrb.mxu2 %v4598_v13  ;;  %3035 = vmatpush.msrb.mxu3 %v2836_v25  ;;  %v4631_v13 = vld [vmem:[#allocation8 + $0x88] sm:$0xff]  ;;  %v4632_v25 = vld [vmem:[#allocation10 + $0x510] sm:$0xff] }
 0x875   :  { %v2815_v57 = vpop.f32.mrf.mxu3  ;;  %2906 = vmatmul.f32.gmra.mxu3 %v2632_v55  ;;  %v4633_v55 = vld [vmem:[#allocation8 + $0x80] sm:$0xff] }
 0x876   :  { %3170 = vmatpush.msrb.mxu2 %v4599_v32  ;;  %v2816_v53 = vadd.f32 %v2815_v57, %v5699_v1  ;;  %v2861_v3 = vpop.f32.mrf.mxu2  ;;  %v4607_v1 = vld [vmem:[#allocation8 + $0xe8] sm:$0xff]  ;;  %v4634_v32 = vld [vmem:[#allocation10 + $0x490] sm:$0xff] }
 0x877   :  { %v2862_v4 = vadd.f32 %v2861_v3, %v5618_v30  ;;  %3105 = vmatmul.f32.vlgmr.msra.gmra.mxu2 %v2675_v62  ;;  %v4608_v30 = vld [vmem:[#allocation8 + $0xe0] sm:$0xff]  ;;  %v4635_v57 = vld [vmem:[#allocation10 + $0x410] sm:$0xff] }
 0x878   :  { %3171 = vmatpush.msrb.mxu2 %v4600_v26  ;;  %2956 = vmatpush.msra.mxu0 %v2816_v53  ;;  %v4636_v26 = vld [vmem:[#allocation10 + $0x390] sm:$0xff] }
 0x879   :  { %3158 = vmatpush.msra.mxu3 %v2862_v4  ;;  %v4637_v62 = vld [vmem:[#allocation10 + $0x310] sm:$0xff] }
 0x87a   :  { %3172 = vmatpush.msrb.mxu2 %v4601_v61  ;;  %2957 = vmatpush.msra.mxu0 %v2813_v21  ;;  %v4638_v53 = vld [vmem:[#allocation10 + $0x290] sm:$0xff] }
 0x87b   :  { %3159 = vmatpush.msra.mxu3 %v2859_v29  ;;  %v4639_v3 = vld [vmem:[#allocation10 + $0x210] sm:$0xff] }
 0x87c   :  { %3173 = vmatpush.msrb.mxu2 %v4602_v5  ;;  %3043 = vmatpush.msrb.mxu0 %v4603_v16  ;;  %v4640_v4 = vld [vmem:[#allocation10 + $0x190] sm:$0xff] }
 0x87d   :  { %v4641_v61 = vld [vmem:[#allocation10 + $0x110] sm:$0xff] }
 0x87e   :  { %3174 = vmatpush.msrb.mxu2 %v4604_v56  ;;  %3044 = vmatpush.msrb.mxu0 %v4605_v9  ;;  %v4642_v21 = vld [vmem:[#allocation10 + $0x90] sm:$0xff] }
 0x87f   :  { %3108 = vmatmul.f32.gmra.mxu2 %v2678_v59  ;;  %v4643_v29 = vld [vmem:[#allocation10 + $0x10] sm:$0xff] }
 0x880   :  { %3175 = vmatpush.msrb.mxu2 %v4606_v14  ;;  %3045 = vmatpush.msrb.mxu0 %v4607_v1  ;;  %v5920_v56 = vld [vmem:[#allocation16] sm:$0xff] }
 0x882   :  { %3046 = vmatpush.msrb.mxu0 %v4608_v30  ;;  %3176 = vmatpush.msrb.mxu2 %v4609_v15  ;;  %v5924_v30 = vld [vmem:[#allocation16 + $0x8] sm:$0xff] }
 0x884   :  { %3047 = vmatpush.msrb.mxu0 %v4610_v7  ;;  %3177 = vmatpush.msrb.mxu2 %v4611_v60 }
 0x886   :  { %3048 = vmatpush.msrb.mxu0 %v4612_v19  ;;  %3178 = vmatpush.msrb.mxu2 %v4613_v23 }
 0x888   :  { %3049 = vmatpush.msrb.mxu0 %v4614_v31  ;;  %3179 = vmatpush.msrb.mxu2 %v4615_v44 }
 0x88a   :  { %3050 = vmatpush.msrb.mxu0 %v4616_v10  ;;  %3180 = vmatpush.msrb.mxu2 %v4617_v27 }
 0x88c   :  { %3051 = vmatpush.msrb.mxu0 %v4618_v28  ;;  %3181 = vmatpush.msrb.mxu2 %v4619_v22 }
 0x88e   :  { %3052 = vmatpush.msrb.mxu0 %v4620_v33  ;;  %3182 = vmatpush.msrb.mxu2 %v4621_v39 }
 0x890   :  { %3393 = vmatpush.msra.mxu2 %v4622_v35  ;;  %3053 = vmatpush.msrb.mxu0 %v4623_v20 }
 0x892   :  { %3394 = vmatpush.msra.mxu2 %v4624_v40  ;;  %3054 = vmatpush.msrb.mxu0 %v4625_v50 }
 0x894   :  { %3395 = vmatpush.msra.mxu2 %v4626_v47  ;;  %3055 = vmatpush.msrb.mxu0 %v4627_v51 }
 0x896   :  { %3396 = vmatpush.msra.mxu2 %v4628_v38  ;;  %3056 = vmatpush.msrb.mxu0 %v4629_v54 }
 0x898   :  { %3397 = vmatpush.msra.mxu2 %v4630_v17  ;;  %3057 = vmatpush.msrb.mxu0 %v4631_v13 }
 0x89a   :  { %3398 = vmatpush.msra.mxu2 %v4632_v25  ;;  %3058 = vmatpush.msrb.mxu0 %v4633_v55 }
 0x89c   :  { %3399 = vmatpush.msra.mxu2 %v4634_v32 }
 0x89e   :  { %3400 = vmatpush.msra.mxu2 %v4635_v57 }
 0x8a0   :  { %3401 = vmatpush.msra.mxu2 %v4636_v26 }
 0x8a2   :  { %3402 = vmatpush.msra.mxu2 %v4637_v62 }
 0x8a4   :  { %3403 = vmatpush.msra.mxu2 %v4638_v53 }
 0x8a6   :  { %3404 = vmatpush.msra.mxu2 %v4639_v3 }
 0x8a8   :  { %3405 = vmatpush.msra.mxu2 %v4640_v4 }
 0x8aa   :  { %3406 = vmatpush.msra.mxu2 %v4641_v61 }
 0x8ac   :  { %3407 = vmatpush.msra.mxu2 %v4642_v21 }
 0x8ae   :  { %3408 = vmatpush.msra.mxu2 %v4643_v29 }
 0x8ea   :  { %v2982_v5 = vpop.f32.mrf.mxu2 }
 0x8eb   :  { %v2988_v16 = vmul.f32 0.35355338, %v2982_v5 }
 0x8ed   :  { %v2990_v9 = vadd.f32 %v5920_v56, %v2988_v16 }
 0x8ef   :  { %v2992_v59 = vsel %vm1307_vm0, %v2990_v9, -inf }
 0x8f0   :  { %2993 = vmax.xlane.f32.xlu0 %v2992_v59  ;;  %v2904_v51 = vpop.f32.mrf.mxu3  ;;  %v2697_v59 = vpop.f32.mrf.mxu1 }
 0x8f1   :  { %v2910_v25 = vmul.f32 0.35355338, %v2904_v51  ;;  %v4647_v51 = vld [vmem:[#allocation10 + $0x700] sm:$0xff] }
 0x8f2   :  { %v2985_v14 = vpop.f32.mrf.mxu2 }
 0x8f3   :  { %v2989_v1 = vmul.f32 0.35355338, %v2985_v14  ;;  %v2912_v57 = vadd.f32 %v5920_v56, %v2910_v25  ;;  %v4650_v25 = vld [vmem:[#allocation10 + $0x580] sm:$0xff] }
 0x8f5   :  { %v2991_v15 = vadd.f32 %v5924_v30, %v2989_v1  ;;  %v2914_v21 = vsel %vm1307_vm0, %v2912_v57, -inf }
 0x8f7   :  { %v2995_v7 = vsel %vm1307_vm0, %v2991_v15, -inf }
 0x8f8   :  { %2996 = vmax.xlane.f32.xlu1 %v2995_v7  ;;  %v2907_v26 = vpop.f32.mrf.mxu3  ;;  %v2700_v14 = vpop.f32.mrf.mxu1 }
 0x8f9   :  { %v2911_v4 = vmul.f32 0.35355338, %v2907_v26  ;;  %v4653_v26 = vld [vmem:[#allocation10 + $0x400] sm:$0xff] }
 0x8fa   :  { %v3106_v60 = vpop.f32.mrf.mxu2 }
 0x8fb   :  { %v3112_v19 = vmul.f32 0.35355338, %v3106_v60  ;;  %v5938_v29 = vadd.f32 %v5924_v30, %v2911_v4  ;;  %v2701_v4 = vadd.f32 %v2700_v14, %v5685_v48  ;;  %v4667_v14 = vld [vmem:[#allocation10 + $0x520] sm:$0xff] }
 0x8fd   :  { %v3114_v23 = vadd.f32 %v5920_v56, %v3112_v19 }
 0x8ff   :  { %v3116_v31 = vsel %vm1307_vm0, %v3114_v23, -inf }
 0x900   :  { %3117 = vmax.xlane.f32.xlu2 %v3116_v31  ;;  %v2789_v1 = vpop.f32.mrf.mxu1 }
 0x902   :  { %v3109_v44 = vpop.f32.mrf.mxu2 }
 0x903   :  { %v3113_v10 = vmul.f32 0.35355338, %v3109_v44  ;;  %v2790_v44 = vadd.f32 %v2789_v1, %v5668_v63  ;;  %v4663_v1 = vld [vmem:[#allocation10 + $0x720] sm:$0xff] }
 0x905   :  { %v3115_v27 = vadd.f32 %v5924_v30, %v3113_v10 }
 0x907   :  { %v3119_v28 = vsel %vm1307_vm0, %v3115_v27, -inf }
 0x908   :  { %3120 = vmax.xlane.f32.xlu0 %v3119_v28  ;;  %v2792_v7 = vpop.f32.mrf.mxu1 }
 0x909   :  { %v2793_v31 = vadd.f32 %v2792_v7, %v5668_v63  ;;  %v4646_v63 = vld [vmem:[#allocation10 + $0x780] sm:$0xff] }
 0x90a   :  { %v4665_v7 = vld [vmem:[#allocation10 + $0x620] sm:$0xff] }
 0x963   :  { %v2994_v22 = vpop.xlane.xlu0 %2993 }
 0x964   :  { %v2998_v33 = vsub.f32 %v2990_v9, %v2994_v22  ;;  %v2917_v9 = vsel %vm1307_vm0, %v5938_v29, -inf }
 0x966   :  { %v3000_v39 = vmul.f32 1.442695, %v2998_v33 }
 0x968   :  { %4330 = vpow2.f32 %v3000_v39 }
 0x96b   :  { %v2997_v35 = vpop.xlane.xlu1 %2996 }
 0x96c   :  { %v2999_v20 = vsub.f32 %v2991_v15, %v2997_v35 }
 0x96e   :  { %v4331_v40 = vpop.eup %4330  ;;  %v3002_v50 = vmul.f32 1.442695, %v2999_v20 }
 0x96f   :  { %v3004_v47 = vsel %vm1307_vm0, %v4331_v40, 0.0 }
 0x970   :  { %4332 = vpow2.f32 %v3002_v50  ;;  %3005 = vadd.xlane.f32.xlu1 %v3004_v47 }
 0x973   :  { %v3118_v38 = vpop.xlane.xlu2 %3117 }
 0x974   :  { %v3122_v54 = vsub.f32 %v3114_v23, %v3118_v38 }
 0x976   :  { %v4333_v17 = vpop.eup %4332  ;;  %v3124_v13 = vmul.f32 1.442695, %v3122_v54  ;;  %v4648_v54 = vld [vmem:[#allocation10 + $0x680] sm:$0xff] }
 0x977   :  { %v3007_v55 = vsel %vm1307_vm0, %v4333_v17, 0.0 }
 0x978   :  { %4334 = vpow2.f32 %v3124_v13  ;;  %3008 = vadd.xlane.f32.xlu2 %v3007_v55  ;;  %v4649_v13 = vld [vmem:[#allocation10 + $0x600] sm:$0xff] }
 0x979   :  { %v4651_v55 = vld [vmem:[#allocation10 + $0x500] sm:$0xff] }
 0x97b   :  { %v3121_v32 = vpop.xlane.xlu0 %3120 }
 0x97c   :  { %v3123_v62 = vsub.f32 %v3115_v27, %v3121_v32  ;;  %v4652_v32 = vld [vmem:[#allocation10 + $0x480] sm:$0xff] }
 0x97e   :  { %v4335_v53 = vpop.eup %4334  ;;  %v3126_v3 = vmul.f32 1.442695, %v3123_v62  ;;  %v4654_v62 = vld [vmem:[#allocation10 + $0x380] sm:$0xff] }
 0x97f   :  { %v3128_v61 = vsel %vm1307_vm0, %v4335_v53, 0.0 }
 0x980   :  { %4336 = vpow2.f32 %v3126_v3  ;;  %3129 = vadd.xlane.f32.xlu0 %v3128_v61  ;;  %2915 = vmax.xlane.f32.xlu2 %v2914_v21  ;;  %v4656_v3 = vld [vmem:[#allocation10 + $0x280] sm:$0xff] }
 0x981   :  { %v4657_v61 = vld [vmem:[#allocation10 + $0x200] sm:$0xff] }
 0x982   :  { %v4658_v21 = vld [vmem:[#allocation10 + $0x180] sm:$0xff] }
 0x986   :  { %v4337_v5 = vpop.eup %4336 }
 0x987   :  { %v3131_v16 = vsel %vm1307_vm0, %v4337_v5, 0.0 }
 0x988   :  { %3132 = vadd.xlane.f32.xlu1 %v3131_v16  ;;  %2918 = vmax.xlane.f32.xlu0 %v2917_v9  ;;  %v4660_v16 = vld [vmem:[#allocation10 + $0x80] sm:$0xff] }
 0x989   :  { %v4661_v9 = vld [vmem:[#allocation10] sm:$0xff] }
 0x9e3   :  { %v3006_v15 = vpop.xlane.xlu1 %3005 }
 0x9e4   :  { %4338 = vrcp.f32 %v3006_v15  ;;  %v4664_v15 = vld [vmem:[#allocation10 + $0x6a0] sm:$0xff] }
 0x9ea   :  { %v4339_v60 = vpop.eup %4338 }
 0x9eb   :  { %v3012_v19 = vmul.f32 %v4339_v60, %v4331_v40  ;;  %v3009_v23 = vpop.xlane.xlu2 %3008  ;;  %v4668_v60 = vld [vmem:[#allocation10 + $0x4a0] sm:$0xff] }
 0x9ec   :  { %4340 = vrcp.f32 %v3009_v23  ;;  %v4670_v23 = vld [vmem:[#allocation10 + $0x3a0] sm:$0xff] }
 0x9ed   :  { %4261 = vmatmul.msk.f32.vlgmr.msrb.gmra.mxu3 %vm1307_vm0, %v3012_v19  ;;  %v4669_v19 = vld [vmem:[#allocation10 + $0x420] sm:$0xff] }
 0x9ee   :  { %3206 = vmatpush.xpose.msrb.mxu3 %v2793_v31  ;;  %v4671_v31 = vld [vmem:[#allocation10 + $0x320] sm:$0xff] }
 0x9f2   :  { %v4341_v10 = vpop.eup %4340  ;;  %3207 = vmatpush.xpose.msrb.mxu3 %v2790_v44  ;;  %v4672_v44 = vld [vmem:[#allocation10 + $0x2a0] sm:$0xff] }
 0x9f3   :  { %v3130_v27 = vpop.xlane.xlu0 %3129  ;;  %v2916_v28 = vpop.xlane.xlu2 %2915  ;;  %v3013_v22 = vmul.f32 %v4341_v10, %v4333_v17  ;;  %v4673_v10 = vld [vmem:[#allocation10 + $0x220] sm:$0xff] }
 0x9f4   :  { %4342 = vrcp.f32 %v3130_v27  ;;  %v2920_v33 = vsub.f32 %v2912_v57, %v2916_v28  ;;  %v2698_v57 = vadd.f32 %v2697_v59, %v5685_v48  ;;  %v4662_v59 = vld [vmem:[#allocation10 + $0x7a0] sm:$0xff] }
 0x9f5   :  { %4262 = vmatmul.msk.f32.gmra.mxu3 %vm1307_vm0, %v3013_v22  ;;  %v4666_v48 = vld [vmem:[#allocation10 + $0x5a0] sm:$0xff] }
 0x9f6   :  { %v2922_v39 = vmul.f32 1.442695, %v2920_v33  ;;  %v4674_v27 = vld [vmem:[#allocation10 + $0x1a0] sm:$0xff] }
 0x9f7   :  { %v4675_v28 = vld [vmem:[#allocation10 + $0x120] sm:$0xff] }
 0x9f8   :  { %4344 = vpow2.f32 %v2922_v39  ;;  %v4676_v22 = vld [vmem:[#allocation10 + $0xa0] sm:$0xff] }
 0x9f9   :  { %v4677_v33 = vld [vmem:[#allocation10 + $0x20] sm:$0xff] }
 0x9fa   :  { %v4343_v35 = vpop.eup %4342 }
 0x9fb   :  { %v3136_v20 = vmul.f32 %v4343_v35, %v4335_v53  ;;  %v3133_v40 = vpop.xlane.xlu1 %3132  ;;  %v4655_v53 = vld [vmem:[#allocation10 + $0x300] sm:$0xff]  ;;  %v2919_v39 = vpop.xlane.xlu0 %2918 }
 0x9fc   :  { %4346 = vrcp.f32 %v3133_v40  ;;  %v2881_v35 = vpop.f32.mrf.mxu1 }
 0x9fd   :  { %4263 = vmatmul.msk.f32.vlgmr.msra.gmra.mxu3 %vm1307_vm0, %v3136_v20 }
 0x9fe   :  { %v5948_v50 = vpop.eup %4344  ;;  %3347 = vmatpush.msra.mxu3 %v4646_v63 }
 0x9ff   :  { %v2926_v47 = vsel %vm1307_vm0, %v5948_v50, 0.0 }
 0xa00   :  { %2927 = vadd.xlane.f32.xlu0 %v2926_v47  ;;  %3348 = vmatpush.msra.mxu3 %v4647_v51 }
 0xa02   :  { %v4347_v38 = vpop.eup %4346  ;;  %3349 = vmatpush.msra.mxu3 %v4648_v54 }
 0xa03   :  { %v3137_v17 = vmul.f32 %v4347_v38, %v4337_v5  ;;  %v4659_v5 = vld [vmem:[#allocation10 + $0x100] sm:$0xff] }
 0xa04   :  { %3350 = vmatpush.msra.mxu3 %v4649_v13  ;;  %v2884_v47 = vpop.f32.mrf.mxu1 }
 0xa05   :  { %4264 = vmatmul.msk.f32.gmra.mxu3 %vm1307_vm0, %v3137_v17  ;;  %v2885_v54 = vadd.f32 %v2884_v47, %v5690_v52  ;;  %v2882_v17 = vadd.f32 %v2881_v35, %v5690_v52  ;;  %v4684_v52 = vld [vmem:[#allocation10 + $0x4b0] sm:$0xff]  ;;  %v4700_v35 = vld [vmem:[#allocation10 + $0x498] sm:$0xff] }
 0xa06   :  { %3351 = vmatpush.msra.mxu3 %v4650_v25  ;;  %v4678_v25 = vld [vmem:[#allocation10 + $0x7b0] sm:$0xff] }
 0xa08   :  { %3352 = vmatpush.msra.mxu3 %v4651_v55  ;;  %v4679_v55 = vld [vmem:[#allocation10 + $0x730] sm:$0xff] }
 0xa0a   :  { %3353 = vmatpush.msra.mxu3 %v4652_v32  ;;  %v4680_v32 = vld [vmem:[#allocation10 + $0x6b0] sm:$0xff] }
 0xa0c   :  { %3354 = vmatpush.msra.mxu3 %v4653_v26  ;;  %v4681_v26 = vld [vmem:[#allocation10 + $0x630] sm:$0xff] }
 0xa0d   :  { %3208 = vmatmul.f32.vlgmr.msrb.gmra.mxu3 %v2698_v57 }
 0xa0e   :  { %3355 = vmatpush.msra.mxu3 %v4654_v62  ;;  %v2921_v62 = vsub.f32 %v5938_v29, %v2919_v39  ;;  %v4688_v29 = vld [vmem:[#allocation10 + $0x2b0] sm:$0xff]  ;;  %v4699_v39 = vld [vmem:[#allocation10 + $0x518] sm:$0xff] }
 0xa10   :  { %3356 = vmatpush.msra.mxu3 %v4655_v53  ;;  %v4683_v53 = vld [vmem:[#allocation10 + $0x530] sm:$0xff] }
 0xa12   :  { %3357 = vmatpush.msra.mxu3 %v4656_v3  ;;  %v2924_v3 = vmul.f32 1.442695, %v2921_v62  ;;  %v4706_v62 = vld [vmem:[#allocation10 + $0x198] sm:$0xff] }
 0xa14   :  { %3358 = vmatpush.msra.mxu3 %v4657_v61  ;;  %v4685_v61 = vld [vmem:[#allocation10 + $0x430] sm:$0xff] }
 0xa15   :  { %3211 = vmatmul.f32.gmra.mxu3 %v2701_v4 }
 0xa16   :  { %3359 = vmatpush.msra.mxu3 %v4658_v21 }
 0xa18   :  { %3360 = vmatpush.msra.mxu3 %v4659_v5  ;;  %v4686_v5 = vld [vmem:[#allocation10 + $0x3b0] sm:$0xff] }
 0xa1a   :  { %3361 = vmatpush.msra.mxu3 %v4660_v16 }
 0xa1c   :  { %3362 = vmatpush.msra.mxu3 %v4661_v9  ;;  %v4687_v9 = vld [vmem:[#allocation10 + $0x330] sm:$0xff] }
 0xa1e   :  { %3439 = vmatpush.msrb.mxu3 %v4662_v59 }
 0xa20   :  { %3440 = vmatpush.msrb.mxu3 %v4663_v1 }
 0xa22   :  { %3441 = vmatpush.msrb.mxu3 %v4664_v15  ;;  %v4689_v15 = vld [vmem:[#allocation10 + $0x230] sm:$0xff] }
 0xa24   :  { %3442 = vmatpush.msrb.mxu3 %v4665_v7 }
 0xa26   :  { %3443 = vmatpush.msrb.mxu3 %v4666_v48 }
 0xa28   :  { %3444 = vmatpush.msrb.mxu3 %v4667_v14  ;;  %v4690_v14 = vld [vmem:[#allocation10 + $0x1b0] sm:$0xff] }
 0xa2a   :  { %3445 = vmatpush.msrb.mxu3 %v4668_v60 }
 0xa2c   :  { %3446 = vmatpush.msrb.mxu3 %v4669_v19  ;;  %v4691_v19 = vld [vmem:[#allocation10 + $0x130] sm:$0xff] }
 0xa2e   :  { %3447 = vmatpush.msrb.mxu3 %v4670_v23 }
 0xa30   :  { %3448 = vmatpush.msrb.mxu3 %v4671_v31  ;;  %v4692_v31 = vld [vmem:[#allocation10 + $0xb0] sm:$0xff] }
 0xa32   :  { %3449 = vmatpush.msrb.mxu3 %v4672_v44  ;;  %v4693_v44 = vld [vmem:[#allocation10 + $0x30] sm:$0xff] }
 0xa34   :  { %3450 = vmatpush.msrb.mxu3 %v4673_v10 }
 0xa36   :  { %3451 = vmatpush.msrb.mxu3 %v4674_v27  ;;  %v4694_v27 = vld [vmem:[#allocation10 + $0x798] sm:$0xff] }
 0xa38   :  { %3452 = vmatpush.msrb.mxu3 %v4675_v28  ;;  %v4695_v28 = vld [vmem:[#allocation10 + $0x718] sm:$0xff] }
 0xa3a   :  { %3453 = vmatpush.msrb.mxu3 %v4676_v22  ;;  %v4696_v22 = vld [vmem:[#allocation10 + $0x698] sm:$0xff] }
 0xa3c   :  { %3454 = vmatpush.msrb.mxu3 %v4677_v33  ;;  %v4698_v33 = vld [vmem:[#allocation10 + $0x598] sm:$0xff] }
 0xa70   :  { %v5955_v20 = vpop.f32.mrf.mxu3 }
 0xa73   :  { %v2928_v40 = vpop.xlane.xlu0 %2927 }
 0xa74   :  { %4348 = vrcp.f32 %v2928_v40 }
 0xa75   :  { %4350 = vpow2.f32 %v2924_v3 }
 0xa78   :  { %v5957_v63 = vpop.f32.mrf.mxu3 }
 0xa7a   :  { %v4349_v51 = vpop.eup %4348 }
 0xa7b   :  { %v2934_v38 = vmul.f32 %v4349_v51, %v5948_v50  ;;  %v4682_v50 = vld [vmem:[#allocation10 + $0x5b0] sm:$0xff]  ;;  %v4351_v48 = vpop.eup %4350  ;;  %v4701_v51 = vld [vmem:[#allocation10 + $0x418] sm:$0xff] }
 0xa7c   :  { %v2929_v23 = vsel %vm1307_vm0, %v4351_v48, 0.0 }
 0xa7d   :  { %4259 = vmatmul.msk.f32.vlgmr.msra.gmra.mxu0 %vm1307_vm0, %v2934_v38 }
 0xa7e   :  { %3261 = vmatpush.msra.mxu0 %v2885_v54  ;;  %v4702_v54 = vld [vmem:[#allocation10 + $0x398] sm:$0xff] }
 0xa80   :  { %3262 = vmatpush.msra.mxu0 %v2882_v17  ;;  %v3161_v13 = vpop.f32.mrf.mxu3  ;;  %v4703_v17 = vld [vmem:[#allocation10 + $0x318] sm:$0xff] }
 0xa81   :  { %3183 = vmatmul.f32.vlgmr.msrb.gmra.mxu2 %v3161_v13  ;;  %v4704_v13 = vld [vmem:[#allocation10 + $0x298] sm:$0xff] }
 0xa82   :  { %3485 = vmatpush.msrb.mxu2 %v4678_v25 }
 0xa84   :  { %3486 = vmatpush.msrb.mxu2 %v4679_v55 }
 0xa86   :  { %3487 = vmatpush.msrb.mxu2 %v4680_v32 }
 0xa88   :  { %v3164_v57 = vpop.f32.mrf.mxu3  ;;  %3488 = vmatpush.msrb.mxu2 %v4681_v26 }
 0xa89   :  { %3186 = vmatmul.f32.gmra.mxu2 %v3164_v57  ;;  %v4705_v57 = vld [vmem:[#allocation10 + $0x218] sm:$0xff] }
 0xa8a   :  { %3489 = vmatpush.msrb.mxu2 %v4682_v50 }
 0xa8c   :  { %3490 = vmatpush.msrb.mxu2 %v4683_v53 }
 0xa8e   :  { %3491 = vmatpush.msrb.mxu2 %v4684_v52  ;;  %v4707_v52 = vld [vmem:[#allocation10 + $0x118] sm:$0xff] }
 0xa90   :  { %v3209_v4 = vpop.f32.mrf.mxu3  ;;  %3492 = vmatpush.msrb.mxu2 %v4685_v61 }
 0xa91   :  { %v3215_v21 = vmul.f32 0.35355338, %v3209_v4  ;;  %v4708_v4 = vld [vmem:[#allocation10 + $0x98] sm:$0xff] }
 0xa92   :  { %3493 = vmatpush.msrb.mxu2 %v4686_v5 }
 0xa93   :  { %v3217_v16 = vadd.f32 %v5920_v56, %v3215_v21  ;;  %v4709_v21 = vld [vmem:[#allocation10 + $0x18] sm:$0xff] }
 0xa94   :  { %3494 = vmatpush.msrb.mxu2 %v4687_v9  ;;  %v4710_v9 = vld [vmem:[#allocation10 + $0x788] sm:$0xff] }
 0xa95   :  { %v3219_v59 = vsel %vm1307_vm0, %v3217_v16, -inf }
 0xa96   :  { %3220 = vmax.xlane.f32.xlu1 %v3219_v59  ;;  %3495 = vmatpush.msrb.mxu2 %v4688_v29  ;;  %v4711_v59 = vld [vmem:[#allocation10 + $0x708] sm:$0xff] }
 0xa97   :  { %v4712_v29 = vld [vmem:[#allocation10 + $0x688] sm:$0xff] }
 0xa98   :  { %v3212_v1 = vpop.f32.mrf.mxu3  ;;  %3496 = vmatpush.msrb.mxu2 %v4689_v15  ;;  %v4714_v15 = vld [vmem:[#allocation10 + $0x588] sm:$0xff] }
 0xa99   :  { %v3216_v7 = vmul.f32 0.35355338, %v3212_v1  ;;  %v4713_v1 = vld [vmem:[#allocation10 + $0x608] sm:$0xff] }
 0xa9a   :  { %3497 = vmatpush.msrb.mxu2 %v4690_v14  ;;  %v4717_v14 = vld [vmem:[#allocation10 + $0x408] sm:$0xff] }
 0xa9b   :  { %v3218_v60 = vadd.f32 %v5924_v30, %v3216_v7  ;;  %v4697_v30 = vld [vmem:[#allocation10 + $0x618] sm:$0xff]  ;;  %v4715_v7 = vld [vmem:[#allocation10 + $0x508] sm:$0xff] }
 0xa9c   :  { %3498 = vmatpush.msrb.mxu2 %v4691_v19  ;;  %v4720_v19 = vld [vmem:[#allocation10 + $0x288] sm:$0xff] }
 0xa9d   :  { %v3222_v56 = vsel %vm1307_vm0, %v3218_v60, -inf }
 0xa9e   :  { %3223 = vmax.xlane.f32.xlu2 %v3222_v56  ;;  %2930 = vadd.xlane.f32.xlu1 %v2929_v23  ;;  %v4721_v56 = vld [vmem:[#allocation10 + $0x208] sm:$0xff] }
 0xa9f   :  { %3499 = vmatpush.msrb.mxu2 %v4692_v31  ;;  %v4722_v23 = vld [vmem:[#allocation10 + $0x188] sm:$0xff] }
 0xaa0   :  { %v4723_v31 = vld [vmem:[#allocation10 + $0x108] sm:$0xff] }
 0xaa1   :  { %3500 = vmatpush.msrb.mxu2 %v4693_v44  ;;  %v4725_v44 = vld [vmem:[#allocation10 + $0x8] sm:$0xff] }
 0xafa   :  { %v2959_v10 = vpop.f32.mrf.mxu0 }
 0xafb   :  { %3082 = vmatmul.f32.vlgmr.msrb.gmra.mxu1 %v2959_v10 }
 0xafc   :  { %3416 = vmatpush.msrb.mxu1 %v4694_v27 }
 0xafe   :  { %3417 = vmatpush.msrb.mxu1 %v4695_v28 }
 0xb00   :  { %3418 = vmatpush.msrb.mxu1 %v4696_v22 }
 0xb02   :  { %3419 = vmatpush.msrb.mxu1 %v4697_v30  ;;  %v4726_v30 = vld [vmem:[#allocation10 + $0x7a8] sm:$0xff] }
 0xb04   :  { %3420 = vmatpush.msrb.mxu1 %v4698_v33  ;;  %v4727_v33 = vld [vmem:[#allocation10 + $0x728] sm:$0xff] }
 0xb06   :  { %3421 = vmatpush.msrb.mxu1 %v4699_v39 }
 0xb08   :  { %3422 = vmatpush.msrb.mxu1 %v4700_v35 }
 0xb09   :  { %v3221_v40 = vpop.xlane.xlu1 %3220 }
 0xb0a   :  { %v3225_v47 = vsub.f32 %v3217_v16, %v3221_v40  ;;  %3423 = vmatpush.msrb.mxu1 %v4701_v51  ;;  %v4728_v40 = vld [vmem:[#allocation10 + $0x6a8] sm:$0xff] }
 0xb0b   :  { %v4729_v51 = vld [vmem:[#allocation10 + $0x628] sm:$0xff] }
 0xb0c   :  { %v3227_v38 = vmul.f32 1.442695, %v3225_v47  ;;  %3424 = vmatpush.msrb.mxu1 %v4702_v54  ;;  %v4731_v54 = vld [vmem:[#allocation10 + $0x528] sm:$0xff] }
 0xb0e   :  { %4352 = vpow2.f32 %v3227_v38  ;;  %3425 = vmatpush.msrb.mxu1 %v4703_v17  ;;  %v4730_v38 = vld [vmem:[#allocation10 + $0x5a8] sm:$0xff] }
 0xb0f   :  { %v4732_v17 = vld [vmem:[#allocation10 + $0x4a8] sm:$0xff] }
 0xb10   :  { %3426 = vmatpush.msrb.mxu1 %v4704_v13  ;;  %v4733_v13 = vld [vmem:[#allocation10 + $0x428] sm:$0xff] }
 0xb11   :  { %v3224_v25 = vpop.xlane.xlu2 %3223  ;;  %v2931_v55 = vpop.xlane.xlu1 %2930 }
 0xb12   :  { %v3226_v32 = vsub.f32 %v3218_v60, %v3224_v25  ;;  %4354 = vrcp.f32 %v2931_v55  ;;  %3427 = vmatpush.msrb.mxu1 %v4705_v57  ;;  %v4718_v60 = vld [vmem:[#allocation10 + $0x388] sm:$0xff] }
 0xb13   :  { %v4734_v25 = vld [vmem:[#allocation10 + $0x3a8] sm:$0xff] }
 0xb14   :  { %v4353_v26 = vpop.eup %4352  ;;  %v3229_v50 = vmul.f32 1.442695, %v3226_v32  ;;  %3428 = vmatpush.msrb.mxu1 %v4706_v62  ;;  %v4735_v55 = vld [vmem:[#allocation10 + $0x328] sm:$0xff] }
 0xb15   :  { %v3231_v53 = vsel %vm1307_vm0, %v4353_v26, 0.0  ;;  %v4736_v32 = vld [vmem:[#allocation10 + $0x2a8] sm:$0xff] }
 0xb16   :  { %4356 = vpow2.f32 %v3229_v50  ;;  %3232 = vadd.xlane.f32.xlu2 %v3231_v53  ;;  %3429 = vmatpush.msrb.mxu1 %v4707_v52  ;;  %v4737_v57 = vld [vmem:[#allocation10 + $0x228] sm:$0xff] }
 0xb17   :  { %v4739_v50 = vld [vmem:[#allocation10 + $0x128] sm:$0xff] }
 0xb18   :  { %v4355_v3 = vpop.eup %4354  ;;  %3430 = vmatpush.msrb.mxu1 %v4708_v4  ;;  %v4740_v62 = vld [vmem:[#allocation10 + $0xa8] sm:$0xff] }
 0xb19   :  { %v2935_v61 = vmul.f32 %v4355_v3, %v4351_v48  ;;  %v4716_v48 = vld [vmem:[#allocation10 + $0x488] sm:$0xff] }
 0xb1a   :  { %3431 = vmatpush.msrb.mxu1 %v4709_v21  ;;  %v4741_v53 = vld [vmem:[#allocation10 + $0x28] sm:$0xff]  ;;  %v4743_v21 = vld [vmem:[#allocation10 + $0x738] sm:$0xff] }
 0xb1b   :  { %4260 = vmatmul.msk.f32.gmra.mxu0 %vm1307_vm0, %v2935_v61  ;;  %v4742_v61 = vld [vmem:[#allocation10 + $0x7b8] sm:$0xff] }
 0xb1c   :  { %v4357_v5 = vpop.eup %4356 }
 0xb1d   :  { %v3234_v16 = vsel %vm1307_vm0, %v4357_v5, 0.0 }
 0xb1e   :  { %3235 = vadd.xlane.f32.xlu0 %v3234_v16 }
 0xb23   :  { %3059 = vmatmul.f32.vlgmr.msrb.gmra.mxu0 %v5955_v20  ;;  %v4719_v20 = vld [vmem:[#allocation10 + $0x308] sm:$0xff] }
 0xb24   :  { %3370 = vmatpush.msrb.mxu0 %v4710_v9  ;;  %v4745_v9 = vld [vmem:[#allocation10 + $0x638] sm:$0xff] }
 0xb26   :  { %3371 = vmatpush.msrb.mxu0 %v4711_v59  ;;  %v4746_v59 = vld [vmem:[#allocation10 + $0x5b8] sm:$0xff] }
 0xb28   :  { %3372 = vmatpush.msrb.mxu0 %v4712_v29  ;;  %v4747_v29 = vld [vmem:[#allocation10 + $0x538] sm:$0xff] }
 0xb2a   :  { %3373 = vmatpush.msrb.mxu0 %v4713_v1  ;;  %v4748_v1 = vld [vmem:[#allocation10 + $0x4b8] sm:$0xff] }
 0xb2b   :  { %3062 = vmatmul.f32.gmra.mxu0 %v5957_v63  ;;  %v4724_v63 = vld [vmem:[#allocation10 + $0x88] sm:$0xff] }
 0xb2c   :  { %3374 = vmatpush.msrb.mxu0 %v4714_v15  ;;  %v4749_v15 = vld [vmem:[#allocation10 + $0x438] sm:$0xff] }
 0xb2e   :  { %3375 = vmatpush.msrb.mxu0 %v4715_v7  ;;  %v4750_v7 = vld [vmem:[#allocation10 + $0x3b8] sm:$0xff] }
 0xb30   :  { %3376 = vmatpush.msrb.mxu0 %v4716_v48  ;;  %v4751_v48 = vld [vmem:[#allocation10 + $0x338] sm:$0xff] }
 0xb32   :  { %3377 = vmatpush.msrb.mxu0 %v4717_v14  ;;  %v4752_v14 = vld [vmem:[#allocation10 + $0x2b8] sm:$0xff] }
 0xb34   :  { %3378 = vmatpush.msrb.mxu0 %v4718_v60  ;;  %v4753_v60 = vld [vmem:[#allocation10 + $0x238] sm:$0xff] }
 0xb36   :  { %3379 = vmatpush.msrb.mxu0 %v4719_v20  ;;  %v4754_v20 = vld [vmem:[#allocation10 + $0x1b8] sm:$0xff] }
 0xb38   :  { %3380 = vmatpush.msrb.mxu0 %v4720_v19  ;;  %v4755_v19 = vld [vmem:[#allocation10 + $0x138] sm:$0xff] }
 0xb3a   :  { %3381 = vmatpush.msrb.mxu0 %v4721_v56  ;;  %v4756_v56 = vld [vmem:[#allocation10 + $0xb8] sm:$0xff] }
 0xb3c   :  { %3382 = vmatpush.msrb.mxu0 %v4722_v23  ;;  %v4757_v23 = vld [vmem:[#allocation10 + $0x38] sm:$0xff] }
 0xb3e   :  { %3383 = vmatpush.msrb.mxu0 %v4723_v31 }
 0xb40   :  { %3384 = vmatpush.msrb.mxu0 %v4724_v63 }
 0xb42   :  { %3385 = vmatpush.msrb.mxu0 %v4725_v44 }
 0xb78   :  { %v3083_v31 = vpop.f32.mrf.mxu1 }
 0xb89   :  { %v3233_v10 = vpop.xlane.xlu2 %3232 }
 0xb8a   :  { %4358 = vrcp.f32 %v3233_v10  ;;  %v3184_v10 = vpop.f32.mrf.mxu2 }
 0xb90   :  { %v4359_v27 = vpop.eup %4358 }
 0xb91   :  { %v3239_v28 = vmul.f32 %v4359_v27, %v4353_v26  ;;  %v3236_v22 = vpop.xlane.xlu0 %3235  ;;  %v4738_v26 = vld [vmem:[#allocation10 + $0x1a8] sm:$0xff] }
 0xb92   :  { %4360 = vrcp.f32 %v3236_v22 }
 0xb93   :  { %4265 = vmatmul.msk.f32.vlgmr.msra.gmra.mxu0 %vm1307_vm0, %v3239_v28 }
 0xb94   :  { %3462 = vmatpush.msra.mxu0 %v4726_v30 }
 0xb96   :  { %3463 = vmatpush.msra.mxu0 %v4727_v33 }
 0xb98   :  { %v4361_v39 = vpop.eup %4360  ;;  %v2962_v35 = vpop.f32.mrf.mxu0  ;;  %3464 = vmatpush.msra.mxu0 %v4728_v40 }
 0xb99   :  { %3085 = vmatmul.f32.gmra.mxu1 %v2962_v35  ;;  %v3240_v47 = vmul.f32 %v4361_v39, %v4357_v5  ;;  %v4744_v5 = vld [vmem:[#allocation10 + $0x6b8] sm:$0xff]  ;;  %v4758_v39 = vld [vmem:[%s6091_s4] ss:$0 sm:$0xff]  ;;  %v3187_v40 = vpop.f32.mrf.mxu2 }
 0xb9a   :  { %3465 = vmatpush.msra.mxu0 %v4729_v51 }
 0xb9b   :  { %4266 = vmatmul.msk.f32.gmra.mxu0 %vm1307_vm0, %v3240_v47 }
 0xb9c   :  { %3466 = vmatpush.msra.mxu0 %v4730_v38 }
 0xb9e   :  { %3467 = vmatpush.msra.mxu0 %v4731_v54 }
 0xba0   :  { %3468 = vmatpush.msra.mxu0 %v4732_v17  ;;  %v3060_v52 = vpop.f32.mrf.mxu0 }
 0xba1   :  { %v3084_v44 = vadd.f32 %v3083_v31, %v3060_v52 }
 0xba2   :  { %3469 = vmatpush.msra.mxu0 %v4733_v13 }
 0xba3   :  { %v3190_v27 = vadd.f32 %v3184_v10, %v3084_v44 }
 0xba4   :  { %3470 = vmatpush.msra.mxu0 %v4734_v25 }
 0xba6   :  { %3471 = vmatpush.msra.mxu0 %v4735_v55 }
 0xba8   :  { %3472 = vmatpush.msra.mxu0 %v4736_v32  ;;  %v3063_v3 = vpop.f32.mrf.mxu0 }
 0xbaa   :  { %3473 = vmatpush.msra.mxu0 %v4737_v57 }
 0xbac   :  { %3474 = vmatpush.msra.mxu0 %v4738_v26 }
 0xbae   :  { %3475 = vmatpush.msra.mxu0 %v4739_v50 }
 0xbb0   :  { %3476 = vmatpush.msra.mxu0 %v4740_v62 }
 0xbb2   :  { %3477 = vmatpush.msra.mxu0 %v4741_v53 }
 0xc10   :  { %v3264_v4 = vpop.f32.mrf.mxu0 }
 0xc11   :  { %3286 = vmatmul.f32.vlgmr.msra.gmra.mxu1 %v3264_v4 }
 0xc12   :  { %3508 = vmatpush.msra.mxu1 %v4742_v61 }
 0xc14   :  { %3509 = vmatpush.msra.mxu1 %v4743_v21 }
 0xc16   :  { %3510 = vmatpush.msra.mxu1 %v4744_v5  ;;  %v3086_v63 = vpop.f32.mrf.mxu1 }
 0xc17   :  { %v3087_v30 = vadd.f32 %v3086_v63, %v3063_v3  ;;  %v4760_v63 = vld [vmem:[%s6093_s6] ss:$0 sm:$0xff] }
 0xc18   :  { %v3267_v16 = vpop.f32.mrf.mxu0  ;;  %3511 = vmatpush.msra.mxu1 %v4745_v9 }
 0xc19   :  { %3289 = vmatmul.f32.gmra.mxu1 %v3267_v16  ;;  %v3191_v47 = vadd.f32 %v3187_v40, %v3087_v30  ;;  %v4761_v30 = vld [vmem:[#allocation10 + $0x7c0] sm:$0xff] }
 0xc1a   :  { %3512 = vmatpush.msra.mxu1 %v4746_v59 }
 0xc1c   :  { %3513 = vmatpush.msra.mxu1 %v4747_v29 }
 0xc1e   :  { %3514 = vmatpush.msra.mxu1 %v4748_v1 }
 0xc20   :  { %3515 = vmatpush.msra.mxu1 %v4749_v15 }
 0xc22   :  { %3516 = vmatpush.msra.mxu1 %v4750_v7 }
 0xc24   :  { %3517 = vmatpush.msra.mxu1 %v4751_v48 }
 0xc26   :  { %3518 = vmatpush.msra.mxu1 %v4752_v14 }
 0xc28   :  { %3519 = vmatpush.msra.mxu1 %v4753_v60 }
 0xc2a   :  { %3520 = vmatpush.msra.mxu1 %v4754_v20 }
 0xc2c   :  { %3521 = vmatpush.msra.mxu1 %v4755_v19 }
 0xc2e   :  { %3522 = vmatpush.msra.mxu1 %v4756_v56  ;;  %v4759_v56 = vld [vmem:[%s6092_s5] ss:$0 sm:$0xff] }
 0xc30   :  { %3523 = vmatpush.msra.mxu1 %v4757_v23 }
 0xc8e   :  { %v3287_v28 = vpop.f32.mrf.mxu1 }
 0xc8f   :  { %v3293_v22 = vadd.f32 %v3287_v28, %v3190_v27 }
 0xc91   :  { %v3295_v33 = vadd.f32 %v3293_v22, %v5871_v34 }
 0xc93   :  { %v3297_v35 = vadd.f32 %v4758_v39, %v3295_v33  ;;  %v4762_v33 = vld [vmem:[#allocation10 + $0x7c8] sm:$0xff] }
 0xc95   :  { %3299 = vadd.xlane.f32.xlu1 %v3297_v35  ;;  %v3305_v51 = vmul.f32 %v3297_v35, %v3297_v35 }
 0xc96   :  { %v3290_v38 = vpop.f32.mrf.mxu1 }
 0xc97   :  { %v3294_v54 = vadd.f32 %v3290_v38, %v3191_v47  ;;  %3307 = vadd.xlane.f32.xlu2 %v3305_v51  ;;  %v4765_v47 = vld [vmem:[#allocation10 + $0x740] sm:$0xff]  ;;  %v4766_v51 = vld [vmem:[#allocation10 + $0x748] sm:$0xff]  ;;  %v4767_v38 = vld [vmem:[#allocation10 + $0x750] sm:$0xff] }
 0xc99   :  { %v3296_v17 = vadd.f32 %v3294_v54, %v5877_v18  ;;  %v4768_v54 = vld [vmem:[#allocation10 + $0x758] sm:$0xff] }
 0xc9b   :  { %v3298_v13 = vadd.f32 %v4758_v39, %v3296_v17  ;;  %v4763_v39 = vld [vmem:[#allocation10 + $0x7d0] sm:$0xff] }
 0xc9d   :  { %3301 = vadd.xlane.f32.xlu0 %v3298_v13  ;;  %v3306_v25 = vmul.f32 %v3298_v13, %v3298_v13 }
 0xc9f   :  { %3309 = vadd.xlane.f32.xlu1 %v3306_v25  ;;  %v4770_v25 = vld [vmem:[#allocation10 + $0x6c8] sm:$0xff] }
 0xd08   :  { %v3300_v55 = vpop.xlane.xlu1 %3299 }
 0xd09   :  { %v3303_v34 = vmul.f32 0.03125, %v3300_v55  ;;  %v4771_v55 = vld [vmem:[#allocation10 + $0x6d0] sm:$0xff] }
 0xd0a   :  { %v3308_v32 = vpop.xlane.xlu2 %3307 }
 0xd0b   :  { %v3313_v57 = vmul.f32 %v3303_v34, %v3303_v34  ;;  %v3311_v26 = vmul.f32 0.03125, %v3308_v32  ;;  %v3317_v48 = vsub.f32 %v3297_v35, %v3303_v34  ;;  %v4764_v35 = vld [vmem:[#allocation10 + $0x7d8] sm:$0xff]  ;;  %v4773_v32 = vld [vmem:[#allocation10 + $0x640] sm:$0xff] }
 0xd0c   :  { %v4772_v34 = vld [vmem:[#allocation10 + $0x6d8] sm:$0xff] }
 0xd0d   :  { %v3315_v50 = vsub.f32 %v3311_v26, %v3313_v57  ;;  %v4774_v57 = vld [vmem:[#allocation10 + $0x648] sm:$0xff]  ;;  %v4775_v26 = vld [vmem:[#allocation10 + $0x650] sm:$0xff] }
 0xd0f   :  { %v3319_v62 = vadd.f32 1e-05, %v3315_v50  ;;  %v4776_v50 = vld [vmem:[#allocation10 + $0x658] sm:$0xff] }
 0xd10   :  { %v3302_v53 = vpop.xlane.xlu0 %3301 }
 0xd11   :  { %4362 = vrsqrt.f32 %v3319_v62  ;;  %v3304_v52 = vmul.f32 0.03125, %v3302_v53  ;;  %vm3327_vm14 = vweird.f32 %v3319_v62  ;;  %v4778_v53 = vld [vmem:[#allocation10 + $0x5c8] sm:$0xff] }
 0xd12   :  { %v3310_v3 = vpop.xlane.xlu1 %3309 }
 0xd13   :  { %v3314_v4 = vmul.f32 %v3304_v52, %v3304_v52  ;;  %v3312_v61 = vmul.f32 0.03125, %v3310_v3  ;;  %v3318_v27 = vsub.f32 %v3298_v13, %v3304_v52  ;;  %v4769_v13 = vld [vmem:[#allocation10 + $0x6c0] sm:$0xff]  ;;  %v4779_v52 = vld [vmem:[#allocation10 + $0x5d0] sm:$0xff]  ;;  %v4780_v3 = vld [vmem:[#allocation10 + $0x5d8] sm:$0xff] }
 0xd15   :  { %v3316_v21 = vsub.f32 %v3312_v61, %v3314_v4  ;;  %v4781_v4 = vld [vmem:[#allocation10 + $0x540] sm:$0xff]  ;;  %v4782_v61 = vld [vmem:[#allocation10 + $0x548] sm:$0xff] }
 0xd17   :  { %v4363_v5 = vpop.eup %4362  ;;  %v3320_v18 = vadd.f32 1e-05, %v3316_v21  ;;  %v4783_v21 = vld [vmem:[#allocation10 + $0x550] sm:$0xff] }
 0xd18   :  { %v3322_v16 = vmul.f32 %v4363_v5, %v3319_v62  ;;  %vm3328_vm13 = vweird.f32 %v4363_v5  ;;  %v4777_v62 = vld [vmem:[#allocation10 + $0x5c0] sm:$0xff] }
 0xd19   :  { %4364 = vrsqrt.f32 %v3320_v18  ;;  %vm3329_vm15 = vmor %vm3327_vm14, %vm3328_vm13  ;;  %vm3337_vm2 = vweird.f32 %v3320_v18 }
 0xd1a   :  { %v3323_v9 = vmul.f32 %v4363_v5, %v3322_v16  ;;  %v4786_v16 = vld [vmem:[#allocation10 + $0x4c8] sm:$0xff] }
 0xd1c   :  { %v3324_v59 = vmul.f32 0.5, %v3323_v9  ;;  %v4787_v9 = vld [vmem:[#allocation10 + $0x4d0] sm:$0xff] }
 0xd1e   :  { %v3325_v29 = vsub.f32 1.5, %v3324_v59  ;;  %v4788_v59 = vld [vmem:[#allocation10 + $0x4d8] sm:$0xff] }
 0xd1f   :  { %v4365_v1 = vpop.eup %4364 }
 0xd20   :  { %v3326_v15 = vmul.f32 %v4363_v5, %v3325_v29  ;;  %v3332_v7 = vmul.f32 %v4365_v1, %v3320_v18  ;;  %vm3338_vm1 = vweird.f32 %v4365_v1  ;;  %v4785_v18 = vld [vmem:[#allocation10 + $0x4c0] sm:$0xff] }
 0xd21   :  { %vm3339_vm3 = vmor %vm3337_vm2, %vm3338_vm1  ;;  %v4789_v29 = vld [vmem:[#allocation10 + $0x440] sm:$0xff] }
 0xd22   :  { %v3330_v14 = vsel %vm3329_vm15, %v4363_v5, %v3326_v15  ;;  %v3333_v60 = vmul.f32 %v4365_v1, %v3332_v7  ;;  %v4784_v5 = vld [vmem:[#allocation10 + $0x558] sm:$0xff]  ;;  %v4791_v15 = vld [vmem:[#allocation10 + $0x450] sm:$0xff] }
 0xd23   :  { %v3341_v20 = vmul.f32 %v3330_v14, %v3317_v48  ;;  %v4792_v7 = vld [vmem:[#allocation10 + $0x458] sm:$0xff]  ;;  %v4793_v48 = vld [vmem:[#allocation10 + $0x3c0] sm:$0xff]  ;;  %v4794_v14 = vld [vmem:[#allocation10 + $0x3c8] sm:$0xff] }
 0xd24   :  { %v3334_v19 = vmul.f32 0.5, %v3333_v60  ;;  %v4795_v60 = vld [vmem:[#allocation10 + $0x3d0] sm:$0xff] }
 0xd25   :  { %v3343_v23 = vmul.f32 %v4759_v56, %v3341_v20  ;;  %v4796_v20 = vld [vmem:[#allocation10 + $0x3d8] sm:$0xff] }
 0xd26   :  { %v3335_v31 = vsub.f32 1.5, %v3334_v19  ;;  %v4797_v19 = vld [vmem:[#allocation10 + $0x340] sm:$0xff] }
 0xd27   :  { %v5987_v44 = vadd.f32 %v4760_v63, %v3343_v23  ;;  %v4799_v23 = vld [vmem:[#allocation10 + $0x350] sm:$0xff] }
 0xd28   :  { %v3336_v10 = vmul.f32 %v4365_v1, %v3335_v31  ;;  %v4800_v31 = vld [vmem:[#allocation10 + $0x358] sm:$0xff] }
 0xd29   :  { %3363 = vmatmul.f32.vlgmr.msra.gmra.mxu3 %v5987_v44  ;;  %3386 = vmatmul.f32.vlgmr.msrb.gmra.mxu0 %v5987_v44 }
 0xd2a   :  { %v3340_v28 = vsel %vm3339_vm3, %v4365_v1, %v3336_v10  ;;  %3409 = vmatmul.f32.vlgmr.msra.gmra.mxu2 %v5987_v44  ;;  %3432 = vmatmul.f32.vlgmr.msrb.gmra.mxu1 %v5987_v44  ;;  %v4790_v1 = vld [vmem:[#allocation10 + $0x448] sm:$0xff] }
 0xd2b   :  { %v3342_v22 = vmul.f32 %v3340_v28, %v3318_v27  ;;  %3531 = vmatpush.msra.mxu3 %v4761_v30  ;;  %3554 = vmatpush.msrb.mxu0 %v4762_v33  ;;  %v4802_v10 = vld [vmem:[#allocation10 + $0x2c8] sm:$0xff]  ;;  %v4803_v27 = vld [vmem:[#allocation10 + $0x2d0] sm:$0xff]  ;;  %v4804_v28 = vld [vmem:[#allocation10 + $0x2d8] sm:$0xff] }
 0xd2c   :  { %3577 = vmatpush.msra.mxu2 %v4763_v39  ;;  %3600 = vmatpush.msrb.mxu1 %v4764_v35  ;;  %v4806_v30 = vld [vmem:[#allocation10 + $0x248] sm:$0xff]  ;;  %v4807_v33 = vld [vmem:[#allocation10 + $0x250] sm:$0xff]  ;;  %v4808_v39 = vld [vmem:[#allocation10 + $0x258] sm:$0xff] }
 0xd2d   :  { %v3344_v40 = vmul.f32 %v4759_v56, %v3342_v22  ;;  %3532 = vmatpush.msra.mxu3 %v4765_v47  ;;  %3555 = vmatpush.msrb.mxu0 %v4766_v51  ;;  %v4798_v56 = vld [vmem:[#allocation10 + $0x348] sm:$0xff]  ;;  %v4805_v22 = vld [vmem:[#allocation10 + $0x240] sm:$0xff]  ;;  %v4811_v47 = vld [vmem:[#allocation10 + $0x1d0] sm:$0xff] }
 0xd2e   :  { %3578 = vmatpush.msra.mxu2 %v4767_v38  ;;  %3601 = vmatpush.msrb.mxu1 %v4768_v54  ;;  %v4809_v35 = vld [vmem:[#allocation10 + $0x1c0] sm:$0xff]  ;;  %v4812_v51 = vld [vmem:[#allocation10 + $0x1d8] sm:$0xff]  ;;  %v4814_v54 = vld [vmem:[#allocation10 + $0x148] sm:$0xff] }
 0xd2f   :  { %v5993_v17 = vadd.f32 %v4760_v63, %v3344_v40  ;;  %3533 = vmatpush.msra.mxu3 %v4769_v13  ;;  %3556 = vmatpush.msrb.mxu0 %v4770_v25  ;;  %v4801_v63 = vld [vmem:[#allocation10 + $0x2c0] sm:$0xff]  ;;  %v4810_v40 = vld [vmem:[#allocation10 + $0x1c8] sm:$0xff]  ;;  %v4815_v13 = vld [vmem:[#allocation10 + $0x150] sm:$0xff] }
 0xd30   :  { %3579 = vmatpush.msra.mxu2 %v4771_v55  ;;  %3602 = vmatpush.msrb.mxu1 %v4772_v34  ;;  %v4813_v38 = vld [vmem:[#allocation10 + $0x140] sm:$0xff]  ;;  %v4816_v25 = vld [vmem:[#allocation10 + $0x158] sm:$0xff]  ;;  %v4818_v34 = vld [vmem:[#allocation10 + $0xc8] sm:$0xff] }
 0xd31   :  { %3534 = vmatpush.msra.mxu3 %v4773_v32  ;;  %3557 = vmatpush.msrb.mxu0 %v4774_v57  ;;  %v4817_v55 = vld [vmem:[#allocation10 + $0xc0] sm:$0xff]  ;;  %v4819_v32 = vld [vmem:[#allocation10 + $0xd0] sm:$0xff]  ;;  %v4820_v57 = vld [vmem:[#allocation10 + $0xd8] sm:$0xff] }
 0xd32   :  { %3580 = vmatpush.msra.mxu2 %v4775_v26  ;;  %3603 = vmatpush.msrb.mxu1 %v4776_v50  ;;  %v4821_v26 = vld [vmem:[#allocation10 + $0x40] sm:$0xff]  ;;  %v4822_v50 = vld [vmem:[#allocation10 + $0x48] sm:$0xff] }
 0xd33   :  { %3366 = vmatmul.f32.gmra.mxu3 %v5993_v17  ;;  %3389 = vmatmul.f32.gmra.mxu0 %v5993_v17 }
 0xd34   :  { %3412 = vmatmul.f32.gmra.mxu2 %v5993_v17  ;;  %3435 = vmatmul.f32.gmra.mxu1 %v5993_v17 }
 0xd35   :  { %3535 = vmatpush.msra.mxu3 %v4777_v62  ;;  %3558 = vmatpush.msrb.mxu0 %v4778_v53  ;;  %v4823_v62 = vld [vmem:[#allocation10 + $0x50] sm:$0xff]  ;;  %v4824_v53 = vld [vmem:[#allocation10 + $0x58] sm:$0xff] }
 0xd36   :  { %3581 = vmatpush.msra.mxu2 %v4779_v52  ;;  %3604 = vmatpush.msrb.mxu1 %v4780_v3  ;;  %v4825_v52 = vld [vmem:[#allocation10 + $0x7e0] sm:$0xff]  ;;  %v4826_v3 = vld [vmem:[#allocation10 + $0x7e8] sm:$0xff] }
 0xd37   :  { %3536 = vmatpush.msra.mxu3 %v4781_v4  ;;  %3559 = vmatpush.msrb.mxu0 %v4782_v61  ;;  %v4827_v4 = vld [vmem:[#allocation10 + $0x7f0] sm:$0xff]  ;;  %v4828_v61 = vld [vmem:[#allocation10 + $0x7f8] sm:$0xff] }
 0xd38   :  { %3582 = vmatpush.msra.mxu2 %v4783_v21  ;;  %3605 = vmatpush.msrb.mxu1 %v4784_v5  ;;  %v4829_v21 = vld [vmem:[#allocation10 + $0x760] sm:$0xff]  ;;  %v4830_v5 = vld [vmem:[#allocation10 + $0x768] sm:$0xff] }
 0xd39   :  { %3537 = vmatpush.msra.mxu3 %v4785_v18  ;;  %3560 = vmatpush.msrb.mxu0 %v4786_v16  ;;  %v4831_v18 = vld [vmem:[#allocation10 + $0x770] sm:$0xff]  ;;  %v4832_v16 = vld [vmem:[#allocation10 + $0x778] sm:$0xff] }
 0xd3a   :  { %3583 = vmatpush.msra.mxu2 %v4787_v9  ;;  %3606 = vmatpush.msrb.mxu1 %v4788_v59  ;;  %v4833_v9 = vld [vmem:[#allocation10 + $0x6e0] sm:$0xff]  ;;  %v4834_v59 = vld [vmem:[#allocation10 + $0x6e8] sm:$0xff] }
 0xd3b   :  { %3538 = vmatpush.msra.mxu3 %v4789_v29  ;;  %3561 = vmatpush.msrb.mxu0 %v4790_v1  ;;  %v4835_v29 = vld [vmem:[#allocation10 + $0x6f0] sm:$0xff]  ;;  %v4836_v1 = vld [vmem:[#allocation10 + $0x6f8] sm:$0xff] }
 0xd3c   :  { %3584 = vmatpush.msra.mxu2 %v4791_v15  ;;  %3607 = vmatpush.msrb.mxu1 %v4792_v7  ;;  %v4837_v15 = vld [vmem:[#allocation10 + $0x660] sm:$0xff]  ;;  %v4838_v7 = vld [vmem:[#allocation10 + $0x668] sm:$0xff] }
 0xd3d   :  { %3455 = vmatmul.f32.vlgmr.msrb.gmra.mxu3 %v5987_v44  ;;  %3478 = vmatmul.f32.vlgmr.msra.gmra.mxu0 %v5987_v44 }
 0xd3e   :  { %3501 = vmatmul.f32.vlgmr.msrb.gmra.mxu2 %v5987_v44  ;;  %3524 = vmatmul.f32.vlgmr.msra.gmra.mxu1 %v5987_v44 }
 0xd3f   :  { %3539 = vmatpush.msra.mxu3 %v4793_v48  ;;  %3562 = vmatpush.msrb.mxu0 %v4794_v14  ;;  %v4839_v48 = vld [vmem:[#allocation10 + $0x670] sm:$0xff]  ;;  %v4840_v14 = vld [vmem:[#allocation10 + $0x678] sm:$0xff] }
 0xd40   :  { %3585 = vmatpush.msra.mxu2 %v4795_v60  ;;  %3608 = vmatpush.msrb.mxu1 %v4796_v20  ;;  %v4841_v60 = vld [vmem:[#allocation10 + $0x5e0] sm:$0xff]  ;;  %v4842_v20 = vld [vmem:[#allocation10 + $0x5e8] sm:$0xff] }
 0xd41   :  { %3540 = vmatpush.msra.mxu3 %v4797_v19  ;;  %3563 = vmatpush.msrb.mxu0 %v4798_v56  ;;  %v4843_v19 = vld [vmem:[#allocation10 + $0x5f0] sm:$0xff]  ;;  %v4844_v56 = vld [vmem:[#allocation10 + $0x5f8] sm:$0xff] }
 0xd42   :  { %3586 = vmatpush.msra.mxu2 %v4799_v23  ;;  %3609 = vmatpush.msrb.mxu1 %v4800_v31  ;;  %v4845_v23 = vld [vmem:[#allocation10 + $0x560] sm:$0xff]  ;;  %v4846_v31 = vld [vmem:[#allocation10 + $0x568] sm:$0xff] }
 0xd43   :  { %3541 = vmatpush.msra.mxu3 %v4801_v63  ;;  %3564 = vmatpush.msrb.mxu0 %v4802_v10  ;;  %v4847_v63 = vld [vmem:[#allocation10 + $0x570] sm:$0xff]  ;;  %v4848_v10 = vld [vmem:[#allocation10 + $0x578] sm:$0xff] }
 0xd44   :  { %3587 = vmatpush.msra.mxu2 %v4803_v27  ;;  %3610 = vmatpush.msrb.mxu1 %v4804_v28  ;;  %v4849_v27 = vld [vmem:[#allocation10 + $0x4e0] sm:$0xff]  ;;  %v4850_v28 = vld [vmem:[#allocation10 + $0x4e8] sm:$0xff] }
 0xd45   :  { %3542 = vmatpush.msra.mxu3 %v4805_v22  ;;  %3565 = vmatpush.msrb.mxu0 %v4806_v30  ;;  %v4851_v22 = vld [vmem:[#allocation10 + $0x4f0] sm:$0xff]  ;;  %v4852_v30 = vld [vmem:[#allocation10 + $0x4f8] sm:$0xff] }
 0xd46   :  { %3588 = vmatpush.msra.mxu2 %v4807_v33  ;;  %3611 = vmatpush.msrb.mxu1 %v4808_v39  ;;  %v4853_v33 = vld [vmem:[#allocation10 + $0x460] sm:$0xff]  ;;  %v4854_v39 = vld [vmem:[#allocation10 + $0x468] sm:$0xff] }
 0xd47   :  { %3458 = vmatmul.f32.gmra.mxu3 %v5993_v17  ;;  %3481 = vmatmul.f32.gmra.mxu0 %v5993_v17 }
 0xd48   :  { %3504 = vmatmul.f32.gmra.mxu2 %v5993_v17  ;;  %3527 = vmatmul.f32.gmra.mxu1 %v5993_v17 }
 0xd49   :  { %3543 = vmatpush.msra.mxu3 %v4809_v35  ;;  %3566 = vmatpush.msrb.mxu0 %v4810_v40  ;;  %v4855_v35 = vld [vmem:[#allocation10 + $0x470] sm:$0xff]  ;;  %v4856_v40 = vld [vmem:[#allocation10 + $0x478] sm:$0xff] }
 0xd4a   :  { %3589 = vmatpush.msra.mxu2 %v4811_v47  ;;  %3612 = vmatpush.msrb.mxu1 %v4812_v51  ;;  %v4857_v47 = vld [vmem:[#allocation10 + $0x3e0] sm:$0xff]  ;;  %v4858_v51 = vld [vmem:[#allocation10 + $0x3e8] sm:$0xff] }
 0xd4b   :  { %3544 = vmatpush.msra.mxu3 %v4813_v38  ;;  %3567 = vmatpush.msrb.mxu0 %v4814_v54  ;;  %v4859_v38 = vld [vmem:[#allocation10 + $0x3f0] sm:$0xff]  ;;  %v4860_v54 = vld [vmem:[#allocation10 + $0x3f8] sm:$0xff] }
 0xd4c   :  { %3590 = vmatpush.msra.mxu2 %v4815_v13  ;;  %3613 = vmatpush.msrb.mxu1 %v4816_v25  ;;  %v4861_v13 = vld [vmem:[#allocation10 + $0x360] sm:$0xff]  ;;  %v4862_v25 = vld [vmem:[#allocation10 + $0x368] sm:$0xff] }
 0xd4d   :  { %3545 = vmatpush.msra.mxu3 %v4817_v55  ;;  %3568 = vmatpush.msrb.mxu0 %v4818_v34  ;;  %v4863_v55 = vld [vmem:[#allocation10 + $0x370] sm:$0xff]  ;;  %v4864_v34 = vld [vmem:[#allocation10 + $0x378] sm:$0xff] }
 0xd4e   :  { %3591 = vmatpush.msra.mxu2 %v4819_v32  ;;  %3614 = vmatpush.msrb.mxu1 %v4820_v57  ;;  %v4865_v32 = vld [vmem:[#allocation10 + $0x2e0] sm:$0xff]  ;;  %v4866_v57 = vld [vmem:[#allocation10 + $0x2e8] sm:$0xff] }
 0xd4f   :  { %3546 = vmatpush.msra.mxu3 %v4821_v26  ;;  %3569 = vmatpush.msrb.mxu0 %v4822_v50  ;;  %v4867_v26 = vld [vmem:[#allocation10 + $0x2f0] sm:$0xff]  ;;  %v4868_v50 = vld [vmem:[#allocation10 + $0x2f8] sm:$0xff] }
 0xd50   :  { %3592 = vmatpush.msra.mxu2 %v4823_v62  ;;  %3615 = vmatpush.msrb.mxu1 %v4824_v53  ;;  %v4869_v62 = vld [vmem:[#allocation10 + $0x260] sm:$0xff]  ;;  %v4870_v53 = vld [vmem:[#allocation10 + $0x268] sm:$0xff] }
 0xd51   :  { %3623 = vmatpush.msrb.mxu3 %v4825_v52  ;;  %3646 = vmatpush.msra.mxu0 %v4826_v3  ;;  %v4871_v52 = vld [vmem:[#allocation10 + $0x270] sm:$0xff]  ;;  %v4872_v3 = vld [vmem:[#allocation10 + $0x278] sm:$0xff] }
 0xd52   :  { %3669 = vmatpush.msrb.mxu2 %v4827_v4  ;;  %3692 = vmatpush.msra.mxu1 %v4828_v61  ;;  %v4873_v4 = vld [vmem:[#allocation10 + $0x1e0] sm:$0xff]  ;;  %v4874_v61 = vld [vmem:[#allocation10 + $0x1e8] sm:$0xff] }
 0xd53   :  { %3547 = vmatmul.f32.vlgmr.msra.gmra.mxu3 %v5987_v44  ;;  %3570 = vmatmul.f32.vlgmr.msrb.gmra.mxu0 %v5987_v44 }
 0xd54   :  { %3593 = vmatmul.f32.vlgmr.msra.gmra.mxu2 %v5987_v44  ;;  %3616 = vmatmul.f32.vlgmr.msrb.gmra.mxu1 %v5987_v44 }
 0xd55   :  { %3624 = vmatpush.msrb.mxu3 %v4829_v21  ;;  %3647 = vmatpush.msra.mxu0 %v4830_v5  ;;  %v4875_v21 = vld [vmem:[#allocation10 + $0x1f0] sm:$0xff]  ;;  %v4876_v5 = vld [vmem:[#allocation10 + $0x1f8] sm:$0xff] }
 0xd56   :  { %3670 = vmatpush.msrb.mxu2 %v4831_v18  ;;  %3693 = vmatpush.msra.mxu1 %v4832_v16  ;;  %v4877_v18 = vld [vmem:[#allocation10 + $0x160] sm:$0xff]  ;;  %v4878_v16 = vld [vmem:[#allocation10 + $0x168] sm:$0xff] }
 0xd57   :  { %3625 = vmatpush.msrb.mxu3 %v4833_v9  ;;  %3648 = vmatpush.msra.mxu0 %v4834_v59  ;;  %v4879_v9 = vld [vmem:[#allocation10 + $0x170] sm:$0xff]  ;;  %v4880_v59 = vld [vmem:[#allocation10 + $0x178] sm:$0xff] }
 0xd58   :  { %3671 = vmatpush.msrb.mxu2 %v4835_v29  ;;  %3694 = vmatpush.msra.mxu1 %v4836_v1  ;;  %v4881_v29 = vld [vmem:[#allocation10 + $0xe0] sm:$0xff]  ;;  %v4882_v1 = vld [vmem:[#allocation10 + $0xe8] sm:$0xff] }
 0xd59   :  { %3626 = vmatpush.msrb.mxu3 %v4837_v15  ;;  %3649 = vmatpush.msra.mxu0 %v4838_v7  ;;  %v4883_v15 = vld [vmem:[#allocation10 + $0xf0] sm:$0xff]  ;;  %v4884_v7 = vld [vmem:[#allocation10 + $0xf8] sm:$0xff] }
 0xd5a   :  { %3672 = vmatpush.msrb.mxu2 %v4839_v48  ;;  %3695 = vmatpush.msra.mxu1 %v4840_v14  ;;  %v4885_v48 = vld [vmem:[#allocation10 + $0x60] sm:$0xff]  ;;  %v4886_v14 = vld [vmem:[#allocation10 + $0x68] sm:$0xff] }
 0xd5b   :  { %3627 = vmatpush.msrb.mxu3 %v4841_v60  ;;  %3650 = vmatpush.msra.mxu0 %v4842_v20  ;;  %v4887_v60 = vld [vmem:[#allocation10 + $0x70] sm:$0xff]  ;;  %v4888_v20 = vld [vmem:[#allocation10 + $0x78] sm:$0xff] }
 0xd5c   :  { %3673 = vmatpush.msrb.mxu2 %v4843_v19  ;;  %3696 = vmatpush.msra.mxu1 %v4844_v56  ;;  %v4889_v19 = vld [vmem:[#allocation13 + $0xf8] sm:$0xff] }
 0xd5d   :  { %3550 = vmatmul.f32.gmra.mxu3 %v5993_v17  ;;  %3573 = vmatmul.f32.gmra.mxu0 %v5993_v17  ;;  %v4890_v56 = vld [vmem:[#allocation13 + $0x1f8] sm:$0xff] }
 0xd5e   :  { %3596 = vmatmul.f32.gmra.mxu2 %v5993_v17  ;;  %3619 = vmatmul.f32.gmra.mxu1 %v5993_v17 }
 0xd5f   :  { %3628 = vmatpush.msrb.mxu3 %v4845_v23  ;;  %3651 = vmatpush.msra.mxu0 %v4846_v31  ;;  %v4891_v23 = vld [vmem:[#allocation13 + $0x78] sm:$0xff] }
 0xd60   :  { %3674 = vmatpush.msrb.mxu2 %v4847_v63  ;;  %3697 = vmatpush.msra.mxu1 %v4848_v10  ;;  %v4892_v31 = vld [vmem:[#allocation13 + $0x178] sm:$0xff]  ;;  %v4893_v63 = vld [vmem:[#allocation13 + $0xf0] sm:$0xff] }
 0xd61   :  { %3629 = vmatpush.msrb.mxu3 %v4849_v27  ;;  %3652 = vmatpush.msra.mxu0 %v4850_v28  ;;  %v4894_v10 = vld [vmem:[#allocation13 + $0x1f0] sm:$0xff] }
 0xd62   :  { %3675 = vmatpush.msrb.mxu2 %v4851_v22  ;;  %3698 = vmatpush.msra.mxu1 %v4852_v30  ;;  %v4895_v27 = vld [vmem:[#allocation13 + $0x70] sm:$0xff]  ;;  %v4897_v22 = vld [vmem:[#allocation13 + $0xe8] sm:$0xff] }
 0xd63   :  { %3630 = vmatpush.msrb.mxu3 %v4853_v33  ;;  %3653 = vmatpush.msra.mxu0 %v4854_v39  ;;  %v4896_v28 = vld [vmem:[#allocation13 + $0x170] sm:$0xff]  ;;  %v4898_v30 = vld [vmem:[#allocation13 + $0x1e8] sm:$0xff] }
 0xd64   :  { %3676 = vmatpush.msrb.mxu2 %v4855_v35  ;;  %3699 = vmatpush.msra.mxu1 %v4856_v40  ;;  %v4899_v33 = vld [vmem:[#allocation13 + $0x68] sm:$0xff]  ;;  %v4901_v35 = vld [vmem:[#allocation13 + $0xe0] sm:$0xff] }
 0xd65   :  { %3631 = vmatpush.msrb.mxu3 %v4857_v47  ;;  %3654 = vmatpush.msra.mxu0 %v4858_v51  ;;  %v4900_v39 = vld [vmem:[#allocation13 + $0x168] sm:$0xff]  ;;  %v4902_v40 = vld [vmem:[#allocation13 + $0x1e0] sm:$0xff] }
 0xd66   :  { %3677 = vmatpush.msrb.mxu2 %v4859_v38  ;;  %3700 = vmatpush.msra.mxu1 %v4860_v54  ;;  %v4903_v47 = vld [vmem:[#allocation13 + $0x60] sm:$0xff]  ;;  %v4905_v38 = vld [vmem:[#allocation13 + $0xd8] sm:$0xff] }
 0xd67   :  { %3632 = vmatpush.msrb.mxu3 %v4861_v13  ;;  %3655 = vmatpush.msra.mxu0 %v4862_v25  ;;  %v4904_v51 = vld [vmem:[#allocation13 + $0x160] sm:$0xff]  ;;  %v4906_v54 = vld [vmem:[#allocation13 + $0x1d8] sm:$0xff] }
 0xd68   :  { %3678 = vmatpush.msrb.mxu2 %v4863_v55  ;;  %3701 = vmatpush.msra.mxu1 %v4864_v34  ;;  %v4907_v13 = vld [vmem:[#allocation13 + $0x58] sm:$0xff]  ;;  %v4909_v55 = vld [vmem:[#allocation13 + $0xd0] sm:$0xff] }
 0xd69   :  { %3633 = vmatpush.msrb.mxu3 %v4865_v32  ;;  %3656 = vmatpush.msra.mxu0 %v4866_v57  ;;  %v4908_v25 = vld [vmem:[#allocation13 + $0x158] sm:$0xff]  ;;  %v4910_v34 = vld [vmem:[#allocation13 + $0x1d0] sm:$0xff] }
 0xd6a   :  { %3679 = vmatpush.msrb.mxu2 %v4867_v26  ;;  %3702 = vmatpush.msra.mxu1 %v4868_v50  ;;  %v4911_v32 = vld [vmem:[#allocation13 + $0x50] sm:$0xff]  ;;  %v4913_v26 = vld [vmem:[#allocation13 + $0xc8] sm:$0xff] }
 0xd6b   :  { %3634 = vmatpush.msrb.mxu3 %v4869_v62  ;;  %3657 = vmatpush.msra.mxu0 %v4870_v53  ;;  %v4912_v57 = vld [vmem:[#allocation13 + $0x150] sm:$0xff]  ;;  %v4914_v50 = vld [vmem:[#allocation13 + $0x1c8] sm:$0xff] }
 0xd6c   :  { %3680 = vmatpush.msrb.mxu2 %v4871_v52  ;;  %3703 = vmatpush.msra.mxu1 %v4872_v3  ;;  %v4915_v62 = vld [vmem:[#allocation13 + $0x48] sm:$0xff]  ;;  %v4917_v52 = vld [vmem:[#allocation13 + $0xc0] sm:$0xff] }
 0xd6d   :  { %3635 = vmatpush.msrb.mxu3 %v4873_v4  ;;  %3658 = vmatpush.msra.mxu0 %v4874_v61  ;;  %v4916_v53 = vld [vmem:[#allocation13 + $0x148] sm:$0xff]  ;;  %v4918_v3 = vld [vmem:[#allocation13 + $0x1c0] sm:$0xff] }
 0xd6e   :  { %3681 = vmatpush.msrb.mxu2 %v4875_v21  ;;  %3704 = vmatpush.msra.mxu1 %v4876_v5  ;;  %v4919_v4 = vld [vmem:[#allocation13 + $0x40] sm:$0xff]  ;;  %v4921_v21 = vld [vmem:[#allocation13 + $0xb8] sm:$0xff] }
 0xd6f   :  { %3636 = vmatpush.msrb.mxu3 %v4877_v18  ;;  %3659 = vmatpush.msra.mxu0 %v4878_v16  ;;  %v4920_v61 = vld [vmem:[#allocation13 + $0x140] sm:$0xff]  ;;  %v4922_v5 = vld [vmem:[#allocation13 + $0x1b8] sm:$0xff] }
 0xd70   :  { %3682 = vmatpush.msrb.mxu2 %v4879_v9  ;;  %3705 = vmatpush.msra.mxu1 %v4880_v59  ;;  %v4923_v18 = vld [vmem:[#allocation13 + $0x38] sm:$0xff]  ;;  %v4925_v9 = vld [vmem:[#allocation13 + $0xb0] sm:$0xff] }
 0xd71   :  { %3637 = vmatpush.msrb.mxu3 %v4881_v29  ;;  %3660 = vmatpush.msra.mxu0 %v4882_v1  ;;  %v4924_v16 = vld [vmem:[#allocation13 + $0x138] sm:$0xff]  ;;  %v4926_v59 = vld [vmem:[#allocation13 + $0x1b0] sm:$0xff] }
 0xd72   :  { %3683 = vmatpush.msrb.mxu2 %v4883_v15  ;;  %3706 = vmatpush.msra.mxu1 %v4884_v7  ;;  %v4927_v29 = vld [vmem:[#allocation13 + $0x30] sm:$0xff]  ;;  %v4929_v15 = vld [vmem:[#allocation13 + $0xa8] sm:$0xff] }
 0xd73   :  { %3638 = vmatpush.msrb.mxu3 %v4885_v48  ;;  %3661 = vmatpush.msra.mxu0 %v4886_v14  ;;  %v4928_v1 = vld [vmem:[#allocation13 + $0x130] sm:$0xff]  ;;  %v4930_v7 = vld [vmem:[#allocation13 + $0x1a8] sm:$0xff] }
 0xd74   :  { %3684 = vmatpush.msrb.mxu2 %v4887_v60  ;;  %3707 = vmatpush.msra.mxu1 %v4888_v20  ;;  %v4931_v48 = vld [vmem:[#allocation13 + $0x28] sm:$0xff]  ;;  %v4933_v60 = vld [vmem:[#allocation13 + $0xa0] sm:$0xff] }
 0xd75   :  { %3639 = vmatmul.f32.vlgmr.msrb.gmra.mxu3 %v5987_v44  ;;  %3662 = vmatmul.f32.vlgmr.msra.gmra.mxu0 %v5987_v44  ;;  %v4932_v14 = vld [vmem:[#allocation13 + $0x128] sm:$0xff]  ;;  %v4934_v20 = vld [vmem:[#allocation13 + $0x1a0] sm:$0xff] }
 0xd76   :  { %3685 = vmatmul.f32.vlgmr.msrb.gmra.mxu2 %v5987_v44  ;;  %3708 = vmatmul.f32.vlgmr.msra.gmra.mxu1 %v5987_v44 }
 0xd77   :  { %3770 = vmatpush.msrb.mxu0 %v4889_v19  ;;  %3816 = vmatpush.msrb.mxu1 %v4890_v56  ;;  %v4935_v19 = vld [vmem:[#allocation13 + $0x20] sm:$0xff] }
 0xd78   :  { %3747 = vmatpush.msra.mxu3 %v4891_v23  ;;  %3793 = vmatpush.msra.mxu2 %v4892_v31  ;;  %v4936_v56 = vld [vmem:[#allocation13 + $0x120] sm:$0xff]  ;;  %v4937_v23 = vld [vmem:[#allocation13 + $0x98] sm:$0xff] }
 0xd79   :  { %3771 = vmatpush.msrb.mxu0 %v4893_v63  ;;  %3817 = vmatpush.msrb.mxu1 %v4894_v10  ;;  %v4938_v31 = vld [vmem:[#allocation13 + $0x198] sm:$0xff] }
 0xd7a   :  { %3748 = vmatpush.msra.mxu3 %v4895_v27  ;;  %3794 = vmatpush.msra.mxu2 %v4896_v28  ;;  %v4939_v63 = vld [vmem:[#allocation13 + $0x18] sm:$0xff]  ;;  %v4941_v27 = vld [vmem:[#allocation13 + $0x90] sm:$0xff] }
 0xd7b   :  { %3772 = vmatpush.msrb.mxu0 %v4897_v22  ;;  %3818 = vmatpush.msrb.mxu1 %v4898_v30  ;;  %v4940_v10 = vld [vmem:[#allocation13 + $0x118] sm:$0xff]  ;;  %v4942_v28 = vld [vmem:[#allocation13 + $0x190] sm:$0xff] }
 0xd7c   :  { %3749 = vmatpush.msra.mxu3 %v4899_v33  ;;  %3795 = vmatpush.msra.mxu2 %v4900_v39  ;;  %v4943_v22 = vld [vmem:[#allocation13 + $0x10] sm:$0xff]  ;;  %v4945_v33 = vld [vmem:[#allocation13 + $0x88] sm:$0xff] }
 0xd7d   :  { %3642 = vmatmul.f32.gmra.mxu3 %v5993_v17  ;;  %3665 = vmatmul.f32.gmra.mxu0 %v5993_v17  ;;  %v4944_v30 = vld [vmem:[#allocation13 + $0x110] sm:$0xff]  ;;  %v4946_v39 = vld [vmem:[#allocation13 + $0x188] sm:$0xff] }
 0xd7e   :  { %3688 = vmatmul.f32.gmra.mxu2 %v5993_v17  ;;  %3711 = vmatmul.f32.gmra.mxu1 %v5993_v17 }
 0xd7f   :  { %3773 = vmatpush.msrb.mxu0 %v4901_v35  ;;  %3819 = vmatpush.msrb.mxu1 %v4902_v40  ;;  %v4947_v35 = vld [vmem:[#allocation13 + $0x8] sm:$0xff] }
 0xd80   :  { %3750 = vmatpush.msra.mxu3 %v4903_v47  ;;  %3796 = vmatpush.msra.mxu2 %v4904_v51  ;;  %v4948_v40 = vld [vmem:[#allocation13 + $0x108] sm:$0xff]  ;;  %v4949_v47 = vld [vmem:[#allocation13 + $0x80] sm:$0xff] }
 0xd81   :  { %3774 = vmatpush.msrb.mxu0 %v4905_v38  ;;  %3820 = vmatpush.msrb.mxu1 %v4906_v54  ;;  %v4950_v51 = vld [vmem:[#allocation13 + $0x180] sm:$0xff]  ;;  %v4951_v38 = vld [vmem:[#allocation13 + $0x2f8] sm:$0xff] }
 0xd82   :  { %3751 = vmatpush.msra.mxu3 %v4907_v13  ;;  %3797 = vmatpush.msra.mxu2 %v4908_v25  ;;  %v4952_v54 = vld [vmem:[#allocation13 + $0x3f8] sm:$0xff]  ;;  %v4953_v13 = vld [vmem:[#allocation13] sm:$0xff] }
 0xd83   :  { %3775 = vmatpush.msrb.mxu0 %v4909_v55  ;;  %3821 = vmatpush.msrb.mxu1 %v4910_v34  ;;  %v4954_v25 = vld [vmem:[#allocation13 + $0x100] sm:$0xff]  ;;  %v4955_v55 = vld [vmem:[#allocation13 + $0x2f0] sm:$0xff] }
 0xd84   :  { %3752 = vmatpush.msra.mxu3 %v4911_v32  ;;  %3798 = vmatpush.msra.mxu2 %v4912_v57  ;;  %v4956_v34 = vld [vmem:[#allocation13 + $0x3f0] sm:$0xff]  ;;  %v4957_v32 = vld [vmem:[#allocation13 + $0x278] sm:$0xff] }
 0xd85   :  { %3776 = vmatpush.msrb.mxu0 %v4913_v26  ;;  %3822 = vmatpush.msrb.mxu1 %v4914_v50  ;;  %v4958_v57 = vld [vmem:[#allocation13 + $0x378] sm:$0xff]  ;;  %v4959_v26 = vld [vmem:[#allocation13 + $0x2e8] sm:$0xff] }
 0xd86   :  { %3753 = vmatpush.msra.mxu3 %v4915_v62  ;;  %3799 = vmatpush.msra.mxu2 %v4916_v53  ;;  %v4960_v50 = vld [vmem:[#allocation13 + $0x3e8] sm:$0xff]  ;;  %v4961_v62 = vld [vmem:[#allocation13 + $0x270] sm:$0xff] }
 0xd87   :  { %3777 = vmatpush.msrb.mxu0 %v4917_v52  ;;  %3823 = vmatpush.msrb.mxu1 %v4918_v3  ;;  %v4962_v53 = vld [vmem:[#allocation13 + $0x370] sm:$0xff]  ;;  %v4963_v52 = vld [vmem:[#allocation13 + $0x2e0] sm:$0xff] }
 0xd88   :  { %3754 = vmatpush.msra.mxu3 %v4919_v4  ;;  %3800 = vmatpush.msra.mxu2 %v4920_v61  ;;  %v4964_v3 = vld [vmem:[#allocation13 + $0x3e0] sm:$0xff]  ;;  %v4965_v4 = vld [vmem:[#allocation13 + $0x268] sm:$0xff] }
 0xd89   :  { %3778 = vmatpush.msrb.mxu0 %v4921_v21  ;;  %3824 = vmatpush.msrb.mxu1 %v4922_v5  ;;  %v4966_v61 = vld [vmem:[#allocation13 + $0x368] sm:$0xff]  ;;  %v4967_v21 = vld [vmem:[#allocation13 + $0x2d8] sm:$0xff] }
 0xd8a   :  { %3755 = vmatpush.msra.mxu3 %v4923_v18  ;;  %3801 = vmatpush.msra.mxu2 %v4924_v16  ;;  %v4968_v5 = vld [vmem:[#allocation13 + $0x3d8] sm:$0xff]  ;;  %v4969_v18 = vld [vmem:[#allocation13 + $0x260] sm:$0xff] }
 0xd8b   :  { %3779 = vmatpush.msrb.mxu0 %v4925_v9  ;;  %3825 = vmatpush.msrb.mxu1 %v4926_v59  ;;  %v4970_v16 = vld [vmem:[#allocation13 + $0x360] sm:$0xff]  ;;  %v4971_v9 = vld [vmem:[#allocation13 + $0x2d0] sm:$0xff] }
 0xd8c   :  { %3756 = vmatpush.msra.mxu3 %v4927_v29  ;;  %3802 = vmatpush.msra.mxu2 %v4928_v1  ;;  %v4972_v59 = vld [vmem:[#allocation13 + $0x3d0] sm:$0xff]  ;;  %v4973_v29 = vld [vmem:[#allocation13 + $0x258] sm:$0xff] }
 0xd8d   :  { %3780 = vmatpush.msrb.mxu0 %v4929_v15  ;;  %3826 = vmatpush.msrb.mxu1 %v4930_v7  ;;  %v4974_v1 = vld [vmem:[#allocation13 + $0x358] sm:$0xff]  ;;  %v4975_v15 = vld [vmem:[#allocation13 + $0x2c8] sm:$0xff] }
 0xd8e   :  { %3757 = vmatpush.msra.mxu3 %v4931_v48  ;;  %3803 = vmatpush.msra.mxu2 %v4932_v14  ;;  %v4976_v7 = vld [vmem:[#allocation13 + $0x3c8] sm:$0xff]  ;;  %v4977_v48 = vld [vmem:[#allocation13 + $0x250] sm:$0xff] }
 0xd8f   :  { %3781 = vmatpush.msrb.mxu0 %v4933_v60  ;;  %3827 = vmatpush.msrb.mxu1 %v4934_v20  ;;  %v4978_v14 = vld [vmem:[#allocation13 + $0x350] sm:$0xff]  ;;  %v4979_v60 = vld [vmem:[#allocation13 + $0x2c0] sm:$0xff] }
 0xd90   :  { %3758 = vmatpush.msra.mxu3 %v4935_v19  ;;  %3804 = vmatpush.msra.mxu2 %v4936_v56  ;;  %v4980_v20 = vld [vmem:[#allocation13 + $0x3c0] sm:$0xff]  ;;  %v4981_v19 = vld [vmem:[#allocation13 + $0x248] sm:$0xff] }
 0xd91   :  { %3782 = vmatpush.msrb.mxu0 %v4937_v23  ;;  %3828 = vmatpush.msrb.mxu1 %v4938_v31  ;;  %v4982_v56 = vld [vmem:[#allocation13 + $0x348] sm:$0xff]  ;;  %v4983_v23 = vld [vmem:[#allocation13 + $0x2b8] sm:$0xff] }
 0xd92   :  { %3759 = vmatpush.msra.mxu3 %v4939_v63  ;;  %3805 = vmatpush.msra.mxu2 %v4940_v10  ;;  %v4984_v31 = vld [vmem:[#allocation13 + $0x3b8] sm:$0xff]  ;;  %v4985_v63 = vld [vmem:[#allocation13 + $0x240] sm:$0xff] }
 0xd93   :  { %3783 = vmatpush.msrb.mxu0 %v4941_v27  ;;  %3829 = vmatpush.msrb.mxu1 %v4942_v28  ;;  %v4986_v10 = vld [vmem:[#allocation13 + $0x340] sm:$0xff]  ;;  %v4987_v27 = vld [vmem:[#allocation13 + $0x2b0] sm:$0xff] }
 0xd94   :  { %3760 = vmatpush.msra.mxu3 %v4943_v22  ;;  %3806 = vmatpush.msra.mxu2 %v4944_v30  ;;  %v4988_v28 = vld [vmem:[#allocation13 + $0x3b0] sm:$0xff] }
 0xd95   :  { %3784 = vmatpush.msrb.mxu0 %v4945_v33  ;;  %3830 = vmatpush.msrb.mxu1 %v4946_v39  ;;  %v4989_v33 = vld [vmem:[#allocation13 + $0x238] sm:$0xff] }
 0xd96   :  { %3761 = vmatpush.msra.mxu3 %v4947_v35  ;;  %3807 = vmatpush.msra.mxu2 %v4948_v40  ;;  %v4990_v39 = vld [vmem:[#allocation13 + $0x338] sm:$0xff]  ;;  %v4991_v35 = vld [vmem:[#allocation13 + $0x2a8] sm:$0xff] }
 0xd97   :  { %3785 = vmatpush.msrb.mxu0 %v4949_v47  ;;  %3831 = vmatpush.msrb.mxu1 %v4950_v51  ;;  %v4992_v40 = vld [vmem:[#allocation13 + $0x3a8] sm:$0xff]  ;;  %v4993_v47 = vld [vmem:[#allocation13 + $0x230] sm:$0xff] }
 0xd98   :  { %3762 = vmatpush.msra.mxu3 %v4953_v13  ;;  %3808 = vmatpush.msra.mxu2 %v4954_v25  ;;  %v4994_v51 = vld [vmem:[#allocation13 + $0x330] sm:$0xff]  ;;  %v4995_v13 = vld [vmem:[#allocation13 + $0x2a0] sm:$0xff] }
 0xd99   :  { %3862 = vmatpush.msra.mxu0 %v4951_v38  ;;  %3908 = vmatpush.msra.mxu1 %v4952_v54  ;;  %v4996_v25 = vld [vmem:[#allocation13 + $0x3a0] sm:$0xff] }
 0xd9a   :  { %3839 = vmatpush.msrb.mxu3 %v4957_v32  ;;  %3885 = vmatpush.msrb.mxu2 %v4958_v57  ;;  %v4999_v32 = vld [vmem:[#allocation13 + $0x298] sm:$0xff] }
 0xd9b   :  { %3863 = vmatpush.msra.mxu0 %v4955_v55  ;;  %3909 = vmatpush.msra.mxu1 %v4956_v34  ;;  %v4997_v55 = vld [vmem:[#allocation13 + $0x228] sm:$0xff]  ;;  %v5000_v57 = vld [vmem:[#allocation13 + $0x398] sm:$0xff] }
 0xd9c   :  { %3840 = vmatpush.msrb.mxu3 %v4961_v62  ;;  %3886 = vmatpush.msrb.mxu2 %v4962_v53  ;;  %v4998_v34 = vld [vmem:[#allocation13 + $0x328] sm:$0xff]  ;;  %v5001_v62 = vld [vmem:[#allocation13 + $0x220] sm:$0xff] }
 0xd9d   :  { %3864 = vmatpush.msra.mxu0 %v4959_v26  ;;  %3910 = vmatpush.msra.mxu1 %v4960_v50  ;;  %v5002_v53 = vld [vmem:[#allocation13 + $0x320] sm:$0xff] }
 0xd9e   :  { %3841 = vmatpush.msrb.mxu3 %v4965_v4  ;;  %3887 = vmatpush.msrb.mxu2 %v4966_v61 }
 0xd9f   :  { %3865 = vmatpush.msra.mxu0 %v4963_v52  ;;  %3911 = vmatpush.msra.mxu1 %v4964_v3  ;;  %v5003_v52 = vld [vmem:[#allocation13 + $0x290] sm:$0xff] }
 0xda0   :  { %3842 = vmatpush.msrb.mxu3 %v4969_v18  ;;  %3888 = vmatpush.msrb.mxu2 %v4970_v16  ;;  %v5004_v3 = vld [vmem:[#allocation13 + $0x390] sm:$0xff]  ;;  %v5007_v18 = vld [vmem:[#allocation13 + $0x288] sm:$0xff] }
 0xda1   :  { %3866 = vmatpush.msra.mxu0 %v4967_v21  ;;  %3912 = vmatpush.msra.mxu1 %v4968_v5  ;;  %v5005_v21 = vld [vmem:[#allocation13 + $0x218] sm:$0xff]  ;;  %v5008_v16 = vld [vmem:[#allocation13 + $0x388] sm:$0xff] }
 0xda2   :  { %3843 = vmatpush.msrb.mxu3 %v4973_v29  ;;  %3889 = vmatpush.msrb.mxu2 %v4974_v1  ;;  %v5006_v5 = vld [vmem:[#allocation13 + $0x318] sm:$0xff] }
 0xda3   :  { %3867 = vmatpush.msra.mxu0 %v4971_v9  ;;  %3913 = vmatpush.msra.mxu1 %v4972_v59 }
 0xda4   :  { %3844 = vmatpush.msrb.mxu3 %v4977_v48  ;;  %3890 = vmatpush.msrb.mxu2 %v4978_v14  ;;  %v5011_v48 = vld [vmem:[#allocation13 + $0x4f8] sm:$0xff] }
 0xda5   :  { %3868 = vmatpush.msra.mxu0 %v4975_v15  ;;  %3914 = vmatpush.msra.mxu1 %v4976_v7  ;;  %v5009_v15 = vld [vmem:[#allocation13 + $0x280] sm:$0xff]  ;;  %v5012_v14 = vld [vmem:[#allocation13 + $0x5f8] sm:$0xff] }
 0xda6   :  { %3845 = vmatpush.msrb.mxu3 %v4981_v19  ;;  %3891 = vmatpush.msrb.mxu2 %v4982_v56  ;;  %v3387_v22 = vpop.f32.mrf.mxu0  ;;  %v5010_v7 = vld [vmem:[#allocation13 + $0x380] sm:$0xff] }
 0xda7   :  { %3869 = vmatpush.msra.mxu0 %v4979_v60  ;;  %3915 = vmatpush.msra.mxu1 %v4980_v20  ;;  %v3433_v30 = vpop.f32.mrf.mxu1  ;;  %v3388_v38 = vadd.f32 %v3387_v22, %v5779_v0  ;;  %v5013_v60 = vld [vmem:[#allocation13 + $0x210] sm:$0xff]  ;;  %v5019_v22 = vld [vmem:[#allocation13 + $0x4e8] sm:$0xff] }
 0xda8   :  { %3846 = vmatpush.msrb.mxu3 %v4985_v63  ;;  %3892 = vmatpush.msrb.mxu2 %v4986_v10  ;;  %v3434_v54 = vadd.f32 %v3433_v30, %v5782_v2  ;;  %v5014_v20 = vld [vmem:[#allocation13 + $0x310] sm:$0xff]  ;;  %v5020_v30 = vld [vmem:[#allocation13 + $0x5e8] sm:$0xff] }
 0xda9   :  { %3870 = vmatpush.msra.mxu0 %v4983_v23  ;;  %3916 = vmatpush.msra.mxu1 %v4984_v31  ;;  %v3716_v26 = vmax.f32 %v3388_v38, 0.0  ;;  %v5015_v63 = vld [vmem:[#allocation13 + $0x4f0] sm:$0xff]  ;;  %v5025_v38 = vld [vmem:[#allocation13 + $0x578] sm:$0xff] }
 0xdaa   :  { %3847 = vmatpush.msrb.mxu3 %v4989_v33  ;;  %3893 = vmatpush.msrb.mxu2 %v4990_v39  ;;  %v3718_v50 = vmax.f32 %v3434_v54, 0.0  ;;  %v5016_v10 = vld [vmem:[#allocation13 + $0x5f0] sm:$0xff]  ;;  %v5026_v54 = vld [vmem:[#allocation13 + $0x5e0] sm:$0xff] }
 0xdab   :  { %3871 = vmatpush.msra.mxu0 %v4987_v27  ;;  %3917 = vmatpush.msra.mxu1 %v4988_v28  ;;  %v5017_v27 = vld [vmem:[#allocation13 + $0x208] sm:$0xff] }
 0xdac   :  { %3848 = vmatpush.msrb.mxu3 %v4993_v47  ;;  %3894 = vmatpush.msrb.mxu2 %v4994_v51  ;;  %v3364_v4 = vpop.f32.mrf.mxu3  ;;  %v5018_v28 = vld [vmem:[#allocation13 + $0x308] sm:$0xff]  ;;  %v5023_v47 = vld [vmem:[#allocation13 + $0x478] sm:$0xff]  ;;  %v5024_v51 = vld [vmem:[#allocation13 + $0x4e0] sm:$0xff] }
 0xdad   :  { %3872 = vmatpush.msra.mxu0 %v4991_v35  ;;  %3918 = vmatpush.msra.mxu1 %v4992_v40  ;;  %v3410_v61 = vpop.f32.mrf.mxu2  ;;  %v3365_v9 = vadd.f32 %v3364_v4, %v5787_v6  ;;  %v5021_v35 = vld [vmem:[#allocation13 + $0x200] sm:$0xff]  ;;  %v5033_v4 = vld [vmem:[#allocation13 + $0x568] sm:$0xff] }
 0xdae   :  { %3849 = vmatpush.msrb.mxu3 %v4997_v55  ;;  %3895 = vmatpush.msrb.mxu2 %v4998_v34  ;;  %v3411_v59 = vadd.f32 %v3410_v61, %v5790_v24  ;;  %v5034_v61 = vld [vmem:[#allocation13 + $0x5d0] sm:$0xff] }
 0xdaf   :  { %3873 = vmatpush.msra.mxu0 %v4995_v13  ;;  %3919 = vmatpush.msra.mxu1 %v4996_v25  ;;  %v3715_v23 = vmax.f32 %v3365_v9, 0.0  ;;  %v5037_v9 = vld [vmem:[#allocation13 + $0x560] sm:$0xff] }
 0xdb0   :  { %3850 = vmatpush.msrb.mxu3 %v5001_v62  ;;  %3896 = vmatpush.msrb.mxu2 %v5002_v53  ;;  %v3390_v29 = vpop.f32.mrf.mxu0  ;;  %v3717_v31 = vmax.f32 %v3411_v59, 0.0  ;;  %v5038_v59 = vld [vmem:[#allocation13 + $0x5c8] sm:$0xff] }
 0xdb1   :  { %3874 = vmatpush.msra.mxu0 %v4999_v32  ;;  %3920 = vmatpush.msra.mxu1 %v5000_v57  ;;  %v3436_v1 = vpop.f32.mrf.mxu1  ;;  %v3391_v19 = vadd.f32 %v3390_v29, %v5779_v0  ;;  %v5022_v0 = vld [vmem:[#allocation13 + $0x300] sm:$0xff]  ;;  %v5027_v32 = vld [vmem:[#allocation13 + $0x470] sm:$0xff]  ;;  %v5028_v57 = vld [vmem:[#allocation13 + $0x4d8] sm:$0xff] }
 0xdb2   :  { %3851 = vmatpush.msrb.mxu3 %v5005_v21  ;;  %3897 = vmatpush.msrb.mxu2 %v5006_v5  ;;  %v3437_v56 = vadd.f32 %v3436_v1, %v5782_v2  ;;  %v5035_v21 = vld [vmem:[#allocation13 + $0x460] sm:$0xff]  ;;  %v5036_v5 = vld [vmem:[#allocation13 + $0x4c8] sm:$0xff] }
 0xdb3   :  { %3875 = vmatpush.msra.mxu0 %v5003_v52  ;;  %3921 = vmatpush.msra.mxu1 %v5004_v3  ;;  %v3732_v33 = vmax.f32 %v3391_v19, 0.0  ;;  %v5031_v3 = vld [vmem:[#allocation13 + $0x468] sm:$0xff] }
 0xdb4   :  { %3786 = vmatmul.f32.vlgmr.msrb.gmra.mxu0 %v3716_v26  ;;  %3832 = vmatmul.f32.vlgmr.msrb.gmra.mxu1 %v3718_v50  ;;  %v3734_v39 = vmax.f32 %v3437_v56, 0.0  ;;  %v5029_v26 = vld [vmem:[#allocation13 + $0x570] sm:$0xff]  ;;  %v5030_v50 = vld [vmem:[#allocation13 + $0x5d8] sm:$0xff] }
 0xdb5   :  { %3876 = vmatpush.msra.mxu0 %v5007_v18  ;;  %3922 = vmatpush.msra.mxu1 %v5008_v16 }
 0xdb6   :  { %3852 = vmatpush.msrb.mxu3 %v5013_v60  ;;  %3898 = vmatpush.msrb.mxu2 %v5014_v20  ;;  %v3367_v2 = vpop.f32.mrf.mxu3 }
 0xdb7   :  { %3877 = vmatpush.msra.mxu0 %v5009_v15  ;;  %3923 = vmatpush.msra.mxu1 %v5010_v7  ;;  %v3413_v40 = vpop.f32.mrf.mxu2  ;;  %v3368_v13 = vadd.f32 %v3367_v2, %v5787_v6  ;;  %v5039_v15 = vld [vmem:[#allocation13 + $0x458] sm:$0xff]  ;;  %v5040_v7 = vld [vmem:[#allocation13 + $0x4c0] sm:$0xff] }
 0xdb8   :  { %3853 = vmatpush.msrb.mxu3 %v5017_v27  ;;  %3899 = vmatpush.msrb.mxu2 %v5018_v28  ;;  %v3414_v25 = vadd.f32 %v3413_v40, %v5790_v24  ;;  %v5032_v24 = vld [vmem:[#allocation13 + $0x4d0] sm:$0xff]  ;;  %v5051_v2 = vld [vmem:[#allocation13 + $0x440] sm:$0xff]  ;;  %v5052_v40 = vld [vmem:[#allocation13 + $0x4a8] sm:$0xff] }
 0xdb9   :  { %3954 = vmatpush.msrb.mxu0 %v5011_v48  ;;  %4000 = vmatpush.msrb.mxu1 %v5012_v14  ;;  %v3731_v52 = vmax.f32 %v3368_v13, 0.0  ;;  %v5041_v48 = vld [vmem:[#allocation13 + $0x558] sm:$0xff]  ;;  %v5042_v14 = vld [vmem:[#allocation13 + $0x5c0] sm:$0xff] }
 0xdba   :  { %3854 = vmatpush.msrb.mxu3 %v5021_v35  ;;  %3900 = vmatpush.msrb.mxu2 %v5022_v0  ;;  %v3479_v55 = vpop.f32.mrf.mxu0  ;;  %v3733_v6 = vmax.f32 %v3414_v25, 0.0  ;;  %v5049_v35 = vld [vmem:[#allocation13 + $0x548] sm:$0xff]  ;;  %v5050_v0 = vld [vmem:[#allocation13 + $0x5b0] sm:$0xff]  ;;  %v5055_v13 = vld [vmem:[#allocation13 + $0x438] sm:$0xff] }
 0xdbb   :  { %3955 = vmatpush.msrb.mxu0 %v5015_v63  ;;  %4001 = vmatpush.msrb.mxu1 %v5016_v10  ;;  %v3525_v34 = vpop.f32.mrf.mxu1  ;;  %v3480_v62 = vadd.f32 %v3479_v55, %v5797_v46  ;;  %v5045_v63 = vld [vmem:[#allocation13 + $0x550] sm:$0xff]  ;;  %v5046_v10 = vld [vmem:[#allocation13 + $0x5b8] sm:$0xff]  ;;  %v5056_v25 = vld [vmem:[#allocation13 + $0x4a0] sm:$0xff] }
 0xdbc   :  { %3763 = vmatmul.f32.vlgmr.msra.gmra.mxu3 %v3715_v23  ;;  %3809 = vmatmul.f32.vlgmr.msra.gmra.mxu2 %v3717_v31  ;;  %v3526_v53 = vadd.f32 %v3525_v34, %v5800_v8  ;;  %v5043_v23 = vld [vmem:[#allocation13 + $0x450] sm:$0xff]  ;;  %v5044_v31 = vld [vmem:[#allocation13 + $0x4b8] sm:$0xff]  ;;  %v5058_v34 = vld [vmem:[#allocation13 + $0x5a0] sm:$0xff] }
 0xdbd   :  { %3956 = vmatpush.msrb.mxu0 %v5019_v22  ;;  %4002 = vmatpush.msrb.mxu1 %v5020_v30  ;;  %v3720_v18 = vmax.f32 %v3480_v62, 0.0  ;;  %v5057_v55 = vld [vmem:[#allocation13 + $0x538] sm:$0xff] }
 0xdbe   :  { %3931 = vmatpush.msra.mxu3 %v5023_v47  ;;  %3977 = vmatpush.msra.mxu2 %v5025_v38  ;;  %v3722_v16 = vmax.f32 %v3526_v53, 0.0  ;;  %v5053_v38 = vld [vmem:[#allocation13 + $0x540] sm:$0xff]  ;;  %v5060_v62 = vld [vmem:[#allocation13 + $0x498] sm:$0xff] }
 0xdbf   :  { %3957 = vmatpush.msrb.mxu0 %v5024_v51  ;;  %4003 = vmatpush.msrb.mxu1 %v5026_v54 }
 0xdc0   :  { %3789 = vmatmul.f32.gmra.mxu0 %v3732_v33  ;;  %3835 = vmatmul.f32.gmra.mxu1 %v3734_v39  ;;  %v3456_v29 = vpop.f32.mrf.mxu3  ;;  %v5047_v33 = vld [vmem:[#allocation13 + $0x448] sm:$0xff]  ;;  %v5048_v39 = vld [vmem:[#allocation13 + $0x4b0] sm:$0xff] }
 0xdc1   :  { %3932 = vmatpush.msra.mxu3 %v5027_v32  ;;  %3958 = vmatpush.msrb.mxu0 %v5028_v57  ;;  %v3502_v1 = vpop.f32.mrf.mxu2  ;;  %v3457_v60 = vadd.f32 %v3456_v29, %v5807_v45 }
 0xdc2   :  { %3978 = vmatpush.msra.mxu2 %v5029_v26  ;;  %4004 = vmatpush.msrb.mxu1 %v5030_v50  ;;  %v3503_v20 = vadd.f32 %v3502_v1, %v5810_v49  ;;  %v5059_v50 = vld [vmem:[#allocation13 + $0x430] sm:$0xff] }
 0xdc3   :  { %3933 = vmatpush.msra.mxu3 %v5031_v3  ;;  %3959 = vmatpush.msrb.mxu0 %v5032_v24  ;;  %v3719_v22 = vmax.f32 %v3457_v60, 0.0  ;;  %v5073_v60 = vld [vmem:[#allocation13 + $0x518] sm:$0xff] }
 0xdc4   :  { %3979 = vmatpush.msra.mxu2 %v5033_v4  ;;  %4005 = vmatpush.msrb.mxu1 %v5034_v61  ;;  %v3482_v19 = vpop.f32.mrf.mxu0  ;;  %v3721_v30 = vmax.f32 %v3503_v20, 0.0  ;;  %v5063_v4 = vld [vmem:[#allocation13 + $0x428] sm:$0xff]  ;;  %v5064_v61 = vld [vmem:[#allocation13 + $0x490] sm:$0xff]  ;;  %v5074_v20 = vld [vmem:[#allocation13 + $0x580] sm:$0xff] }
 0xdc5   :  { %3934 = vmatpush.msra.mxu3 %v5035_v21  ;;  %3960 = vmatpush.msrb.mxu0 %v5036_v5  ;;  %v3528_v56 = vpop.f32.mrf.mxu1  ;;  %v3483_v27 = vadd.f32 %v3482_v19, %v5797_v46  ;;  %v5054_v46 = vld [vmem:[#allocation13 + $0x5a8] sm:$0xff]  ;;  %v5066_v21 = vld [vmem:[#allocation13 + $0x590] sm:$0xff]  ;;  %v5075_v19 = vld [vmem:[#allocation13 + $0x6f8] sm:$0xff] }
 0xdc6   :  { %3980 = vmatpush.msra.mxu2 %v5037_v9  ;;  %4006 = vmatpush.msrb.mxu1 %v5038_v59  ;;  %v3529_v28 = vadd.f32 %v3528_v56, %v5800_v8  ;;  %v5069_v9 = vld [vmem:[#allocation13 + $0x520] sm:$0xff]  ;;  %v5070_v59 = vld [vmem:[#allocation13 + $0x588] sm:$0xff]  ;;  %v5076_v56 = vld [vmem:[#allocation13 + $0x7f8] sm:$0xff] }
 0xdc7   :  { %3766 = vmatmul.f32.gmra.mxu3 %v3731_v52  ;;  %3812 = vmatmul.f32.gmra.mxu2 %v3733_v6  ;;  %v3736_v47 = vmax.f32 %v3483_v27, 0.0  ;;  %v5061_v52 = vld [vmem:[#allocation13 + $0x530] sm:$0xff]  ;;  %v5062_v6 = vld [vmem:[#allocation13 + $0x598] sm:$0xff] }
 0xdc8   :  { %3935 = vmatpush.msra.mxu3 %v5039_v15  ;;  %3961 = vmatpush.msrb.mxu0 %v5040_v7  ;;  %v3738_v51 = vmax.f32 %v3529_v28, 0.0  ;;  %v5071_v15 = vld [vmem:[#allocation13 + $0x418] sm:$0xff]  ;;  %v5072_v7 = vld [vmem:[#allocation13 + $0x480] sm:$0xff]  ;;  %v5078_v28 = vld [vmem:[#allocation13 + $0x510] sm:$0xff] }
 0xdc9   :  { %3981 = vmatpush.msra.mxu2 %v5041_v48  ;;  %4007 = vmatpush.msrb.mxu1 %v5042_v14 }
 0xdca   :  { %3878 = vmatmul.f32.vlgmr.msra.gmra.mxu0 %v3720_v18  ;;  %3924 = vmatmul.f32.vlgmr.msra.gmra.mxu1 %v3722_v16  ;;  %v3459_v8 = vpop.f32.mrf.mxu3  ;;  %v5067_v18 = vld [vmem:[#allocation13 + $0x420] sm:$0xff]  ;;  %v5068_v16 = vld [vmem:[#allocation13 + $0x488] sm:$0xff] }
 0xdcb   :  { %3936 = vmatpush.msra.mxu3 %v5043_v23  ;;  %3962 = vmatpush.msrb.mxu0 %v5044_v31  ;;  %v3505_v54 = vpop.f32.mrf.mxu2  ;;  %v3460_v32 = vadd.f32 %v3459_v8, %v5807_v45  ;;  %v5077_v23 = vld [vmem:[#allocation13 + $0x410] sm:$0xff]  ;;  %v5087_v8 = vld [vmem:[#allocation13 + $0x678] sm:$0xff] }
 0xdcc   :  { %3982 = vmatpush.msra.mxu2 %v5045_v63  ;;  %4008 = vmatpush.msrb.mxu1 %v5046_v10  ;;  %v3506_v57 = vadd.f32 %v3505_v54, %v5810_v49  ;;  %v5065_v49 = vld [vmem:[#allocation13 + $0x528] sm:$0xff]  ;;  %v5088_v54 = vld [vmem:[#allocation13 + $0x6e0] sm:$0xff] }
 0xdcd   :  { %3937 = vmatpush.msra.mxu3 %v5047_v33  ;;  %3963 = vmatpush.msrb.mxu0 %v5048_v39  ;;  %v3735_v3 = vmax.f32 %v3460_v32, 0.0  ;;  %v5081_v33 = vld [vmem:[#allocation13 + $0x408] sm:$0xff]  ;;  %v5091_v32 = vld [vmem:[#allocation13 + $0x670] sm:$0xff] }
 0xdce   :  { %3983 = vmatpush.msra.mxu2 %v5049_v35  ;;  %4009 = vmatpush.msrb.mxu1 %v5050_v0  ;;  %v3737_v24 = vmax.f32 %v3506_v57, 0.0  ;;  %v5082_v39 = vld [vmem:[#allocation13 + $0x508] sm:$0xff]  ;;  %v5092_v57 = vld [vmem:[#allocation13 + $0x6d8] sm:$0xff] }
 0xdcf   :  { %3938 = vmatpush.msra.mxu3 %v5051_v2  ;;  %3964 = vmatpush.msrb.mxu0 %v5052_v40 }
 0xdd0   :  { %3984 = vmatpush.msra.mxu2 %v5053_v38  ;;  %4010 = vmatpush.msrb.mxu1 %v5054_v46  ;;  %v3571_v26 = vpop.f32.mrf.mxu0  ;;  %v5085_v38 = vld [vmem:[#allocation13 + $0x400] sm:$0xff] }
 0xdd1   :  { %3855 = vmatmul.f32.vlgmr.msrb.gmra.mxu3 %v3719_v22  ;;  %3901 = vmatmul.f32.vlgmr.msrb.gmra.mxu2 %v3721_v30  ;;  %v3617_v53 = vpop.f32.mrf.mxu1  ;;  %v3572_v45 = vadd.f32 %v3571_v26, %v5821_v41  ;;  %v5079_v22 = vld [vmem:[#allocation13 + $0x6f0] sm:$0xff]  ;;  %v5086_v46 = vld [vmem:[#allocation13 + $0x500] sm:$0xff] }
 0xdd2   :  { %3939 = vmatpush.msra.mxu3 %v5055_v13  ;;  %3965 = vmatpush.msrb.mxu0 %v5056_v25  ;;  %v3618_v5 = vadd.f32 %v3617_v53, %v5824_v37  ;;  %v5080_v30 = vld [vmem:[#allocation13 + $0x7f0] sm:$0xff] }
 0xdd3   :  { %3985 = vmatpush.msra.mxu2 %v5057_v55  ;;  %4011 = vmatpush.msrb.mxu1 %v5058_v34  ;;  %v3724_v29 = vmax.f32 %v3572_v45, 0.0  ;;  %v5089_v55 = vld [vmem:[#allocation13 + $0x778] sm:$0xff]  ;;  %v5093_v26 = vld [vmem:[#allocation13 + $0x770] sm:$0xff]  ;;  %v5099_v45 = vld [vmem:[#allocation13 + $0x660] sm:$0xff] }
 0xdd4   :  { %3881 = vmatmul.f32.gmra.mxu0 %v3736_v47  ;;  %3927 = vmatmul.f32.gmra.mxu1 %v3738_v51  ;;  %v3726_v1 = vmax.f32 %v3618_v5, 0.0  ;;  %v5083_v47 = vld [vmem:[#allocation13 + $0x6e8] sm:$0xff]  ;;  %v5104_v5 = vld [vmem:[#allocation13 + $0x6c0] sm:$0xff] }
 0xdd5   :  { %3940 = vmatpush.msra.mxu3 %v5059_v50  ;;  %3966 = vmatpush.msrb.mxu0 %v5060_v62  ;;  %v5084_v51 = vld [vmem:[#allocation13 + $0x7e8] sm:$0xff]  ;;  %v5094_v50 = vld [vmem:[#allocation13 + $0x7d8] sm:$0xff] }
 0xdd6   :  { %3986 = vmatpush.msra.mxu2 %v5061_v52  ;;  %4012 = vmatpush.msrb.mxu1 %v5062_v6  ;;  %v3548_v48 = vpop.f32.mrf.mxu3  ;;  %v5095_v52 = vld [vmem:[#allocation13 + $0x668] sm:$0xff]  ;;  %v5096_v6 = vld [vmem:[#allocation13 + $0x6d0] sm:$0xff] }
 0xdd7   :  { %3941 = vmatpush.msra.mxu3 %v5063_v4  ;;  %3967 = vmatpush.msrb.mxu0 %v5064_v61  ;;  %v3594_v14 = vpop.f32.mrf.mxu2  ;;  %v3549_v31 = vadd.f32 %v3548_v48, %v5829_v11  ;;  %v5113_v48 = vld [vmem:[#allocation13 + $0x748] sm:$0xff] }
 0xdd8   :  { %3987 = vmatpush.msra.mxu2 %v5065_v49  ;;  %4013 = vmatpush.msrb.mxu1 %v5066_v21  ;;  %v3595_v63 = vadd.f32 %v3594_v14, %v5832_v12  ;;  %v5100_v49 = vld [vmem:[#allocation13 + $0x6c8] sm:$0xff]  ;;  %v5101_v21 = vld [vmem:[#allocation13 + $0x760] sm:$0xff]  ;;  %v5114_v14 = vld [vmem:[#allocation13 + $0x7b0] sm:$0xff] }
 0xdd9   :  { %3942 = vmatpush.msra.mxu3 %v5067_v18  ;;  %3968 = vmatpush.msrb.mxu0 %v5068_v16  ;;  %v3723_v2 = vmax.f32 %v3549_v31, 0.0  ;;  %v5105_v18 = vld [vmem:[#allocation13 + $0x758] sm:$0xff]  ;;  %v5106_v16 = vld [vmem:[#allocation13 + $0x7c0] sm:$0xff]  ;;  %v5118_v31 = vld [vmem:[#allocation13 + $0x7a8] sm:$0xff] }
 0xdda   :  { %3988 = vmatpush.msra.mxu2 %v5069_v9  ;;  %4014 = vmatpush.msrb.mxu1 %v5070_v59  ;;  %v3574_v10 = vpop.f32.mrf.mxu0  ;;  %v3725_v40 = vmax.f32 %v3595_v63, 0.0  ;;  %v5107_v9 = vld [vmem:[#allocation13 + $0x650] sm:$0xff]  ;;  %v5108_v59 = vld [vmem:[#allocation13 + $0x6b8] sm:$0xff] }
 0xddb   :  { %3858 = vmatmul.f32.gmra.mxu3 %v3735_v3  ;;  %3904 = vmatmul.f32.gmra.mxu2 %v3737_v24  ;;  %v3620_v27 = vpop.f32.mrf.mxu1  ;;  %v3575_v35 = vadd.f32 %v3574_v10, %v5821_v41  ;;  %v5090_v41 = vld [vmem:[#allocation13 + $0x7e0] sm:$0xff]  ;;  %v5097_v3 = vld [vmem:[#allocation13 + $0x768] sm:$0xff]  ;;  %v5098_v24 = vld [vmem:[#allocation13 + $0x7d0] sm:$0xff] }
 0xddc   :  { %3943 = vmatpush.msra.mxu3 %v5071_v15  ;;  %3969 = vmatpush.msrb.mxu0 %v5072_v7  ;;  %v3621_v0 = vadd.f32 %v3620_v27, %v5824_v37  ;;  %v5111_v15 = vld [vmem:[#allocation13 + $0x648] sm:$0xff]  ;;  %v5112_v7 = vld [vmem:[#allocation13 + $0x6b0] sm:$0xff]  ;;  %v5119_v63 = vld [vmem:[#allocation13 + $0x638] sm:$0xff] }
 0xddd   :  { %3989 = vmatpush.msra.mxu2 %v5073_v60  ;;  %4015 = vmatpush.msrb.mxu1 %v5074_v20  ;;  %v3740_v13 = vmax.f32 %v3575_v35, 0.0  ;;  %v5120_v10 = vld [vmem:[#allocation13 + $0x6a0] sm:$0xff]  ;;  %v5121_v27 = vld [vmem:[#allocation13 + $0x738] sm:$0xff]  ;;  %v5125_v35 = vld [vmem:[#allocation13 + $0x730] sm:$0xff] }
 0xdde   :  { %4046 = vmatpush.msra.mxu0 %v5075_v19  ;;  %3944 = vmatpush.msra.mxu3 %v5077_v23  ;;  %v3742_v25 = vmax.f32 %v3621_v0, 0.0  ;;  %v5115_v19 = vld [vmem:[#allocation13 + $0x640] sm:$0xff]  ;;  %v5126_v0 = vld [vmem:[#allocation13 + $0x798] sm:$0xff] }
 0xddf   :  { %4092 = vmatpush.msra.mxu1 %v5076_v56  ;;  %3970 = vmatmul.f32.vlgmr.msrb.gmra.mxu0 %v3724_v29  ;;  %v5109_v29 = vld [vmem:[#allocation13 + $0x750] sm:$0xff]  ;;  %v5116_v56 = vld [vmem:[#allocation13 + $0x6a8] sm:$0xff]  ;;  %v5117_v23 = vld [vmem:[#allocation13 + $0x740] sm:$0xff] }
 0xde0   :  { %3990 = vmatpush.msra.mxu2 %v5078_v28  ;;  %4016 = vmatmul.f32.vlgmr.msrb.gmra.mxu1 %v3726_v1  ;;  %v3551_v37 = vpop.f32.mrf.mxu3  ;;  %v5110_v1 = vld [vmem:[#allocation13 + $0x7b8] sm:$0xff]  ;;  %v5122_v28 = vld [vmem:[#allocation13 + $0x7a0] sm:$0xff] }
 0xde1   :  { %4047 = vmatpush.msra.mxu0 %v5079_v22  ;;  %4093 = vmatpush.msra.mxu1 %v5080_v30  ;;  %v3597_v34 = vpop.f32.mrf.mxu2  ;;  %v3552_v62 = vadd.f32 %v3551_v37, %v5829_v11  ;;  %v5102_v11 = vld [vmem:[#allocation13 + $0x7c8] sm:$0xff]  ;;  %v5123_v22 = vld [vmem:[#allocation13 + $0x630] sm:$0xff]  ;;  %v5124_v30 = vld [vmem:[#allocation13 + $0x698] sm:$0xff] }
 0xde2   :  { %3945 = vmatpush.msra.mxu3 %v5081_v33  ;;  %3991 = vmatpush.msra.mxu2 %v5082_v39  ;;  %v3598_v53 = vadd.f32 %v3597_v34, %v5832_v12  ;;  %v5103_v12 = vld [vmem:[#allocation13 + $0x658] sm:$0xff] }
 0xde3   :  { %4048 = vmatpush.msra.mxu0 %v5083_v47  ;;  %4094 = vmatpush.msra.mxu1 %v5084_v51  ;;  %v3739_v4 = vmax.f32 %v3552_v62, 0.0  ;;  %v5127_v47 = vld [vmem:[#allocation13 + $0x628] sm:$0xff]  ;;  %v5128_v51 = vld [vmem:[#allocation13 + $0x690] sm:$0xff]  ;;  %v5137_v62 = vld [vmem:[#allocation13 + $0x718] sm:$0xff] }
 0xde4   :  { %3946 = vmatpush.msra.mxu3 %v5085_v38  ;;  %3992 = vmatpush.msra.mxu2 %v5086_v46  ;;  %v3741_v61 = vmax.f32 %v3598_v53, 0.0  ;;  %v5129_v38 = vld [vmem:[#allocation13 + $0x728] sm:$0xff]  ;;  %v5130_v46 = vld [vmem:[#allocation13 + $0x790] sm:$0xff]  ;;  %v5138_v53 = vld [vmem:[#allocation13 + $0x780] sm:$0xff] }
 0xde5   :  { %4049 = vmatpush.msra.mxu0 %v5088_v54  ;;  %4095 = vmatpush.msra.mxu1 %v5090_v41  ;;  %v5134_v41 = vld [vmem:[#allocation13 + $0x788] sm:$0xff] }
 0xde6   :  { %4023 = vmatpush.msrb.mxu3 %v5087_v8  ;;  %4069 = vmatpush.msrb.mxu2 %v5089_v55  ;;  %v5133_v55 = vld [vmem:[#allocation13 + $0x720] sm:$0xff] }
 0xde7   :  { %3947 = vmatmul.f32.vlgmr.msra.gmra.mxu3 %v3723_v2  ;;  %3993 = vmatmul.f32.vlgmr.msra.gmra.mxu2 %v3725_v40 }
 0xde8   :  { %4024 = vmatpush.msrb.mxu3 %v5091_v32  ;;  %4050 = vmatpush.msra.mxu0 %v5092_v57  ;;  %v5135_v32 = vld [vmem:[#allocation13 + $0x618] sm:$0xff]  ;;  %v5136_v57 = vld [vmem:[#allocation13 + $0x680] sm:$0xff] }
 0xde9   :  { %4070 = vmatpush.msrb.mxu2 %v5093_v26  ;;  %4096 = vmatpush.msra.mxu1 %v5094_v50 }
 0xdea   :  { %3973 = vmatmul.f32.gmra.mxu0 %v3740_v13  ;;  %4019 = vmatmul.f32.gmra.mxu1 %v3742_v25  ;;  %v5131_v13 = vld [vmem:[#allocation13 + $0x620] sm:$0xff]  ;;  %v5132_v25 = vld [vmem:[#allocation13 + $0x688] sm:$0xff] }
 0xdeb   :  { %4025 = vmatpush.msrb.mxu3 %v5095_v52  ;;  %4051 = vmatpush.msra.mxu0 %v5096_v6 }
 0xdec   :  { %4071 = vmatpush.msrb.mxu2 %v5097_v3  ;;  %4097 = vmatpush.msra.mxu1 %v5098_v24  ;;  %v5139_v3 = vld [vmem:[#allocation13 + $0x610] sm:$0xff] }
 0xded   :  { %4026 = vmatpush.msrb.mxu3 %v5099_v45  ;;  %4052 = vmatpush.msra.mxu0 %v5100_v49  ;;  %v5140_v24 = vld [vmem:[#allocation13 + $0x710] sm:$0xff]  ;;  %v5141_v45 = vld [vmem:[#allocation13 + $0x608] sm:$0xff] }
 0xdee   :  { %4072 = vmatpush.msrb.mxu2 %v5101_v21  ;;  %4098 = vmatpush.msra.mxu1 %v5102_v11  ;;  %v5142_v49 = vld [vmem:[#allocation13 + $0x708] sm:$0xff] }
 0xdef   :  { %4027 = vmatpush.msrb.mxu3 %v5103_v12  ;;  %4053 = vmatpush.msra.mxu0 %v5104_v5 }
 0xdf0   :  { %4073 = vmatpush.msrb.mxu2 %v5105_v18  ;;  %4099 = vmatpush.msra.mxu1 %v5106_v16  ;;  %v5143_v18 = vld [vmem:[#allocation13 + $0x600] sm:$0xff] }
 0xdf1   :  { %3950 = vmatmul.f32.gmra.mxu3 %v3739_v4  ;;  %3996 = vmatmul.f32.gmra.mxu2 %v3741_v61  ;;  %v5144_v16 = vld [vmem:[#allocation13 + $0x700] sm:$0xff] }
 0xdf2   :  { %4028 = vmatpush.msrb.mxu3 %v5107_v9  ;;  %4054 = vmatpush.msra.mxu0 %v5108_v59  ;;  %v3663_v60 = vpop.f32.mrf.mxu0 }
 0xdf3   :  { %4074 = vmatpush.msrb.mxu2 %v5109_v29  ;;  %4100 = vmatpush.msra.mxu1 %v5110_v1  ;;  %v3709_v20 = vpop.f32.mrf.mxu1  ;;  %v3664_v33 = vadd.f32 %v3663_v60, %v5841_v58 }
 0xdf4   :  { %4029 = vmatpush.msrb.mxu3 %v5111_v15  ;;  %4055 = vmatpush.msra.mxu0 %v5112_v7  ;;  %v3710_v39 = vadd.f32 %v3709_v20, %v5844_v43 }
 0xdf5   :  { %4075 = vmatpush.msrb.mxu2 %v5113_v48  ;;  %4101 = vmatpush.msra.mxu1 %v5114_v14  ;;  %v3728_v8 = vmax.f32 %v3664_v33, 0.0 }
 0xdf6   :  { %4030 = vmatpush.msrb.mxu3 %v5115_v19  ;;  %4056 = vmatpush.msra.mxu0 %v5116_v56  ;;  %v3730_v54 = vmax.f32 %v3710_v39, 0.0 }
 0xdf7   :  { %4076 = vmatpush.msrb.mxu2 %v5117_v23  ;;  %4102 = vmatpush.msra.mxu1 %v5118_v31 }
 0xdf8   :  { %4031 = vmatpush.msrb.mxu3 %v5119_v63  ;;  %4057 = vmatpush.msra.mxu0 %v5120_v10  ;;  %v3640_v2 = vpop.f32.mrf.mxu3 }
 0xdf9   :  { %4077 = vmatpush.msrb.mxu2 %v5121_v27  ;;  %4103 = vmatpush.msra.mxu1 %v5122_v28  ;;  %v3686_v40 = vpop.f32.mrf.mxu2  ;;  %v3641_v26 = vadd.f32 %v3640_v2, %v5849_v42 }
 0xdfa   :  { %4032 = vmatpush.msrb.mxu3 %v5123_v22  ;;  %4058 = vmatpush.msra.mxu0 %v5124_v30  ;;  %v3666_v37 = vpop.f32.mrf.mxu0  ;;  %v3687_v50 = vadd.f32 %v3686_v40, %v5852_v36 }
 0xdfb   :  { %4078 = vmatpush.msrb.mxu2 %v5125_v35  ;;  %4104 = vmatpush.msra.mxu1 %v5126_v0  ;;  %v3712_v34 = vpop.f32.mrf.mxu1  ;;  %v3667_v52 = vadd.f32 %v3666_v37, %v5841_v58  ;;  %v3727_v4 = vmax.f32 %v3641_v26, 0.0 }
 0xdfc   :  { %4033 = vmatpush.msrb.mxu3 %v5127_v47  ;;  %4059 = vmatpush.msra.mxu0 %v5128_v51  ;;  %v3713_v6 = vadd.f32 %v3712_v34, %v5844_v43  ;;  %v3729_v61 = vmax.f32 %v3687_v50, 0.0 }
 0xdfd   :  { %4079 = vmatpush.msrb.mxu2 %v5129_v38  ;;  %4105 = vmatpush.msra.mxu1 %v5130_v46  ;;  %v3744_v12 = vmax.f32 %v3667_v52, 0.0 }
 0xdfe   :  { %4034 = vmatpush.msrb.mxu3 %v5131_v13  ;;  %4060 = vmatpush.msra.mxu0 %v5132_v25  ;;  %v3746_v5 = vmax.f32 %v3713_v6, 0.0 }
 0xdff   :  { %4080 = vmatpush.msrb.mxu2 %v5133_v55  ;;  %4106 = vmatpush.msra.mxu1 %v5134_v41 }
 0xe00   :  { %4035 = vmatpush.msrb.mxu3 %v5135_v32  ;;  %4061 = vmatpush.msra.mxu0 %v5136_v57  ;;  %v3643_v21 = vpop.f32.mrf.mxu3 }
 0xe01   :  { %4081 = vmatpush.msrb.mxu2 %v5137_v62  ;;  %4107 = vmatpush.msra.mxu1 %v5138_v53  ;;  %v3689_v11 = vpop.f32.mrf.mxu2  ;;  %v3644_v58 = vadd.f32 %v3643_v21, %v5849_v42  ;;  %v5145_v42 = vld [vmem:[%s6097_s10] ss:$0 sm:$0xff] }
 0xe02   :  { %4062 = vmatmul.f32.vlgmr.msra.gmra.mxu0 %v3728_v8  ;;  %4108 = vmatmul.f32.vlgmr.msra.gmra.mxu1 %v3730_v54  ;;  %v3690_v43 = vadd.f32 %v3689_v11, %v5852_v36 }
 0xe03   :  { %4036 = vmatpush.msrb.mxu3 %v5139_v3  ;;  %4082 = vmatpush.msrb.mxu2 %v5140_v24  ;;  %v3743_v9 = vmax.f32 %v3644_v58, 0.0 }
 0xe04   :  { %v3745_v59 = vmax.f32 %v3690_v43, 0.0 }
 0xe05   :  { %4037 = vmatpush.msrb.mxu3 %v5141_v45  ;;  %4083 = vmatpush.msrb.mxu2 %v5142_v49 }
 0xe07   :  { %4038 = vmatpush.msrb.mxu3 %v5143_v18  ;;  %4084 = vmatpush.msrb.mxu2 %v5144_v16 }
 0xe08   :  { %4039 = vmatmul.f32.vlgmr.msrb.gmra.mxu3 %v3727_v4  ;;  %4085 = vmatmul.f32.vlgmr.msrb.gmra.mxu2 %v3729_v61 }
 0xe0a   :  { %4065 = vmatmul.f32.gmra.mxu0 %v3744_v12  ;;  %4111 = vmatmul.f32.gmra.mxu1 %v3746_v5 }
 0xe10   :  { %4042 = vmatmul.f32.gmra.mxu3 %v3743_v9  ;;  %4088 = vmatmul.f32.gmra.mxu2 %v3745_v59 }
 0xe31   :  { %v3787_v29 = vpop.f32.mrf.mxu0  ;;  %v3833_v7 = vpop.f32.mrf.mxu1 }
 0xe3d   :  { %v3790_v48 = vpop.f32.mrf.mxu0  ;;  %v3836_v20 = vpop.f32.mrf.mxu1 }
 0xe3f   :  { %v3764_v1 = vpop.f32.mrf.mxu3  ;;  %v3810_v15 = vpop.f32.mrf.mxu2 }
 0xe40   :  { %v3765_v19 = vadd.f32 %v5145_v42, %v3764_v1 }
 0xe42   :  { %v3788_v23 = vadd.f32 %v3787_v29, %v3765_v19 }
 0xe44   :  { %v3811_v10 = vadd.f32 %v3810_v15, %v3788_v23 }
 0xe46   :  { %v3834_v22 = vadd.f32 %v3833_v7, %v3811_v10 }
 0xe47   :  { %v3879_v36 = vpop.f32.mrf.mxu0  ;;  %v3925_v63 = vpop.f32.mrf.mxu1 }
 0xe4a   :  { %v3767_v14 = vpop.f32.mrf.mxu3  ;;  %v3813_v60 = vpop.f32.mrf.mxu2 }
 0xe4b   :  { %v3768_v27 = vadd.f32 %v5145_v42, %v3767_v14 }
 0xe4d   :  { %v3791_v28 = vadd.f32 %v3790_v48, %v3768_v27  ;;  %v4204_v27 = vld [vmem:[#allocation14 + $0x78] sm:$0xff] }
 0xe4e   :  { %4209 = vmatpush.msrb.mxu0 %v4204_v27 }
 0xe4f   :  { %v3814_v0 = vadd.f32 %v3813_v60, %v3791_v28 }
 0xe51   :  { %v3882_v30 = vpop.f32.mrf.mxu0  ;;  %v3928_v2 = vpop.f32.mrf.mxu1  ;;  %v3837_v47 = vadd.f32 %v3836_v20, %v3814_v0  ;;  %v4200_v0 = vld [vmem:[#allocation14 + $0x58] sm:$0xff] }
 0xe54   :  { %v3856_v56 = vpop.f32.mrf.mxu3  ;;  %v3902_v31 = vpop.f32.mrf.mxu2 }
 0xe55   :  { %v3857_v39 = vadd.f32 %v3856_v56, %v3834_v22 }
 0xe57   :  { %v3880_v40 = vadd.f32 %v3879_v36, %v3857_v39  ;;  %v4201_v39 = vld [vmem:[#allocation14 + $0x60] sm:$0xff] }
 0xe59   :  { %v3903_v51 = vadd.f32 %v3902_v31, %v3880_v40 }
 0xe5b   :  { %v3926_v25 = vadd.f32 %v3925_v63, %v3903_v51 }
 0xe5c   :  { %v3971_v46 = vpop.f32.mrf.mxu0 }
 0xe5d   :  { %v4017_v55 = vpop.f32.mrf.mxu1 }
 0xe5e   :  { %v3859_v33 = vpop.f32.mrf.mxu3  ;;  %v3905_v35 = vpop.f32.mrf.mxu2 }
 0xe5f   :  { %v3860_v38 = vadd.f32 %v3859_v33, %v3837_v47  ;;  %v4199_v47 = vld [vmem:[#allocation14 + $0x50] sm:$0xff] }
 0xe61   :  { %v3883_v13 = vadd.f32 %v3882_v30, %v3860_v38  ;;  %v4202_v30 = vld [vmem:[#allocation14 + $0x68] sm:$0xff] }
 0xe62   :  { %v4198_v38 = vld [vmem:[#allocation14 + $0x48] sm:$0xff] }
 0xe63   :  { %v3906_v37 = vadd.f32 %v3905_v35, %v3883_v13 }
 0xe65   :  { %v3929_v26 = vadd.f32 %v3928_v2, %v3906_v37 }
 0xe67   :  { %v3974_v32 = vpop.f32.mrf.mxu0  ;;  %v4020_v52 = vpop.f32.mrf.mxu1 }
 0xe6a   :  { %v3948_v8 = vpop.f32.mrf.mxu3  ;;  %v3994_v54 = vpop.f32.mrf.mxu2 }
 0xe6b   :  { %v3949_v41 = vadd.f32 %v3948_v8, %v3926_v25  ;;  %v4197_v8 = vld [vmem:[#allocation14 + $0x40] sm:$0xff] }
 0xe6d   :  { %v3972_v34 = vadd.f32 %v3971_v46, %v3949_v41 }
 0xe6f   :  { %v3995_v62 = vadd.f32 %v3994_v54, %v3972_v34  ;;  %v4195_v34 = vld [vmem:[#allocation14 + $0x30] sm:$0xff] }
 0xe71   :  { %v4018_v3 = vadd.f32 %v4017_v55, %v3995_v62  ;;  %v4196_v55 = vld [vmem:[#allocation14 + $0x38] sm:$0xff] }
 0xe74   :  { %v3951_v57 = vpop.f32.mrf.mxu3  ;;  %v3997_v50 = vpop.f32.mrf.mxu2 }
 0xe75   :  { %v3952_v53 = vadd.f32 %v3951_v57, %v3929_v26 }
 0xe77   :  { %v3975_v6 = vadd.f32 %v3974_v32, %v3952_v53 }
 0xe79   :  { %v3998_v49 = vadd.f32 %v3997_v50, %v3975_v6  ;;  %v4194_v50 = vld [vmem:[#allocation14 + $0x28] sm:$0xff]  ;;  %v5146_v6 = vld [vmem:[%s6098_s11] ss:$0 sm:$0xff] }
 0xe7b   :  { %v4021_v18 = vadd.f32 %v4020_v52, %v3998_v49  ;;  %v4193_v52 = vld [vmem:[#allocation14 + $0x20] sm:$0xff] }
 0xe7f   :  { %v4063_v24 = vpop.f32.mrf.mxu0  ;;  %v4109_v11 = vpop.f32.mrf.mxu1 }
 0xe87   :  { %v4066_v9 = vpop.f32.mrf.mxu0  ;;  %v4112_v15 = vpop.f32.mrf.mxu1 }
 0xe8b   :  { %v4040_v4 = vpop.f32.mrf.mxu3  ;;  %v4086_v45 = vpop.f32.mrf.mxu2 }
 0xe8c   :  { %v4041_v61 = vadd.f32 %v4040_v4, %v4018_v3  ;;  %v4192_v4 = vld [vmem:[#allocation14 + $0x18] sm:$0xff] }
 0xe8e   :  { %v4064_v21 = vadd.f32 %v4063_v24, %v4041_v61 }
 0xe90   :  { %v4087_v12 = vadd.f32 %v4086_v45, %v4064_v21  ;;  %v5147_v45 = vld [vmem:[%s6099_s12] ss:$0 sm:$0xff] }
 0xe92   :  { %v4110_v5 = vadd.f32 %v4109_v11, %v4087_v12  ;;  %v4191_v11 = vld [vmem:[#allocation14 + $0x10] sm:$0xff] }
 0xe93   :  { %v4043_v16 = vpop.f32.mrf.mxu3  ;;  %v4089_v29 = vpop.f32.mrf.mxu2 }
 0xe94   :  { %v4044_v58 = vadd.f32 %v4043_v16, %v4021_v18  ;;  %v6059_v43 = vadd.f32 %v4110_v5, %v5987_v44  ;;  %v4190_v5 = vld [vmem:[#allocation14 + $0x8] sm:$0xff] }
 0xe96   :  { %v4067_v59 = vadd.f32 %v4066_v9, %v4044_v58  ;;  %4117 = vadd.xlane.f32.xlu0 %v6059_v43  ;;  %v4123_v60 = vmul.f32 %v6059_v43, %v6059_v43  ;;  %v4165_v58 = vld [vmem:[%s6103_s16] sm:$0x3] }
 0xe98   :  { %v4090_v1 = vadd.f32 %v4089_v29, %v4067_v59  ;;  %v4289_v59 = vld [vmem:[%s6101_s14] ss:$0 sm:$0xff] }
 0xe9a   :  { %v4113_v7 = vadd.f32 %v4112_v15, %v4090_v1 }
 0xe9c   :  { %v4116_v48 = vadd.f32 %v4113_v7, %v5993_v17  ;;  %v4203_v17 = vld [vmem:[#allocation14 + $0x70] sm:$0xff] }
 0xe9d   :  { %4210 = vmatpush.msrb.mxu0 %v4203_v17 }
 0xe9e   :  { %4119 = vadd.xlane.f32.xlu2 %v4116_v48  ;;  %v4124_v14 = vmul.f32 %v4116_v48, %v4116_v48 }
 0xe9f   :  { %4211 = vmatpush.msrb.mxu0 %v4202_v30 }
 0xea0   :  { %4127 = vadd.xlane.f32.xlu1 %v4124_v14 }
 0xea1   :  { %4212 = vmatpush.msrb.mxu0 %v4201_v39 }
 0xea3   :  { %4213 = vmatpush.msrb.mxu0 %v4200_v0 }
 0xea5   :  { %4214 = vmatpush.msrb.mxu0 %v4199_v47 }
 0xea6   :  { %4125 = vadd.xlane.f32.xlu2 %v4123_v60 }
 0xea7   :  { %4215 = vmatpush.msrb.mxu0 %v4198_v38 }
 0xea9   :  { %4216 = vmatpush.msrb.mxu0 %v4197_v8 }
 0xeab   :  { %4217 = vmatpush.msrb.mxu0 %v4196_v55 }
 0xead   :  { %4218 = vmatpush.msrb.mxu0 %v4195_v34 }
 0xeaf   :  { %4219 = vmatpush.msrb.mxu0 %v4194_v50 }
 0xeb1   :  { %4220 = vmatpush.msrb.mxu0 %v4193_v52 }
 0xeb3   :  { %4221 = vmatpush.msrb.mxu0 %v4192_v4 }
 0xeb5   :  { %4222 = vmatpush.msrb.mxu0 %v4191_v11 }
 0xeb7   :  { %4223 = vmatpush.msrb.mxu0 %v4190_v5 }
 0xf09   :  { %v4118_v42 = vpop.xlane.xlu0 %4117 }
 0xf0a   :  { %v6065_v23 = vmul.f32 0.03125, %v4118_v42 }
 0xf0c   :  { %v4131_v28 = vmul.f32 %v6065_v23, %v6065_v23  ;;  %v4135_v61 = vsub.f32 %v6059_v43, %v6065_v23  ;;  %v4189_v43 = vld [vmem:[#allocation14] sm:$0xff] }
 0xf0d   :  { %4224 = vmatpush.msrb.mxu0 %v4189_v43 }
 0xf11   :  { %v4120_v20 = vpop.xlane.xlu2 %4119 }
 0xf12   :  { %v4122_v44 = vmul.f32 0.03125, %v4120_v20 }
 0xf13   :  { %v4128_v19 = vpop.xlane.xlu1 %4127 }
 0xf14   :  { %v4132_v36 = vmul.f32 %v4122_v44, %v4122_v44  ;;  %v4130_v56 = vmul.f32 0.03125, %v4128_v19  ;;  %v4136_v32 = vsub.f32 %v4116_v48, %v4122_v44 }
 0xf16   :  { %v4134_v31 = vsub.f32 %v4130_v56, %v4132_v36 }
 0xf18   :  { %v4138_v63 = vadd.f32 1e-05, %v4134_v31 }
 0xf19   :  { %v4126_v10 = vpop.xlane.xlu2 %4125 }
 0xf1a   :  { %4366 = vrsqrt.f32 %v4138_v63  ;;  %v4129_v22 = vmul.f32 0.03125, %v4126_v10  ;;  %vm4155_vm5 = vweird.f32 %v4138_v63 }
 0xf1c   :  { %v4133_v33 = vsub.f32 %v4129_v22, %v4131_v28 }
 0xf1e   :  { %v4137_v35 = vadd.f32 1e-05, %v4133_v33 }
 0xf20   :  { %v4367_v2 = vpop.eup %4366  ;;  %4368 = vrsqrt.f32 %v4137_v35  ;;  %vm4145_vm8 = vweird.f32 %v4137_v35 }
 0xf21   :  { %v4150_v40 = vmul.f32 %v4367_v2, %v4138_v63  ;;  %vm4156_vm4 = vweird.f32 %v4367_v2 }
 0xf22   :  { %vm4157_vm6 = vmor %vm4155_vm5, %vm4156_vm4 }
 0xf23   :  { %v4151_v51 = vmul.f32 %v4367_v2, %v4150_v40 }
 0xf25   :  { %v4152_v46 = vmul.f32 0.5, %v4151_v51 }
 0xf26   :  { %v4369_v54 = vpop.eup %4368 }
 0xf27   :  { %v4153_v13 = vsub.f32 1.5, %v4152_v46  ;;  %v4140_v25 = vmul.f32 %v4369_v54, %v4137_v35  ;;  %vm4146_vm7 = vweird.f32 %v4369_v54 }
 0xf28   :  { %vm4147_vm9 = vmor %vm4145_vm8, %vm4146_vm7 }
 0xf29   :  { %v4154_v41 = vmul.f32 %v4367_v2, %v4153_v13  ;;  %v4141_v37 = vmul.f32 %v4369_v54, %v4140_v25 }
 0xf2b   :  { %v4158_v57 = vsel %vm4157_vm6, %v4367_v2, %v4154_v41  ;;  %v4142_v26 = vmul.f32 0.5, %v4141_v37 }
 0xf2c   :  { %v4160_v62 = vmul.f32 %v4158_v57, %v4136_v32 }
 0xf2d   :  { %v4143_v53 = vsub.f32 1.5, %v4142_v26 }
 0xf2e   :  { %v4162_v3 = vmul.f32 %v5146_v6, %v4160_v62 }
 0xf2f   :  { %v4144_v24 = vmul.f32 %v4369_v54, %v4143_v53 }
 0xf30   :  { %v4164_v49 = vadd.f32 %v5147_v45, %v4162_v3 }
 0xf31   :  { %v4148_v21 = vsel %vm4147_vm9, %v4369_v54, %v4144_v24 }
 0xf32   :  { %4183 = vmatpush.msra.mxu3 %v4164_v49  ;;  %v4159_v12 = vmul.f32 %v4148_v21, %v4135_v61 }
 0xf34   :  { %v4161_v18 = vmul.f32 %v5146_v6, %v4159_v12 }
 0xf36   :  { %v4163_v16 = vadd.f32 %v5147_v45, %v4161_v18 }
 0xf38   :  { %4184 = vmatpush.msra.mxu3 %v4163_v16 }
 0xf39   :  { %4267 = vmatmul.msk.f32.vlgmr.msra.gmra.mxu3 %vm1307_vm0, %v4165_v58 }
 0xfbc   :  { %v4186_v9 = vpop.f32.mrf.mxu3 }
 0xfbd   :  { %4225 = vmatmul.f32.vlgmr.msrb.gmra.mxu0 %v4186_v9 }
0x103a   :  { %v4226_v29 = vpop.f32.mrf.mxu0 }
0x103b   :  { %v4227_v1 = vadd.f32 %v4289_v59, %v4226_v29 }
0x103d   :  { %4229 = vst [vmem:[#allocation17] sm:$0x3] %v4227_v1 }
0x103e   :  { %4240 = dma.vmem_to_hbm [thread:$0]  %s4236_s15, 32, %s4238_s24, [#allocation4]  }
0x103f   :  { %5398 = dma.done.wait [#allocation4], 32  }
0x1040   :  { %5399 = vsyncadd [#allocation4], 4294967264 }
0x1041   :  { %4245 = vsyncpa [#allocation3], 1 }
0x1042   :  { %4246 = vsyncpa [#allocation6], 1 }
0x1043   :  { %4247 = vsyncpa [#allocation9], 1 }
0x1044   :  { %4248 = vsyncpa [#allocation12], 1 }
0x1045   :  { %4249 = vsyncpa [#allocation15], 1 }
0x1046   :  { %4250 = vsyncpa [#allocation4], 1 }

</bundles_post_ra>
